<compile_context>
chip_gen: v7x
topology: tpu7x:2x2x1
jax: 0.10.0
libtpu: 0.0.40
codegen_flags: <defaults>
</compile_context>

<pallas_src>
import functools
import math

import jax
import jax.numpy as jnp
from jax.experimental import pallas as pl
from jax.experimental.pallas import tpu as pltpu

LN_EPS = 1e-5  # PyTorch nn.LayerNorm default


# ------------------------------ fused kernel ------------------------------

def _vit2d_kernel(
    tok_ref, pe_enc_ref, pe_dec_ref,
    enc_w_ref, enc_b_ref, enc_g_ref, enc_be_ref,
    ln1g_ref, ln1b_ref, wqkv_ref, wo_ref, bo_ref,
    ln2g_ref, ln2b_ref, w1_ref, b1_ref, w2_ref, b2_ref,
    d1w_ref, d1b_ref, d1g_ref, d1be_ref,
    d2w_ref, d2b_ref, d2g_ref, d2be_ref,
    o_ref,
    *, b, n, heads, dim_head, depth):
    inner = heads * dim_head
    scale = 1.0 / math.sqrt(dim_head)   # SDPA default == dim_head ** -0.5

    def layernorm(x, g, bias):
        mu = jnp.mean(x, axis=-1, keepdims=True)
        var = jnp.mean(jnp.square(x - mu), axis=-1, keepdims=True)
        return (x - mu) * jax.lax.rsqrt(var + LN_EPS) * g + bias

    def gelu(x):  # exact erf GELU == torch.nn.GELU(approximate='none')
        return 0.5 * x * (1.0 + jax.lax.erf(x * (1.0 / math.sqrt(2.0))))

    def attention(qkv):
        # qkv: (b*n, 3*inner) with columns ordered [q | k | v], heads contiguous
        # inside each — identical to 'b n (h d)' head packing in the reference.
        batch_outs = []
        for bb in range(b):                       # static unroll; all in VMEM
            r0 = bb * n
            qkv_b = qkv[r0:r0 + n, :]             # (n, 3*inner)
            head_outs = []
            for hh in range(heads):
                c0 = hh * dim_head
                q = qkv_b[:, c0:c0 + dim_head] * scale        # fold scale into q
                k = qkv_b[:, inner + c0:inner + c0 + dim_head]
                v = qkv_b[:, 2 * inner + c0:2 * inner + c0 + dim_head]
                s = jax.lax.dot_general(q, k, (((1,), (1,)), ((), ())),
                                        preferred_element_type=jnp.float32)
                s = s - jnp.max(s, axis=-1, keepdims=True)
                p = jnp.exp(s)
                p = p * pl.reciprocal(jnp.sum(p, axis=-1, keepdims=True),
                                      approx=True)
                head_outs.append(
                    jnp.dot(p, v, preferred_element_type=jnp.float32))
            batch_outs.append(jnp.concatenate(head_outs, axis=-1))  # (n, inner)
        return jnp.concatenate(batch_outs, axis=0)                  # (b*n, inner)

    def block(x, l):
        # --- Attention sub-block (pre-norm) ---
        xn = layernorm(x, ln1g_ref[pl.ds(l, 1), :], ln1b_ref[pl.ds(l, 1), :])
        qkv = jnp.dot(xn, wqkv_ref[l], preferred_element_type=jnp.float32)
        o = attention(qkv)
        o = jnp.dot(o, wo_ref[l], preferred_element_type=jnp.float32) \
            + bo_ref[pl.ds(l, 1), :]
        x = x + o
        # --- FeedForward sub-block (pre-norm) ---
        xn = layernorm(x, ln2g_ref[pl.ds(l, 1), :], ln2b_ref[pl.ds(l, 1), :])
        h = gelu(jnp.dot(xn, w1_ref[l], preferred_element_type=jnp.float32)
                 + b1_ref[pl.ds(l, 1), :])
        x = x + jnp.dot(h, w2_ref[l], preferred_element_type=jnp.float32) \
            + b2_ref[pl.ds(l, 1), :]
        return x

    # ---------------- encode ----------------
    t = tok_ref[...].astype(jnp.float32)                      # (b*n, input_dim)
    t = jnp.dot(t, enc_w_ref[...], preferred_element_type=jnp.float32) \
        + enc_b_ref[...]                                       # encoder_linear
    t = layernorm(t, enc_g_ref[...], enc_be_ref[...])          # encoder_layer_norm
    t = t + jnp.concatenate([pe_enc_ref[...]] * b, axis=0)     # pos_embedding_enc
    # token_dropout / registers / codebook are identity with the defaults used
    for l in range(depth):                                     # encoder layers
        t = block(t, l)

    # ---------------- decode ----------------
    t = t + jnp.concatenate([pe_dec_ref[...]] * b, axis=0)     # pos_embedding_dec
    for l in range(depth, 2 * depth):                          # decoder layers
        t = block(t, l)
    t = jnp.dot(t, d1w_ref[...], preferred_element_type=jnp.float32) \
        + d1b_ref[...]                                         # decoder_linear_1
    t = layernorm(t, d1g_ref[...], d1be_ref[...])              # decoder_layer_norm_1
    t = jnp.dot(t, d2w_ref[...], preferred_element_type=jnp.float32) \
        + d2b_ref[...]                                         # decoder_linear_2
    t = layernorm(t, d2g_ref[...], d2be_ref[...])              # decoder_layer_norm_2
    o_ref[...] = t


def _fused_vit2d(tokens, params, cfg, *, b, n, input_dim):
    bn = b * n
    inputs = [
        tokens,
        params["pe_enc"], params["pe_dec"],
        params["enc_w"], params["enc_b"], params["enc_ln_g"], params["enc_ln_b"],
        params["ln1_g"], params["ln1_b"], params["w_qkv"],
        params["w_o"], params["b_o"],
        params["ln2_g"], params["ln2_b"], params["w1"], params["b1"],
        params["w2"], params["b2"],
        params["dec1_w"], params["dec1_b"], params["dec_ln1_g"], params["dec_ln1_b"],
        params["dec2_w"], params["dec2_b"], params["dec_ln2_g"], params["dec_ln2_b"],
    ]

    def full_spec(a):
        # whole array as a single block (last-two-dims == full extents is legal)
        return pl.BlockSpec(a.shape, lambda i, _nd=a.ndim: (0,) * _nd)

    kern = functools.partial(_vit2d_kernel, b=b, n=n, heads=cfg["heads"],
                             dim_head=cfg["dim_head"], depth=cfg["depth"])
    return pl.pallas_call(
        kern,
        out_shape=jax.ShapeDtypeStruct((bn, input_dim), jnp.float32),
        grid=(1,),
        in_specs=[full_spec(a) for a in inputs],
        out_specs=pl.BlockSpec((bn, input_dim), lambda i: (0, 0)),
        compiler_params=pltpu.CompilerParams(
            dimension_semantics=("arbitrary",),
            vmem_limit_bytes=32 * 1024 * 1024),
    )(*inputs)


# ------------------------------ model pieces ---------------------------------

def surface_posemb2d(image_h, image_w, patch_h, patch_w, dim, temperature=10000.0):
    # TODO(synk): SurfacePosEmb2D is not defined in the provided source; this is
    # the standard fixed 2D sin-cos embedding used in wpsml, applied as x + pe.
    h, w = image_h // patch_h, image_w // patch_w
    assert dim % 4 == 0
    y, x = jnp.meshgrid(jnp.arange(h), jnp.arange(w), indexing="ij")
    omega = jnp.arange(dim // 4, dtype=jnp.float32) / (dim // 4 - 1)
    omega = 1.0 / (temperature ** omega)
    y = y.reshape(-1).astype(jnp.float32)[:, None] * omega[None, :]
    x = x.reshape(-1).astype(jnp.float32)[:, None] * omega[None, :]
    pe = jnp.concatenate([jnp.sin(x), jnp.cos(x), jnp.sin(y), jnp.cos(y)], axis=1)
    return pe.astype(jnp.float32)  # (h*w, dim)


def init_params(key, cfg):
    keys = iter(jax.random.split(key, 256))

    def linear(din, dout, bias=True):
        bound = 1.0 / math.sqrt(din)
        w = jax.random.uniform(next(keys), (din, dout), jnp.float32, -bound, bound)
        if bias:
            bvec = jax.random.uniform(next(keys), (dout,), jnp.float32, -bound, bound)
        else:
            bvec = jnp.zeros((dout,), jnp.float32)
        return w, bvec

    dim, heads, dim_head, mlp_dim, depth = (cfg["dim"], cfg["heads"],
                                            cfg["dim_head"], cfg["mlp_dim"],
                                            cfg["depth"])
    inner = heads * dim_head
    input_dim = (cfg["channels"] * cfg["frames"] + cfg["surface_channels"]) \
        * cfg["patch_h"] * cfg["patch_w"]
    L = 2 * depth   # layers [0, depth) = encoder, [depth, 2*depth) = decoder

    wqkv, wo, bo, w1, b1, w2, b2 = [], [], [], [], [], [], []
    for _ in range(L):
        wq, _ = linear(dim, 3 * inner, bias=False)
        o_w, o_b = linear(inner, dim)
        f1_w, f1_b = linear(dim, mlp_dim)
        f2_w, f2_b = linear(mlp_dim, dim)
        wqkv.append(wq); wo.append(o_w); bo.append(o_b)
        w1.append(f1_w); b1.append(f1_b); w2.append(f2_w); b2.append(f2_b)

    enc_w, enc_b = linear(input_dim, dim)
    dec1_w, dec1_b = linear(dim, 4 * dim)
    dec2_w, dec2_b = linear(4 * dim, input_dim)
    pe = surface_posemb2d(cfg["image_h"], cfg["image_w"],
                          cfg["patch_h"], cfg["patch_w"], dim)

    row = lambda v: v.reshape(1, -1)
    return dict(
        # encoder head
        enc_w=enc_w, enc_b=row(enc_b),
        enc_ln_g=jnp.ones((1, dim), jnp.float32),
        enc_ln_b=jnp.zeros((1, dim), jnp.float32),
        # decoder head
        dec1_w=dec1_w, dec1_b=row(dec1_b),
        dec_ln1_g=jnp.ones((1, 4 * dim), jnp.float32),
        dec_ln1_b=jnp.zeros((1, 4 * dim), jnp.float32),
        dec2_w=dec2_w, dec2_b=row(dec2_b),
        dec_ln2_g=jnp.ones((1, input_dim), jnp.float32),
        dec_ln2_b=jnp.zeros((1, input_dim), jnp.float32),
        # positional embeddings
        pe_enc=pe, pe_dec=pe,
        # stacked transformer layer weights (encoder first, then decoder)
        ln1_g=jnp.ones((L, dim), jnp.float32), ln1_b=jnp.zeros((L, dim), jnp.float32),
        w_qkv=jnp.stack(wqkv), w_o=jnp.stack(wo), b_o=jnp.stack(bo),
        ln2_g=jnp.ones((L, dim), jnp.float32), ln2_b=jnp.zeros((L, dim), jnp.float32),
        w1=jnp.stack(w1), b1=jnp.stack(b1), w2=jnp.stack(w2), b2=jnp.stack(b2),
    )


def vit2d_forward(params, x, cfg):
    b, c, H, W = x.shape
    p1, p2 = cfg["patch_h"], cfg["patch_w"]
    h, w = H // p1, W // p2
    n = h * w
    input_dim = p1 * p2 * c

    # encoder_embed: 'b c (h p1) (w p2) -> b (h w) (p1 p2 c)'  (pure data movement)
    t = x.reshape(b, c, h, p1, w, p2).transpose(0, 2, 4, 3, 5, 1)
    t = t.reshape(b * n, input_dim)

    # entire encode + decode stack in one fused Pallas kernel
    t = _fused_vit2d(t, params, cfg, b=b, n=n, input_dim=input_dim)

    # decoder_rearrange: 'b (h w) (p1 p2 c) -> b c (p1 h) (w p2)'
    # (asymmetric '(p1 h)' ordering matches the module's einops string exactly)
    out = t.reshape(b, h, w, p1, p2, c).transpose(0, 5, 3, 1, 2, 4)
    return out.reshape(b, c, p1 * h, w * p2)


# ------------------------------ main ------------------------------

CFG = dict(
    image_h=16, image_w=16, patch_h=4, patch_w=4,
    frames=1, channels=4, surface_channels=2,
    dim=32, depth=2, heads=4, dim_head=8, mlp_dim=64,
)

if __name__ == "__main__":
    key = jax.random.PRNGKey(0)
    kp, kx = jax.random.split(key)
    params = init_params(kp, CFG)

    c_total = CFG["channels"] * CFG["frames"] + CFG["surface_channels"]  # = 6
    x = jax.random.normal(kx, (2, c_total, CFG["image_h"], CFG["image_w"]),
                          dtype=jnp.float32)

    fwd = jax.jit(lambda p, xx: vit2d_forward(p, xx, CFG))
    y = fwd(params, x)
    jax.block_until_ready(y)
    assert y.shape == x.shape, (y.shape, x.shape)
    print("KERNEL_OK")
</pallas_src>

<mosaic_0001>
module attributes {stable_mosaic.version = 11 : i64} {
  func.func @_vit2d_kernel(%arg0: i32, %arg1: memref<32x96xf32, #tpu.memory_space<vmem>>, %arg2: memref<16x32xf32, #tpu.memory_space<vmem>>, %arg3: memref<16x32xf32, #tpu.memory_space<vmem>>, %arg4: memref<96x32xf32, #tpu.memory_space<vmem>>, %arg5: memref<1x32xf32, #tpu.memory_space<vmem>>, %arg6: memref<1x32xf32, #tpu.memory_space<vmem>>, %arg7: memref<1x32xf32, #tpu.memory_space<vmem>>, %arg8: memref<4x32xf32, #tpu.memory_space<vmem>>, %arg9: memref<4x32xf32, #tpu.memory_space<vmem>>, %arg10: memref<4x32x96xf32, #tpu.memory_space<vmem>>, %arg11: memref<4x32x32xf32, #tpu.memory_space<vmem>>, %arg12: memref<4x32xf32, #tpu.memory_space<vmem>>, %arg13: memref<4x32xf32, #tpu.memory_space<vmem>>, %arg14: memref<4x32xf32, #tpu.memory_space<vmem>>, %arg15: memref<4x32x64xf32, #tpu.memory_space<vmem>>, %arg16: memref<4x64xf32, #tpu.memory_space<vmem>>, %arg17: memref<4x64x32xf32, #tpu.memory_space<vmem>>, %arg18: memref<4x32xf32, #tpu.memory_space<vmem>>, %arg19: memref<32x128xf32, #tpu.memory_space<vmem>>, %arg20: memref<1x128xf32, #tpu.memory_space<vmem>>, %arg21: memref<1x128xf32, #tpu.memory_space<vmem>>, %arg22: memref<1x128xf32, #tpu.memory_space<vmem>>, %arg23: memref<128x96xf32, #tpu.memory_space<vmem>>, %arg24: memref<1x96xf32, #tpu.memory_space<vmem>>, %arg25: memref<1x96xf32, #tpu.memory_space<vmem>>, %arg26: memref<1x96xf32, #tpu.memory_space<vmem>>, %arg27: memref<32x96xf32, #tpu.memory_space<vmem>>) attributes {dimension_semantics = [#tpu.dimension_semantics<arbitrary>], iteration_bounds = array<i64: 1>, scalar_prefetch = 0 : i64, scratch_operands = 0 : i64, tpu.core_type = #tpu.core_type<tc>, window_params = [{pipeline_mode = #tpu.pipeline_mode<synchronous>, transform_indices = @transform_0, window_bounds = array<i64: 32, 96>}, {pipeline_mode = #tpu.pipeline_mode<synchronous>, transform_indices = @transform_1, window_bounds = array<i64: 16, 32>}, {pipeline_mode = #tpu.pipeline_mode<synchronous>, transform_indices = @transform_2, window_bounds = array<i64: 16, 32>}, {pipeline_mode = #tpu.pipeline_mode<synchronous>, transform_indices = @transform_3, window_bounds = array<i64: 96, 32>}, {pipeline_mode = #tpu.pipeline_mode<synchronous>, transform_indices = @transform_4, window_bounds = array<i64: 1, 32>}, {pipeline_mode = #tpu.pipeline_mode<synchronous>, transform_indices = @transform_5, window_bounds = array<i64: 1, 32>}, {pipeline_mode = #tpu.pipeline_mode<synchronous>, transform_indices = @transform_6, window_bounds = array<i64: 1, 32>}, {pipeline_mode = #tpu.pipeline_mode<synchronous>, transform_indices = @transform_7, window_bounds = array<i64: 4, 32>}, {pipeline_mode = #tpu.pipeline_mode<synchronous>, transform_indices = @transform_8, window_bounds = array<i64: 4, 32>}, {pipeline_mode = #tpu.pipeline_mode<synchronous>, transform_indices = @transform_9, window_bounds = array<i64: 4, 32, 96>}, {pipeline_mode = #tpu.pipeline_mode<synchronous>, transform_indices = @transform_10, window_bounds = array<i64: 4, 32, 32>}, {pipeline_mode = #tpu.pipeline_mode<synchronous>, transform_indices = @transform_11, window_bounds = array<i64: 4, 32>}, {pipeline_mode = #tpu.pipeline_mode<synchronous>, transform_indices = @transform_12, window_bounds = array<i64: 4, 32>}, {pipeline_mode = #tpu.pipeline_mode<synchronous>, transform_indices = @transform_13, window_bounds = array<i64: 4, 32>}, {pipeline_mode = #tpu.pipeline_mode<synchronous>, transform_indices = @transform_14, window_bounds = array<i64: 4, 32, 64>}, {pipeline_mode = #tpu.pipeline_mode<synchronous>, transform_indices = @transform_15, window_bounds = array<i64: 4, 64>}, {pipeline_mode = #tpu.pipeline_mode<synchronous>, transform_indices = @transform_16, window_bounds = array<i64: 4, 64, 32>}, {pipeline_mode = #tpu.pipeline_mode<synchronous>, transform_indices = @transform_17, window_bounds = array<i64: 4, 32>}, {pipeline_mode = #tpu.pipeline_mode<synchronous>, transform_indices = @transform_18, window_bounds = array<i64: 32, 128>}, {pipeline_mode = #tpu.pipeline_mode<synchronous>, transform_indices = @transform_19, window_bounds = array<i64: 1, 128>}, {pipeline_mode = #tpu.pipeline_mode<synchronous>, transform_indices = @transform_20, window_bounds = array<i64: 1, 128>}, {pipeline_mode = #tpu.pipeline_mode<synchronous>, transform_indices = @transform_21, window_bounds = array<i64: 1, 128>}, {pipeline_mode = #tpu.pipeline_mode<synchronous>, transform_indices = @transform_22, window_bounds = array<i64: 128, 96>}, {pipeline_mode = #tpu.pipeline_mode<synchronous>, transform_indices = @transform_23, window_bounds = array<i64: 1, 96>}, {pipeline_mode = #tpu.pipeline_mode<synchronous>, transform_indices = @transform_24, window_bounds = array<i64: 1, 96>}, {pipeline_mode = #tpu.pipeline_mode<synchronous>, transform_indices = @transform_25, window_bounds = array<i64: 1, 96>}, {pipeline_mode = #tpu.pipeline_mode<synchronous>, transform_indices = @transform_26, window_bounds = array<i64: 32, 96>}]} {
    %c0 = arith.constant 0 : index
    %c0_0 = arith.constant 0 : index
    %0 = vector.load %arg1[%c0, %c0_0] : memref<32x96xf32, #tpu.memory_space<vmem>>, vector<32x96xf32>
    %c0_1 = arith.constant 0 : index
    %c0_2 = arith.constant 0 : index
    %1 = vector.load %arg4[%c0_1, %c0_2] : memref<96x32xf32, #tpu.memory_space<vmem>>, vector<96x32xf32>
    %cst = arith.constant dense<0.000000e+00> : vector<32x32xf32>
    %2 = tpu.matmul %0, %1, %cst {dimension_numbers = #tpu.dot_dimension_numbers<[1], [0], [0], [1], [0, 0, 1, 1], [], []>} : vector<32x96xf32>, vector<96x32xf32>, vector<32x32xf32> -> vector<32x32xf32>
    %c0_3 = arith.constant 0 : index
    %c0_4 = arith.constant 0 : index
    %3 = vector.load %arg5[%c0_3, %c0_4] : memref<1x32xf32, #tpu.memory_space<vmem>>, vector<1x32xf32>
    %4 = vector.broadcast %3 : vector<1x32xf32> to vector<32x32xf32>
    %5 = arith.addf %2, %4 : vector<32x32xf32>
    %c0_5 = arith.constant 0 : index
    %c0_6 = arith.constant 0 : index
    %6 = vector.load %arg6[%c0_5, %c0_6] : memref<1x32xf32, #tpu.memory_space<vmem>>, vector<1x32xf32>
    %c0_7 = arith.constant 0 : index
    %c0_8 = arith.constant 0 : index
    %7 = vector.load %arg7[%c0_7, %c0_8] : memref<1x32xf32, #tpu.memory_space<vmem>>, vector<1x32xf32>
    %cst_9 = arith.constant dense<0.000000e+00> : vector<32xf32>
    %8 = vector.multi_reduction <add>, %5, %cst_9 [1] : vector<32x32xf32> to vector<32xf32>
    %9 = vector.shape_cast %8 : vector<32xf32> to vector<32x1xf32>
    %cst_10 = arith.constant 3.200000e+01 : f32
    %10 = vector.broadcast %cst_10 : f32 to vector<32x1xf32>
    %11 = arith.divf %9, %10 : vector<32x1xf32>
    %12 = vector.broadcast %11 : vector<32x1xf32> to vector<32x32xf32>
    %13 = arith.subf %5, %12 : vector<32x32xf32>
    %14 = arith.mulf %13, %13 : vector<32x32xf32>
    %cst_11 = arith.constant dense<0.000000e+00> : vector<32xf32>
    %15 = vector.multi_reduction <add>, %14, %cst_11 [1] : vector<32x32xf32> to vector<32xf32>
    %16 = vector.shape_cast %15 : vector<32xf32> to vector<32x1xf32>
    %cst_12 = arith.constant 3.200000e+01 : f32
    %17 = vector.broadcast %cst_12 : f32 to vector<32x1xf32>
    %18 = arith.divf %16, %17 : vector<32x1xf32>
    %19 = vector.broadcast %11 : vector<32x1xf32> to vector<32x32xf32>
    %20 = arith.subf %5, %19 : vector<32x32xf32>
    %cst_13 = arith.constant 9.99999974E-6 : f32
    %21 = vector.broadcast %cst_13 : f32 to vector<32x1xf32>
    %22 = arith.addf %18, %21 : vector<32x1xf32>
    %23 = math.rsqrt %22 : vector<32x1xf32>
    %24 = vector.broadcast %23 : vector<32x1xf32> to vector<32x32xf32>
    %25 = arith.mulf %20, %24 : vector<32x32xf32>
    %26 = vector.broadcast %6 : vector<1x32xf32> to vector<32x32xf32>
    %27 = arith.mulf %25, %26 : vector<32x32xf32>
    %28 = vector.broadcast %7 : vector<1x32xf32> to vector<32x32xf32>
    %29 = arith.addf %27, %28 : vector<32x32xf32>
    %c0_14 = arith.constant 0 : index
    %c0_15 = arith.constant 0 : index
    %30 = vector.load %arg2[%c0_14, %c0_15] : memref<16x32xf32, #tpu.memory_space<vmem>>, vector<16x32xf32>
    %31 = tpu.concatenate %30, %30 in 0 : vector<16x32xf32>, vector<16x32xf32> -> vector<32x32xf32>
    %32 = arith.addf %29, %31 : vector<32x32xf32>
    %c0_16 = arith.constant 0 : index
    %c0_17 = arith.constant 0 : index
    %33 = vector.load %arg8[%c0_16, %c0_17] : memref<4x32xf32, #tpu.memory_space<vmem>>, vector<1x32xf32>
    %c0_18 = arith.constant 0 : index
    %c0_19 = arith.constant 0 : index
    %34 = vector.load %arg9[%c0_18, %c0_19] : memref<4x32xf32, #tpu.memory_space<vmem>>, vector<1x32xf32>
    %cst_20 = arith.constant dense<0.000000e+00> : vector<32xf32>
    %35 = vector.multi_reduction <add>, %32, %cst_20 [1] : vector<32x32xf32> to vector<32xf32>
    %36 = vector.shape_cast %35 : vector<32xf32> to vector<32x1xf32>
    %cst_21 = arith.constant 3.200000e+01 : f32
    %37 = vector.broadcast %cst_21 : f32 to vector<32x1xf32>
    %38 = arith.divf %36, %37 : vector<32x1xf32>
    %39 = vector.broadcast %38 : vector<32x1xf32> to vector<32x32xf32>
    %40 = arith.subf %32, %39 : vector<32x32xf32>
    %41 = arith.mulf %40, %40 : vector<32x32xf32>
    %cst_22 = arith.constant dense<0.000000e+00> : vector<32xf32>
    %42 = vector.multi_reduction <add>, %41, %cst_22 [1] : vector<32x32xf32> to vector<32xf32>
    %43 = vector.shape_cast %42 : vector<32xf32> to vector<32x1xf32>
    %cst_23 = arith.constant 3.200000e+01 : f32
    %44 = vector.broadcast %cst_23 : f32 to vector<32x1xf32>
    %45 = arith.divf %43, %44 : vector<32x1xf32>
    %46 = vector.broadcast %38 : vector<32x1xf32> to vector<32x32xf32>
    %47 = arith.subf %32, %46 : vector<32x32xf32>
    %cst_24 = arith.constant 9.99999974E-6 : f32
    %48 = vector.broadcast %cst_24 : f32 to vector<32x1xf32>
    %49 = arith.addf %45, %48 : vector<32x1xf32>
    %50 = math.rsqrt %49 : vector<32x1xf32>
    %51 = vector.broadcast %50 : vector<32x1xf32> to vector<32x32xf32>
    %52 = arith.mulf %47, %51 : vector<32x32xf32>
    %53 = vector.broadcast %33 : vector<1x32xf32> to vector<32x32xf32>
    %54 = arith.mulf %52, %53 : vector<32x32xf32>
    %55 = vector.broadcast %34 : vector<1x32xf32> to vector<32x32xf32>
    %56 = arith.addf %54, %55 : vector<32x32xf32>
    %c0_25 = arith.constant 0 : index
    %c0_26 = arith.constant 0 : index
    %c0_27 = arith.constant 0 : index
    %57 = vector.load %arg10[%c0_25, %c0_26, %c0_27] : memref<4x32x96xf32, #tpu.memory_space<vmem>>, vector<1x32x96xf32>
    %58 = vector.shape_cast %57 : vector<1x32x96xf32> to vector<32x96xf32>
    %cst_28 = arith.constant dense<0.000000e+00> : vector<32x96xf32>
    %59 = tpu.matmul %56, %58, %cst_28 {dimension_numbers = #tpu.dot_dimension_numbers<[1], [0], [0], [1], [0, 0, 1, 1], [], []>} : vector<32x32xf32>, vector<32x96xf32>, vector<32x96xf32> -> vector<32x96xf32>
    %60 = vector.extract_strided_slice %59 {offsets = [0, 0], sizes = [16, 96], strides = [1, 1]} : vector<32x96xf32> to vector<16x96xf32>
    %61 = vector.extract_strided_slice %60 {offsets = [0, 0], sizes = [16, 8], strides = [1, 1]} : vector<16x96xf32> to vector<16x8xf32>
    %cst_29 = arith.constant 0.353553385 : f32
    %62 = vector.broadcast %cst_29 : f32 to vector<16x8xf32>
    %63 = arith.mulf %61, %62 : vector<16x8xf32>
    %64 = vector.extract_strided_slice %60 {offsets = [0, 32], sizes = [16, 8], strides = [1, 1]} : vector<16x96xf32> to vector<16x8xf32>
    %65 = vector.extract_strided_slice %60 {offsets = [0, 64], sizes = [16, 8], strides = [1, 1]} : vector<16x96xf32> to vector<16x8xf32>
    %cst_30 = arith.constant dense<0.000000e+00> : vector<16x16xf32>
    %66 = tpu.matmul %63, %64, %cst_30 {dimension_numbers = #tpu.dot_dimension_numbers<[1], [1], [0], [0], [0, 0, 1, 0], [], []>} : vector<16x8xf32>, vector<16x8xf32>, vector<16x16xf32> -> vector<16x16xf32>
    %cst_31 = arith.constant dense<0xFF800000> : vector<16xf32>
    %67 = vector.multi_reduction <maximumf>, %66, %cst_31 [1] : vector<16x16xf32> to vector<16xf32>
    %68 = vector.shape_cast %67 : vector<16xf32> to vector<16x1xf32>
    %69 = vector.broadcast %68 : vector<16x1xf32> to vector<16x16xf32>
    %70 = arith.subf %66, %69 : vector<16x16xf32>
    %71 = math.exp %70 : vector<16x16xf32>
    %cst_32 = arith.constant dense<0.000000e+00> : vector<16xf32>
    %72 = vector.multi_reduction <add>, %71, %cst_32 [1] : vector<16x16xf32> to vector<16xf32>
    %73 = vector.shape_cast %72 : vector<16xf32> to vector<16x1xf32>
    %74 = tpu.reciprocal %73 {approx = true} : vector<16x1xf32> -> vector<16x1xf32>
    %75 = vector.broadcast %74 : vector<16x1xf32> to vector<16x16xf32>
    %76 = arith.mulf %71, %75 : vector<16x16xf32>
    %cst_33 = arith.constant dense<0.000000e+00> : vector<16x8xf32>
    %77 = tpu.matmul %76, %65, %cst_33 {dimension_numbers = #tpu.dot_dimension_numbers<[1], [0], [0], [1], [0, 0, 1, 1], [], []>} : vector<16x16xf32>, vector<16x8xf32>, vector<16x8xf32> -> vector<16x8xf32>
    %78 = vector.extract_strided_slice %60 {offsets = [0, 8], sizes = [16, 8], strides = [1, 1]} : vector<16x96xf32> to vector<16x8xf32>
    %cst_34 = arith.constant 0.353553385 : f32
    %79 = vector.broadcast %cst_34 : f32 to vector<16x8xf32>
    %80 = arith.mulf %78, %79 : vector<16x8xf32>
    %81 = vector.extract_strided_slice %60 {offsets = [0, 40], sizes = [16, 8], strides = [1, 1]} : vector<16x96xf32> to vector<16x8xf32>
    %82 = vector.extract_strided_slice %60 {offsets = [0, 72], sizes = [16, 8], strides = [1, 1]} : vector<16x96xf32> to vector<16x8xf32>
    %cst_35 = arith.constant dense<0.000000e+00> : vector<16x16xf32>
    %83 = tpu.matmul %80, %81, %cst_35 {dimension_numbers = #tpu.dot_dimension_numbers<[1], [1], [0], [0], [0, 0, 1, 0], [], []>} : vector<16x8xf32>, vector<16x8xf32>, vector<16x16xf32> -> vector<16x16xf32>
    %cst_36 = arith.constant dense<0xFF800000> : vector<16xf32>
    %84 = vector.multi_reduction <maximumf>, %83, %cst_36 [1] : vector<16x16xf32> to vector<16xf32>
    %85 = vector.shape_cast %84 : vector<16xf32> to vector<16x1xf32>
    %86 = vector.broadcast %85 : vector<16x1xf32> to vector<16x16xf32>
    %87 = arith.subf %83, %86 : vector<16x16xf32>
    %88 = math.exp %87 : vector<16x16xf32>
    %cst_37 = arith.constant dense<0.000000e+00> : vector<16xf32>
    %89 = vector.multi_reduction <add>, %88, %cst_37 [1] : vector<16x16xf32> to vector<16xf32>
    %90 = vector.shape_cast %89 : vector<16xf32> to vector<16x1xf32>
    %91 = tpu.reciprocal %90 {approx = true} : vector<16x1xf32> -> vector<16x1xf32>
    %92 = vector.broadcast %91 : vector<16x1xf32> to vector<16x16xf32>
    %93 = arith.mulf %88, %92 : vector<16x16xf32>
    %cst_38 = arith.constant dense<0.000000e+00> : vector<16x8xf32>
    %94 = tpu.matmul %93, %82, %cst_38 {dimension_numbers = #tpu.dot_dimension_numbers<[1], [0], [0], [1], [0, 0, 1, 1], [], []>} : vector<16x16xf32>, vector<16x8xf32>, vector<16x8xf32> -> vector<16x8xf32>
    %95 = vector.extract_strided_slice %60 {offsets = [0, 16], sizes = [16, 8], strides = [1, 1]} : vector<16x96xf32> to vector<16x8xf32>
    %cst_39 = arith.constant 0.353553385 : f32
    %96 = vector.broadcast %cst_39 : f32 to vector<16x8xf32>
    %97 = arith.mulf %95, %96 : vector<16x8xf32>
    %98 = vector.extract_strided_slice %60 {offsets = [0, 48], sizes = [16, 8], strides = [1, 1]} : vector<16x96xf32> to vector<16x8xf32>
    %99 = vector.extract_strided_slice %60 {offsets = [0, 80], sizes = [16, 8], strides = [1, 1]} : vector<16x96xf32> to vector<16x8xf32>
    %cst_40 = arith.constant dense<0.000000e+00> : vector<16x16xf32>
    %100 = tpu.matmul %97, %98, %cst_40 {dimension_numbers = #tpu.dot_dimension_numbers<[1], [1], [0], [0], [0, 0, 1, 0], [], []>} : vector<16x8xf32>, vector<16x8xf32>, vector<16x16xf32> -> vector<16x16xf32>
    %cst_41 = arith.constant dense<0xFF800000> : vector<16xf32>
    %101 = vector.multi_reduction <maximumf>, %100, %cst_41 [1] : vector<16x16xf32> to vector<16xf32>
    %102 = vector.shape_cast %101 : vector<16xf32> to vector<16x1xf32>
    %103 = vector.broadcast %102 : vector<16x1xf32> to vector<16x16xf32>
    %104 = arith.subf %100, %103 : vector<16x16xf32>
    %105 = math.exp %104 : vector<16x16xf32>
    %cst_42 = arith.constant dense<0.000000e+00> : vector<16xf32>
    %106 = vector.multi_reduction <add>, %105, %cst_42 [1] : vector<16x16xf32> to vector<16xf32>
    %107 = vector.shape_cast %106 : vector<16xf32> to vector<16x1xf32>
    %108 = tpu.reciprocal %107 {approx = true} : vector<16x1xf32> -> vector<16x1xf32>
    %109 = vector.broadcast %108 : vector<16x1xf32> to vector<16x16xf32>
    %110 = arith.mulf %105, %109 : vector<16x16xf32>
    %cst_43 = arith.constant dense<0.000000e+00> : vector<16x8xf32>
    %111 = tpu.matmul %110, %99, %cst_43 {dimension_numbers = #tpu.dot_dimension_numbers<[1], [0], [0], [1], [0, 0, 1, 1], [], []>} : vector<16x16xf32>, vector<16x8xf32>, vector<16x8xf32> -> vector<16x8xf32>
    %112 = vector.extract_strided_slice %60 {offsets = [0, 24], sizes = [16, 8], strides = [1, 1]} : vector<16x96xf32> to vector<16x8xf32>
    %cst_44 = arith.constant 0.353553385 : f32
    %113 = vector.broadcast %cst_44 : f32 to vector<16x8xf32>
    %114 = arith.mulf %112, %113 : vector<16x8xf32>
    %115 = vector.extract_strided_slice %60 {offsets = [0, 56], sizes = [16, 8], strides = [1, 1]} : vector<16x96xf32> to vector<16x8xf32>
    %116 = vector.extract_strided_slice %60 {offsets = [0, 88], sizes = [16, 8], strides = [1, 1]} : vector<16x96xf32> to vector<16x8xf32>
    %cst_45 = arith.constant dense<0.000000e+00> : vector<16x16xf32>
    %117 = tpu.matmul %114, %115, %cst_45 {dimension_numbers = #tpu.dot_dimension_numbers<[1], [1], [0], [0], [0, 0, 1, 0], [], []>} : vector<16x8xf32>, vector<16x8xf32>, vector<16x16xf32> -> vector<16x16xf32>
    %cst_46 = arith.constant dense<0xFF800000> : vector<16xf32>
    %118 = vector.multi_reduction <maximumf>, %117, %cst_46 [1] : vector<16x16xf32> to vector<16xf32>
    %119 = vector.shape_cast %118 : vector<16xf32> to vector<16x1xf32>
    %120 = vector.broadcast %119 : vector<16x1xf32> to vector<16x16xf32>
    %121 = arith.subf %117, %120 : vector<16x16xf32>
    %122 = math.exp %121 : vector<16x16xf32>
    %cst_47 = arith.constant dense<0.000000e+00> : vector<16xf32>
    %123 = vector.multi_reduction <add>, %122, %cst_47 [1] : vector<16x16xf32> to vector<16xf32>
    %124 = vector.shape_cast %123 : vector<16xf32> to vector<16x1xf32>
    %125 = tpu.reciprocal %124 {approx = true} : vector<16x1xf32> -> vector<16x1xf32>
    %126 = vector.broadcast %125 : vector<16x1xf32> to vector<16x16xf32>
    %127 = arith.mulf %122, %126 : vector<16x16xf32>
    %cst_48 = arith.constant dense<0.000000e+00> : vector<16x8xf32>
    %128 = tpu.matmul %127, %116, %cst_48 {dimension_numbers = #tpu.dot_dimension_numbers<[1], [0], [0], [1], [0, 0, 1, 1], [], []>} : vector<16x16xf32>, vector<16x8xf32>, vector<16x8xf32> -> vector<16x8xf32>
    %129 = tpu.concatenate %77, %94, %111, %128 in 1 : vector<16x8xf32>, vector<16x8xf32>, vector<16x8xf32>, vector<16x8xf32> -> vector<16x32xf32>
    %130 = vector.extract_strided_slice %59 {offsets = [16, 0], sizes = [16, 96], strides = [1, 1]} : vector<32x96xf32> to vector<16x96xf32>
    %131 = vector.extract_strided_slice %130 {offsets = [0, 0], sizes = [16, 8], strides = [1, 1]} : vector<16x96xf32> to vector<16x8xf32>
    %cst_49 = arith.constant 0.353553385 : f32
    %132 = vector.broadcast %cst_49 : f32 to vector<16x8xf32>
    %133 = arith.mulf %131, %132 : vector<16x8xf32>
    %134 = vector.extract_strided_slice %130 {offsets = [0, 32], sizes = [16, 8], strides = [1, 1]} : vector<16x96xf32> to vector<16x8xf32>
    %135 = vector.extract_strided_slice %130 {offsets = [0, 64], sizes = [16, 8], strides = [1, 1]} : vector<16x96xf32> to vector<16x8xf32>
    %cst_50 = arith.constant dense<0.000000e+00> : vector<16x16xf32>
    %136 = tpu.matmul %133, %134, %cst_50 {dimension_numbers = #tpu.dot_dimension_numbers<[1], [1], [0], [0], [0, 0, 1, 0], [], []>} : vector<16x8xf32>, vector<16x8xf32>, vector<16x16xf32> -> vector<16x16xf32>
    %cst_51 = arith.constant dense<0xFF800000> : vector<16xf32>
    %137 = vector.multi_reduction <maximumf>, %136, %cst_51 [1] : vector<16x16xf32> to vector<16xf32>
    %138 = vector.shape_cast %137 : vector<16xf32> to vector<16x1xf32>
    %139 = vector.broadcast %138 : vector<16x1xf32> to vector<16x16xf32>
    %140 = arith.subf %136, %139 : vector<16x16xf32>
    %141 = math.exp %140 : vector<16x16xf32>
    %cst_52 = arith.constant dense<0.000000e+00> : vector<16xf32>
    %142 = vector.multi_reduction <add>, %141, %cst_52 [1] : vector<16x16xf32> to vector<16xf32>
    %143 = vector.shape_cast %142 : vector<16xf32> to vector<16x1xf32>
    %144 = tpu.reciprocal %143 {approx = true} : vector<16x1xf32> -> vector<16x1xf32>
    %145 = vector.broadcast %144 : vector<16x1xf32> to vector<16x16xf32>
    %146 = arith.mulf %141, %145 : vector<16x16xf32>
    %cst_53 = arith.constant dense<0.000000e+00> : vector<16x8xf32>
    %147 = tpu.matmul %146, %135, %cst_53 {dimension_numbers = #tpu.dot_dimension_numbers<[1], [0], [0], [1], [0, 0, 1, 1], [], []>} : vector<16x16xf32>, vector<16x8xf32>, vector<16x8xf32> -> vector<16x8xf32>
    %148 = vector.extract_strided_slice %130 {offsets = [0, 8], sizes = [16, 8], strides = [1, 1]} : vector<16x96xf32> to vector<16x8xf32>
    %cst_54 = arith.constant 0.353553385 : f32
    %149 = vector.broadcast %cst_54 : f32 to vector<16x8xf32>
    %150 = arith.mulf %148, %149 : vector<16x8xf32>
    %151 = vector.extract_strided_slice %130 {offsets = [0, 40], sizes = [16, 8], strides = [1, 1]} : vector<16x96xf32> to vector<16x8xf32>
    %152 = vector.extract_strided_slice %130 {offsets = [0, 72], sizes = [16, 8], strides = [1, 1]} : vector<16x96xf32> to vector<16x8xf32>
    %cst_55 = arith.constant dense<0.000000e+00> : vector<16x16xf32>
    %153 = tpu.matmul %150, %151, %cst_55 {dimension_numbers = #tpu.dot_dimension_numbers<[1], [1], [0], [0], [0, 0, 1, 0], [], []>} : vector<16x8xf32>, vector<16x8xf32>, vector<16x16xf32> -> vector<16x16xf32>
    %cst_56 = arith.constant dense<0xFF800000> : vector<16xf32>
    %154 = vector.multi_reduction <maximumf>, %153, %cst_56 [1] : vector<16x16xf32> to vector<16xf32>
    %155 = vector.shape_cast %154 : vector<16xf32> to vector<16x1xf32>
    %156 = vector.broadcast %155 : vector<16x1xf32> to vector<16x16xf32>
    %157 = arith.subf %153, %156 : vector<16x16xf32>
    %158 = math.exp %157 : vector<16x16xf32>
    %cst_57 = arith.constant dense<0.000000e+00> : vector<16xf32>
    %159 = vector.multi_reduction <add>, %158, %cst_57 [1] : vector<16x16xf32> to vector<16xf32>
    %160 = vector.shape_cast %159 : vector<16xf32> to vector<16x1xf32>
    %161 = tpu.reciprocal %160 {approx = true} : vector<16x1xf32> -> vector<16x1xf32>
    %162 = vector.broadcast %161 : vector<16x1xf32> to vector<16x16xf32>
    %163 = arith.mulf %158, %162 : vector<16x16xf32>
    %cst_58 = arith.constant dense<0.000000e+00> : vector<16x8xf32>
    %164 = tpu.matmul %163, %152, %cst_58 {dimension_numbers = #tpu.dot_dimension_numbers<[1], [0], [0], [1], [0, 0, 1, 1], [], []>} : vector<16x16xf32>, vector<16x8xf32>, vector<16x8xf32> -> vector<16x8xf32>
    %165 = vector.extract_strided_slice %130 {offsets = [0, 16], sizes = [16, 8], strides = [1, 1]} : vector<16x96xf32> to vector<16x8xf32>
    %cst_59 = arith.constant 0.353553385 : f32
    %166 = vector.broadcast %cst_59 : f32 to vector<16x8xf32>
    %167 = arith.mulf %165, %166 : vector<16x8xf32>
    %168 = vector.extract_strided_slice %130 {offsets = [0, 48], sizes = [16, 8], strides = [1, 1]} : vector<16x96xf32> to vector<16x8xf32>
    %169 = vector.extract_strided_slice %130 {offsets = [0, 80], sizes = [16, 8], strides = [1, 1]} : vector<16x96xf32> to vector<16x8xf32>
    %cst_60 = arith.constant dense<0.000000e+00> : vector<16x16xf32>
    %170 = tpu.matmul %167, %168, %cst_60 {dimension_numbers = #tpu.dot_dimension_numbers<[1], [1], [0], [0], [0, 0, 1, 0], [], []>} : vector<16x8xf32>, vector<16x8xf32>, vector<16x16xf32> -> vector<16x16xf32>
    %cst_61 = arith.constant dense<0xFF800000> : vector<16xf32>
    %171 = vector.multi_reduction <maximumf>, %170, %cst_61 [1] : vector<16x16xf32> to vector<16xf32>
    %172 = vector.shape_cast %171 : vector<16xf32> to vector<16x1xf32>
    %173 = vector.broadcast %172 : vector<16x1xf32> to vector<16x16xf32>
    %174 = arith.subf %170, %173 : vector<16x16xf32>
    %175 = math.exp %174 : vector<16x16xf32>
    %cst_62 = arith.constant dense<0.000000e+00> : vector<16xf32>
    %176 = vector.multi_reduction <add>, %175, %cst_62 [1] : vector<16x16xf32> to vector<16xf32>
    %177 = vector.shape_cast %176 : vector<16xf32> to vector<16x1xf32>
    %178 = tpu.reciprocal %177 {approx = true} : vector<16x1xf32> -> vector<16x1xf32>
    %179 = vector.broadcast %178 : vector<16x1xf32> to vector<16x16xf32>
    %180 = arith.mulf %175, %179 : vector<16x16xf32>
    %cst_63 = arith.constant dense<0.000000e+00> : vector<16x8xf32>
    %181 = tpu.matmul %180, %169, %cst_63 {dimension_numbers = #tpu.dot_dimension_numbers<[1], [0], [0], [1], [0, 0, 1, 1], [], []>} : vector<16x16xf32>, vector<16x8xf32>, vector<16x8xf32> -> vector<16x8xf32>
    %182 = vector.extract_strided_slice %130 {offsets = [0, 24], sizes = [16, 8], strides = [1, 1]} : vector<16x96xf32> to vector<16x8xf32>
    %cst_64 = arith.constant 0.353553385 : f32
    %183 = vector.broadcast %cst_64 : f32 to vector<16x8xf32>
    %184 = arith.mulf %182, %183 : vector<16x8xf32>
    %185 = vector.extract_strided_slice %130 {offsets = [0, 56], sizes = [16, 8], strides = [1, 1]} : vector<16x96xf32> to vector<16x8xf32>
    %186 = vector.extract_strided_slice %130 {offsets = [0, 88], sizes = [16, 8], strides = [1, 1]} : vector<16x96xf32> to vector<16x8xf32>
    %cst_65 = arith.constant dense<0.000000e+00> : vector<16x16xf32>
    %187 = tpu.matmul %184, %185, %cst_65 {dimension_numbers = #tpu.dot_dimension_numbers<[1], [1], [0], [0], [0, 0, 1, 0], [], []>} : vector<16x8xf32>, vector<16x8xf32>, vector<16x16xf32> -> vector<16x16xf32>
    %cst_66 = arith.constant dense<0xFF800000> : vector<16xf32>
    %188 = vector.multi_reduction <maximumf>, %187, %cst_66 [1] : vector<16x16xf32> to vector<16xf32>
    %189 = vector.shape_cast %188 : vector<16xf32> to vector<16x1xf32>
    %190 = vector.broadcast %189 : vector<16x1xf32> to vector<16x16xf32>
    %191 = arith.subf %187, %190 : vector<16x16xf32>
    %192 = math.exp %191 : vector<16x16xf32>
    %cst_67 = arith.constant dense<0.000000e+00> : vector<16xf32>
    %193 = vector.multi_reduction <add>, %192, %cst_67 [1] : vector<16x16xf32> to vector<16xf32>
    %194 = vector.shape_cast %193 : vector<16xf32> to vector<16x1xf32>
    %195 = tpu.reciprocal %194 {approx = true} : vector<16x1xf32> -> vector<16x1xf32>
    %196 = vector.broadcast %195 : vector<16x1xf32> to vector<16x16xf32>
    %197 = arith.mulf %192, %196 : vector<16x16xf32>
    %cst_68 = arith.constant dense<0.000000e+00> : vector<16x8xf32>
    %198 = tpu.matmul %197, %186, %cst_68 {dimension_numbers = #tpu.dot_dimension_numbers<[1], [0], [0], [1], [0, 0, 1, 1], [], []>} : vector<16x16xf32>, vector<16x8xf32>, vector<16x8xf32> -> vector<16x8xf32>
    %199 = tpu.concatenate %147, %164, %181, %198 in 1 : vector<16x8xf32>, vector<16x8xf32>, vector<16x8xf32>, vector<16x8xf32> -> vector<16x32xf32>
    %200 = tpu.concatenate %129, %199 in 0 : vector<16x32xf32>, vector<16x32xf32> -> vector<32x32xf32>
    %c0_69 = arith.constant 0 : index
    %c0_70 = arith.constant 0 : index
    %c0_71 = arith.constant 0 : index
    %201 = vector.load %arg11[%c0_69, %c0_70, %c0_71] : memref<4x32x32xf32, #tpu.memory_space<vmem>>, vector<1x32x32xf32>
    %202 = vector.shape_cast %201 : vector<1x32x32xf32> to vector<32x32xf32>
    %cst_72 = arith.constant dense<0.000000e+00> : vector<32x32xf32>
    %203 = tpu.matmul %200, %202, %cst_72 {dimension_numbers = #tpu.dot_dimension_numbers<[1], [0], [0], [1], [0, 0, 1, 1], [], []>} : vector<32x32xf32>, vector<32x32xf32>, vector<32x32xf32> -> vector<32x32xf32>
    %c0_73 = arith.constant 0 : index
    %c0_74 = arith.constant 0 : index
    %204 = vector.load %arg12[%c0_73, %c0_74] : memref<4x32xf32, #tpu.memory_space<vmem>>, vector<1x32xf32>
    %205 = vector.broadcast %204 : vector<1x32xf32> to vector<32x32xf32>
    %206 = arith.addf %203, %205 : vector<32x32xf32>
    %207 = arith.addf %32, %206 : vector<32x32xf32>
    %c0_75 = arith.constant 0 : index
    %c0_76 = arith.constant 0 : index
    %208 = vector.load %arg13[%c0_75, %c0_76] : memref<4x32xf32, #tpu.memory_space<vmem>>, vector<1x32xf32>
    %c0_77 = arith.constant 0 : index
    %c0_78 = arith.constant 0 : index
    %209 = vector.load %arg14[%c0_77, %c0_78] : memref<4x32xf32, #tpu.memory_space<vmem>>, vector<1x32xf32>
    %cst_79 = arith.constant dense<0.000000e+00> : vector<32xf32>
    %210 = vector.multi_reduction <add>, %207, %cst_79 [1] : vector<32x32xf32> to vector<32xf32>
    %211 = vector.shape_cast %210 : vector<32xf32> to vector<32x1xf32>
    %cst_80 = arith.constant 3.200000e+01 : f32
    %212 = vector.broadcast %cst_80 : f32 to vector<32x1xf32>
    %213 = arith.divf %211, %212 : vector<32x1xf32>
    %214 = vector.broadcast %213 : vector<32x1xf32> to vector<32x32xf32>
    %215 = arith.subf %207, %214 : vector<32x32xf32>
    %216 = arith.mulf %215, %215 : vector<32x32xf32>
    %cst_81 = arith.constant dense<0.000000e+00> : vector<32xf32>
    %217 = vector.multi_reduction <add>, %216, %cst_81 [1] : vector<32x32xf32> to vector<32xf32>
    %218 = vector.shape_cast %217 : vector<32xf32> to vector<32x1xf32>
    %cst_82 = arith.constant 3.200000e+01 : f32
    %219 = vector.broadcast %cst_82 : f32 to vector<32x1xf32>
    %220 = arith.divf %218, %219 : vector<32x1xf32>
    %221 = vector.broadcast %213 : vector<32x1xf32> to vector<32x32xf32>
    %222 = arith.subf %207, %221 : vector<32x32xf32>
    %cst_83 = arith.constant 9.99999974E-6 : f32
    %223 = vector.broadcast %cst_83 : f32 to vector<32x1xf32>
    %224 = arith.addf %220, %223 : vector<32x1xf32>
    %225 = math.rsqrt %224 : vector<32x1xf32>
    %226 = vector.broadcast %225 : vector<32x1xf32> to vector<32x32xf32>
    %227 = arith.mulf %222, %226 : vector<32x32xf32>
    %228 = vector.broadcast %208 : vector<1x32xf32> to vector<32x32xf32>
    %229 = arith.mulf %227, %228 : vector<32x32xf32>
    %230 = vector.broadcast %209 : vector<1x32xf32> to vector<32x32xf32>
    %231 = arith.addf %229, %230 : vector<32x32xf32>
    %c0_84 = arith.constant 0 : index
    %c0_85 = arith.constant 0 : index
    %c0_86 = arith.constant 0 : index
    %232 = vector.load %arg15[%c0_84, %c0_85, %c0_86] : memref<4x32x64xf32, #tpu.memory_space<vmem>>, vector<1x32x64xf32>
    %233 = vector.shape_cast %232 : vector<1x32x64xf32> to vector<32x64xf32>
    %cst_87 = arith.constant dense<0.000000e+00> : vector<32x64xf32>
    %234 = tpu.matmul %231, %233, %cst_87 {dimension_numbers = #tpu.dot_dimension_numbers<[1], [0], [0], [1], [0, 0, 1, 1], [], []>} : vector<32x32xf32>, vector<32x64xf32>, vector<32x64xf32> -> vector<32x64xf32>
    %c0_88 = arith.constant 0 : index
    %c0_89 = arith.constant 0 : index
    %235 = vector.load %arg16[%c0_88, %c0_89] : memref<4x64xf32, #tpu.memory_space<vmem>>, vector<1x64xf32>
    %236 = vector.broadcast %235 : vector<1x64xf32> to vector<32x64xf32>
    %237 = arith.addf %234, %236 : vector<32x64xf32>
    %cst_90 = arith.constant 5.000000e-01 : f32
    %238 = vector.broadcast %cst_90 : f32 to vector<32x64xf32>
    %239 = arith.mulf %238, %237 : vector<32x64xf32>
    %cst_91 = arith.constant 0.707106769 : f32
    %240 = vector.broadcast %cst_91 : f32 to vector<32x64xf32>
    %241 = arith.mulf %237, %240 : vector<32x64xf32>
    %242 = math.erf %241 : vector<32x64xf32>
    %cst_92 = arith.constant 1.000000e+00 : f32
    %243 = vector.broadcast %cst_92 : f32 to vector<32x64xf32>
    %244 = arith.addf %243, %242 : vector<32x64xf32>
    %245 = arith.mulf %239, %244 : vector<32x64xf32>
    %c0_93 = arith.constant 0 : index
    %c0_94 = arith.constant 0 : index
    %c0_95 = arith.constant 0 : index
    %246 = vector.load %arg17[%c0_93, %c0_94, %c0_95] : memref<4x64x32xf32, #tpu.memory_space<vmem>>, vector<1x64x32xf32>
    %247 = vector.shape_cast %246 : vector<1x64x32xf32> to vector<64x32xf32>
    %cst_96 = arith.constant dense<0.000000e+00> : vector<32x32xf32>
    %248 = tpu.matmul %245, %247, %cst_96 {dimension_numbers = #tpu.dot_dimension_numbers<[1], [0], [0], [1], [0, 0, 1, 1], [], []>} : vector<32x64xf32>, vector<64x32xf32>, vector<32x32xf32> -> vector<32x32xf32>
    %249 = arith.addf %207, %248 : vector<32x32xf32>
    %c0_97 = arith.constant 0 : index
    %c0_98 = arith.constant 0 : index
    %250 = vector.load %arg18[%c0_97, %c0_98] : memref<4x32xf32, #tpu.memory_space<vmem>>, vector<1x32xf32>
    %251 = vector.broadcast %250 : vector<1x32xf32> to vector<32x32xf32>
    %252 = arith.addf %249, %251 : vector<32x32xf32>
    %c1 = arith.constant 1 : index
    %c0_99 = arith.constant 0 : index
    %253 = vector.load %arg8[%c1, %c0_99] : memref<4x32xf32, #tpu.memory_space<vmem>>, vector<1x32xf32>
    %c1_100 = arith.constant 1 : index
    %c0_101 = arith.constant 0 : index
    %254 = vector.load %arg9[%c1_100, %c0_101] : memref<4x32xf32, #tpu.memory_space<vmem>>, vector<1x32xf32>
    %cst_102 = arith.constant dense<0.000000e+00> : vector<32xf32>
    %255 = vector.multi_reduction <add>, %252, %cst_102 [1] : vector<32x32xf32> to vector<32xf32>
    %256 = vector.shape_cast %255 : vector<32xf32> to vector<32x1xf32>
    %cst_103 = arith.constant 3.200000e+01 : f32
    %257 = vector.broadcast %cst_103 : f32 to vector<32x1xf32>
    %258 = arith.divf %256, %257 : vector<32x1xf32>
    %259 = vector.broadcast %258 : vector<32x1xf32> to vector<32x32xf32>
    %260 = arith.subf %252, %259 : vector<32x32xf32>
    %261 = arith.mulf %260, %260 : vector<32x32xf32>
    %cst_104 = arith.constant dense<0.000000e+00> : vector<32xf32>
    %262 = vector.multi_reduction <add>, %261, %cst_104 [1] : vector<32x32xf32> to vector<32xf32>
    %263 = vector.shape_cast %262 : vector<32xf32> to vector<32x1xf32>
    %cst_105 = arith.constant 3.200000e+01 : f32
    %264 = vector.broadcast %cst_105 : f32 to vector<32x1xf32>
    %265 = arith.divf %263, %264 : vector<32x1xf32>
    %266 = vector.broadcast %258 : vector<32x1xf32> to vector<32x32xf32>
    %267 = arith.subf %252, %266 : vector<32x32xf32>
    %cst_106 = arith.constant 9.99999974E-6 : f32
    %268 = vector.broadcast %cst_106 : f32 to vector<32x1xf32>
    %269 = arith.addf %265, %268 : vector<32x1xf32>
    %270 = math.rsqrt %269 : vector<32x1xf32>
    %271 = vector.broadcast %270 : vector<32x1xf32> to vector<32x32xf32>
    %272 = arith.mulf %267, %271 : vector<32x32xf32>
    %273 = vector.broadcast %253 : vector<1x32xf32> to vector<32x32xf32>
    %274 = arith.mulf %272, %273 : vector<32x32xf32>
    %275 = vector.broadcast %254 : vector<1x32xf32> to vector<32x32xf32>
    %276 = arith.addf %274, %275 : vector<32x32xf32>
    %c1_107 = arith.constant 1 : index
    %c0_108 = arith.constant 0 : index
    %c0_109 = arith.constant 0 : index
    %277 = vector.load %arg10[%c1_107, %c0_108, %c0_109] : memref<4x32x96xf32, #tpu.memory_space<vmem>>, vector<1x32x96xf32>
    %278 = vector.shape_cast %277 : vector<1x32x96xf32> to vector<32x96xf32>
    %cst_110 = arith.constant dense<0.000000e+00> : vector<32x96xf32>
    %279 = tpu.matmul %276, %278, %cst_110 {dimension_numbers = #tpu.dot_dimension_numbers<[1], [0], [0], [1], [0, 0, 1, 1], [], []>} : vector<32x32xf32>, vector<32x96xf32>, vector<32x96xf32> -> vector<32x96xf32>
    %280 = vector.extract_strided_slice %279 {offsets = [0, 0], sizes = [16, 96], strides = [1, 1]} : vector<32x96xf32> to vector<16x96xf32>
    %281 = vector.extract_strided_slice %280 {offsets = [0, 0], sizes = [16, 8], strides = [1, 1]} : vector<16x96xf32> to vector<16x8xf32>
    %cst_111 = arith.constant 0.353553385 : f32
    %282 = vector.broadcast %cst_111 : f32 to vector<16x8xf32>
    %283 = arith.mulf %281, %282 : vector<16x8xf32>
    %284 = vector.extract_strided_slice %280 {offsets = [0, 32], sizes = [16, 8], strides = [1, 1]} : vector<16x96xf32> to vector<16x8xf32>
    %285 = vector.extract_strided_slice %280 {offsets = [0, 64], sizes = [16, 8], strides = [1, 1]} : vector<16x96xf32> to vector<16x8xf32>
    %cst_112 = arith.constant dense<0.000000e+00> : vector<16x16xf32>
    %286 = tpu.matmul %283, %284, %cst_112 {dimension_numbers = #tpu.dot_dimension_numbers<[1], [1], [0], [0], [0, 0, 1, 0], [], []>} : vector<16x8xf32>, vector<16x8xf32>, vector<16x16xf32> -> vector<16x16xf32>
    %cst_113 = arith.constant dense<0xFF800000> : vector<16xf32>
    %287 = vector.multi_reduction <maximumf>, %286, %cst_113 [1] : vector<16x16xf32> to vector<16xf32>
    %288 = vector.shape_cast %287 : vector<16xf32> to vector<16x1xf32>
    %289 = vector.broadcast %288 : vector<16x1xf32> to vector<16x16xf32>
    %290 = arith.subf %286, %289 : vector<16x16xf32>
    %291 = math.exp %290 : vector<16x16xf32>
    %cst_114 = arith.constant dense<0.000000e+00> : vector<16xf32>
    %292 = vector.multi_reduction <add>, %291, %cst_114 [1] : vector<16x16xf32> to vector<16xf32>
    %293 = vector.shape_cast %292 : vector<16xf32> to vector<16x1xf32>
    %294 = tpu.reciprocal %293 {approx = true} : vector<16x1xf32> -> vector<16x1xf32>
    %295 = vector.broadcast %294 : vector<16x1xf32> to vector<16x16xf32>
    %296 = arith.mulf %291, %295 : vector<16x16xf32>
    %cst_115 = arith.constant dense<0.000000e+00> : vector<16x8xf32>
    %297 = tpu.matmul %296, %285, %cst_115 {dimension_numbers = #tpu.dot_dimension_numbers<[1], [0], [0], [1], [0, 0, 1, 1], [], []>} : vector<16x16xf32>, vector<16x8xf32>, vector<16x8xf32> -> vector<16x8xf32>
    %298 = vector.extract_strided_slice %280 {offsets = [0, 8], sizes = [16, 8], strides = [1, 1]} : vector<16x96xf32> to vector<16x8xf32>
    %cst_116 = arith.constant 0.353553385 : f32
    %299 = vector.broadcast %cst_116 : f32 to vector<16x8xf32>
    %300 = arith.mulf %298, %299 : vector<16x8xf32>
    %301 = vector.extract_strided_slice %280 {offsets = [0, 40], sizes = [16, 8], strides = [1, 1]} : vector<16x96xf32> to vector<16x8xf32>
    %302 = vector.extract_strided_slice %280 {offsets = [0, 72], sizes = [16, 8], strides = [1, 1]} : vector<16x96xf32> to vector<16x8xf32>
    %cst_117 = arith.constant dense<0.000000e+00> : vector<16x16xf32>
    %303 = tpu.matmul %300, %301, %cst_117 {dimension_numbers = #tpu.dot_dimension_numbers<[1], [1], [0], [0], [0, 0, 1, 0], [], []>} : vector<16x8xf32>, vector<16x8xf32>, vector<16x16xf32> -> vector<16x16xf32>
    %cst_118 = arith.constant dense<0xFF800000> : vector<16xf32>
    %304 = vector.multi_reduction <maximumf>, %303, %cst_118 [1] : vector<16x16xf32> to vector<16xf32>
    %305 = vector.shape_cast %304 : vector<16xf32> to vector<16x1xf32>
    %306 = vector.broadcast %305 : vector<16x1xf32> to vector<16x16xf32>
    %307 = arith.subf %303, %306 : vector<16x16xf32>
    %308 = math.exp %307 : vector<16x16xf32>
    %cst_119 = arith.constant dense<0.000000e+00> : vector<16xf32>
    %309 = vector.multi_reduction <add>, %308, %cst_119 [1] : vector<16x16xf32> to vector<16xf32>
    %310 = vector.shape_cast %309 : vector<16xf32> to vector<16x1xf32>
    %311 = tpu.reciprocal %310 {approx = true} : vector<16x1xf32> -> vector<16x1xf32>
    %312 = vector.broadcast %311 : vector<16x1xf32> to vector<16x16xf32>
    %313 = arith.mulf %308, %312 : vector<16x16xf32>
    %cst_120 = arith.constant dense<0.000000e+00> : vector<16x8xf32>
    %314 = tpu.matmul %313, %302, %cst_120 {dimension_numbers = #tpu.dot_dimension_numbers<[1], [0], [0], [1], [0, 0, 1, 1], [], []>} : vector<16x16xf32>, vector<16x8xf32>, vector<16x8xf32> -> vector<16x8xf32>
    %315 = vector.extract_strided_slice %280 {offsets = [0, 16], sizes = [16, 8], strides = [1, 1]} : vector<16x96xf32> to vector<16x8xf32>
    %cst_121 = arith.constant 0.353553385 : f32
    %316 = vector.broadcast %cst_121 : f32 to vector<16x8xf32>
    %317 = arith.mulf %315, %316 : vector<16x8xf32>
    %318 = vector.extract_strided_slice %280 {offsets = [0, 48], sizes = [16, 8], strides = [1, 1]} : vector<16x96xf32> to vector<16x8xf32>
    %319 = vector.extract_strided_slice %280 {offsets = [0, 80], sizes = [16, 8], strides = [1, 1]} : vector<16x96xf32> to vector<16x8xf32>
    %cst_122 = arith.constant dense<0.000000e+00> : vector<16x16xf32>
    %320 = tpu.matmul %317, %318, %cst_122 {dimension_numbers = #tpu.dot_dimension_numbers<[1], [1], [0], [0], [0, 0, 1, 0], [], []>} : vector<16x8xf32>, vector<16x8xf32>, vector<16x16xf32> -> vector<16x16xf32>
    %cst_123 = arith.constant dense<0xFF800000> : vector<16xf32>
    %321 = vector.multi_reduction <maximumf>, %320, %cst_123 [1] : vector<16x16xf32> to vector<16xf32>
    %322 = vector.shape_cast %321 : vector<16xf32> to vector<16x1xf32>
    %323 = vector.broadcast %322 : vector<16x1xf32> to vector<16x16xf32>
    %324 = arith.subf %320, %323 : vector<16x16xf32>
    %325 = math.exp %324 : vector<16x16xf32>
    %cst_124 = arith.constant dense<0.000000e+00> : vector<16xf32>
    %326 = vector.multi_reduction <add>, %325, %cst_124 [1] : vector<16x16xf32> to vector<16xf32>
    %327 = vector.shape_cast %326 : vector<16xf32> to vector<16x1xf32>
    %328 = tpu.reciprocal %327 {approx = true} : vector<16x1xf32> -> vector<16x1xf32>
    %329 = vector.broadcast %328 : vector<16x1xf32> to vector<16x16xf32>
    %330 = arith.mulf %325, %329 : vector<16x16xf32>
    %cst_125 = arith.constant dense<0.000000e+00> : vector<16x8xf32>
    %331 = tpu.matmul %330, %319, %cst_125 {dimension_numbers = #tpu.dot_dimension_numbers<[1], [0], [0], [1], [0, 0, 1, 1], [], []>} : vector<16x16xf32>, vector<16x8xf32>, vector<16x8xf32> -> vector<16x8xf32>
    %332 = vector.extract_strided_slice %280 {offsets = [0, 24], sizes = [16, 8], strides = [1, 1]} : vector<16x96xf32> to vector<16x8xf32>
    %cst_126 = arith.constant 0.353553385 : f32
    %333 = vector.broadcast %cst_126 : f32 to vector<16x8xf32>
    %334 = arith.mulf %332, %333 : vector<16x8xf32>
    %335 = vector.extract_strided_slice %280 {offsets = [0, 56], sizes = [16, 8], strides = [1, 1]} : vector<16x96xf32> to vector<16x8xf32>
    %336 = vector.extract_strided_slice %280 {offsets = [0, 88], sizes = [16, 8], strides = [1, 1]} : vector<16x96xf32> to vector<16x8xf32>
    %cst_127 = arith.constant dense<0.000000e+00> : vector<16x16xf32>
    %337 = tpu.matmul %334, %335, %cst_127 {dimension_numbers = #tpu.dot_dimension_numbers<[1], [1], [0], [0], [0, 0, 1, 0], [], []>} : vector<16x8xf32>, vector<16x8xf32>, vector<16x16xf32> -> vector<16x16xf32>
    %cst_128 = arith.constant dense<0xFF800000> : vector<16xf32>
    %338 = vector.multi_reduction <maximumf>, %337, %cst_128 [1] : vector<16x16xf32> to vector<16xf32>
    %339 = vector.shape_cast %338 : vector<16xf32> to vector<16x1xf32>
    %340 = vector.broadcast %339 : vector<16x1xf32> to vector<16x16xf32>
    %341 = arith.subf %337, %340 : vector<16x16xf32>
    %342 = math.exp %341 : vector<16x16xf32>
    %cst_129 = arith.constant dense<0.000000e+00> : vector<16xf32>
    %343 = vector.multi_reduction <add>, %342, %cst_129 [1] : vector<16x16xf32> to vector<16xf32>
    %344 = vector.shape_cast %343 : vector<16xf32> to vector<16x1xf32>
    %345 = tpu.reciprocal %344 {approx = true} : vector<16x1xf32> -> vector<16x1xf32>
    %346 = vector.broadcast %345 : vector<16x1xf32> to vector<16x16xf32>
    %347 = arith.mulf %342, %346 : vector<16x16xf32>
    %cst_130 = arith.constant dense<0.000000e+00> : vector<16x8xf32>
    %348 = tpu.matmul %347, %336, %cst_130 {dimension_numbers = #tpu.dot_dimension_numbers<[1], [0], [0], [1], [0, 0, 1, 1], [], []>} : vector<16x16xf32>, vector<16x8xf32>, vector<16x8xf32> -> vector<16x8xf32>
    %349 = tpu.concatenate %297, %314, %331, %348 in 1 : vector<16x8xf32>, vector<16x8xf32>, vector<16x8xf32>, vector<16x8xf32> -> vector<16x32xf32>
    %350 = vector.extract_strided_slice %279 {offsets = [16, 0], sizes = [16, 96], strides = [1, 1]} : vector<32x96xf32> to vector<16x96xf32>
    %351 = vector.extract_strided_slice %350 {offsets = [0, 0], sizes = [16, 8], strides = [1, 1]} : vector<16x96xf32> to vector<16x8xf32>
    %cst_131 = arith.constant 0.353553385 : f32
    %352 = vector.broadcast %cst_131 : f32 to vector<16x8xf32>
    %353 = arith.mulf %351, %352 : vector<16x8xf32>
    %354 = vector.extract_strided_slice %350 {offsets = [0, 32], sizes = [16, 8], strides = [1, 1]} : vector<16x96xf32> to vector<16x8xf32>
    %355 = vector.extract_strided_slice %350 {offsets = [0, 64], sizes = [16, 8], strides = [1, 1]} : vector<16x96xf32> to vector<16x8xf32>
    %cst_132 = arith.constant dense<0.000000e+00> : vector<16x16xf32>
    %356 = tpu.matmul %353, %354, %cst_132 {dimension_numbers = #tpu.dot_dimension_numbers<[1], [1], [0], [0], [0, 0, 1, 0], [], []>} : vector<16x8xf32>, vector<16x8xf32>, vector<16x16xf32> -> vector<16x16xf32>
    %cst_133 = arith.constant dense<0xFF800000> : vector<16xf32>
    %357 = vector.multi_reduction <maximumf>, %356, %cst_133 [1] : vector<16x16xf32> to vector<16xf32>
    %358 = vector.shape_cast %357 : vector<16xf32> to vector<16x1xf32>
    %359 = vector.broadcast %358 : vector<16x1xf32> to vector<16x16xf32>
    %360 = arith.subf %356, %359 : vector<16x16xf32>
    %361 = math.exp %360 : vector<16x16xf32>
    %cst_134 = arith.constant dense<0.000000e+00> : vector<16xf32>
    %362 = vector.multi_reduction <add>, %361, %cst_134 [1] : vector<16x16xf32> to vector<16xf32>
    %363 = vector.shape_cast %362 : vector<16xf32> to vector<16x1xf32>
    %364 = tpu.reciprocal %363 {approx = true} : vector<16x1xf32> -> vector<16x1xf32>
    %365 = vector.broadcast %364 : vector<16x1xf32> to vector<16x16xf32>
    %366 = arith.mulf %361, %365 : vector<16x16xf32>
    %cst_135 = arith.constant dense<0.000000e+00> : vector<16x8xf32>
    %367 = tpu.matmul %366, %355, %cst_135 {dimension_numbers = #tpu.dot_dimension_numbers<[1], [0], [0], [1], [0, 0, 1, 1], [], []>} : vector<16x16xf32>, vector<16x8xf32>, vector<16x8xf32> -> vector<16x8xf32>
    %368 = vector.extract_strided_slice %350 {offsets = [0, 8], sizes = [16, 8], strides = [1, 1]} : vector<16x96xf32> to vector<16x8xf32>
    %cst_136 = arith.constant 0.353553385 : f32
    %369 = vector.broadcast %cst_136 : f32 to vector<16x8xf32>
    %370 = arith.mulf %368, %369 : vector<16x8xf32>
    %371 = vector.extract_strided_slice %350 {offsets = [0, 40], sizes = [16, 8], strides = [1, 1]} : vector<16x96xf32> to vector<16x8xf32>
    %372 = vector.extract_strided_slice %350 {offsets = [0, 72], sizes = [16, 8], strides = [1, 1]} : vector<16x96xf32> to vector<16x8xf32>
    %cst_137 = arith.constant dense<0.000000e+00> : vector<16x16xf32>
    %373 = tpu.matmul %370, %371, %cst_137 {dimension_numbers = #tpu.dot_dimension_numbers<[1], [1], [0], [0], [0, 0, 1, 0], [], []>} : vector<16x8xf32>, vector<16x8xf32>, vector<16x16xf32> -> vector<16x16xf32>
    %cst_138 = arith.constant dense<0xFF800000> : vector<16xf32>
    %374 = vector.multi_reduction <maximumf>, %373, %cst_138 [1] : vector<16x16xf32> to vector<16xf32>
    %375 = vector.shape_cast %374 : vector<16xf32> to vector<16x1xf32>
    %376 = vector.broadcast %375 : vector<16x1xf32> to vector<16x16xf32>
    %377 = arith.subf %373, %376 : vector<16x16xf32>
    %378 = math.exp %377 : vector<16x16xf32>
    %cst_139 = arith.constant dense<0.000000e+00> : vector<16xf32>
    %379 = vector.multi_reduction <add>, %378, %cst_139 [1] : vector<16x16xf32> to vector<16xf32>
    %380 = vector.shape_cast %379 : vector<16xf32> to vector<16x1xf32>
    %381 = tpu.reciprocal %380 {approx = true} : vector<16x1xf32> -> vector<16x1xf32>
    %382 = vector.broadcast %381 : vector<16x1xf32> to vector<16x16xf32>
    %383 = arith.mulf %378, %382 : vector<16x16xf32>
    %cst_140 = arith.constant dense<0.000000e+00> : vector<16x8xf32>
    %384 = tpu.matmul %383, %372, %cst_140 {dimension_numbers = #tpu.dot_dimension_numbers<[1], [0], [0], [1], [0, 0, 1, 1], [], []>} : vector<16x16xf32>, vector<16x8xf32>, vector<16x8xf32> -> vector<16x8xf32>
    %385 = vector.extract_strided_slice %350 {offsets = [0, 16], sizes = [16, 8], strides = [1, 1]} : vector<16x96xf32> to vector<16x8xf32>
    %cst_141 = arith.constant 0.353553385 : f32
    %386 = vector.broadcast %cst_141 : f32 to vector<16x8xf32>
    %387 = arith.mulf %385, %386 : vector<16x8xf32>
    %388 = vector.extract_strided_slice %350 {offsets = [0, 48], sizes = [16, 8], strides = [1, 1]} : vector<16x96xf32> to vector<16x8xf32>
    %389 = vector.extract_strided_slice %350 {offsets = [0, 80], sizes = [16, 8], strides = [1, 1]} : vector<16x96xf32> to vector<16x8xf32>
    %cst_142 = arith.constant dense<0.000000e+00> : vector<16x16xf32>
    %390 = tpu.matmul %387, %388, %cst_142 {dimension_numbers = #tpu.dot_dimension_numbers<[1], [1], [0], [0], [0, 0, 1, 0], [], []>} : vector<16x8xf32>, vector<16x8xf32>, vector<16x16xf32> -> vector<16x16xf32>
    %cst_143 = arith.constant dense<0xFF800000> : vector<16xf32>
    %391 = vector.multi_reduction <maximumf>, %390, %cst_143 [1] : vector<16x16xf32> to vector<16xf32>
    %392 = vector.shape_cast %391 : vector<16xf32> to vector<16x1xf32>
    %393 = vector.broadcast %392 : vector<16x1xf32> to vector<16x16xf32>
    %394 = arith.subf %390, %393 : vector<16x16xf32>
    %395 = math.exp %394 : vector<16x16xf32>
    %cst_144 = arith.constant dense<0.000000e+00> : vector<16xf32>
    %396 = vector.multi_reduction <add>, %395, %cst_144 [1] : vector<16x16xf32> to vector<16xf32>
    %397 = vector.shape_cast %396 : vector<16xf32> to vector<16x1xf32>
    %398 = tpu.reciprocal %397 {approx = true} : vector<16x1xf32> -> vector<16x1xf32>
    %399 = vector.broadcast %398 : vector<16x1xf32> to vector<16x16xf32>
    %400 = arith.mulf %395, %399 : vector<16x16xf32>
    %cst_145 = arith.constant dense<0.000000e+00> : vector<16x8xf32>
    %401 = tpu.matmul %400, %389, %cst_145 {dimension_numbers = #tpu.dot_dimension_numbers<[1], [0], [0], [1], [0, 0, 1, 1], [], []>} : vector<16x16xf32>, vector<16x8xf32>, vector<16x8xf32> -> vector<16x8xf32>
    %402 = vector.extract_strided_slice %350 {offsets = [0, 24], sizes = [16, 8], strides = [1, 1]} : vector<16x96xf32> to vector<16x8xf32>
    %cst_146 = arith.constant 0.353553385 : f32
    %403 = vector.broadcast %cst_146 : f32 to vector<16x8xf32>
    %404 = arith.mulf %402, %403 : vector<16x8xf32>
    %405 = vector.extract_strided_slice %350 {offsets = [0, 56], sizes = [16, 8], strides = [1, 1]} : vector<16x96xf32> to vector<16x8xf32>
    %406 = vector.extract_strided_slice %350 {offsets = [0, 88], sizes = [16, 8], strides = [1, 1]} : vector<16x96xf32> to vector<16x8xf32>
    %cst_147 = arith.constant dense<0.000000e+00> : vector<16x16xf32>
    %407 = tpu.matmul %404, %405, %cst_147 {dimension_numbers = #tpu.dot_dimension_numbers<[1], [1], [0], [0], [0, 0, 1, 0], [], []>} : vector<16x8xf32>, vector<16x8xf32>, vector<16x16xf32> -> vector<16x16xf32>
    %cst_148 = arith.constant dense<0xFF800000> : vector<16xf32>
    %408 = vector.multi_reduction <maximumf>, %407, %cst_148 [1] : vector<16x16xf32> to vector<16xf32>
    %409 = vector.shape_cast %408 : vector<16xf32> to vector<16x1xf32>
    %410 = vector.broadcast %409 : vector<16x1xf32> to vector<16x16xf32>
    %411 = arith.subf %407, %410 : vector<16x16xf32>
    %412 = math.exp %411 : vector<16x16xf32>
    %cst_149 = arith.constant dense<0.000000e+00> : vector<16xf32>
    %413 = vector.multi_reduction <add>, %412, %cst_149 [1] : vector<16x16xf32> to vector<16xf32>
    %414 = vector.shape_cast %413 : vector<16xf32> to vector<16x1xf32>
    %415 = tpu.reciprocal %414 {approx = true} : vector<16x1xf32> -> vector<16x1xf32>
    %416 = vector.broadcast %415 : vector<16x1xf32> to vector<16x16xf32>
    %417 = arith.mulf %412, %416 : vector<16x16xf32>
    %cst_150 = arith.constant dense<0.000000e+00> : vector<16x8xf32>
    %418 = tpu.matmul %417, %406, %cst_150 {dimension_numbers = #tpu.dot_dimension_numbers<[1], [0], [0], [1], [0, 0, 1, 1], [], []>} : vector<16x16xf32>, vector<16x8xf32>, vector<16x8xf32> -> vector<16x8xf32>
    %419 = tpu.concatenate %367, %384, %401, %418 in 1 : vector<16x8xf32>, vector<16x8xf32>, vector<16x8xf32>, vector<16x8xf32> -> vector<16x32xf32>
    %420 = tpu.concatenate %349, %419 in 0 : vector<16x32xf32>, vector<16x32xf32> -> vector<32x32xf32>
    %c1_151 = arith.constant 1 : index
    %c0_152 = arith.constant 0 : index
    %c0_153 = arith.constant 0 : index
    %421 = vector.load %arg11[%c1_151, %c0_152, %c0_153] : memref<4x32x32xf32, #tpu.memory_space<vmem>>, vector<1x32x32xf32>
    %422 = vector.shape_cast %421 : vector<1x32x32xf32> to vector<32x32xf32>
    %cst_154 = arith.constant dense<0.000000e+00> : vector<32x32xf32>
    %423 = tpu.matmul %420, %422, %cst_154 {dimension_numbers = #tpu.dot_dimension_numbers<[1], [0], [0], [1], [0, 0, 1, 1], [], []>} : vector<32x32xf32>, vector<32x32xf32>, vector<32x32xf32> -> vector<32x32xf32>
    %c1_155 = arith.constant 1 : index
    %c0_156 = arith.constant 0 : index
    %424 = vector.load %arg12[%c1_155, %c0_156] : memref<4x32xf32, #tpu.memory_space<vmem>>, vector<1x32xf32>
    %425 = vector.broadcast %424 : vector<1x32xf32> to vector<32x32xf32>
    %426 = arith.addf %423, %425 : vector<32x32xf32>
    %427 = arith.addf %252, %426 : vector<32x32xf32>
    %c1_157 = arith.constant 1 : index
    %c0_158 = arith.constant 0 : index
    %428 = vector.load %arg13[%c1_157, %c0_158] : memref<4x32xf32, #tpu.memory_space<vmem>>, vector<1x32xf32>
    %c1_159 = arith.constant 1 : index
    %c0_160 = arith.constant 0 : index
    %429 = vector.load %arg14[%c1_159, %c0_160] : memref<4x32xf32, #tpu.memory_space<vmem>>, vector<1x32xf32>
    %cst_161 = arith.constant dense<0.000000e+00> : vector<32xf32>
    %430 = vector.multi_reduction <add>, %427, %cst_161 [1] : vector<32x32xf32> to vector<32xf32>
    %431 = vector.shape_cast %430 : vector<32xf32> to vector<32x1xf32>
    %cst_162 = arith.constant 3.200000e+01 : f32
    %432 = vector.broadcast %cst_162 : f32 to vector<32x1xf32>
    %433 = arith.divf %431, %432 : vector<32x1xf32>
    %434 = vector.broadcast %433 : vector<32x1xf32> to vector<32x32xf32>
    %435 = arith.subf %427, %434 : vector<32x32xf32>
    %436 = arith.mulf %435, %435 : vector<32x32xf32>
    %cst_163 = arith.constant dense<0.000000e+00> : vector<32xf32>
    %437 = vector.multi_reduction <add>, %436, %cst_163 [1] : vector<32x32xf32> to vector<32xf32>
    %438 = vector.shape_cast %437 : vector<32xf32> to vector<32x1xf32>
    %cst_164 = arith.constant 3.200000e+01 : f32
    %439 = vector.broadcast %cst_164 : f32 to vector<32x1xf32>
    %440 = arith.divf %438, %439 : vector<32x1xf32>
    %441 = vector.broadcast %433 : vector<32x1xf32> to vector<32x32xf32>
    %442 = arith.subf %427, %441 : vector<32x32xf32>
    %cst_165 = arith.constant 9.99999974E-6 : f32
    %443 = vector.broadcast %cst_165 : f32 to vector<32x1xf32>
    %444 = arith.addf %440, %443 : vector<32x1xf32>
    %445 = math.rsqrt %444 : vector<32x1xf32>
    %446 = vector.broadcast %445 : vector<32x1xf32> to vector<32x32xf32>
    %447 = arith.mulf %442, %446 : vector<32x32xf32>
    %448 = vector.broadcast %428 : vector<1x32xf32> to vector<32x32xf32>
    %449 = arith.mulf %447, %448 : vector<32x32xf32>
    %450 = vector.broadcast %429 : vector<1x32xf32> to vector<32x32xf32>
    %451 = arith.addf %449, %450 : vector<32x32xf32>
    %c1_166 = arith.constant 1 : index
    %c0_167 = arith.constant 0 : index
    %c0_168 = arith.constant 0 : index
    %452 = vector.load %arg15[%c1_166, %c0_167, %c0_168] : memref<4x32x64xf32, #tpu.memory_space<vmem>>, vector<1x32x64xf32>
    %453 = vector.shape_cast %452 : vector<1x32x64xf32> to vector<32x64xf32>
    %cst_169 = arith.constant dense<0.000000e+00> : vector<32x64xf32>
    %454 = tpu.matmul %451, %453, %cst_169 {dimension_numbers = #tpu.dot_dimension_numbers<[1], [0], [0], [1], [0, 0, 1, 1], [], []>} : vector<32x32xf32>, vector<32x64xf32>, vector<32x64xf32> -> vector<32x64xf32>
    %c1_170 = arith.constant 1 : index
    %c0_171 = arith.constant 0 : index
    %455 = vector.load %arg16[%c1_170, %c0_171] : memref<4x64xf32, #tpu.memory_space<vmem>>, vector<1x64xf32>
    %456 = vector.broadcast %455 : vector<1x64xf32> to vector<32x64xf32>
    %457 = arith.addf %454, %456 : vector<32x64xf32>
    %cst_172 = arith.constant 5.000000e-01 : f32
    %458 = vector.broadcast %cst_172 : f32 to vector<32x64xf32>
    %459 = arith.mulf %458, %457 : vector<32x64xf32>
    %cst_173 = arith.constant 0.707106769 : f32
    %460 = vector.broadcast %cst_173 : f32 to vector<32x64xf32>
    %461 = arith.mulf %457, %460 : vector<32x64xf32>
    %462 = math.erf %461 : vector<32x64xf32>
    %cst_174 = arith.constant 1.000000e+00 : f32
    %463 = vector.broadcast %cst_174 : f32 to vector<32x64xf32>
    %464 = arith.addf %463, %462 : vector<32x64xf32>
    %465 = arith.mulf %459, %464 : vector<32x64xf32>
    %c1_175 = arith.constant 1 : index
    %c0_176 = arith.constant 0 : index
    %c0_177 = arith.constant 0 : index
    %466 = vector.load %arg17[%c1_175, %c0_176, %c0_177] : memref<4x64x32xf32, #tpu.memory_space<vmem>>, vector<1x64x32xf32>
    %467 = vector.shape_cast %466 : vector<1x64x32xf32> to vector<64x32xf32>
    %cst_178 = arith.constant dense<0.000000e+00> : vector<32x32xf32>
    %468 = tpu.matmul %465, %467, %cst_178 {dimension_numbers = #tpu.dot_dimension_numbers<[1], [0], [0], [1], [0, 0, 1, 1], [], []>} : vector<32x64xf32>, vector<64x32xf32>, vector<32x32xf32> -> vector<32x32xf32>
    %469 = arith.addf %427, %468 : vector<32x32xf32>
    %c1_179 = arith.constant 1 : index
    %c0_180 = arith.constant 0 : index
    %470 = vector.load %arg18[%c1_179, %c0_180] : memref<4x32xf32, #tpu.memory_space<vmem>>, vector<1x32xf32>
    %471 = vector.broadcast %470 : vector<1x32xf32> to vector<32x32xf32>
    %472 = arith.addf %469, %471 : vector<32x32xf32>
    %c0_181 = arith.constant 0 : index
    %c0_182 = arith.constant 0 : index
    %473 = vector.load %arg3[%c0_181, %c0_182] : memref<16x32xf32, #tpu.memory_space<vmem>>, vector<16x32xf32>
    %474 = tpu.concatenate %473, %473 in 0 : vector<16x32xf32>, vector<16x32xf32> -> vector<32x32xf32>
    %475 = arith.addf %472, %474 : vector<32x32xf32>
    %c2 = arith.constant 2 : index
    %c0_183 = arith.constant 0 : index
    %476 = vector.load %arg8[%c2, %c0_183] : memref<4x32xf32, #tpu.memory_space<vmem>>, vector<1x32xf32>
    %c2_184 = arith.constant 2 : index
    %c0_185 = arith.constant 0 : index
    %477 = vector.load %arg9[%c2_184, %c0_185] : memref<4x32xf32, #tpu.memory_space<vmem>>, vector<1x32xf32>
    %cst_186 = arith.constant dense<0.000000e+00> : vector<32xf32>
    %478 = vector.multi_reduction <add>, %475, %cst_186 [1] : vector<32x32xf32> to vector<32xf32>
    %479 = vector.shape_cast %478 : vector<32xf32> to vector<32x1xf32>
    %cst_187 = arith.constant 3.200000e+01 : f32
    %480 = vector.broadcast %cst_187 : f32 to vector<32x1xf32>
    %481 = arith.divf %479, %480 : vector<32x1xf32>
    %482 = vector.broadcast %481 : vector<32x1xf32> to vector<32x32xf32>
    %483 = arith.subf %475, %482 : vector<32x32xf32>
    %484 = arith.mulf %483, %483 : vector<32x32xf32>
    %cst_188 = arith.constant dense<0.000000e+00> : vector<32xf32>
    %485 = vector.multi_reduction <add>, %484, %cst_188 [1] : vector<32x32xf32> to vector<32xf32>
    %486 = vector.shape_cast %485 : vector<32xf32> to vector<32x1xf32>
    %cst_189 = arith.constant 3.200000e+01 : f32
    %487 = vector.broadcast %cst_189 : f32 to vector<32x1xf32>
    %488 = arith.divf %486, %487 : vector<32x1xf32>
    %489 = vector.broadcast %481 : vector<32x1xf32> to vector<32x32xf32>
    %490 = arith.subf %475, %489 : vector<32x32xf32>
    %cst_190 = arith.constant 9.99999974E-6 : f32
    %491 = vector.broadcast %cst_190 : f32 to vector<32x1xf32>
    %492 = arith.addf %488, %491 : vector<32x1xf32>
    %493 = math.rsqrt %492 : vector<32x1xf32>
    %494 = vector.broadcast %493 : vector<32x1xf32> to vector<32x32xf32>
    %495 = arith.mulf %490, %494 : vector<32x32xf32>
    %496 = vector.broadcast %476 : vector<1x32xf32> to vector<32x32xf32>
    %497 = arith.mulf %495, %496 : vector<32x32xf32>
    %498 = vector.broadcast %477 : vector<1x32xf32> to vector<32x32xf32>
    %499 = arith.addf %497, %498 : vector<32x32xf32>
    %c2_191 = arith.constant 2 : index
    %c0_192 = arith.constant 0 : index
    %c0_193 = arith.constant 0 : index
    %500 = vector.load %arg10[%c2_191, %c0_192, %c0_193] : memref<4x32x96xf32, #tpu.memory_space<vmem>>, vector<1x32x96xf32>
    %501 = vector.shape_cast %500 : vector<1x32x96xf32> to vector<32x96xf32>
    %cst_194 = arith.constant dense<0.000000e+00> : vector<32x96xf32>
    %502 = tpu.matmul %499, %501, %cst_194 {dimension_numbers = #tpu.dot_dimension_numbers<[1], [0], [0], [1], [0, 0, 1, 1], [], []>} : vector<32x32xf32>, vector<32x96xf32>, vector<32x96xf32> -> vector<32x96xf32>
    %503 = vector.extract_strided_slice %502 {offsets = [0, 0], sizes = [16, 96], strides = [1, 1]} : vector<32x96xf32> to vector<16x96xf32>
    %504 = vector.extract_strided_slice %503 {offsets = [0, 0], sizes = [16, 8], strides = [1, 1]} : vector<16x96xf32> to vector<16x8xf32>
    %cst_195 = arith.constant 0.353553385 : f32
    %505 = vector.broadcast %cst_195 : f32 to vector<16x8xf32>
    %506 = arith.mulf %504, %505 : vector<16x8xf32>
    %507 = vector.extract_strided_slice %503 {offsets = [0, 32], sizes = [16, 8], strides = [1, 1]} : vector<16x96xf32> to vector<16x8xf32>
    %508 = vector.extract_strided_slice %503 {offsets = [0, 64], sizes = [16, 8], strides = [1, 1]} : vector<16x96xf32> to vector<16x8xf32>
    %cst_196 = arith.constant dense<0.000000e+00> : vector<16x16xf32>
    %509 = tpu.matmul %506, %507, %cst_196 {dimension_numbers = #tpu.dot_dimension_numbers<[1], [1], [0], [0], [0, 0, 1, 0], [], []>} : vector<16x8xf32>, vector<16x8xf32>, vector<16x16xf32> -> vector<16x16xf32>
    %cst_197 = arith.constant dense<0xFF800000> : vector<16xf32>
    %510 = vector.multi_reduction <maximumf>, %509, %cst_197 [1] : vector<16x16xf32> to vector<16xf32>
    %511 = vector.shape_cast %510 : vector<16xf32> to vector<16x1xf32>
    %512 = vector.broadcast %511 : vector<16x1xf32> to vector<16x16xf32>
    %513 = arith.subf %509, %512 : vector<16x16xf32>
    %514 = math.exp %513 : vector<16x16xf32>
    %cst_198 = arith.constant dense<0.000000e+00> : vector<16xf32>
    %515 = vector.multi_reduction <add>, %514, %cst_198 [1] : vector<16x16xf32> to vector<16xf32>
    %516 = vector.shape_cast %515 : vector<16xf32> to vector<16x1xf32>
    %517 = tpu.reciprocal %516 {approx = true} : vector<16x1xf32> -> vector<16x1xf32>
    %518 = vector.broadcast %517 : vector<16x1xf32> to vector<16x16xf32>
    %519 = arith.mulf %514, %518 : vector<16x16xf32>
    %cst_199 = arith.constant dense<0.000000e+00> : vector<16x8xf32>
    %520 = tpu.matmul %519, %508, %cst_199 {dimension_numbers = #tpu.dot_dimension_numbers<[1], [0], [0], [1], [0, 0, 1, 1], [], []>} : vector<16x16xf32>, vector<16x8xf32>, vector<16x8xf32> -> vector<16x8xf32>
    %521 = vector.extract_strided_slice %503 {offsets = [0, 8], sizes = [16, 8], strides = [1, 1]} : vector<16x96xf32> to vector<16x8xf32>
    %cst_200 = arith.constant 0.353553385 : f32
    %522 = vector.broadcast %cst_200 : f32 to vector<16x8xf32>
    %523 = arith.mulf %521, %522 : vector<16x8xf32>
    %524 = vector.extract_strided_slice %503 {offsets = [0, 40], sizes = [16, 8], strides = [1, 1]} : vector<16x96xf32> to vector<16x8xf32>
    %525 = vector.extract_strided_slice %503 {offsets = [0, 72], sizes = [16, 8], strides = [1, 1]} : vector<16x96xf32> to vector<16x8xf32>
    %cst_201 = arith.constant dense<0.000000e+00> : vector<16x16xf32>
    %526 = tpu.matmul %523, %524, %cst_201 {dimension_numbers = #tpu.dot_dimension_numbers<[1], [1], [0], [0], [0, 0, 1, 0], [], []>} : vector<16x8xf32>, vector<16x8xf32>, vector<16x16xf32> -> vector<16x16xf32>
    %cst_202 = arith.constant dense<0xFF800000> : vector<16xf32>
    %527 = vector.multi_reduction <maximumf>, %526, %cst_202 [1] : vector<16x16xf32> to vector<16xf32>
    %528 = vector.shape_cast %527 : vector<16xf32> to vector<16x1xf32>
    %529 = vector.broadcast %528 : vector<16x1xf32> to vector<16x16xf32>
    %530 = arith.subf %526, %529 : vector<16x16xf32>
    %531 = math.exp %530 : vector<16x16xf32>
    %cst_203 = arith.constant dense<0.000000e+00> : vector<16xf32>
    %532 = vector.multi_reduction <add>, %531, %cst_203 [1] : vector<16x16xf32> to vector<16xf32>
    %533 = vector.shape_cast %532 : vector<16xf32> to vector<16x1xf32>
    %534 = tpu.reciprocal %533 {approx = true} : vector<16x1xf32> -> vector<16x1xf32>
    %535 = vector.broadcast %534 : vector<16x1xf32> to vector<16x16xf32>
    %536 = arith.mulf %531, %535 : vector<16x16xf32>
    %cst_204 = arith.constant dense<0.000000e+00> : vector<16x8xf32>
    %537 = tpu.matmul %536, %525, %cst_204 {dimension_numbers = #tpu.dot_dimension_numbers<[1], [0], [0], [1], [0, 0, 1, 1], [], []>} : vector<16x16xf32>, vector<16x8xf32>, vector<16x8xf32> -> vector<16x8xf32>
    %538 = vector.extract_strided_slice %503 {offsets = [0, 16], sizes = [16, 8], strides = [1, 1]} : vector<16x96xf32> to vector<16x8xf32>
    %cst_205 = arith.constant 0.353553385 : f32
    %539 = vector.broadcast %cst_205 : f32 to vector<16x8xf32>
    %540 = arith.mulf %538, %539 : vector<16x8xf32>
    %541 = vector.extract_strided_slice %503 {offsets = [0, 48], sizes = [16, 8], strides = [1, 1]} : vector<16x96xf32> to vector<16x8xf32>
    %542 = vector.extract_strided_slice %503 {offsets = [0, 80], sizes = [16, 8], strides = [1, 1]} : vector<16x96xf32> to vector<16x8xf32>
    %cst_206 = arith.constant dense<0.000000e+00> : vector<16x16xf32>
    %543 = tpu.matmul %540, %541, %cst_206 {dimension_numbers = #tpu.dot_dimension_numbers<[1], [1], [0], [0], [0, 0, 1, 0], [], []>} : vector<16x8xf32>, vector<16x8xf32>, vector<16x16xf32> -> vector<16x16xf32>
    %cst_207 = arith.constant dense<0xFF800000> : vector<16xf32>
    %544 = vector.multi_reduction <maximumf>, %543, %cst_207 [1] : vector<16x16xf32> to vector<16xf32>
    %545 = vector.shape_cast %544 : vector<16xf32> to vector<16x1xf32>
    %546 = vector.broadcast %545 : vector<16x1xf32> to vector<16x16xf32>
    %547 = arith.subf %543, %546 : vector<16x16xf32>
    %548 = math.exp %547 : vector<16x16xf32>
    %cst_208 = arith.constant dense<0.000000e+00> : vector<16xf32>
    %549 = vector.multi_reduction <add>, %548, %cst_208 [1] : vector<16x16xf32> to vector<16xf32>
    %550 = vector.shape_cast %549 : vector<16xf32> to vector<16x1xf32>
    %551 = tpu.reciprocal %550 {approx = true} : vector<16x1xf32> -> vector<16x1xf32>
    %552 = vector.broadcast %551 : vector<16x1xf32> to vector<16x16xf32>
    %553 = arith.mulf %548, %552 : vector<16x16xf32>
    %cst_209 = arith.constant dense<0.000000e+00> : vector<16x8xf32>
    %554 = tpu.matmul %553, %542, %cst_209 {dimension_numbers = #tpu.dot_dimension_numbers<[1], [0], [0], [1], [0, 0, 1, 1], [], []>} : vector<16x16xf32>, vector<16x8xf32>, vector<16x8xf32> -> vector<16x8xf32>
    %555 = vector.extract_strided_slice %503 {offsets = [0, 24], sizes = [16, 8], strides = [1, 1]} : vector<16x96xf32> to vector<16x8xf32>
    %cst_210 = arith.constant 0.353553385 : f32
    %556 = vector.broadcast %cst_210 : f32 to vector<16x8xf32>
    %557 = arith.mulf %555, %556 : vector<16x8xf32>
    %558 = vector.extract_strided_slice %503 {offsets = [0, 56], sizes = [16, 8], strides = [1, 1]} : vector<16x96xf32> to vector<16x8xf32>
    %559 = vector.extract_strided_slice %503 {offsets = [0, 88], sizes = [16, 8], strides = [1, 1]} : vector<16x96xf32> to vector<16x8xf32>
    %cst_211 = arith.constant dense<0.000000e+00> : vector<16x16xf32>
    %560 = tpu.matmul %557, %558, %cst_211 {dimension_numbers = #tpu.dot_dimension_numbers<[1], [1], [0], [0], [0, 0, 1, 0], [], []>} : vector<16x8xf32>, vector<16x8xf32>, vector<16x16xf32> -> vector<16x16xf32>
    %cst_212 = arith.constant dense<0xFF800000> : vector<16xf32>
    %561 = vector.multi_reduction <maximumf>, %560, %cst_212 [1] : vector<16x16xf32> to vector<16xf32>
    %562 = vector.shape_cast %561 : vector<16xf32> to vector<16x1xf32>
    %563 = vector.broadcast %562 : vector<16x1xf32> to vector<16x16xf32>
    %564 = arith.subf %560, %563 : vector<16x16xf32>
    %565 = math.exp %564 : vector<16x16xf32>
    %cst_213 = arith.constant dense<0.000000e+00> : vector<16xf32>
    %566 = vector.multi_reduction <add>, %565, %cst_213 [1] : vector<16x16xf32> to vector<16xf32>
    %567 = vector.shape_cast %566 : vector<16xf32> to vector<16x1xf32>
    %568 = tpu.reciprocal %567 {approx = true} : vector<16x1xf32> -> vector<16x1xf32>
    %569 = vector.broadcast %568 : vector<16x1xf32> to vector<16x16xf32>
    %570 = arith.mulf %565, %569 : vector<16x16xf32>
    %cst_214 = arith.constant dense<0.000000e+00> : vector<16x8xf32>
    %571 = tpu.matmul %570, %559, %cst_214 {dimension_numbers = #tpu.dot_dimension_numbers<[1], [0], [0], [1], [0, 0, 1, 1], [], []>} : vector<16x16xf32>, vector<16x8xf32>, vector<16x8xf32> -> vector<16x8xf32>
    %572 = tpu.concatenate %520, %537, %554, %571 in 1 : vector<16x8xf32>, vector<16x8xf32>, vector<16x8xf32>, vector<16x8xf32> -> vector<16x32xf32>
    %573 = vector.extract_strided_slice %502 {offsets = [16, 0], sizes = [16, 96], strides = [1, 1]} : vector<32x96xf32> to vector<16x96xf32>
    %574 = vector.extract_strided_slice %573 {offsets = [0, 0], sizes = [16, 8], strides = [1, 1]} : vector<16x96xf32> to vector<16x8xf32>
    %cst_215 = arith.constant 0.353553385 : f32
    %575 = vector.broadcast %cst_215 : f32 to vector<16x8xf32>
    %576 = arith.mulf %574, %575 : vector<16x8xf32>
    %577 = vector.extract_strided_slice %573 {offsets = [0, 32], sizes = [16, 8], strides = [1, 1]} : vector<16x96xf32> to vector<16x8xf32>
    %578 = vector.extract_strided_slice %573 {offsets = [0, 64], sizes = [16, 8], strides = [1, 1]} : vector<16x96xf32> to vector<16x8xf32>
    %cst_216 = arith.constant dense<0.000000e+00> : vector<16x16xf32>
    %579 = tpu.matmul %576, %577, %cst_216 {dimension_numbers = #tpu.dot_dimension_numbers<[1], [1], [0], [0], [0, 0, 1, 0], [], []>} : vector<16x8xf32>, vector<16x8xf32>, vector<16x16xf32> -> vector<16x16xf32>
    %cst_217 = arith.constant dense<0xFF800000> : vector<16xf32>
    %580 = vector.multi_reduction <maximumf>, %579, %cst_217 [1] : vector<16x16xf32> to vector<16xf32>
    %581 = vector.shape_cast %580 : vector<16xf32> to vector<16x1xf32>
    %582 = vector.broadcast %581 : vector<16x1xf32> to vector<16x16xf32>
    %583 = arith.subf %579, %582 : vector<16x16xf32>
    %584 = math.exp %583 : vector<16x16xf32>
    %cst_218 = arith.constant dense<0.000000e+00> : vector<16xf32>
    %585 = vector.multi_reduction <add>, %584, %cst_218 [1] : vector<16x16xf32> to vector<16xf32>
    %586 = vector.shape_cast %585 : vector<16xf32> to vector<16x1xf32>
    %587 = tpu.reciprocal %586 {approx = true} : vector<16x1xf32> -> vector<16x1xf32>
    %588 = vector.broadcast %587 : vector<16x1xf32> to vector<16x16xf32>
    %589 = arith.mulf %584, %588 : vector<16x16xf32>
    %cst_219 = arith.constant dense<0.000000e+00> : vector<16x8xf32>
    %590 = tpu.matmul %589, %578, %cst_219 {dimension_numbers = #tpu.dot_dimension_numbers<[1], [0], [0], [1], [0, 0, 1, 1], [], []>} : vector<16x16xf32>, vector<16x8xf32>, vector<16x8xf32> -> vector<16x8xf32>
    %591 = vector.extract_strided_slice %573 {offsets = [0, 8], sizes = [16, 8], strides = [1, 1]} : vector<16x96xf32> to vector<16x8xf32>
    %cst_220 = arith.constant 0.353553385 : f32
    %592 = vector.broadcast %cst_220 : f32 to vector<16x8xf32>
    %593 = arith.mulf %591, %592 : vector<16x8xf32>
    %594 = vector.extract_strided_slice %573 {offsets = [0, 40], sizes = [16, 8], strides = [1, 1]} : vector<16x96xf32> to vector<16x8xf32>
    %595 = vector.extract_strided_slice %573 {offsets = [0, 72], sizes = [16, 8], strides = [1, 1]} : vector<16x96xf32> to vector<16x8xf32>
    %cst_221 = arith.constant dense<0.000000e+00> : vector<16x16xf32>
    %596 = tpu.matmul %593, %594, %cst_221 {dimension_numbers = #tpu.dot_dimension_numbers<[1], [1], [0], [0], [0, 0, 1, 0], [], []>} : vector<16x8xf32>, vector<16x8xf32>, vector<16x16xf32> -> vector<16x16xf32>
    %cst_222 = arith.constant dense<0xFF800000> : vector<16xf32>
    %597 = vector.multi_reduction <maximumf>, %596, %cst_222 [1] : vector<16x16xf32> to vector<16xf32>
    %598 = vector.shape_cast %597 : vector<16xf32> to vector<16x1xf32>
    %599 = vector.broadcast %598 : vector<16x1xf32> to vector<16x16xf32>
    %600 = arith.subf %596, %599 : vector<16x16xf32>
    %601 = math.exp %600 : vector<16x16xf32>
    %cst_223 = arith.constant dense<0.000000e+00> : vector<16xf32>
    %602 = vector.multi_reduction <add>, %601, %cst_223 [1] : vector<16x16xf32> to vector<16xf32>
    %603 = vector.shape_cast %602 : vector<16xf32> to vector<16x1xf32>
    %604 = tpu.reciprocal %603 {approx = true} : vector<16x1xf32> -> vector<16x1xf32>
    %605 = vector.broadcast %604 : vector<16x1xf32> to vector<16x16xf32>
    %606 = arith.mulf %601, %605 : vector<16x16xf32>
    %cst_224 = arith.constant dense<0.000000e+00> : vector<16x8xf32>
    %607 = tpu.matmul %606, %595, %cst_224 {dimension_numbers = #tpu.dot_dimension_numbers<[1], [0], [0], [1], [0, 0, 1, 1], [], []>} : vector<16x16xf32>, vector<16x8xf32>, vector<16x8xf32> -> vector<16x8xf32>
    %608 = vector.extract_strided_slice %573 {offsets = [0, 16], sizes = [16, 8], strides = [1, 1]} : vector<16x96xf32> to vector<16x8xf32>
    %cst_225 = arith.constant 0.353553385 : f32
    %609 = vector.broadcast %cst_225 : f32 to vector<16x8xf32>
    %610 = arith.mulf %608, %609 : vector<16x8xf32>
    %611 = vector.extract_strided_slice %573 {offsets = [0, 48], sizes = [16, 8], strides = [1, 1]} : vector<16x96xf32> to vector<16x8xf32>
    %612 = vector.extract_strided_slice %573 {offsets = [0, 80], sizes = [16, 8], strides = [1, 1]} : vector<16x96xf32> to vector<16x8xf32>
    %cst_226 = arith.constant dense<0.000000e+00> : vector<16x16xf32>
    %613 = tpu.matmul %610, %611, %cst_226 {dimension_numbers = #tpu.dot_dimension_numbers<[1], [1], [0], [0], [0, 0, 1, 0], [], []>} : vector<16x8xf32>, vector<16x8xf32>, vector<16x16xf32> -> vector<16x16xf32>
    %cst_227 = arith.constant dense<0xFF800000> : vector<16xf32>
    %614 = vector.multi_reduction <maximumf>, %613, %cst_227 [1] : vector<16x16xf32> to vector<16xf32>
    %615 = vector.shape_cast %614 : vector<16xf32> to vector<16x1xf32>
    %616 = vector.broadcast %615 : vector<16x1xf32> to vector<16x16xf32>
    %617 = arith.subf %613, %616 : vector<16x16xf32>
    %618 = math.exp %617 : vector<16x16xf32>
    %cst_228 = arith.constant dense<0.000000e+00> : vector<16xf32>
    %619 = vector.multi_reduction <add>, %618, %cst_228 [1] : vector<16x16xf32> to vector<16xf32>
    %620 = vector.shape_cast %619 : vector<16xf32> to vector<16x1xf32>
    %621 = tpu.reciprocal %620 {approx = true} : vector<16x1xf32> -> vector<16x1xf32>
    %622 = vector.broadcast %621 : vector<16x1xf32> to vector<16x16xf32>
    %623 = arith.mulf %618, %622 : vector<16x16xf32>
    %cst_229 = arith.constant dense<0.000000e+00> : vector<16x8xf32>
    %624 = tpu.matmul %623, %612, %cst_229 {dimension_numbers = #tpu.dot_dimension_numbers<[1], [0], [0], [1], [0, 0, 1, 1], [], []>} : vector<16x16xf32>, vector<16x8xf32>, vector<16x8xf32> -> vector<16x8xf32>
    %625 = vector.extract_strided_slice %573 {offsets = [0, 24], sizes = [16, 8], strides = [1, 1]} : vector<16x96xf32> to vector<16x8xf32>
    %cst_230 = arith.constant 0.353553385 : f32
    %626 = vector.broadcast %cst_230 : f32 to vector<16x8xf32>
    %627 = arith.mulf %625, %626 : vector<16x8xf32>
    %628 = vector.extract_strided_slice %573 {offsets = [0, 56], sizes = [16, 8], strides = [1, 1]} : vector<16x96xf32> to vector<16x8xf32>
    %629 = vector.extract_strided_slice %573 {offsets = [0, 88], sizes = [16, 8], strides = [1, 1]} : vector<16x96xf32> to vector<16x8xf32>
    %cst_231 = arith.constant dense<0.000000e+00> : vector<16x16xf32>
    %630 = tpu.matmul %627, %628, %cst_231 {dimension_numbers = #tpu.dot_dimension_numbers<[1], [1], [0], [0], [0, 0, 1, 0], [], []>} : vector<16x8xf32>, vector<16x8xf32>, vector<16x16xf32> -> vector<16x16xf32>
    %cst_232 = arith.constant dense<0xFF800000> : vector<16xf32>
    %631 = vector.multi_reduction <maximumf>, %630, %cst_232 [1] : vector<16x16xf32> to vector<16xf32>
    %632 = vector.shape_cast %631 : vector<16xf32> to vector<16x1xf32>
    %633 = vector.broadcast %632 : vector<16x1xf32> to vector<16x16xf32>
    %634 = arith.subf %630, %633 : vector<16x16xf32>
    %635 = math.exp %634 : vector<16x16xf32>
    %cst_233 = arith.constant dense<0.000000e+00> : vector<16xf32>
    %636 = vector.multi_reduction <add>, %635, %cst_233 [1] : vector<16x16xf32> to vector<16xf32>
    %637 = vector.shape_cast %636 : vector<16xf32> to vector<16x1xf32>
    %638 = tpu.reciprocal %637 {approx = true} : vector<16x1xf32> -> vector<16x1xf32>
    %639 = vector.broadcast %638 : vector<16x1xf32> to vector<16x16xf32>
    %640 = arith.mulf %635, %639 : vector<16x16xf32>
    %cst_234 = arith.constant dense<0.000000e+00> : vector<16x8xf32>
    %641 = tpu.matmul %640, %629, %cst_234 {dimension_numbers = #tpu.dot_dimension_numbers<[1], [0], [0], [1], [0, 0, 1, 1], [], []>} : vector<16x16xf32>, vector<16x8xf32>, vector<16x8xf32> -> vector<16x8xf32>
    %642 = tpu.concatenate %590, %607, %624, %641 in 1 : vector<16x8xf32>, vector<16x8xf32>, vector<16x8xf32>, vector<16x8xf32> -> vector<16x32xf32>
    %643 = tpu.concatenate %572, %642 in 0 : vector<16x32xf32>, vector<16x32xf32> -> vector<32x32xf32>
    %c2_235 = arith.constant 2 : index
    %c0_236 = arith.constant 0 : index
    %c0_237 = arith.constant 0 : index
    %644 = vector.load %arg11[%c2_235, %c0_236, %c0_237] : memref<4x32x32xf32, #tpu.memory_space<vmem>>, vector<1x32x32xf32>
    %645 = vector.shape_cast %644 : vector<1x32x32xf32> to vector<32x32xf32>
    %cst_238 = arith.constant dense<0.000000e+00> : vector<32x32xf32>
    %646 = tpu.matmul %643, %645, %cst_238 {dimension_numbers = #tpu.dot_dimension_numbers<[1], [0], [0], [1], [0, 0, 1, 1], [], []>} : vector<32x32xf32>, vector<32x32xf32>, vector<32x32xf32> -> vector<32x32xf32>
    %c2_239 = arith.constant 2 : index
    %c0_240 = arith.constant 0 : index
    %647 = vector.load %arg12[%c2_239, %c0_240] : memref<4x32xf32, #tpu.memory_space<vmem>>, vector<1x32xf32>
    %648 = vector.broadcast %647 : vector<1x32xf32> to vector<32x32xf32>
    %649 = arith.addf %646, %648 : vector<32x32xf32>
    %650 = arith.addf %475, %649 : vector<32x32xf32>
    %c2_241 = arith.constant 2 : index
    %c0_242 = arith.constant 0 : index
    %651 = vector.load %arg13[%c2_241, %c0_242] : memref<4x32xf32, #tpu.memory_space<vmem>>, vector<1x32xf32>
    %c2_243 = arith.constant 2 : index
    %c0_244 = arith.constant 0 : index
    %652 = vector.load %arg14[%c2_243, %c0_244] : memref<4x32xf32, #tpu.memory_space<vmem>>, vector<1x32xf32>
    %cst_245 = arith.constant dense<0.000000e+00> : vector<32xf32>
    %653 = vector.multi_reduction <add>, %650, %cst_245 [1] : vector<32x32xf32> to vector<32xf32>
    %654 = vector.shape_cast %653 : vector<32xf32> to vector<32x1xf32>
    %cst_246 = arith.constant 3.200000e+01 : f32
    %655 = vector.broadcast %cst_246 : f32 to vector<32x1xf32>
    %656 = arith.divf %654, %655 : vector<32x1xf32>
    %657 = vector.broadcast %656 : vector<32x1xf32> to vector<32x32xf32>
    %658 = arith.subf %650, %657 : vector<32x32xf32>
    %659 = arith.mulf %658, %658 : vector<32x32xf32>
    %cst_247 = arith.constant dense<0.000000e+00> : vector<32xf32>
    %660 = vector.multi_reduction <add>, %659, %cst_247 [1] : vector<32x32xf32> to vector<32xf32>
    %661 = vector.shape_cast %660 : vector<32xf32> to vector<32x1xf32>
    %cst_248 = arith.constant 3.200000e+01 : f32
    %662 = vector.broadcast %cst_248 : f32 to vector<32x1xf32>
    %663 = arith.divf %661, %662 : vector<32x1xf32>
    %664 = vector.broadcast %656 : vector<32x1xf32> to vector<32x32xf32>
    %665 = arith.subf %650, %664 : vector<32x32xf32>
    %cst_249 = arith.constant 9.99999974E-6 : f32
    %666 = vector.broadcast %cst_249 : f32 to vector<32x1xf32>
    %667 = arith.addf %663, %666 : vector<32x1xf32>
    %668 = math.rsqrt %667 : vector<32x1xf32>
    %669 = vector.broadcast %668 : vector<32x1xf32> to vector<32x32xf32>
    %670 = arith.mulf %665, %669 : vector<32x32xf32>
    %671 = vector.broadcast %651 : vector<1x32xf32> to vector<32x32xf32>
    %672 = arith.mulf %670, %671 : vector<32x32xf32>
    %673 = vector.broadcast %652 : vector<1x32xf32> to vector<32x32xf32>
    %674 = arith.addf %672, %673 : vector<32x32xf32>
    %c2_250 = arith.constant 2 : index
    %c0_251 = arith.constant 0 : index
    %c0_252 = arith.constant 0 : index
    %675 = vector.load %arg15[%c2_250, %c0_251, %c0_252] : memref<4x32x64xf32, #tpu.memory_space<vmem>>, vector<1x32x64xf32>
    %676 = vector.shape_cast %675 : vector<1x32x64xf32> to vector<32x64xf32>
    %cst_253 = arith.constant dense<0.000000e+00> : vector<32x64xf32>
    %677 = tpu.matmul %674, %676, %cst_253 {dimension_numbers = #tpu.dot_dimension_numbers<[1], [0], [0], [1], [0, 0, 1, 1], [], []>} : vector<32x32xf32>, vector<32x64xf32>, vector<32x64xf32> -> vector<32x64xf32>
    %c2_254 = arith.constant 2 : index
    %c0_255 = arith.constant 0 : index
    %678 = vector.load %arg16[%c2_254, %c0_255] : memref<4x64xf32, #tpu.memory_space<vmem>>, vector<1x64xf32>
    %679 = vector.broadcast %678 : vector<1x64xf32> to vector<32x64xf32>
    %680 = arith.addf %677, %679 : vector<32x64xf32>
    %cst_256 = arith.constant 5.000000e-01 : f32
    %681 = vector.broadcast %cst_256 : f32 to vector<32x64xf32>
    %682 = arith.mulf %681, %680 : vector<32x64xf32>
    %cst_257 = arith.constant 0.707106769 : f32
    %683 = vector.broadcast %cst_257 : f32 to vector<32x64xf32>
    %684 = arith.mulf %680, %683 : vector<32x64xf32>
    %685 = math.erf %684 : vector<32x64xf32>
    %cst_258 = arith.constant 1.000000e+00 : f32
    %686 = vector.broadcast %cst_258 : f32 to vector<32x64xf32>
    %687 = arith.addf %686, %685 : vector<32x64xf32>
    %688 = arith.mulf %682, %687 : vector<32x64xf32>
    %c2_259 = arith.constant 2 : index
    %c0_260 = arith.constant 0 : index
    %c0_261 = arith.constant 0 : index
    %689 = vector.load %arg17[%c2_259, %c0_260, %c0_261] : memref<4x64x32xf32, #tpu.memory_space<vmem>>, vector<1x64x32xf32>
    %690 = vector.shape_cast %689 : vector<1x64x32xf32> to vector<64x32xf32>
    %cst_262 = arith.constant dense<0.000000e+00> : vector<32x32xf32>
    %691 = tpu.matmul %688, %690, %cst_262 {dimension_numbers = #tpu.dot_dimension_numbers<[1], [0], [0], [1], [0, 0, 1, 1], [], []>} : vector<32x64xf32>, vector<64x32xf32>, vector<32x32xf32> -> vector<32x32xf32>
    %692 = arith.addf %650, %691 : vector<32x32xf32>
    %c2_263 = arith.constant 2 : index
    %c0_264 = arith.constant 0 : index
    %693 = vector.load %arg18[%c2_263, %c0_264] : memref<4x32xf32, #tpu.memory_space<vmem>>, vector<1x32xf32>
    %694 = vector.broadcast %693 : vector<1x32xf32> to vector<32x32xf32>
    %695 = arith.addf %692, %694 : vector<32x32xf32>
    %c3 = arith.constant 3 : index
    %c0_265 = arith.constant 0 : index
    %696 = vector.load %arg8[%c3, %c0_265] : memref<4x32xf32, #tpu.memory_space<vmem>>, vector<1x32xf32>
    %c3_266 = arith.constant 3 : index
    %c0_267 = arith.constant 0 : index
    %697 = vector.load %arg9[%c3_266, %c0_267] : memref<4x32xf32, #tpu.memory_space<vmem>>, vector<1x32xf32>
    %cst_268 = arith.constant dense<0.000000e+00> : vector<32xf32>
    %698 = vector.multi_reduction <add>, %695, %cst_268 [1] : vector<32x32xf32> to vector<32xf32>
    %699 = vector.shape_cast %698 : vector<32xf32> to vector<32x1xf32>
    %cst_269 = arith.constant 3.200000e+01 : f32
    %700 = vector.broadcast %cst_269 : f32 to vector<32x1xf32>
    %701 = arith.divf %699, %700 : vector<32x1xf32>
    %702 = vector.broadcast %701 : vector<32x1xf32> to vector<32x32xf32>
    %703 = arith.subf %695, %702 : vector<32x32xf32>
    %704 = arith.mulf %703, %703 : vector<32x32xf32>
    %cst_270 = arith.constant dense<0.000000e+00> : vector<32xf32>
    %705 = vector.multi_reduction <add>, %704, %cst_270 [1] : vector<32x32xf32> to vector<32xf32>
    %706 = vector.shape_cast %705 : vector<32xf32> to vector<32x1xf32>
    %cst_271 = arith.constant 3.200000e+01 : f32
    %707 = vector.broadcast %cst_271 : f32 to vector<32x1xf32>
    %708 = arith.divf %706, %707 : vector<32x1xf32>
    %709 = vector.broadcast %701 : vector<32x1xf32> to vector<32x32xf32>
    %710 = arith.subf %695, %709 : vector<32x32xf32>
    %cst_272 = arith.constant 9.99999974E-6 : f32
    %711 = vector.broadcast %cst_272 : f32 to vector<32x1xf32>
    %712 = arith.addf %708, %711 : vector<32x1xf32>
    %713 = math.rsqrt %712 : vector<32x1xf32>
    %714 = vector.broadcast %713 : vector<32x1xf32> to vector<32x32xf32>
    %715 = arith.mulf %710, %714 : vector<32x32xf32>
    %716 = vector.broadcast %696 : vector<1x32xf32> to vector<32x32xf32>
    %717 = arith.mulf %715, %716 : vector<32x32xf32>
    %718 = vector.broadcast %697 : vector<1x32xf32> to vector<32x32xf32>
    %719 = arith.addf %717, %718 : vector<32x32xf32>
    %c3_273 = arith.constant 3 : index
    %c0_274 = arith.constant 0 : index
    %c0_275 = arith.constant 0 : index
    %720 = vector.load %arg10[%c3_273, %c0_274, %c0_275] : memref<4x32x96xf32, #tpu.memory_space<vmem>>, vector<1x32x96xf32>
    %721 = vector.shape_cast %720 : vector<1x32x96xf32> to vector<32x96xf32>
    %cst_276 = arith.constant dense<0.000000e+00> : vector<32x96xf32>
    %722 = tpu.matmul %719, %721, %cst_276 {dimension_numbers = #tpu.dot_dimension_numbers<[1], [0], [0], [1], [0, 0, 1, 1], [], []>} : vector<32x32xf32>, vector<32x96xf32>, vector<32x96xf32> -> vector<32x96xf32>
    %723 = vector.extract_strided_slice %722 {offsets = [0, 0], sizes = [16, 96], strides = [1, 1]} : vector<32x96xf32> to vector<16x96xf32>
    %724 = vector.extract_strided_slice %723 {offsets = [0, 0], sizes = [16, 8], strides = [1, 1]} : vector<16x96xf32> to vector<16x8xf32>
    %cst_277 = arith.constant 0.353553385 : f32
    %725 = vector.broadcast %cst_277 : f32 to vector<16x8xf32>
    %726 = arith.mulf %724, %725 : vector<16x8xf32>
    %727 = vector.extract_strided_slice %723 {offsets = [0, 32], sizes = [16, 8], strides = [1, 1]} : vector<16x96xf32> to vector<16x8xf32>
    %728 = vector.extract_strided_slice %723 {offsets = [0, 64], sizes = [16, 8], strides = [1, 1]} : vector<16x96xf32> to vector<16x8xf32>
    %cst_278 = arith.constant dense<0.000000e+00> : vector<16x16xf32>
    %729 = tpu.matmul %726, %727, %cst_278 {dimension_numbers = #tpu.dot_dimension_numbers<[1], [1], [0], [0], [0, 0, 1, 0], [], []>} : vector<16x8xf32>, vector<16x8xf32>, vector<16x16xf32> -> vector<16x16xf32>
    %cst_279 = arith.constant dense<0xFF800000> : vector<16xf32>
    %730 = vector.multi_reduction <maximumf>, %729, %cst_279 [1] : vector<16x16xf32> to vector<16xf32>
    %731 = vector.shape_cast %730 : vector<16xf32> to vector<16x1xf32>
    %732 = vector.broadcast %731 : vector<16x1xf32> to vector<16x16xf32>
    %733 = arith.subf %729, %732 : vector<16x16xf32>
    %734 = math.exp %733 : vector<16x16xf32>
    %cst_280 = arith.constant dense<0.000000e+00> : vector<16xf32>
    %735 = vector.multi_reduction <add>, %734, %cst_280 [1] : vector<16x16xf32> to vector<16xf32>
    %736 = vector.shape_cast %735 : vector<16xf32> to vector<16x1xf32>
    %737 = tpu.reciprocal %736 {approx = true} : vector<16x1xf32> -> vector<16x1xf32>
    %738 = vector.broadcast %737 : vector<16x1xf32> to vector<16x16xf32>
    %739 = arith.mulf %734, %738 : vector<16x16xf32>
    %cst_281 = arith.constant dense<0.000000e+00> : vector<16x8xf32>
    %740 = tpu.matmul %739, %728, %cst_281 {dimension_numbers = #tpu.dot_dimension_numbers<[1], [0], [0], [1], [0, 0, 1, 1], [], []>} : vector<16x16xf32>, vector<16x8xf32>, vector<16x8xf32> -> vector<16x8xf32>
    %741 = vector.extract_strided_slice %723 {offsets = [0, 8], sizes = [16, 8], strides = [1, 1]} : vector<16x96xf32> to vector<16x8xf32>
    %cst_282 = arith.constant 0.353553385 : f32
    %742 = vector.broadcast %cst_282 : f32 to vector<16x8xf32>
    %743 = arith.mulf %741, %742 : vector<16x8xf32>
    %744 = vector.extract_strided_slice %723 {offsets = [0, 40], sizes = [16, 8], strides = [1, 1]} : vector<16x96xf32> to vector<16x8xf32>
    %745 = vector.extract_strided_slice %723 {offsets = [0, 72], sizes = [16, 8], strides = [1, 1]} : vector<16x96xf32> to vector<16x8xf32>
    %cst_283 = arith.constant dense<0.000000e+00> : vector<16x16xf32>
    %746 = tpu.matmul %743, %744, %cst_283 {dimension_numbers = #tpu.dot_dimension_numbers<[1], [1], [0], [0], [0, 0, 1, 0], [], []>} : vector<16x8xf32>, vector<16x8xf32>, vector<16x16xf32> -> vector<16x16xf32>
    %cst_284 = arith.constant dense<0xFF800000> : vector<16xf32>
    %747 = vector.multi_reduction <maximumf>, %746, %cst_284 [1] : vector<16x16xf32> to vector<16xf32>
    %748 = vector.shape_cast %747 : vector<16xf32> to vector<16x1xf32>
    %749 = vector.broadcast %748 : vector<16x1xf32> to vector<16x16xf32>
    %750 = arith.subf %746, %749 : vector<16x16xf32>
    %751 = math.exp %750 : vector<16x16xf32>
    %cst_285 = arith.constant dense<0.000000e+00> : vector<16xf32>
    %752 = vector.multi_reduction <add>, %751, %cst_285 [1] : vector<16x16xf32> to vector<16xf32>
    %753 = vector.shape_cast %752 : vector<16xf32> to vector<16x1xf32>
    %754 = tpu.reciprocal %753 {approx = true} : vector<16x1xf32> -> vector<16x1xf32>
    %755 = vector.broadcast %754 : vector<16x1xf32> to vector<16x16xf32>
    %756 = arith.mulf %751, %755 : vector<16x16xf32>
    %cst_286 = arith.constant dense<0.000000e+00> : vector<16x8xf32>
    %757 = tpu.matmul %756, %745, %cst_286 {dimension_numbers = #tpu.dot_dimension_numbers<[1], [0], [0], [1], [0, 0, 1, 1], [], []>} : vector<16x16xf32>, vector<16x8xf32>, vector<16x8xf32> -> vector<16x8xf32>
    %758 = vector.extract_strided_slice %723 {offsets = [0, 16], sizes = [16, 8], strides = [1, 1]} : vector<16x96xf32> to vector<16x8xf32>
    %cst_287 = arith.constant 0.353553385 : f32
    %759 = vector.broadcast %cst_287 : f32 to vector<16x8xf32>
    %760 = arith.mulf %758, %759 : vector<16x8xf32>
    %761 = vector.extract_strided_slice %723 {offsets = [0, 48], sizes = [16, 8], strides = [1, 1]} : vector<16x96xf32> to vector<16x8xf32>
    %762 = vector.extract_strided_slice %723 {offsets = [0, 80], sizes = [16, 8], strides = [1, 1]} : vector<16x96xf32> to vector<16x8xf32>
    %cst_288 = arith.constant dense<0.000000e+00> : vector<16x16xf32>
    %763 = tpu.matmul %760, %761, %cst_288 {dimension_numbers = #tpu.dot_dimension_numbers<[1], [1], [0], [0], [0, 0, 1, 0], [], []>} : vector<16x8xf32>, vector<16x8xf32>, vector<16x16xf32> -> vector<16x16xf32>
    %cst_289 = arith.constant dense<0xFF800000> : vector<16xf32>
    %764 = vector.multi_reduction <maximumf>, %763, %cst_289 [1] : vector<16x16xf32> to vector<16xf32>
    %765 = vector.shape_cast %764 : vector<16xf32> to vector<16x1xf32>
    %766 = vector.broadcast %765 : vector<16x1xf32> to vector<16x16xf32>
    %767 = arith.subf %763, %766 : vector<16x16xf32>
    %768 = math.exp %767 : vector<16x16xf32>
    %cst_290 = arith.constant dense<0.000000e+00> : vector<16xf32>
    %769 = vector.multi_reduction <add>, %768, %cst_290 [1] : vector<16x16xf32> to vector<16xf32>
    %770 = vector.shape_cast %769 : vector<16xf32> to vector<16x1xf32>
    %771 = tpu.reciprocal %770 {approx = true} : vector<16x1xf32> -> vector<16x1xf32>
    %772 = vector.broadcast %771 : vector<16x1xf32> to vector<16x16xf32>
    %773 = arith.mulf %768, %772 : vector<16x16xf32>
    %cst_291 = arith.constant dense<0.000000e+00> : vector<16x8xf32>
    %774 = tpu.matmul %773, %762, %cst_291 {dimension_numbers = #tpu.dot_dimension_numbers<[1], [0], [0], [1], [0, 0, 1, 1], [], []>} : vector<16x16xf32>, vector<16x8xf32>, vector<16x8xf32> -> vector<16x8xf32>
    %775 = vector.extract_strided_slice %723 {offsets = [0, 24], sizes = [16, 8], strides = [1, 1]} : vector<16x96xf32> to vector<16x8xf32>
    %cst_292 = arith.constant 0.353553385 : f32
    %776 = vector.broadcast %cst_292 : f32 to vector<16x8xf32>
    %777 = arith.mulf %775, %776 : vector<16x8xf32>
    %778 = vector.extract_strided_slice %723 {offsets = [0, 56], sizes = [16, 8], strides = [1, 1]} : vector<16x96xf32> to vector<16x8xf32>
    %779 = vector.extract_strided_slice %723 {offsets = [0, 88], sizes = [16, 8], strides = [1, 1]} : vector<16x96xf32> to vector<16x8xf32>
    %cst_293 = arith.constant dense<0.000000e+00> : vector<16x16xf32>
    %780 = tpu.matmul %777, %778, %cst_293 {dimension_numbers = #tpu.dot_dimension_numbers<[1], [1], [0], [0], [0, 0, 1, 0], [], []>} : vector<16x8xf32>, vector<16x8xf32>, vector<16x16xf32> -> vector<16x16xf32>
    %cst_294 = arith.constant dense<0xFF800000> : vector<16xf32>
    %781 = vector.multi_reduction <maximumf>, %780, %cst_294 [1] : vector<16x16xf32> to vector<16xf32>
    %782 = vector.shape_cast %781 : vector<16xf32> to vector<16x1xf32>
    %783 = vector.broadcast %782 : vector<16x1xf32> to vector<16x16xf32>
    %784 = arith.subf %780, %783 : vector<16x16xf32>
    %785 = math.exp %784 : vector<16x16xf32>
    %cst_295 = arith.constant dense<0.000000e+00> : vector<16xf32>
    %786 = vector.multi_reduction <add>, %785, %cst_295 [1] : vector<16x16xf32> to vector<16xf32>
    %787 = vector.shape_cast %786 : vector<16xf32> to vector<16x1xf32>
    %788 = tpu.reciprocal %787 {approx = true} : vector<16x1xf32> -> vector<16x1xf32>
    %789 = vector.broadcast %788 : vector<16x1xf32> to vector<16x16xf32>
    %790 = arith.mulf %785, %789 : vector<16x16xf32>
    %cst_296 = arith.constant dense<0.000000e+00> : vector<16x8xf32>
    %791 = tpu.matmul %790, %779, %cst_296 {dimension_numbers = #tpu.dot_dimension_numbers<[1], [0], [0], [1], [0, 0, 1, 1], [], []>} : vector<16x16xf32>, vector<16x8xf32>, vector<16x8xf32> -> vector<16x8xf32>
    %792 = tpu.concatenate %740, %757, %774, %791 in 1 : vector<16x8xf32>, vector<16x8xf32>, vector<16x8xf32>, vector<16x8xf32> -> vector<16x32xf32>
    %793 = vector.extract_strided_slice %722 {offsets = [16, 0], sizes = [16, 96], strides = [1, 1]} : vector<32x96xf32> to vector<16x96xf32>
    %794 = vector.extract_strided_slice %793 {offsets = [0, 0], sizes = [16, 8], strides = [1, 1]} : vector<16x96xf32> to vector<16x8xf32>
    %cst_297 = arith.constant 0.353553385 : f32
    %795 = vector.broadcast %cst_297 : f32 to vector<16x8xf32>
    %796 = arith.mulf %794, %795 : vector<16x8xf32>
    %797 = vector.extract_strided_slice %793 {offsets = [0, 32], sizes = [16, 8], strides = [1, 1]} : vector<16x96xf32> to vector<16x8xf32>
    %798 = vector.extract_strided_slice %793 {offsets = [0, 64], sizes = [16, 8], strides = [1, 1]} : vector<16x96xf32> to vector<16x8xf32>
    %cst_298 = arith.constant dense<0.000000e+00> : vector<16x16xf32>
    %799 = tpu.matmul %796, %797, %cst_298 {dimension_numbers = #tpu.dot_dimension_numbers<[1], [1], [0], [0], [0, 0, 1, 0], [], []>} : vector<16x8xf32>, vector<16x8xf32>, vector<16x16xf32> -> vector<16x16xf32>
    %cst_299 = arith.constant dense<0xFF800000> : vector<16xf32>
    %800 = vector.multi_reduction <maximumf>, %799, %cst_299 [1] : vector<16x16xf32> to vector<16xf32>
    %801 = vector.shape_cast %800 : vector<16xf32> to vector<16x1xf32>
    %802 = vector.broadcast %801 : vector<16x1xf32> to vector<16x16xf32>
    %803 = arith.subf %799, %802 : vector<16x16xf32>
    %804 = math.exp %803 : vector<16x16xf32>
    %cst_300 = arith.constant dense<0.000000e+00> : vector<16xf32>
    %805 = vector.multi_reduction <add>, %804, %cst_300 [1] : vector<16x16xf32> to vector<16xf32>
    %806 = vector.shape_cast %805 : vector<16xf32> to vector<16x1xf32>
    %807 = tpu.reciprocal %806 {approx = true} : vector<16x1xf32> -> vector<16x1xf32>
    %808 = vector.broadcast %807 : vector<16x1xf32> to vector<16x16xf32>
    %809 = arith.mulf %804, %808 : vector<16x16xf32>
    %cst_301 = arith.constant dense<0.000000e+00> : vector<16x8xf32>
    %810 = tpu.matmul %809, %798, %cst_301 {dimension_numbers = #tpu.dot_dimension_numbers<[1], [0], [0], [1], [0, 0, 1, 1], [], []>} : vector<16x16xf32>, vector<16x8xf32>, vector<16x8xf32> -> vector<16x8xf32>
    %811 = vector.extract_strided_slice %793 {offsets = [0, 8], sizes = [16, 8], strides = [1, 1]} : vector<16x96xf32> to vector<16x8xf32>
    %cst_302 = arith.constant 0.353553385 : f32
    %812 = vector.broadcast %cst_302 : f32 to vector<16x8xf32>
    %813 = arith.mulf %811, %812 : vector<16x8xf32>
    %814 = vector.extract_strided_slice %793 {offsets = [0, 40], sizes = [16, 8], strides = [1, 1]} : vector<16x96xf32> to vector<16x8xf32>
    %815 = vector.extract_strided_slice %793 {offsets = [0, 72], sizes = [16, 8], strides = [1, 1]} : vector<16x96xf32> to vector<16x8xf32>
    %cst_303 = arith.constant dense<0.000000e+00> : vector<16x16xf32>
    %816 = tpu.matmul %813, %814, %cst_303 {dimension_numbers = #tpu.dot_dimension_numbers<[1], [1], [0], [0], [0, 0, 1, 0], [], []>} : vector<16x8xf32>, vector<16x8xf32>, vector<16x16xf32> -> vector<16x16xf32>
    %cst_304 = arith.constant dense<0xFF800000> : vector<16xf32>
    %817 = vector.multi_reduction <maximumf>, %816, %cst_304 [1] : vector<16x16xf32> to vector<16xf32>
    %818 = vector.shape_cast %817 : vector<16xf32> to vector<16x1xf32>
    %819 = vector.broadcast %818 : vector<16x1xf32> to vector<16x16xf32>
    %820 = arith.subf %816, %819 : vector<16x16xf32>
    %821 = math.exp %820 : vector<16x16xf32>
    %cst_305 = arith.constant dense<0.000000e+00> : vector<16xf32>
    %822 = vector.multi_reduction <add>, %821, %cst_305 [1] : vector<16x16xf32> to vector<16xf32>
    %823 = vector.shape_cast %822 : vector<16xf32> to vector<16x1xf32>
    %824 = tpu.reciprocal %823 {approx = true} : vector<16x1xf32> -> vector<16x1xf32>
    %825 = vector.broadcast %824 : vector<16x1xf32> to vector<16x16xf32>
    %826 = arith.mulf %821, %825 : vector<16x16xf32>
    %cst_306 = arith.constant dense<0.000000e+00> : vector<16x8xf32>
    %827 = tpu.matmul %826, %815, %cst_306 {dimension_numbers = #tpu.dot_dimension_numbers<[1], [0], [0], [1], [0, 0, 1, 1], [], []>} : vector<16x16xf32>, vector<16x8xf32>, vector<16x8xf32> -> vector<16x8xf32>
    %828 = vector.extract_strided_slice %793 {offsets = [0, 16], sizes = [16, 8], strides = [1, 1]} : vector<16x96xf32> to vector<16x8xf32>
    %cst_307 = arith.constant 0.353553385 : f32
    %829 = vector.broadcast %cst_307 : f32 to vector<16x8xf32>
    %830 = arith.mulf %828, %829 : vector<16x8xf32>
    %831 = vector.extract_strided_slice %793 {offsets = [0, 48], sizes = [16, 8], strides = [1, 1]} : vector<16x96xf32> to vector<16x8xf32>
    %832 = vector.extract_strided_slice %793 {offsets = [0, 80], sizes = [16, 8], strides = [1, 1]} : vector<16x96xf32> to vector<16x8xf32>
    %cst_308 = arith.constant dense<0.000000e+00> : vector<16x16xf32>
    %833 = tpu.matmul %830, %831, %cst_308 {dimension_numbers = #tpu.dot_dimension_numbers<[1], [1], [0], [0], [0, 0, 1, 0], [], []>} : vector<16x8xf32>, vector<16x8xf32>, vector<16x16xf32> -> vector<16x16xf32>
    %cst_309 = arith.constant dense<0xFF800000> : vector<16xf32>
    %834 = vector.multi_reduction <maximumf>, %833, %cst_309 [1] : vector<16x16xf32> to vector<16xf32>
    %835 = vector.shape_cast %834 : vector<16xf32> to vector<16x1xf32>
    %836 = vector.broadcast %835 : vector<16x1xf32> to vector<16x16xf32>
    %837 = arith.subf %833, %836 : vector<16x16xf32>
    %838 = math.exp %837 : vector<16x16xf32>
    %cst_310 = arith.constant dense<0.000000e+00> : vector<16xf32>
    %839 = vector.multi_reduction <add>, %838, %cst_310 [1] : vector<16x16xf32> to vector<16xf32>
    %840 = vector.shape_cast %839 : vector<16xf32> to vector<16x1xf32>
    %841 = tpu.reciprocal %840 {approx = true} : vector<16x1xf32> -> vector<16x1xf32>
    %842 = vector.broadcast %841 : vector<16x1xf32> to vector<16x16xf32>
    %843 = arith.mulf %838, %842 : vector<16x16xf32>
    %cst_311 = arith.constant dense<0.000000e+00> : vector<16x8xf32>
    %844 = tpu.matmul %843, %832, %cst_311 {dimension_numbers = #tpu.dot_dimension_numbers<[1], [0], [0], [1], [0, 0, 1, 1], [], []>} : vector<16x16xf32>, vector<16x8xf32>, vector<16x8xf32> -> vector<16x8xf32>
    %845 = vector.extract_strided_slice %793 {offsets = [0, 24], sizes = [16, 8], strides = [1, 1]} : vector<16x96xf32> to vector<16x8xf32>
    %cst_312 = arith.constant 0.353553385 : f32
    %846 = vector.broadcast %cst_312 : f32 to vector<16x8xf32>
    %847 = arith.mulf %845, %846 : vector<16x8xf32>
    %848 = vector.extract_strided_slice %793 {offsets = [0, 56], sizes = [16, 8], strides = [1, 1]} : vector<16x96xf32> to vector<16x8xf32>
    %849 = vector.extract_strided_slice %793 {offsets = [0, 88], sizes = [16, 8], strides = [1, 1]} : vector<16x96xf32> to vector<16x8xf32>
    %cst_313 = arith.constant dense<0.000000e+00> : vector<16x16xf32>
    %850 = tpu.matmul %847, %848, %cst_313 {dimension_numbers = #tpu.dot_dimension_numbers<[1], [1], [0], [0], [0, 0, 1, 0], [], []>} : vector<16x8xf32>, vector<16x8xf32>, vector<16x16xf32> -> vector<16x16xf32>
    %cst_314 = arith.constant dense<0xFF800000> : vector<16xf32>
    %851 = vector.multi_reduction <maximumf>, %850, %cst_314 [1] : vector<16x16xf32> to vector<16xf32>
    %852 = vector.shape_cast %851 : vector<16xf32> to vector<16x1xf32>
    %853 = vector.broadcast %852 : vector<16x1xf32> to vector<16x16xf32>
    %854 = arith.subf %850, %853 : vector<16x16xf32>
    %855 = math.exp %854 : vector<16x16xf32>
    %cst_315 = arith.constant dense<0.000000e+00> : vector<16xf32>
    %856 = vector.multi_reduction <add>, %855, %cst_315 [1] : vector<16x16xf32> to vector<16xf32>
    %857 = vector.shape_cast %856 : vector<16xf32> to vector<16x1xf32>
    %858 = tpu.reciprocal %857 {approx = true} : vector<16x1xf32> -> vector<16x1xf32>
    %859 = vector.broadcast %858 : vector<16x1xf32> to vector<16x16xf32>
    %860 = arith.mulf %855, %859 : vector<16x16xf32>
    %cst_316 = arith.constant dense<0.000000e+00> : vector<16x8xf32>
    %861 = tpu.matmul %860, %849, %cst_316 {dimension_numbers = #tpu.dot_dimension_numbers<[1], [0], [0], [1], [0, 0, 1, 1], [], []>} : vector<16x16xf32>, vector<16x8xf32>, vector<16x8xf32> -> vector<16x8xf32>
    %862 = tpu.concatenate %810, %827, %844, %861 in 1 : vector<16x8xf32>, vector<16x8xf32>, vector<16x8xf32>, vector<16x8xf32> -> vector<16x32xf32>
    %863 = tpu.concatenate %792, %862 in 0 : vector<16x32xf32>, vector<16x32xf32> -> vector<32x32xf32>
    %c3_317 = arith.constant 3 : index
    %c0_318 = arith.constant 0 : index
    %c0_319 = arith.constant 0 : index
    %864 = vector.load %arg11[%c3_317, %c0_318, %c0_319] : memref<4x32x32xf32, #tpu.memory_space<vmem>>, vector<1x32x32xf32>
    %865 = vector.shape_cast %864 : vector<1x32x32xf32> to vector<32x32xf32>
    %cst_320 = arith.constant dense<0.000000e+00> : vector<32x32xf32>
    %866 = tpu.matmul %863, %865, %cst_320 {dimension_numbers = #tpu.dot_dimension_numbers<[1], [0], [0], [1], [0, 0, 1, 1], [], []>} : vector<32x32xf32>, vector<32x32xf32>, vector<32x32xf32> -> vector<32x32xf32>
    %c3_321 = arith.constant 3 : index
    %c0_322 = arith.constant 0 : index
    %867 = vector.load %arg12[%c3_321, %c0_322] : memref<4x32xf32, #tpu.memory_space<vmem>>, vector<1x32xf32>
    %868 = vector.broadcast %867 : vector<1x32xf32> to vector<32x32xf32>
    %869 = arith.addf %866, %868 : vector<32x32xf32>
    %870 = arith.addf %695, %869 : vector<32x32xf32>
    %c3_323 = arith.constant 3 : index
    %c0_324 = arith.constant 0 : index
    %871 = vector.load %arg13[%c3_323, %c0_324] : memref<4x32xf32, #tpu.memory_space<vmem>>, vector<1x32xf32>
    %c3_325 = arith.constant 3 : index
    %c0_326 = arith.constant 0 : index
    %872 = vector.load %arg14[%c3_325, %c0_326] : memref<4x32xf32, #tpu.memory_space<vmem>>, vector<1x32xf32>
    %cst_327 = arith.constant dense<0.000000e+00> : vector<32xf32>
    %873 = vector.multi_reduction <add>, %870, %cst_327 [1] : vector<32x32xf32> to vector<32xf32>
    %874 = vector.shape_cast %873 : vector<32xf32> to vector<32x1xf32>
    %cst_328 = arith.constant 3.200000e+01 : f32
    %875 = vector.broadcast %cst_328 : f32 to vector<32x1xf32>
    %876 = arith.divf %874, %875 : vector<32x1xf32>
    %877 = vector.broadcast %876 : vector<32x1xf32> to vector<32x32xf32>
    %878 = arith.subf %870, %877 : vector<32x32xf32>
    %879 = arith.mulf %878, %878 : vector<32x32xf32>
    %cst_329 = arith.constant dense<0.000000e+00> : vector<32xf32>
    %880 = vector.multi_reduction <add>, %879, %cst_329 [1] : vector<32x32xf32> to vector<32xf32>
    %881 = vector.shape_cast %880 : vector<32xf32> to vector<32x1xf32>
    %cst_330 = arith.constant 3.200000e+01 : f32
    %882 = vector.broadcast %cst_330 : f32 to vector<32x1xf32>
    %883 = arith.divf %881, %882 : vector<32x1xf32>
    %884 = vector.broadcast %876 : vector<32x1xf32> to vector<32x32xf32>
    %885 = arith.subf %870, %884 : vector<32x32xf32>
    %cst_331 = arith.constant 9.99999974E-6 : f32
    %886 = vector.broadcast %cst_331 : f32 to vector<32x1xf32>
    %887 = arith.addf %883, %886 : vector<32x1xf32>
    %888 = math.rsqrt %887 : vector<32x1xf32>
    %889 = vector.broadcast %888 : vector<32x1xf32> to vector<32x32xf32>
    %890 = arith.mulf %885, %889 : vector<32x32xf32>
    %891 = vector.broadcast %871 : vector<1x32xf32> to vector<32x32xf32>
    %892 = arith.mulf %890, %891 : vector<32x32xf32>
    %893 = vector.broadcast %872 : vector<1x32xf32> to vector<32x32xf32>
    %894 = arith.addf %892, %893 : vector<32x32xf32>
    %c3_332 = arith.constant 3 : index
    %c0_333 = arith.constant 0 : index
    %c0_334 = arith.constant 0 : index
    %895 = vector.load %arg15[%c3_332, %c0_333, %c0_334] : memref<4x32x64xf32, #tpu.memory_space<vmem>>, vector<1x32x64xf32>
    %896 = vector.shape_cast %895 : vector<1x32x64xf32> to vector<32x64xf32>
    %cst_335 = arith.constant dense<0.000000e+00> : vector<32x64xf32>
    %897 = tpu.matmul %894, %896, %cst_335 {dimension_numbers = #tpu.dot_dimension_numbers<[1], [0], [0], [1], [0, 0, 1, 1], [], []>} : vector<32x32xf32>, vector<32x64xf32>, vector<32x64xf32> -> vector<32x64xf32>
    %c3_336 = arith.constant 3 : index
    %c0_337 = arith.constant 0 : index
    %898 = vector.load %arg16[%c3_336, %c0_337] : memref<4x64xf32, #tpu.memory_space<vmem>>, vector<1x64xf32>
    %899 = vector.broadcast %898 : vector<1x64xf32> to vector<32x64xf32>
    %900 = arith.addf %897, %899 : vector<32x64xf32>
    %cst_338 = arith.constant 5.000000e-01 : f32
    %901 = vector.broadcast %cst_338 : f32 to vector<32x64xf32>
    %902 = arith.mulf %901, %900 : vector<32x64xf32>
    %cst_339 = arith.constant 0.707106769 : f32
    %903 = vector.broadcast %cst_339 : f32 to vector<32x64xf32>
    %904 = arith.mulf %900, %903 : vector<32x64xf32>
    %905 = math.erf %904 : vector<32x64xf32>
    %cst_340 = arith.constant 1.000000e+00 : f32
    %906 = vector.broadcast %cst_340 : f32 to vector<32x64xf32>
    %907 = arith.addf %906, %905 : vector<32x64xf32>
    %908 = arith.mulf %902, %907 : vector<32x64xf32>
    %c3_341 = arith.constant 3 : index
    %c0_342 = arith.constant 0 : index
    %c0_343 = arith.constant 0 : index
    %909 = vector.load %arg17[%c3_341, %c0_342, %c0_343] : memref<4x64x32xf32, #tpu.memory_space<vmem>>, vector<1x64x32xf32>
    %910 = vector.shape_cast %909 : vector<1x64x32xf32> to vector<64x32xf32>
    %cst_344 = arith.constant dense<0.000000e+00> : vector<32x32xf32>
    %911 = tpu.matmul %908, %910, %cst_344 {dimension_numbers = #tpu.dot_dimension_numbers<[1], [0], [0], [1], [0, 0, 1, 1], [], []>} : vector<32x64xf32>, vector<64x32xf32>, vector<32x32xf32> -> vector<32x32xf32>
    %912 = arith.addf %870, %911 : vector<32x32xf32>
    %c3_345 = arith.constant 3 : index
    %c0_346 = arith.constant 0 : index
    %913 = vector.load %arg18[%c3_345, %c0_346] : memref<4x32xf32, #tpu.memory_space<vmem>>, vector<1x32xf32>
    %914 = vector.broadcast %913 : vector<1x32xf32> to vector<32x32xf32>
    %915 = arith.addf %912, %914 : vector<32x32xf32>
    %c0_347 = arith.constant 0 : index
    %c0_348 = arith.constant 0 : index
    %916 = vector.load %arg19[%c0_347, %c0_348] : memref<32x128xf32, #tpu.memory_space<vmem>>, vector<32x128xf32>
    %cst_349 = arith.constant dense<0.000000e+00> : vector<32x128xf32>
    %917 = tpu.matmul %915, %916, %cst_349 {dimension_numbers = #tpu.dot_dimension_numbers<[1], [0], [0], [1], [0, 0, 1, 1], [], []>} : vector<32x32xf32>, vector<32x128xf32>, vector<32x128xf32> -> vector<32x128xf32>
    %c0_350 = arith.constant 0 : index
    %c0_351 = arith.constant 0 : index
    %918 = vector.load %arg20[%c0_350, %c0_351] : memref<1x128xf32, #tpu.memory_space<vmem>>, vector<1x128xf32>
    %919 = vector.broadcast %918 : vector<1x128xf32> to vector<32x128xf32>
    %920 = arith.addf %917, %919 : vector<32x128xf32>
    %c0_352 = arith.constant 0 : index
    %c0_353 = arith.constant 0 : index
    %921 = vector.load %arg21[%c0_352, %c0_353] : memref<1x128xf32, #tpu.memory_space<vmem>>, vector<1x128xf32>
    %c0_354 = arith.constant 0 : index
    %c0_355 = arith.constant 0 : index
    %922 = vector.load %arg22[%c0_354, %c0_355] : memref<1x128xf32, #tpu.memory_space<vmem>>, vector<1x128xf32>
    %cst_356 = arith.constant dense<0.000000e+00> : vector<32xf32>
    %923 = vector.multi_reduction <add>, %920, %cst_356 [1] : vector<32x128xf32> to vector<32xf32>
    %924 = vector.shape_cast %923 : vector<32xf32> to vector<32x1xf32>
    %cst_357 = arith.constant 1.280000e+02 : f32
    %925 = vector.broadcast %cst_357 : f32 to vector<32x1xf32>
    %926 = arith.divf %924, %925 : vector<32x1xf32>
    %927 = vector.broadcast %926 : vector<32x1xf32> to vector<32x128xf32>
    %928 = arith.subf %920, %927 : vector<32x128xf32>
    %929 = arith.mulf %928, %928 : vector<32x128xf32>
    %cst_358 = arith.constant dense<0.000000e+00> : vector<32xf32>
    %930 = vector.multi_reduction <add>, %929, %cst_358 [1] : vector<32x128xf32> to vector<32xf32>
    %931 = vector.shape_cast %930 : vector<32xf32> to vector<32x1xf32>
    %cst_359 = arith.constant 1.280000e+02 : f32
    %932 = vector.broadcast %cst_359 : f32 to vector<32x1xf32>
    %933 = arith.divf %931, %932 : vector<32x1xf32>
    %934 = vector.broadcast %926 : vector<32x1xf32> to vector<32x128xf32>
    %935 = arith.subf %920, %934 : vector<32x128xf32>
    %cst_360 = arith.constant 9.99999974E-6 : f32
    %936 = vector.broadcast %cst_360 : f32 to vector<32x1xf32>
    %937 = arith.addf %933, %936 : vector<32x1xf32>
    %938 = math.rsqrt %937 : vector<32x1xf32>
    %939 = vector.broadcast %938 : vector<32x1xf32> to vector<32x128xf32>
    %940 = arith.mulf %935, %939 : vector<32x128xf32>
    %941 = vector.broadcast %921 : vector<1x128xf32> to vector<32x128xf32>
    %942 = arith.mulf %940, %941 : vector<32x128xf32>
    %943 = vector.broadcast %922 : vector<1x128xf32> to vector<32x128xf32>
    %944 = arith.addf %942, %943 : vector<32x128xf32>
    %c0_361 = arith.constant 0 : index
    %c0_362 = arith.constant 0 : index
    %945 = vector.load %arg23[%c0_361, %c0_362] : memref<128x96xf32, #tpu.memory_space<vmem>>, vector<128x96xf32>
    %cst_363 = arith.constant dense<0.000000e+00> : vector<32x96xf32>
    %946 = tpu.matmul %944, %945, %cst_363 {dimension_numbers = #tpu.dot_dimension_numbers<[1], [0], [0], [1], [0, 0, 1, 1], [], []>} : vector<32x128xf32>, vector<128x96xf32>, vector<32x96xf32> -> vector<32x96xf32>
    %c0_364 = arith.constant 0 : index
    %c0_365 = arith.constant 0 : index
    %947 = vector.load %arg24[%c0_364, %c0_365] : memref<1x96xf32, #tpu.memory_space<vmem>>, vector<1x96xf32>
    %948 = vector.broadcast %947 : vector<1x96xf32> to vector<32x96xf32>
    %949 = arith.addf %946, %948 : vector<32x96xf32>
    %c0_366 = arith.constant 0 : index
    %c0_367 = arith.constant 0 : index
    %950 = vector.load %arg25[%c0_366, %c0_367] : memref<1x96xf32, #tpu.memory_space<vmem>>, vector<1x96xf32>
    %c0_368 = arith.constant 0 : index
    %c0_369 = arith.constant 0 : index
    %951 = vector.load %arg26[%c0_368, %c0_369] : memref<1x96xf32, #tpu.memory_space<vmem>>, vector<1x96xf32>
    %cst_370 = arith.constant dense<0.000000e+00> : vector<32xf32>
    %952 = vector.multi_reduction <add>, %949, %cst_370 [1] : vector<32x96xf32> to vector<32xf32>
    %953 = vector.shape_cast %952 : vector<32xf32> to vector<32x1xf32>
    %cst_371 = arith.constant 9.600000e+01 : f32
    %954 = vector.broadcast %cst_371 : f32 to vector<32x1xf32>
    %955 = arith.divf %953, %954 : vector<32x1xf32>
    %956 = vector.broadcast %955 : vector<32x1xf32> to vector<32x96xf32>
    %957 = arith.subf %949, %956 : vector<32x96xf32>
    %958 = arith.mulf %957, %957 : vector<32x96xf32>
    %cst_372 = arith.constant dense<0.000000e+00> : vector<32xf32>
    %959 = vector.multi_reduction <add>, %958, %cst_372 [1] : vector<32x96xf32> to vector<32xf32>
    %960 = vector.shape_cast %959 : vector<32xf32> to vector<32x1xf32>
    %cst_373 = arith.constant 9.600000e+01 : f32
    %961 = vector.broadcast %cst_373 : f32 to vector<32x1xf32>
    %962 = arith.divf %960, %961 : vector<32x1xf32>
    %963 = vector.broadcast %955 : vector<32x1xf32> to vector<32x96xf32>
    %964 = arith.subf %949, %963 : vector<32x96xf32>
    %cst_374 = arith.constant 9.99999974E-6 : f32
    %965 = vector.broadcast %cst_374 : f32 to vector<32x1xf32>
    %966 = arith.addf %962, %965 : vector<32x1xf32>
    %967 = math.rsqrt %966 : vector<32x1xf32>
    %968 = vector.broadcast %967 : vector<32x1xf32> to vector<32x96xf32>
    %969 = arith.mulf %964, %968 : vector<32x96xf32>
    %970 = vector.broadcast %950 : vector<1x96xf32> to vector<32x96xf32>
    %971 = arith.mulf %969, %970 : vector<32x96xf32>
    %972 = vector.broadcast %951 : vector<1x96xf32> to vector<32x96xf32>
    %973 = arith.addf %971, %972 : vector<32x96xf32>
    %c0_375 = arith.constant 0 : index
    %c0_376 = arith.constant 0 : index
    %974 = vector.load %arg27[%c0_375, %c0_376] : memref<32x96xf32, #tpu.memory_space<vmem>>, vector<32x96xf32>
    tpu.vector_store %arg27[%c0_375, %c0_376], %973 {strides = array<i32>} : memref<32x96xf32, #tpu.memory_space<vmem>>, vector<32x96xf32>,
    return
  }
  func.func @transform_0(%arg0: i32) -> (i32, i32) {
    %c0_i32 = arith.constant 0 : i32
    %c0_i32_0 = arith.constant 0 : i32
    %c0_i32_1 = arith.constant 0 : i32
    return %c0_i32, %c0_i32_0 : i32, i32
  }
  func.func @transform_1(%arg0: i32) -> (i32, i32) {
    %c0_i32 = arith.constant 0 : i32
    %c0_i32_0 = arith.constant 0 : i32
    %c0_i32_1 = arith.constant 0 : i32
    return %c0_i32, %c0_i32_0 : i32, i32
  }
  func.func @transform_2(%arg0: i32) -> (i32, i32) {
    %c0_i32 = arith.constant 0 : i32
    %c0_i32_0 = arith.constant 0 : i32
    %c0_i32_1 = arith.constant 0 : i32
    return %c0_i32, %c0_i32_0 : i32, i32
  }
  func.func @transform_3(%arg0: i32) -> (i32, i32) {
    %c0_i32 = arith.constant 0 : i32
    %c0_i32_0 = arith.constant 0 : i32
    %c0_i32_1 = arith.constant 0 : i32
    return %c0_i32, %c0_i32_0 : i32, i32
  }
  func.func @transform_4(%arg0: i32) -> (i32, i32) {
    %c0_i32 = arith.constant 0 : i32
    %c0_i32_0 = arith.constant 0 : i32
    %c0_i32_1 = arith.constant 0 : i32
    return %c0_i32, %c0_i32_0 : i32, i32
  }
  func.func @transform_5(%arg0: i32) -> (i32, i32) {
    %c0_i32 = arith.constant 0 : i32
    %c0_i32_0 = arith.constant 0 : i32
    %c0_i32_1 = arith.constant 0 : i32
    return %c0_i32, %c0_i32_0 : i32, i32
  }
  func.func @transform_6(%arg0: i32) -> (i32, i32) {
    %c0_i32 = arith.constant 0 : i32
    %c0_i32_0 = arith.constant 0 : i32
    %c0_i32_1 = arith.constant 0 : i32
    return %c0_i32, %c0_i32_0 : i32, i32
  }
  func.func @transform_7(%arg0: i32) -> (i32, i32) {
    %c0_i32 = arith.constant 0 : i32
    %c0_i32_0 = arith.constant 0 : i32
    %c0_i32_1 = arith.constant 0 : i32
    return %c0_i32, %c0_i32_0 : i32, i32
  }
  func.func @transform_8(%arg0: i32) -> (i32, i32) {
    %c0_i32 = arith.constant 0 : i32
    %c0_i32_0 = arith.constant 0 : i32
    %c0_i32_1 = arith.constant 0 : i32
    return %c0_i32, %c0_i32_0 : i32, i32
  }
  func.func @transform_9(%arg0: i32) -> (i32, i32, i32) {
    %c0_i32 = arith.constant 0 : i32
    %c0_i32_0 = arith.constant 0 : i32
    %c0_i32_1 = arith.constant 0 : i32
    %c0_i32_2 = arith.constant 0 : i32
    return %c0_i32, %c0_i32_0, %c0_i32_1 : i32, i32, i32
  }
  func.func @transform_10(%arg0: i32) -> (i32, i32, i32) {
    %c0_i32 = arith.constant 0 : i32
    %c0_i32_0 = arith.constant 0 : i32
    %c0_i32_1 = arith.constant 0 : i32
    %c0_i32_2 = arith.constant 0 : i32
    return %c0_i32, %c0_i32_0, %c0_i32_1 : i32, i32, i32
  }
  func.func @transform_11(%arg0: i32) -> (i32, i32) {
    %c0_i32 = arith.constant 0 : i32
    %c0_i32_0 = arith.constant 0 : i32
    %c0_i32_1 = arith.constant 0 : i32
    return %c0_i32, %c0_i32_0 : i32, i32
  }
  func.func @transform_12(%arg0: i32) -> (i32, i32) {
    %c0_i32 = arith.constant 0 : i32
    %c0_i32_0 = arith.constant 0 : i32
    %c0_i32_1 = arith.constant 0 : i32
    return %c0_i32, %c0_i32_0 : i32, i32
  }
  func.func @transform_13(%arg0: i32) -> (i32, i32) {
    %c0_i32 = arith.constant 0 : i32
    %c0_i32_0 = arith.constant 0 : i32
    %c0_i32_1 = arith.constant 0 : i32
    return %c0_i32, %c0_i32_0 : i32, i32
  }
  func.func @transform_14(%arg0: i32) -> (i32, i32, i32) {
    %c0_i32 = arith.constant 0 : i32
    %c0_i32_0 = arith.constant 0 : i32
    %c0_i32_1 = arith.constant 0 : i32
    %c0_i32_2 = arith.constant 0 : i32
    return %c0_i32, %c0_i32_0, %c0_i32_1 : i32, i32, i32
  }
  func.func @transform_15(%arg0: i32) -> (i32, i32) {
    %c0_i32 = arith.constant 0 : i32
    %c0_i32_0 = arith.constant 0 : i32
    %c0_i32_1 = arith.constant 0 : i32
    return %c0_i32, %c0_i32_0 : i32, i32
  }
  func.func @transform_16(%arg0: i32) -> (i32, i32, i32) {
    %c0_i32 = arith.constant 0 : i32
    %c0_i32_0 = arith.constant 0 : i32
    %c0_i32_1 = arith.constant 0 : i32
    %c0_i32_2 = arith.constant 0 : i32
    return %c0_i32, %c0_i32_0, %c0_i32_1 : i32, i32, i32
  }
  func.func @transform_17(%arg0: i32) -> (i32, i32) {
    %c0_i32 = arith.constant 0 : i32
    %c0_i32_0 = arith.constant 0 : i32
    %c0_i32_1 = arith.constant 0 : i32
    return %c0_i32, %c0_i32_0 : i32, i32
  }
  func.func @transform_18(%arg0: i32) -> (i32, i32) {
    %c0_i32 = arith.constant 0 : i32
    %c0_i32_0 = arith.constant 0 : i32
    %c0_i32_1 = arith.constant 0 : i32
    return %c0_i32, %c0_i32_0 : i32, i32
  }
  func.func @transform_19(%arg0: i32) -> (i32, i32) {
    %c0_i32 = arith.constant 0 : i32
    %c0_i32_0 = arith.constant 0 : i32
    %c0_i32_1 = arith.constant 0 : i32
    return %c0_i32, %c0_i32_0 : i32, i32
  }
  func.func @transform_20(%arg0: i32) -> (i32, i32) {
    %c0_i32 = arith.constant 0 : i32
    %c0_i32_0 = arith.constant 0 : i32
    %c0_i32_1 = arith.constant 0 : i32
    return %c0_i32, %c0_i32_0 : i32, i32
  }
  func.func @transform_21(%arg0: i32) -> (i32, i32) {
    %c0_i32 = arith.constant 0 : i32
    %c0_i32_0 = arith.constant 0 : i32
    %c0_i32_1 = arith.constant 0 : i32
    return %c0_i32, %c0_i32_0 : i32, i32
  }
  func.func @transform_22(%arg0: i32) -> (i32, i32) {
    %c0_i32 = arith.constant 0 : i32
    %c0_i32_0 = arith.constant 0 : i32
    %c0_i32_1 = arith.constant 0 : i32
    return %c0_i32, %c0_i32_0 : i32, i32
  }
  func.func @transform_23(%arg0: i32) -> (i32, i32) {
    %c0_i32 = arith.constant 0 : i32
    %c0_i32_0 = arith.constant 0 : i32
    %c0_i32_1 = arith.constant 0 : i32
    return %c0_i32, %c0_i32_0 : i32, i32
  }
  func.func @transform_24(%arg0: i32) -> (i32, i32) {
    %c0_i32 = arith.constant 0 : i32
    %c0_i32_0 = arith.constant 0 : i32
    %c0_i32_1 = arith.constant 0 : i32
    return %c0_i32, %c0_i32_0 : i32, i32
  }
  func.func @transform_25(%arg0: i32) -> (i32, i32) {
    %c0_i32 = arith.constant 0 : i32
    %c0_i32_0 = arith.constant 0 : i32
    %c0_i32_1 = arith.constant 0 : i32
    return %c0_i32, %c0_i32_0 : i32, i32
  }
  func.func @transform_26(%arg0: i32) -> (i32, i32) {
    %c0_i32 = arith.constant 0 : i32
    %c0_i32_0 = arith.constant 0 : i32
    %c0_i32_1 = arith.constant 0 : i32
    return %c0_i32, %c0_i32_0 : i32, i32
  }
}

</mosaic_0001>

<bundles_post_ra>
// kernel: _lambda_.1
= control target key start
LH: loop header
LB: loop body
LE: loop exit
PB: predicated region body
PF: predicated region fallthrough
CT: control target
= control target key end

     0   :  { %vm106_vm0 = vcmask 785408   ;;  %vm206_vm1 = vcmask 261120   ;;  %s14612_s29 = smov 88   ;;  %vm465_vm2 = vcmask 64512   ;;  %vm551_vm4 = vcmask 130048   ;;  %s14590_s30 = smov 56   ;;  %s14553_s3 = inlined_call_operand.vmem [shape: f32[96,32], index: 3, kind: input, shape index: {}]   ;;  %s14554_s0 = inlined_call_operand.vmem [shape: f32[32,96], index: 0, kind: input, shape index: {}]   ;;  %s14555_s4 = inlined_call_operand.vmem [shape: f32[1,32], index: 4, kind: input, shape index: {}]   ;;  %s14556_s5 = inlined_call_operand.vmem [shape: f32[1,32], index: 5, kind: input, shape index: {}]   ;;  %s14557_s6 = inlined_call_operand.vmem [shape: f32[1,32], index: 6, kind: input, shape index: {}]   ;;  %s14558_s1 = inlined_call_operand.vmem [shape: f32[16,32], index: 1, kind: input, shape index: {}]   ;;  %s14559_s9 = inlined_call_operand.vmem [shape: f32[4,32,96], index: 9, kind: input, shape index: {}]   ;;  %s14560_s7 = inlined_call_operand.vmem [shape: f32[4,32], index: 7, kind: input, shape index: {}]   ;;  %s14561_s8 = inlined_call_operand.vmem [shape: f32[4,32], index: 8, kind: input, shape index: {}]   ;;  %s14562_s10 = inlined_call_operand.vmem [shape: f32[4,32,32], index: 10, kind: input, shape index: {}]   ;;  %s14563_s11 = inlined_call_operand.vmem [shape: f32[4,32], index: 11, kind: input, shape index: {}]   ;;  %s14564_s14 = inlined_call_operand.vmem [shape: f32[4,32,64], index: 14, kind: input, shape index: {}]   ;;  %s14565_s12 = inlined_call_operand.vmem [shape: f32[4,32], index: 12, kind: input, shape index: {}]   ;;  %s14566_s13 = inlined_call_operand.vmem [shape: f32[4,32], index: 13, kind: input, shape index: {}]   ;;  %s14567_s16 = inlined_call_operand.vmem [shape: f32[4,64,32], index: 16, kind: input, shape index: {}]   ;;  %s14568_s15 = inlined_call_operand.vmem [shape: f32[4,64], index: 15, kind: input, shape index: {}]   ;;  %s14569_s17 = inlined_call_operand.vmem [shape: f32[4,32], index: 17, kind: input, shape index: {}]   ;;  %s14570_s2 = inlined_call_operand.vmem [shape: f32[16,32], index: 2, kind: input, shape index: {}]   ;;  %s14571_s18 = inlined_call_operand.vmem [shape: f32[32,128], index: 18, kind: input, shape index: {}]   ;;  %s14572_s19 = inlined_call_operand.vmem [shape: f32[1,128], index: 19, kind: input, shape index: {}]   ;;  %s14573_s22 = inlined_call_operand.vmem [shape: f32[128,96], index: 22, kind: input, shape index: {}]   ;;  %s14574_s20 = inlined_call_operand.vmem [shape: f32[1,128], index: 20, kind: input, shape index: {}]   ;;  %s14575_s21 = inlined_call_operand.vmem [shape: f32[1,128], index: 21, kind: input, shape index: {}]   ;;  %s14576_s23 = inlined_call_operand.vmem [shape: f32[1,96], index: 23, kind: input, shape index: {}]   ;;  %s14577_s24 = inlined_call_operand.vmem [shape: f32[1,96], index: 24, kind: input, shape index: {}]   ;;  %s14578_s25 = inlined_call_operand.vmem [shape: f32[1,96], index: 25, kind: input, shape index: {}]   ;;  %s14579_s26 = inlined_call_operand.vmem [shape: f32[32,96], index: 26, kind: output, shape index: {}]  }
   0x1   :  { %14622 = sst [smem:[#allocation2_spill]] %s14553_s3  ;;  %vm12873_vm3 = vmpackc.low %vm465_vm2, %vm465_vm2  ;;  %vm1289_vm5 = vcmask 195584   ;;  %vm2438_vm6 = vcmask 523264  }
   0x2   :  { %14623 = sst [smem:[#allocation3_spill]] %s14554_s0  ;;  %s14592_s0 = smov 40  }
   0x3   :  { %14624 = sst [smem:[#allocation4_spill]] %s14555_s4  ;;  %s14643_s27 = sld [smem:[#allocation3_spill]] }
   0x4   :  { %14625 = sst [smem:[#allocation5_spill]] %s14556_s5  ;;  %s14600_s4 = smov 112  }
   0x5   :  { %14626 = sst [smem:[#allocation6_spill]] %s14557_s6  ;;  %s14644_s6 = sld [smem:[#allocation4_spill]] }
   0x6   :  { %14627 = sst [smem:[#allocation7_spill]] %s14558_s1  ;;  %s14645_s3 = sld [smem:[#allocation5_spill]] }
   0x7   :  { %14628 = sst [smem:[#allocation8_spill]] %s14559_s9  ;;  %s14646_s9 = sld [smem:[#allocation6_spill]] }
   0x8   :  { %14629 = sst [smem:[#allocation9_spill]] %s14560_s7  ;;  %s14642_s7 = sld [smem:[#allocation2_spill]] }
   0x9   :  { %14630 = sst [smem:[#allocation10_spill]] %s14561_s8  ;;  %v83_v8 = vld [vmem:[%s14643_s27] sm:$0xff]  ;;  %v84_v19 = vld [vmem:[%s14643_s27 + $0x8] sm:$0xff]  ;;  %v85_v27 = vld [vmem:[%s14643_s27 + $0x10] sm:$0xff]  ;;  %s14647_s28 = sld [smem:[#allocation7_spill]] }
   0xa   :  { %14631 = sst [smem:[#allocation11_spill]] %s14562_s10  ;;  %10539 = vmatprep.mubr.msk.f32.mxu0 %vm106_vm0, %v83_v8  ;;  %v86_v28 = vld [vmem:[%s14643_s27 + $0x18] sm:$0xff]  ;;  %s14648_s1 = sld [smem:[#allocation8_spill]] }
   0xb   :  { %14632 = sst [smem:[#allocation12_spill]] %s14563_s11  ;;  %v12751_v20 = vld [vmem:[%s14644_s6] ss:$0 sm:$0xff]  ;;  %s14649_s5 = sld [smem:[#allocation9_spill]] }
   0xc   :  { %14633 = sst [smem:[#allocation13_spill]] %s14571_s18  ;;  %v12770_v46 = vld [vmem:[%s14645_s3] ss:$0 sm:$0xff]  ;;  %s14650_s6 = sld [smem:[#allocation10_spill]] }
   0xd   :  { %14634 = sst [smem:[#allocation14_spill]] %s14572_s19  ;;  %v12775_v48 = vld [vmem:[%s14646_s9] ss:$0 sm:$0xff]  ;;  %s14610_s10 = smov 120  }
   0xe   :  { %14635 = sst [smem:[#allocation15_spill]] %s14573_s22  ;;  %v87_v0 = vld [vmem:[%s14642_s7] sm:$0xff]  ;;  %v88_v1 = vld [vmem:[%s14642_s7 + $0x8] sm:$0xff]  ;;  %v89_v2 = vld [vmem:[%s14642_s7 + $0x10] sm:$0xff]  ;;  %s14598_s27 = smov 64  }
   0xf   :  { %14636 = sst [smem:[#allocation16_spill]] %s14574_s20  ;;  %v11301_v3 = vpack.c.bf16 %v88_v1, %v87_v0  ;;  %v90_v4 = vld [vmem:[%s14642_s7 + $0x18] sm:$0xff]  ;;  %v91_v6 = vld [vmem:[%s14642_s7 + $0x20] sm:$0xff]  ;;  %v92_v7 = vld [vmem:[%s14642_s7 + $0x28] sm:$0xff]  ;;  %s14594_s3 = smov 72  }
  0x10   :  { %14637 = sst [smem:[#allocation17_spill]] %s14575_s21  ;;  %v11305_v5 = vpack.c.bf16 %v90_v4, %v89_v2  ;;  %v11309_v9 = vpack.c.bf16 %v92_v7, %v91_v6  ;;  %v93_v10 = vld [vmem:[%s14642_s7 + $0x30] sm:$0xff]  ;;  %v94_v11 = vld [vmem:[%s14642_s7 + $0x38] sm:$0xff]  ;;  %v95_v13 = vld [vmem:[%s14642_s7 + $0x40] sm:$0xff]  ;;  %s14588_s11 = smov 104  }
  0x11   :  { %14638 = sst [smem:[#allocation18_spill]] %s14576_s23  ;;  %11302 = vmatprep.subr.bf16.mxu0 %v11301_v3  ;;  %v11313_v12 = vpack.c.bf16 %v94_v11, %v93_v10  ;;  %v96_v14 = vld [vmem:[%s14642_s7 + $0x48] sm:$0xff]  ;;  %v97_v16 = vld [vmem:[%s14642_s7 + $0x50] sm:$0xff]  ;;  %v98_v17 = vld [vmem:[%s14642_s7 + $0x58] sm:$0xff]  ;;  %s14614_s7 = smov 96  }
  0x12   :  { %14639 = sst [smem:[#allocation19_spill]] %s14577_s24  ;;  %11304 = vmatpush3.bf16.msra.mxu0 %v11301_v3  ;;  %v11317_v15 = vpack.c.bf16 %v96_v14, %v95_v13  ;;  %v11321_v18 = vpack.c.bf16 %v98_v17, %v97_v16  ;;  %v12781_v51 = vld [vmem:[%s14647_s28] sm:$0xff]  ;;  %v12791_v56 = vld [vmem:[%s14647_s28 + $0x8] sm:$0xff]  ;;  %v358_v16 = vld [vmem:[%s14648_s1 + $0x10] sm:$0xff]  ;;  %s14608_s9 = smov 80  }
  0x13   :  { %14640 = sst [smem:[#allocation20_spill]] %s14578_s25  ;;  %11306 = vmatprep.subr.bf16.mxu0 %v11305_v5  ;;  %v356_v13 = vld [vmem:[%s14648_s1] sm:$0xff]  ;;  %v357_v14 = vld [vmem:[%s14648_s1 + $0x8] sm:$0xff]  ;;  %v359_v17 = vld [vmem:[%s14648_s1 + $0x18] sm:$0xff]  ;;  %s14596_s28 = smov 48  }
  0x14   :  { %14641 = sst [smem:[#allocation21_spill]] %s14579_s26  ;;  %s14606_s8 = smov 8  }
  0x15   :  { %s14665_s26 = smov 8   ;;  %s14666_s25 = smov 16  }
  0x16   :  { %11308 = vmatpush3.bf16.msra.mxu0 %v11305_v5  ;;  %s14667_s24 = smov 24   ;;  %s14668_s20 = smov 96  }
  0x17   :  { %11310 = vmatprep.subr.bf16.mxu0 %v11309_v9  ;;  %s14669_s19 = sld [smem:[#allocation11_spill]] }
  0x1a   :  { %11312 = vmatpush3.bf16.msra.mxu0 %v11309_v9 }
  0x1b   :  { %11314 = vmatprep.subr.bf16.mxu0 %v11313_v12 }
  0x1e   :  { %11316 = vmatpush3.bf16.msra.mxu0 %v11313_v12 }
  0x1f   :  { %11318 = vmatprep.subr.bf16.mxu0 %v11317_v15 }
  0x22   :  { %11320 = vmatpush3.bf16.msra.mxu0 %v11317_v15  ;;  %v11325_v15 = vpack.c.bf16 %v357_v14, %v356_v13 }
  0x23   :  { %11322 = vmatprep.subr.bf16.mxu0 %v11321_v18 }
  0x24   :  { %11326 = vmatprep.subr.bf16.mxu1 %v11325_v15 }
  0x25   :  { %11328 = vmatpush3.bf16.msra.mxu1 %v11325_v15 }
  0x26   :  { %11324 = vmatpush3.bf16.msra.mxu0 %v11321_v18  ;;  %v11329_v18 = vpack.c.bf16 %v359_v17, %v358_v16 }
  0x28   :  { %11330 = vmatprep.subr.bf16.mxu1 %v11329_v18 }
  0x29   :  { %10540 = vmatmul.mubr.msk.f32.vlgmr.msra.gmra.mrb[0].mxu0 %vm106_vm0, %v84_v19  ;;  %11332 = vmatpush3.bf16.msra.mxu1 %v11329_v18 }
  0x2a   :  { %10542 = vmatprep.mubr.msk.f32.mxu0 %vm106_vm0, %v85_v27 }
  0x2d   :  { %10543 = vmatmul.mubr.msk.f32.gmra.mrb[2].mxu0 %vm106_vm0, %v86_v28 }
  0xfc   :  { %v10541_v21 = vpop.f32.mrb[0].mxu0 }
  0xfd   :  { %v185_v22 = vpop.f32.mrb[1].mxu0  ;;  %v191_v24 = vadd.f32 %v10541_v21, %v12751_v20 }
  0xfe   :  { %v186_v23 = vadd.f32 %v12751_v20, %v185_v22 }
  0xff   :  { %v210_v26 = vsel %vm206_vm1, %v191_v24, 0.0 }
 0x100   :  { %v207_v25 = vsel %vm206_vm1, %v186_v23, 0.0  ;;  %v10544_v61 = vpop.f32.mrb[2].mxu0 }
 0x101   :  { %208 = vadd.xlane.f32.xlu0 %v207_v25  ;;  %v195_v62 = vpop.f32.mrb[3].mxu0  ;;  %v201_v10 = vadd.f32 %v10544_v61, %v12751_v20 }
 0x102   :  { %v196_v4 = vadd.f32 %v12751_v20, %v195_v62 }
 0x103   :  { %v216_v12 = vsel %vm206_vm1, %v201_v10, 0.0 }
 0x104   :  { %v213_v9 = vsel %vm206_vm1, %v196_v4, 0.0 }
 0x105   :  { %211 = vadd.xlane.f32.xlu0 %v210_v26 }
 0x18e   :  { %v209_v29 = vpop.xlane.xlu0 %208 }
 0x18f   :  { %v220_v30 = vmul.f32 0.03125, %v209_v29 }
 0x191   :  { %v224_v31 = vsub.f32 %v186_v23, %v220_v30 }
 0x192   :  { %v212_v32 = vpop.xlane.xlu0 %211 }
 0x193   :  { %v221_v33 = vmul.f32 0.03125, %v212_v32  ;;  %v228_v34 = vmul.f32 %v224_v31, %v224_v31 }
 0x195   :  { %v225_v35 = vsub.f32 %v191_v24, %v221_v33  ;;  %v232_v36 = vsel %vm206_vm1, %v228_v34, 0.0 }
 0x196   :  { %233 = vadd.xlane.f32.xlu1 %v232_v36  ;;  %v12826_v36 = vld [vmem:[%s14649_s5] ss:$0 sm:$0xff] }
 0x197   :  { %v229_v37 = vmul.f32 %v225_v35, %v225_v35 }
 0x199   :  { %v235_v38 = vsel %vm206_vm1, %v229_v37, 0.0 }
 0x19a   :  { %236 = vadd.xlane.f32.xlu1 %v235_v38  ;;  %v12831_v38 = vld [vmem:[%s14650_s6] ss:$0 sm:$0xff] }
 0x223   :  { %v234_v39 = vpop.xlane.xlu1 %233 }
 0x224   :  { %v244_v40 = vmul.f32 0.03125, %v234_v39 }
 0x226   :  { %v248_v41 = vadd.f32 1e-05, %v244_v40 }
 0x227   :  { %v237_v42 = vpop.xlane.xlu1 %236 }
 0x228   :  { %12179 = vrsqrt.f32 %v248_v41  ;;  %v245_v43 = vmul.f32 0.03125, %v237_v42 }
 0x22a   :  { %v249_v44 = vadd.f32 1e-05, %v245_v43 }
 0x22c   :  { %12181 = vrsqrt.f32 %v249_v44 }
 0x232   :  { %v12180_v45 = vpop.eup %12179 }
 0x233   :  { %v256_v47 = vmul.f32 %v12180_v45, %v224_v31 }
 0x235   :  { %v266_v49 = vmul.f32 %v12770_v46, %v256_v47 }
 0x236   :  { %v12182_v50 = vpop.eup %12181 }
 0x237   :  { %v276_v52 = vadd.f32 %v12775_v48, %v266_v49  ;;  %v257_v53 = vmul.f32 %v12182_v50, %v225_v35 }
 0x239   :  { %v12785_v54 = vadd.f32 %v12781_v51, %v276_v52  ;;  %v267_v55 = vmul.f32 %v12770_v46, %v257_v53 }
 0x23b   :  { %v288_v57 = vsel %vm206_vm1, %v12785_v54, 0.0  ;;  %v277_v58 = vadd.f32 %v12775_v48, %v267_v55 }
 0x23c   :  { %289 = vadd.xlane.f32.xlu0 %v288_v57 }
 0x23d   :  { %v12797_v59 = vadd.f32 %v12791_v56, %v277_v58 }
 0x23f   :  { %v291_v60 = vsel %vm206_vm1, %v12797_v59, 0.0 }
 0x240   :  { %292 = vadd.xlane.f32.xlu1 %v291_v60 }
 0x2c9   :  { %v290_v63 = vpop.xlane.xlu0 %289 }
 0x2ca   :  { %v300_v0 = vmul.f32 0.03125, %v290_v63 }
 0x2cc   :  { %v304_v1 = vsub.f32 %v12785_v54, %v300_v0 }
 0x2cd   :  { %v293_v2 = vpop.xlane.xlu1 %292 }
 0x2ce   :  { %v301_v3 = vmul.f32 0.03125, %v293_v2  ;;  %v308_v5 = vmul.f32 %v304_v1, %v304_v1 }
 0x2d0   :  { %v305_v6 = vsub.f32 %v12797_v59, %v301_v3  ;;  %v312_v7 = vsel %vm206_vm1, %v308_v5, 0.0 }
 0x2d1   :  { %313 = vadd.xlane.f32.xlu0 %v312_v7 }
 0x2d2   :  { %v309_v8 = vmul.f32 %v305_v6, %v305_v6 }
 0x2d4   :  { %v315_v11 = vsel %vm206_vm1, %v309_v8, 0.0 }
 0x2d5   :  { %316 = vadd.xlane.f32.xlu1 %v315_v11  ;;  %214 = vadd.xlane.f32.xlu0 %v213_v9 }
 0x2d9   :  { %217 = vadd.xlane.f32.xlu1 %v216_v12 }
 0x35e   :  { %v314_v19 = vpop.xlane.xlu0 %313 }
 0x35f   :  { %v324_v20 = vmul.f32 0.03125, %v314_v19 }
 0x361   :  { %v328_v21 = vadd.f32 1e-05, %v324_v20 }
 0x362   :  { %v317_v22 = vpop.xlane.xlu1 %316  ;;  %v215_v23 = vpop.xlane.xlu0 %214 }
 0x363   :  { %12183 = vrsqrt.f32 %v328_v21  ;;  %v325_v24 = vmul.f32 0.03125, %v317_v22  ;;  %v222_v25 = vmul.f32 0.03125, %v215_v23 }
 0x365   :  { %v329_v26 = vadd.f32 1e-05, %v325_v24  ;;  %v226_v27 = vsub.f32 %v196_v4, %v222_v25 }
 0x366   :  { %v218_v28 = vpop.xlane.xlu1 %217 }
 0x367   :  { %12185 = vrsqrt.f32 %v329_v26  ;;  %v223_v29 = vmul.f32 0.03125, %v218_v28  ;;  %v230_v30 = vmul.f32 %v226_v27, %v226_v27 }
 0x369   :  { %v227_v31 = vsub.f32 %v201_v10, %v223_v29  ;;  %v238_v32 = vsel %vm206_vm1, %v230_v30, 0.0 }
 0x36a   :  { %239 = vadd.xlane.f32.xlu0 %v238_v32 }
 0x36b   :  { %v231_v33 = vmul.f32 %v227_v31, %v227_v31 }
 0x36d   :  { %v12184_v34 = vpop.eup %12183  ;;  %v241_v35 = vsel %vm206_vm1, %v231_v33, 0.0 }
 0x36e   :  { %242 = vadd.xlane.f32.xlu1 %v241_v35  ;;  %v336_v37 = vmul.f32 %v12184_v34, %v304_v1 }
 0x370   :  { %v344_v39 = vmul.f32 %v12826_v36, %v336_v37 }
 0x371   :  { %v12186_v40 = vpop.eup %12185 }
 0x372   :  { %v352_v41 = vadd.f32 %v12831_v38, %v344_v39  ;;  %v337_v42 = vmul.f32 %v12186_v40, %v305_v6 }
 0x374   :  { %10553 = vmatprep.mubr.msk.f32.mxu1 %vm206_vm1, %v352_v41  ;;  %v345_v43 = vmul.f32 %v12826_v36, %v337_v42 }
 0x376   :  { %v353_v44 = vadd.f32 %v12831_v38, %v345_v43 }
 0x378   :  { %10554 = vmatmul.mubr.msk.f32.vlgmr.msra.gmra.mrb[0].mxu1 %vm206_vm1, %v353_v44 }
 0x3f7   :  { %v240_v45 = vpop.xlane.xlu0 %239 }
 0x3f8   :  { %v246_v47 = vmul.f32 0.03125, %v240_v45 }
 0x3fa   :  { %v250_v49 = vadd.f32 1e-05, %v246_v47 }
 0x3fb   :  { %v243_v50 = vpop.xlane.xlu1 %242 }
 0x3fc   :  { %12187 = vrsqrt.f32 %v250_v49  ;;  %v247_v52 = vmul.f32 0.03125, %v243_v50 }
 0x3fe   :  { %v251_v53 = vadd.f32 1e-05, %v247_v52 }
 0x400   :  { %12189 = vrsqrt.f32 %v251_v53 }
 0x406   :  { %v12188_v55 = vpop.eup %12187 }
 0x407   :  { %v258_v57 = vmul.f32 %v12188_v55, %v226_v27 }
 0x409   :  { %v268_v58 = vmul.f32 %v12770_v46, %v258_v57 }
 0x40a   :  { %v12190_v60 = vpop.eup %12189 }
 0x40b   :  { %v278_v61 = vadd.f32 %v12775_v48, %v268_v58  ;;  %v259_v62 = vmul.f32 %v12190_v60, %v227_v31 }
 0x40d   :  { %v12842_v63 = vadd.f32 %v12781_v51, %v278_v61  ;;  %v269_v0 = vmul.f32 %v12770_v46, %v259_v62 }
 0x40f   :  { %v294_v1 = vsel %vm206_vm1, %v12842_v63, 0.0  ;;  %v279_v2 = vadd.f32 %v12775_v48, %v269_v0 }
 0x410   :  { %295 = vadd.xlane.f32.xlu0 %v294_v1 }
 0x411   :  { %v12849_v3 = vadd.f32 %v12791_v56, %v279_v2 }
 0x413   :  { %v297_v4 = vsel %vm206_vm1, %v12849_v3, 0.0 }
 0x414   :  { %298 = vadd.xlane.f32.xlu1 %v297_v4 }
 0x44b   :  { %v10555_v5 = vpop.f32.mrb[0].mxu1 }
 0x44c   :  { %v438_v6 = vpop.f32.mrb[1].mxu1  ;;  %v12867_v15 = vmul.f32 0.35355338, %v10555_v5 }
 0x44d   :  { %v12853_v7 = vpack.i.bf16 %v10555_v5, %v438_v6  ;;  %v12863_v14 = vmul.f32 0.35355338, %v438_v6 }
 0x49d   :  { %v296_v51 = vpop.xlane.xlu0 %295 }
 0x49e   :  { %v302_v8 = vmul.f32 0.03125, %v296_v51 }
 0x4a0   :  { %v306_v46 = vsub.f32 %v12842_v63, %v302_v8 }
 0x4a1   :  { %v299_v9 = vpop.xlane.xlu1 %298 }
 0x4a2   :  { %v303_v10 = vmul.f32 0.03125, %v299_v9  ;;  %v310_v11 = vmul.f32 %v306_v46, %v306_v46 }
 0x4a4   :  { %v307_v48 = vsub.f32 %v12849_v3, %v303_v10  ;;  %v318_v56 = vsel %vm206_vm1, %v310_v11, 0.0 }
 0x4a5   :  { %319 = vadd.xlane.f32.xlu0 %v318_v56 }
 0x4a6   :  { %v311_v12 = vmul.f32 %v307_v48, %v307_v48 }
 0x4a8   :  { %v321_v13 = vsel %vm206_vm1, %v311_v12, 0.0 }
 0x4a9   :  { %322 = vadd.xlane.f32.xlu1 %v321_v13 }
 0x4bb   :  { %11860 = vrot.lane.b32.xlu0 %v12853_v7, %s14614_s7 }
 0x4bf   :  { %11870 = vrot.lane.b32.xlu0 %v12853_v7, %s14612_s29 }
 0x4c3   :  { %661 = vrot.lane.b32.xlu0 %v12863_v14, %s14610_s10 }
 0x4c7   :  { %663 = vrot.lane.b32.xlu0 %v12867_v15, %s14610_s10 }
 0x532   :  { %v320_v16 = vpop.xlane.xlu0 %319 }
 0x533   :  { %v326_v17 = vmul.f32 0.03125, %v320_v16 }
 0x535   :  { %v330_v18 = vadd.f32 1e-05, %v326_v17 }
 0x536   :  { %v323_v19 = vpop.xlane.xlu1 %322  ;;  %v11861_v20 = vpop.permute.xlu0 %11860 }
 0x537   :  { %12191 = vrsqrt.f32 %v330_v18  ;;  %v327_v21 = vmul.f32 0.03125, %v323_v19  ;;  %v11863_v22 = vunpack.i.h.bf16 %v11861_v20  ;;  %v11862_v23 = vunpack.i.l.bf16 %v11861_v20 }
 0x539   :  { %v331_v25 = vadd.f32 1e-05, %v327_v21  ;;  %v11333_v26 = vpack.c.bf16 %v11863_v22, %v11862_v23 }
 0x53a   :  { %v11871_v60 = vpop.permute.xlu0 %11870 }
 0x53b   :  { %12193 = vrsqrt.f32 %v331_v25  ;;  %11335 = vmatprep.subr.msk.bf16.mxu1 %vm12873_vm3, %v11333_v26  ;;  %v11873_v62 = vunpack.i.h.bf16 %v11871_v60  ;;  %v11872_v0 = vunpack.i.l.bf16 %v11871_v60 }
 0x53c   :  { %11338 = vmatpush3.bf16.xpose.msk.msra.mxu1 %vm12873_vm3, %v11333_v26 }
 0x53d   :  { %v11343_v5 = vpack.c.bf16 %v11873_v62, %v11872_v0 }
 0x53e   :  { %v662_v9 = vpop.permute.xlu0 %661 }
 0x541   :  { %v12192_v27 = vpop.eup %12191 }
 0x542   :  { %v338_v28 = vmul.f32 %v12192_v27, %v306_v46  ;;  %v664_v10 = vpop.permute.xlu0 %663 }
 0x544   :  { %v346_v29 = vmul.f32 %v12826_v36, %v338_v28 }
 0x545   :  { %v12194_v30 = vpop.eup %12193 }
 0x546   :  { %v354_v31 = vadd.f32 %v12831_v38, %v346_v29  ;;  %v339_v32 = vmul.f32 %v12194_v30, %v307_v48 }
 0x548   :  { %10556 = vmatprep.mubr.msk.f32.mxu1 %vm206_vm1, %v354_v31  ;;  %v347_v33 = vmul.f32 %v12826_v36, %v339_v32 }
 0x54a   :  { %v355_v34 = vadd.f32 %v12831_v38, %v347_v33 }
 0x54c   :  { %10557 = vmatmul.mubr.msk.f32.gmra.mrb[2].mxu1 %vm206_vm1, %v355_v34 }
 0x54d   :  { %10563 = vmatprep.mubr.msk.f32.mxu1 %vm465_vm2, %v12863_v14 }
 0x550   :  { %10564 = vmatmul.mubr.msk.f32.vlgmr.msra.gmra.mrb[4].mxu1 %vm465_vm2, %v12867_v15 }
 0x61f   :  { %v12891_v35 = vpop.f32.mrb[2].mxu1 }
 0x620   :  { %v12893_v37 = vpop.f32.mrb[3].mxu1 }
 0x621   :  { %v12897_v39 = vpack.i.bf16 %v12891_v35, %v12893_v37 }
 0x623   :  { %v10565_v36 = vpop.f32.mrb[4].mxu1 }
 0x624   :  { %v542_v40 = vpop.f32.mrb[5].mxu1  ;;  %v555_v41 = vsel %vm551_vm4, %v10565_v36, -inf }
 0x625   :  { %v552_v38 = vsel %vm551_vm4, %v542_v40, -inf }
 0x626   :  { %553 = vmax.xlane.f32.xlu1 %v552_v38 }
 0x62a   :  { %556 = vmax.xlane.f32.xlu1 %v555_v41 }
 0x6b3   :  { %v554_v42 = vpop.xlane.xlu1 %553 }
 0x6b4   :  { %v558_v43 = vsub.f32 %v542_v40, %v554_v42 }
 0x6b6   :  { %v560_v47 = vmul.f32 1.442695, %v558_v43 }
 0x6b7   :  { %v557_v44 = vpop.xlane.xlu1 %556 }
 0x6b8   :  { %v559_v45 = vsub.f32 %v10565_v36, %v557_v44 }
 0x6ba   :  { %v562_v49 = vmul.f32 1.442695, %v559_v45 }
 0x6bc   :  { %12195 = vpow2.f32 %v562_v49 }
 0x6bd   :  { %12197 = vpow2.f32 %v560_v47 }
 0x6c6   :  { %v12196_v50 = vpop.eup %12195 }
 0x6c7   :  { %v567_v52 = vsel %vm551_vm4, %v12196_v50, 0.0  ;;  %v12198_v53 = vpop.eup %12197 }
 0x6c8   :  { %568 = vadd.xlane.f32.xlu1 %v567_v52  ;;  %v564_v55 = vsel %vm551_vm4, %v12198_v53, 0.0 }
 0x6cc   :  { %565 = vadd.xlane.f32.xlu1 %v564_v55 }
 0x6dd   :  { %11865 = vrot.lane.b32.xlu1 %v12853_v7, %s14598_s27 }
 0x755   :  { %v569_v57 = vpop.xlane.xlu1 %568 }
 0x756   :  { %12199 = vrcp.f32 %v569_v57 }
 0x759   :  { %v566_v58 = vpop.xlane.xlu1 %565 }
 0x75a   :  { %12201 = vrcp.f32 %v566_v58 }
 0x75d   :  { %v11866_v61 = vpop.permute.xlu1 %11865 }
 0x75e   :  { %v11868_v1 = vunpack.i.h.bf16 %v11866_v61  ;;  %v11867_v2 = vunpack.i.l.bf16 %v11866_v61 }
 0x760   :  { %v11339_v4 = vpack.c.bf16 %v11868_v1, %v11867_v2  ;;  %v12200_v6 = vpop.eup %12199 }
 0x761   :  { %v573_v46 = vmul.f32 %v12200_v6, %v12196_v50 }
 0x762   :  { %11340 = vmatprep.subr.bf16.mxu1 %v11339_v4 }
 0x763   :  { %11342 = vmatpush3.bf16.msra.mxu1 %v11339_v4 }
 0x764   :  { %v12202_v51 = vpop.eup %12201  ;;  %11345 = vmatprep.subr.msk.bf16.mxu1 %vm12873_vm3, %v11343_v5 }
 0x765   :  { %v572_v8 = vmul.f32 %v12202_v51, %v12198_v53 }
 0x767   :  { %10570 = vmatprep.mubr.msk.f32.mxu1 %vm551_vm4, %v572_v8 }
 0x768   :  { %10571 = vmatmul.mubr.msk.f32.vlgmr.msra.gmra.mrb[6].mxu1 %vm551_vm4, %v573_v46 }
 0x769   :  { %10577 = vmatprep.mubr.msk.f32.mxu1 %vm465_vm2, %v662_v9 }
 0x76c   :  { %11348 = vmatpush3.bf16.xpose.msk.msra.mxu1 %vm12873_vm3, %v11343_v5 }
 0x773   :  { %10578 = vmatmul.mubr.msk.f32.vlgmr.msra.gmra.mrb[8].mxu1 %vm465_vm2, %v664_v10 }
 0x83b   :  { %v12913_v11 = vpop.f32.mrb[6].mxu1 }
 0x83c   :  { %v12915_v48 = vpop.f32.mrb[7].mxu1 }
 0x846   :  { %v10579_v56 = vpop.f32.mrb[8].mxu1 }
 0x847   :  { %v743_v12 = vpop.f32.mrb[9].mxu1  ;;  %v755_v13 = vsel %vm551_vm4, %v10579_v56, -inf }
 0x848   :  { %756 = vmax.xlane.f32.xlu0 %v755_v13  ;;  %v752_v16 = vsel %vm551_vm4, %v743_v12, -inf }
 0x849   :  { %753 = vmax.xlane.f32.xlu1 %v752_v16 }
 0x85a   :  { %11875 = vrot.lane.b32.xlu1 %v12853_v7, %s14590_s30 }
 0x85e   :  { %11885 = vrot.lane.b32.xlu1 %v12853_v7, %s14594_s3 }
 0x862   :  { %861 = vrot.lane.b32.xlu1 %v12863_v14, %s14600_s4 }
 0x866   :  { %863 = vrot.lane.b32.xlu1 %v12867_v15, %s14600_s4 }
 0x86a   :  { %1063 = vrot.lane.b32.xlu1 %v12867_v15, %s14588_s11 }
 0x8d5   :  { %v757_v17 = vpop.xlane.xlu0 %756 }
 0x8d6   :  { %v759_v18 = vsub.f32 %v10579_v56, %v757_v17  ;;  %v754_v19 = vpop.xlane.xlu1 %753 }
 0x8d7   :  { %v758_v20 = vsub.f32 %v743_v12, %v754_v19 }
 0x8d8   :  { %v762_v21 = vmul.f32 1.442695, %v759_v18 }
 0x8d9   :  { %v760_v22 = vmul.f32 1.442695, %v758_v20 }
 0x8da   :  { %12203 = vpow2.f32 %v762_v21  ;;  %v11876_v23 = vpop.permute.xlu1 %11875 }
 0x8db   :  { %v11878_v25 = vunpack.i.h.bf16 %v11876_v23  ;;  %v11877_v26 = vunpack.i.l.bf16 %v11876_v23  ;;  %12205 = vpow2.f32 %v760_v22 }
 0x8dd   :  { %v11349_v27 = vpack.c.bf16 %v11878_v25, %v11877_v26 }
 0x8de   :  { %v11886_v38 = vpop.permute.xlu1 %11885 }
 0x8df   :  { %11350 = vmatprep.subr.bf16.mxu1 %v11349_v27  ;;  %v11888_v43 = vunpack.i.h.bf16 %v11886_v38  ;;  %v11887_v44 = vunpack.i.l.bf16 %v11886_v38 }
 0x8e0   :  { %11352 = vmatpush3.bf16.msra.mxu1 %v11349_v27 }
 0x8e2   :  { %v862_v49 = vpop.permute.xlu1 %861 }
 0x8e4   :  { %v12204_v28 = vpop.eup %12203 }
 0x8e5   :  { %v767_v29 = vsel %vm551_vm4, %v12204_v28, 0.0  ;;  %v12206_v30 = vpop.eup %12205 }
 0x8e6   :  { %768 = vadd.xlane.f32.xlu0 %v767_v29  ;;  %v764_v15 = vsel %vm551_vm4, %v12206_v30, 0.0  ;;  %v864_v50 = vpop.permute.xlu1 %863 }
 0x8ea   :  { %765 = vadd.xlane.f32.xlu0 %v764_v15  ;;  %v1064_v53 = vpop.permute.xlu1 %1063  ;;  %v12967_v15 = vmul.f32 0.35355338, %v12893_v37 }
 0x900   :  { %11880 = vrot.lane.b32.xlu0 %v12853_v7, %s14608_s9 }
 0x904   :  { %1061 = vrot.lane.b32.xlu0 %v12863_v14, %s14588_s11  ;;  %v11363_v14 = vpack.c.bf16 %v11888_v43, %v11887_v44 }
 0x973   :  { %v769_v31 = vpop.xlane.xlu0 %768 }
 0x974   :  { %12207 = vrcp.f32 %v769_v31  ;;  %v12975_v31 = vmul.f32 0.35355338, %v12891_v35 }
 0x977   :  { %v766_v32 = vpop.xlane.xlu0 %765 }
 0x978   :  { %12209 = vrcp.f32 %v766_v32 }
 0x97b   :  { %v11881_v33 = vpop.permute.xlu0 %11880 }
 0x97c   :  { %v11883_v34 = vunpack.i.h.bf16 %v11881_v33  ;;  %v11882_v36 = vunpack.i.l.bf16 %v11881_v33 }
 0x97e   :  { %v11353_v40 = vpack.c.bf16 %v11883_v34, %v11882_v36  ;;  %v12208_v41 = vpop.eup %12207 }
 0x97f   :  { %v773_v47 = vmul.f32 %v12208_v41, %v12204_v28  ;;  %v1062_v52 = vpop.permute.xlu0 %1061 }
 0x980   :  { %11355 = vmatprep.subr.msk.bf16.mxu1 %vm12873_vm3, %v11353_v40 }
 0x982   :  { %v12210_v42 = vpop.eup %12209 }
 0x983   :  { %v772_v45 = vmul.f32 %v12210_v42, %v12206_v30 }
 0x985   :  { %10584 = vmatprep.mubr.msk.f32.mxu1 %vm551_vm4, %v772_v45 }
 0x986   :  { %10585 = vmatmul.mubr.msk.f32.vlgmr.msra.gmra.mrb[10].mxu1 %vm551_vm4, %v773_v47 }
 0x987   :  { %11358 = vmatpush3.bf16.xpose.msk.msra.mxu1 %vm12873_vm3, %v11353_v40  ;;  %10591 = vmatprep.mubr.msk.f32.mxu1 %vm465_vm2, %v862_v49 }
 0x988   :  { %11365 = vmatprep.subr.msk.bf16.mxu1 %vm12873_vm3, %v11363_v14 }
 0x98e   :  { %10592 = vmatmul.mubr.msk.f32.vlgmr.msra.gmra.mrb[12].mxu1 %vm465_vm2, %v864_v50 }
 0x98f   :  { %11368 = vmatpush3.bf16.xpose.msk.msra.mxu1 %vm12873_vm3, %v11363_v14  ;;  %10605 = vmatprep.mubr.msk.f32.mxu1 %vm465_vm2, %v1062_v52 }
 0x996   :  { %10606 = vmatmul.mubr.msk.f32.vlgmr.msra.gmra.mrb[14].mxu1 %vm465_vm2, %v1064_v53 }
 0xa59   :  { %v12949_v55 = vpop.f32.mrb[10].mxu1 }
 0xa5a   :  { %v12951_v57 = vpop.f32.mrb[11].mxu1 }
 0xa61   :  { %v10593_v58 = vpop.f32.mrb[12].mxu1 }
 0xa62   :  { %v943_v60 = vpop.f32.mrb[13].mxu1  ;;  %v955_v13 = vsel %vm551_vm4, %v10593_v58, -inf }
 0xa63   :  { %v952_v2 = vsel %vm551_vm4, %v943_v60, -inf }
 0xa69   :  { %v10607_v61 = vpop.f32.mrb[14].mxu1 }
 0xa6a   :  { %v1143_v62 = vpop.f32.mrb[15].mxu1  ;;  %v1155_v0 = vsel %vm551_vm4, %v10607_v61, -inf }
 0xa6b   :  { %1156 = vmax.xlane.f32.xlu1 %v1155_v0  ;;  %v1152_v1 = vsel %vm551_vm4, %v1143_v62, -inf }
 0xa6c   :  { %1153 = vmax.xlane.f32.xlu0 %v1152_v1 }
 0xa7c   :  { %11895 = vrot.lane.b32.xlu1 %v12897_v39, %s14614_s7 }
 0xaa0   :  { %953 = vmax.xlane.f32.xlu1 %v952_v2 }
 0xaf8   :  { %v1157_v4 = vpop.xlane.xlu1 %1156 }
 0xaf9   :  { %v1159_v5 = vsub.f32 %v10607_v61, %v1157_v4  ;;  %v1154_v6 = vpop.xlane.xlu0 %1153 }
 0xafa   :  { %v1158_v51 = vsub.f32 %v1143_v62, %v1154_v6 }
 0xafb   :  { %v1162_v8 = vmul.f32 1.442695, %v1159_v5 }
 0xafc   :  { %v1160_v46 = vmul.f32 1.442695, %v1158_v51  ;;  %v11896_v18 = vpop.permute.xlu1 %11895 }
 0xafd   :  { %12211 = vpow2.f32 %v1162_v8  ;;  %v11898_v20 = vunpack.i.h.bf16 %v11896_v18  ;;  %v11897_v21 = vunpack.i.l.bf16 %v11896_v18 }
 0xafe   :  { %12213 = vpow2.f32 %v1160_v46 }
 0xaff   :  { %v11373_v26 = vpack.c.bf16 %v11898_v20, %v11897_v21 }
 0xb07   :  { %v12212_v9 = vpop.eup %12211 }
 0xb08   :  { %v1167_v10 = vsel %vm551_vm4, %v12212_v9, 0.0  ;;  %v12214_v56 = vpop.eup %12213 }
 0xb09   :  { %1168 = vadd.xlane.f32.xlu0 %v1167_v10  ;;  %v1164_v12 = vsel %vm551_vm4, %v12214_v56, 0.0 }
 0xb0d   :  { %1165 = vadd.xlane.f32.xlu0 %v1164_v12 }
 0xb23   :  { %11890 = vrot.lane.b32.xlu0 %v12853_v7, %s14592_s0 }
 0xb2d   :  { %v954_v33 = vpop.xlane.xlu1 %953 }
 0xb2e   :  { %v958_v36 = vsub.f32 %v943_v60, %v954_v33 }
 0xb30   :  { %v960_v40 = vmul.f32 1.442695, %v958_v36 }
 0xb42   :  { %956 = vmax.xlane.f32.xlu0 %v955_v13 }
 0xb96   :  { %v1169_v16 = vpop.xlane.xlu0 %1168 }
 0xb97   :  { %12215 = vrcp.f32 %v1169_v16 }
 0xb9a   :  { %v1166_v17 = vpop.xlane.xlu0 %1165 }
 0xb9b   :  { %12217 = vrcp.f32 %v1166_v17 }
 0xb9e   :  { %v11891_v19 = vpop.permute.xlu0 %11890 }
 0xb9f   :  { %v11893_v22 = vunpack.i.h.bf16 %v11891_v19  ;;  %v11892_v23 = vunpack.i.l.bf16 %v11891_v19 }
 0xba1   :  { %v11369_v25 = vpack.c.bf16 %v11893_v22, %v11892_v23  ;;  %v12216_v27 = vpop.eup %12215 }
 0xba2   :  { %v1173_v30 = vmul.f32 %v12216_v27, %v12212_v9 }
 0xba3   :  { %11370 = vmatprep.subr.bf16.mxu1 %v11369_v25 }
 0xba4   :  { %11372 = vmatpush3.bf16.msra.mxu1 %v11369_v25 }
 0xba5   :  { %v12218_v28 = vpop.eup %12217  ;;  %11375 = vmatprep.subr.msk.bf16.mxu1 %vm12873_vm3, %v11373_v26 }
 0xba6   :  { %v1172_v29 = vmul.f32 %v12218_v28, %v12214_v56 }
 0xba8   :  { %10612 = vmatprep.mubr.msk.f32.mxu1 %vm551_vm4, %v1172_v29 }
 0xba9   :  { %10613 = vmatmul.mubr.msk.f32.vlgmr.msra.gmra.mrb[16].mxu1 %vm551_vm4, %v1173_v30 }
 0xbaa   :  { %10619 = vmatprep.mubr.msk.f32.mxu1 %vm465_vm2, %v12967_v15 }
 0xbad   :  { %11378 = vmatpush3.bf16.xpose.msk.msra.mxu1 %vm12873_vm3, %v11373_v26 }
 0xbb4   :  { %10620 = vmatmul.mubr.msk.f32.vlgmr.msra.gmra.mrb[18].mxu1 %vm465_vm2, %v12975_v31 }
 0xbcf   :  { %v957_v32 = vpop.xlane.xlu0 %956 }
 0xbd0   :  { %v959_v34 = vsub.f32 %v10593_v58, %v957_v32 }
 0xbd2   :  { %v962_v37 = vmul.f32 1.442695, %v959_v34 }
 0xbd4   :  { %12219 = vpow2.f32 %v962_v37 }
 0xbd5   :  { %12221 = vpow2.f32 %v960_v40 }
 0xbde   :  { %v12220_v44 = vpop.eup %12219 }
 0xbdf   :  { %v12222_v47 = vpop.eup %12221  ;;  %v967_v14 = vsel %vm551_vm4, %v12220_v44, 0.0 }
 0xbe0   :  { %v964_v49 = vsel %vm551_vm4, %v12222_v47, 0.0 }
 0xc7c   :  { %v12979_v38 = vpop.f32.mrb[16].mxu1 }
 0xc7d   :  { %v12981_v41 = vpop.f32.mrb[17].mxu1 }
 0xc87   :  { %v10621_v42 = vpop.f32.mrb[18].mxu1 }
 0xc88   :  { %v1376_v43 = vpop.f32.mrb[19].mxu1  ;;  %v1388_v35 = vsel %vm551_vm4, %v10621_v42, -inf }
 0xc89   :  { %1389 = vmax.xlane.f32.xlu1 %v1388_v35  ;;  %v1385_v45 = vsel %vm551_vm4, %v1376_v43, -inf }
 0xc8a   :  { %1386 = vmax.xlane.f32.xlu0 %v1385_v45 }
 0xc8d   :  { %968 = vadd.xlane.f32.xlu1 %v967_v14 }
 0xc8e   :  { %965 = vadd.xlane.f32.xlu0 %v964_v49 }
 0xd16   :  { %v1390_v50 = vpop.xlane.xlu1 %1389 }
 0xd17   :  { %v1392_v52 = vsub.f32 %v10621_v42, %v1390_v50  ;;  %v1387_v53 = vpop.xlane.xlu0 %1386 }
 0xd18   :  { %v1391_v58 = vsub.f32 %v1376_v43, %v1387_v53 }
 0xd19   :  { %v1395_v60 = vmul.f32 1.442695, %v1392_v52 }
 0xd1a   :  { %v1393_v61 = vmul.f32 1.442695, %v1391_v58  ;;  %v969_v51 = vpop.xlane.xlu1 %968 }
 0xd1b   :  { %12223 = vpow2.f32 %v1395_v60  ;;  %v966_v62 = vpop.xlane.xlu0 %965 }
 0xd1c   :  { %12225 = vpow2.f32 %v1393_v61 }
 0xd1d   :  { %12227 = vrcp.f32 %v966_v62 }
 0xd1e   :  { %12229 = vrcp.f32 %v969_v51 }
 0xd25   :  { %v12224_v0 = vpop.eup %12223 }
 0xd26   :  { %v12226_v1 = vpop.eup %12225  ;;  %v1400_v2 = vsel %vm551_vm4, %v12224_v0, 0.0 }
 0xd27   :  { %1401 = vadd.xlane.f32.xlu1 %v1400_v2  ;;  %v1397_v4 = vsel %vm551_vm4, %v12226_v1, 0.0  ;;  %v12228_v5 = vpop.eup %12227 }
 0xd28   :  { %1398 = vadd.xlane.f32.xlu0 %v1397_v4  ;;  %v972_v6 = vmul.f32 %v12228_v5, %v12222_v47  ;;  %v12230_v18 = vpop.eup %12229 }
 0xd29   :  { %v973_v23 = vmul.f32 %v12230_v18, %v12220_v44 }
 0xd2a   :  { %10598 = vmatprep.mubr.msk.f32.mxu0 %vm551_vm4, %v972_v6 }
 0xd38   :  { %11905 = vrot.lane.b32.xlu1 %v12897_v39, %s14598_s27  ;;  %s14657_s27 = smov 112  }
 0xd3c   :  { %11910 = vrot.lane.b32.xlu1 %v12897_v39, %s14612_s29 }
 0xd3e   :  { %11900 = vrot.lane.b32.xlu0 %v12853_v7, %s14596_s28 }
 0xd40   :  { %1494 = vrot.lane.b32.xlu1 %v12967_v15, %s14610_s10 }
 0xd42   :  { %1496 = vrot.lane.b32.xlu0 %v12975_v31, %s14610_s10  ;;  %s14659_s10 = smov 48  }
 0xdb4   :  { %v1402_v8 = vpop.xlane.xlu1 %1401 }
 0xdb5   :  { %v1399_v46 = vpop.xlane.xlu0 %1398 }
 0xdb6   :  { %12231 = vrcp.f32 %v1399_v46 }
 0xdb7   :  { %12233 = vrcp.f32 %v1402_v8 }
 0xdb8   :  { %v11906_v9 = vpop.permute.xlu1 %11905 }
 0xdb9   :  { %v11901_v10 = vpop.permute.xlu0 %11900  ;;  %v11908_v56 = vunpack.i.h.bf16 %v11906_v9  ;;  %v11907_v12 = vunpack.i.l.bf16 %v11906_v9 }
 0xdba   :  { %v11903_v13 = vunpack.i.h.bf16 %v11901_v10  ;;  %v11902_v16 = vunpack.i.l.bf16 %v11901_v10 }
 0xdbb   :  { %v11379_v21 = vpack.c.bf16 %v11908_v56, %v11907_v12 }
 0xdbc   :  { %v11911_v17 = vpop.permute.xlu1 %11910  ;;  %v11359_v7 = vpack.c.bf16 %v11903_v13, %v11902_v16 }
 0xdbd   :  { %v11913_v19 = vunpack.i.h.bf16 %v11911_v17  ;;  %v11912_v20 = vunpack.i.l.bf16 %v11911_v17  ;;  %v1497_v30 = vpop.permute.xlu0 %1496 }
 0xdbe   :  { %11360 = vmatprep.subr.bf16.mxu0 %v11359_v7 }
 0xdbf   :  { %11362 = vmatpush3.bf16.msra.mxu0 %v11359_v7  ;;  %v11383_v27 = vpack.c.bf16 %v11913_v19, %v11912_v20 }
 0xdc0   :  { %v12232_v22 = vpop.eup %12231  ;;  %11380 = vmatprep.subr.bf16.mxu0 %v11379_v21  ;;  %v1495_v29 = vpop.permute.xlu1 %1494 }
 0xdc1   :  { %v12234_v25 = vpop.eup %12233  ;;  %v1405_v26 = vmul.f32 %v12232_v22, %v12226_v1 }
 0xdc2   :  { %10599 = vmatmul.mubr.msk.f32.vlgmr.msra.gmra.mrb[4].mxu0 %vm551_vm4, %v973_v23  ;;  %v1406_v28 = vmul.f32 %v12234_v25, %v12224_v0 }
 0xdc3   :  { %11382 = vmatpush3.bf16.msra.mxu0 %v11379_v21  ;;  %10626 = vmatprep.mubr.msk.f32.mxu0 %vm551_vm4, %v1405_v26 }
 0xdc4   :  { %11385 = vmatprep.subr.msk.bf16.mxu0 %vm12873_vm3, %v11383_v27 }
 0xdc6   :  { %10627 = vmatmul.mubr.msk.f32.vlgmr.msra.gmra.mrb[6].mxu0 %vm551_vm4, %v1406_v28 }
 0xdc7   :  { %10633 = vmatprep.mubr.msk.f32.mxu0 %vm465_vm2, %v1495_v29 }
 0xdcc   :  { %11388 = vmatpush3.bf16.xpose.msk.msra.mxu0 %vm12873_vm3, %v11383_v27 }
 0xdd3   :  { %10634 = vmatmul.mubr.msk.f32.vlgmr.msra.gmra.mrb[8].mxu0 %vm465_vm2, %v1497_v30 }
 0xe95   :  { %v13009_v32 = vpop.f32.mrb[4].mxu0 }
 0xe96   :  { %v13011_v33 = vpop.f32.mrb[5].mxu0 }
 0xe99   :  { %v13013_v34 = vpop.f32.mrb[6].mxu0 }
 0xe9a   :  { %v13015_v36 = vpop.f32.mrb[7].mxu0 }
 0xea6   :  { %v10635_v37 = vpop.f32.mrb[8].mxu0 }
 0xea7   :  { %v1576_v40 = vpop.f32.mrb[9].mxu0  ;;  %v1588_v42 = vsel %vm551_vm4, %v10635_v37, -inf }
 0xea8   :  { %1589 = vmax.xlane.f32.xlu0 %v1588_v42  ;;  %v1585_v43 = vsel %vm551_vm4, %v1576_v40, -inf }
 0xea9   :  { %1586 = vmax.xlane.f32.xlu1 %v1585_v43 }
 0xeba   :  { %11915 = vrot.lane.b32.xlu1 %v12897_v39, %s14590_s30  ;;  %s14602_s30 = smov 24  }
 0xebe   :  { %1694 = vrot.lane.b32.xlu1 %v12967_v15, %s14600_s4 }
 0xec2   :  { %1696 = vrot.lane.b32.xlu1 %v12975_v31, %s14600_s4  ;;  %s14654_s4 = sld [smem:[#allocation12_spill]] }
 0xf35   :  { %v1590_v35 = vpop.xlane.xlu0 %1589 }
 0xf36   :  { %v1592_v44 = vsub.f32 %v10635_v37, %v1590_v35  ;;  %v1587_v45 = vpop.xlane.xlu1 %1586 }
 0xf37   :  { %v1591_v47 = vsub.f32 %v1576_v40, %v1587_v45 }
 0xf38   :  { %v1595_v14 = vmul.f32 1.442695, %v1592_v44 }
 0xf39   :  { %v1593_v49 = vmul.f32 1.442695, %v1591_v47 }
 0xf3a   :  { %12235 = vpow2.f32 %v1595_v14  ;;  %v11916_v50 = vpop.permute.xlu1 %11915 }
 0xf3b   :  { %v11918_v52 = vunpack.i.h.bf16 %v11916_v50  ;;  %v11917_v53 = vunpack.i.l.bf16 %v11916_v50  ;;  %12237 = vpow2.f32 %v1593_v49 }
 0xf3d   :  { %v11389_v58 = vpack.c.bf16 %v11918_v52, %v11917_v53 }
 0xf3e   :  { %v1695_v56 = vpop.permute.xlu1 %1694 }
 0xf3f   :  { %11390 = vmatprep.subr.bf16.mxu1 %v11389_v58 }
 0xf40   :  { %11392 = vmatpush3.bf16.msra.mxu1 %v11389_v58 }
 0xf42   :  { %v1697_v12 = vpop.permute.xlu1 %1696 }
 0xf44   :  { %v12236_v60 = vpop.eup %12235 }
 0xf45   :  { %v1600_v61 = vsel %vm551_vm4, %v12236_v60, 0.0  ;;  %v12238_v62 = vpop.eup %12237 }
 0xf46   :  { %1601 = vadd.xlane.f32.xlu0 %v1600_v61  ;;  %v1597_v0 = vsel %vm551_vm4, %v12238_v62, 0.0 }
 0xf4a   :  { %1598 = vadd.xlane.f32.xlu0 %v1597_v0 }
 0xf60   :  { %11920 = vrot.lane.b32.xlu0 %v12897_v39, %s14608_s9  ;;  %s14662_s9 = smov 104  }
 0xfd3   :  { %v1602_v1 = vpop.xlane.xlu0 %1601 }
 0xfd4   :  { %12239 = vrcp.f32 %v1602_v1 }
 0xfd7   :  { %v1599_v2 = vpop.xlane.xlu0 %1598 }
 0xfd8   :  { %12241 = vrcp.f32 %v1599_v2 }
 0xfdb   :  { %v11921_v4 = vpop.permute.xlu0 %11920 }
 0xfdc   :  { %v11923_v5 = vunpack.i.h.bf16 %v11921_v4  ;;  %v11922_v6 = vunpack.i.l.bf16 %v11921_v4 }
 0xfde   :  { %v11393_v51 = vpack.c.bf16 %v11923_v5, %v11922_v6  ;;  %v12240_v8 = vpop.eup %12239 }
 0xfdf   :  { %v1606_v10 = vmul.f32 %v12240_v8, %v12236_v60 }
 0xfe0   :  { %11395 = vmatprep.subr.msk.bf16.mxu1 %vm12873_vm3, %v11393_v51 }
 0xfe2   :  { %v12242_v46 = vpop.eup %12241 }
 0xfe3   :  { %v1605_v9 = vmul.f32 %v12242_v46, %v12238_v62 }
 0xfe5   :  { %10640 = vmatprep.mubr.msk.f32.mxu1 %vm551_vm4, %v1605_v9 }
 0xfe6   :  { %10641 = vmatmul.mubr.msk.f32.vlgmr.msra.gmra.mrb[20].mxu1 %vm551_vm4, %v1606_v10 }
 0xfe7   :  { %11398 = vmatpush3.bf16.xpose.msk.msra.mxu1 %vm12873_vm3, %v11393_v51  ;;  %10647 = vmatprep.mubr.msk.f32.mxu1 %vm465_vm2, %v1695_v56 }
 0xfee   :  { %10648 = vmatmul.mubr.msk.f32.vlgmr.msra.gmra.mrb[22].mxu1 %vm465_vm2, %v1697_v12 }
0x10b9   :  { %v13037_v13 = vpop.f32.mrb[20].mxu1 }
0x10ba   :  { %v13039_v16 = vpop.f32.mrb[21].mxu1 }
0x10c1   :  { %v10649_v17 = vpop.f32.mrb[22].mxu1 }
0x10c2   :  { %v1776_v7 = vpop.f32.mrb[23].mxu1  ;;  %v1788_v18 = vsel %vm551_vm4, %v10649_v17, -inf }
0x10c3   :  { %1789 = vmax.xlane.f32.xlu0 %v1788_v18  ;;  %v1785_v19 = vsel %vm551_vm4, %v1776_v7, -inf }
0x10c4   :  { %1786 = vmax.xlane.f32.xlu1 %v1785_v19 }
0x10d5   :  { %11925 = vrot.lane.b32.xlu1 %v12897_v39, %s14596_s28  ;;  %s14653_s28 = sld [smem:[#allocation11_spill]] }
0x10d9   :  { %1894 = vrot.lane.b32.xlu1 %v12967_v15, %s14588_s11 }
0x10db   :  { %v2124_v12 = vld [vmem:[%s14653_s28] sm:$0xff] }
0x10dd   :  { %1896 = vrot.lane.b32.xlu1 %v12975_v31, %s14588_s11  ;;  %s14604_s11 = smov 16  }
0x1150   :  { %v1790_v20 = vpop.xlane.xlu0 %1789 }
0x1151   :  { %v1792_v21 = vsub.f32 %v10649_v17, %v1790_v20  ;;  %v1787_v22 = vpop.xlane.xlu1 %1786 }
0x1152   :  { %v1791_v23 = vsub.f32 %v1776_v7, %v1787_v22  ;;  %v2126_v22 = vld [vmem:[%s14653_s28 + $0x10] sm:$0xff] }
0x1153   :  { %v1795_v25 = vmul.f32 1.442695, %v1792_v21 }
0x1154   :  { %v1793_v26 = vmul.f32 1.442695, %v1791_v23 }
0x1155   :  { %12243 = vpow2.f32 %v1795_v25  ;;  %v11926_v27 = vpop.permute.xlu1 %11925 }
0x1156   :  { %v11928_v28 = vunpack.i.h.bf16 %v11926_v27  ;;  %v11927_v29 = vunpack.i.l.bf16 %v11926_v27  ;;  %12245 = vpow2.f32 %v1793_v26 }
0x1158   :  { %v11399_v30 = vpack.c.bf16 %v11928_v28, %v11927_v29 }
0x1159   :  { %v1895_v53 = vpop.permute.xlu1 %1894 }
0x115a   :  { %11400 = vmatprep.subr.bf16.mxu0 %v11399_v30 }
0x115b   :  { %11402 = vmatpush3.bf16.msra.mxu0 %v11399_v30 }
0x115d   :  { %v1897_v58 = vpop.permute.xlu1 %1896 }
0x115f   :  { %v12244_v37 = vpop.eup %12243 }
0x1160   :  { %v1800_v15 = vsel %vm551_vm4, %v12244_v37, 0.0  ;;  %v12246_v40 = vpop.eup %12245 }
0x1161   :  { %1801 = vadd.xlane.f32.xlu0 %v1800_v15  ;;  %v1797_v31 = vsel %vm551_vm4, %v12246_v40, 0.0 }
0x1165   :  { %1798 = vadd.xlane.f32.xlu0 %v1797_v31 }
0x117b   :  { %11930 = vrot.lane.b32.xlu0 %v12897_v39, %s14594_s3  ;;  %s14658_s3 = smov 64  }
0x11ee   :  { %v1802_v42 = vpop.xlane.xlu0 %1801 }
0x11ef   :  { %12247 = vrcp.f32 %v1802_v42 }
0x11f2   :  { %v1799_v43 = vpop.xlane.xlu0 %1798 }
0x11f3   :  { %12249 = vrcp.f32 %v1799_v43 }
0x11f6   :  { %v11931_v35 = vpop.permute.xlu0 %11930 }
0x11f7   :  { %v11933_v44 = vunpack.i.h.bf16 %v11931_v35  ;;  %v11932_v45 = vunpack.i.l.bf16 %v11931_v35 }
0x11f9   :  { %v11403_v47 = vpack.c.bf16 %v11933_v44, %v11932_v45  ;;  %v12248_v14 = vpop.eup %12247  ;;  %v9771_v45 = vld [vmem:[%s14654_s4] ss:$0 sm:$0xff] }
0x11fa   :  { %v1806_v52 = vmul.f32 %v12248_v14, %v12244_v37 }
0x11fb   :  { %11405 = vmatprep.subr.msk.bf16.mxu0 %vm12873_vm3, %v11403_v47 }
0x11fd   :  { %v12250_v49 = vpop.eup %12249 }
0x11fe   :  { %v1805_v50 = vmul.f32 %v12250_v49, %v12246_v40 }
0x1200   :  { %10654 = vmatprep.mubr.msk.f32.mxu0 %vm551_vm4, %v1805_v50 }
0x1201   :  { %10655 = vmatmul.mubr.msk.f32.vlgmr.msra.gmra.mrb[10].mxu0 %vm551_vm4, %v1806_v52 }
0x1202   :  { %11408 = vmatpush3.bf16.xpose.msk.msra.mxu0 %vm12873_vm3, %v11403_v47  ;;  %10661 = vmatprep.mubr.msk.f32.mxu0 %vm465_vm2, %v1895_v53 }
0x1209   :  { %10662 = vmatmul.mubr.msk.f32.vlgmr.msra.gmra.mrb[12].mxu0 %vm465_vm2, %v1897_v58 }
0x12d4   :  { %v10656_v60 = vpop.f32.mrb[10].mxu0 }
0x12d5   :  { %v1885_v61 = vpop.f32.mrb[11].mxu0 }
0x12dc   :  { %v10663_v62 = vpop.f32.mrb[12].mxu0 }
0x12dd   :  { %v1976_v0 = vpop.f32.mrb[13].mxu0  ;;  %v1988_v1 = vsel %vm551_vm4, %v10663_v62, -inf }
0x12de   :  { %1989 = vmax.xlane.f32.xlu0 %v1988_v1  ;;  %v1985_v2 = vsel %vm551_vm4, %v1976_v0, -inf }
0x12df   :  { %1986 = vmax.xlane.f32.xlu1 %v1985_v2 }
0x12f0   :  { %11935 = vrot.lane.b32.xlu1 %v12897_v39, %s14592_s0  ;;  %s14656_s0 = smov 80  }
0x12f4   :  { %1265 = vrot.lane.b32.xlu1 %v12949_v55, %s14606_s8 }
0x12f8   :  { %1271 = vrot.lane.b32.xlu1 %v13011_v33, %s14604_s11 }
0x12fc   :  { %1273 = vrot.lane.b32.xlu1 %v13009_v32, %s14604_s11 }
0x1300   :  { %1281 = vrot.lane.b32.xlu1 %v12979_v38, %s14602_s30 }
0x1304   :  { %2098 = vrot.lane.b32.xlu1 %v13037_v13, %s14606_s8  ;;  %v2125_v13 = vld [vmem:[%s14653_s28 + $0x8] sm:$0xff] }
0x1305   :  { %v11413_v17 = vpack.c.bf16 %v2125_v13, %v2124_v12  ;;  %v2307_v12 = vld [vmem:[%s14564_s14 + $0x18] sm:$0xff] }
0x1308   :  { %2106 = vrot.lane.b32.xlu1 %v10656_v60, %s14604_s11 }
0x136b   :  { %v1990_v39 = vpop.xlane.xlu0 %1989 }
0x136c   :  { %v1992_v4 = vsub.f32 %v10663_v62, %v1990_v39  ;;  %v1987_v5 = vpop.xlane.xlu1 %1986 }
0x136d   :  { %v1991_v55 = vsub.f32 %v1976_v0, %v1987_v5 }
0x136e   :  { %v1995_v6 = vmul.f32 1.442695, %v1992_v4 }
0x136f   :  { %v1993_v51 = vmul.f32 1.442695, %v1991_v55 }
0x1370   :  { %12251 = vpow2.f32 %v1995_v6  ;;  %v11936_v33 = vpop.permute.xlu1 %11935 }
0x1371   :  { %v11938_v8 = vunpack.i.h.bf16 %v11936_v33  ;;  %v11937_v46 = vunpack.i.l.bf16 %v11936_v33  ;;  %12253 = vpow2.f32 %v1993_v51 }
0x1373   :  { %v11409_v32 = vpack.c.bf16 %v11938_v8, %v11937_v46 }
0x1374   :  { %v1266_v18 = vpop.permute.xlu1 %1265 }
0x1375   :  { %11410 = vmatprep.subr.bf16.mxu1 %v11409_v32 }
0x1376   :  { %11412 = vmatpush3.bf16.msra.mxu1 %v11409_v32 }
0x1377   :  { %11414 = vmatprep.subr.bf16.mxu1 %v11413_v17 }
0x1378   :  { %v1272_v20 = vpop.permute.xlu1 %1271 }
0x137a   :  { %v12252_v38 = vpop.eup %12251 }
0x137b   :  { %v2000_v9 = vsel %vm551_vm4, %v12252_v38, 0.0  ;;  %v12254_v10 = vpop.eup %12253 }
0x137c   :  { %2001 = vadd.xlane.f32.xlu0 %v2000_v9  ;;  %v1997_v56 = vsel %vm551_vm4, %v12254_v10, 0.0  ;;  %v1274_v27 = vpop.permute.xlu1 %1273  ;;  %v2305_v9 = vld [vmem:[%s14564_s14 + $0x8] sm:$0xff] }
0x1380   :  { %1998 = vadd.xlane.f32.xlu0 %v1997_v56  ;;  %v1282_v15 = vpop.permute.xlu1 %1281  ;;  %v2306_v56 = vld [vmem:[%s14564_s14 + $0x10] sm:$0xff] }
0x1381   :  { %v11425_v13 = vpack.c.bf16 %v2307_v12, %v2306_v56 }
0x1384   :  { %v2099_v53 = vpop.permute.xlu1 %2098 }
0x1388   :  { %v2107_v60 = vpop.permute.xlu1 %2106 }
0x1396   :  { %1263 = vrot.lane.b32.xlu0 %v12951_v57, %s14606_s8 }
0x139a   :  { %1279 = vrot.lane.b32.xlu0 %v12981_v41, %s14602_s30  ;;  %v2127_v41 = vld [vmem:[%s14653_s28 + $0x18] sm:$0xff] }
0x139b   :  { %v11417_v29 = vpack.c.bf16 %v2127_v41, %v2126_v22 }
0x139e   :  { %2096 = vrot.lane.b32.xlu0 %v13039_v16, %s14606_s8  ;;  %s14655_s8 = smov 120  }
0x13a2   :  { %2104 = vrot.lane.b32.xlu0 %v1885_v61, %s14604_s11  ;;  %s14661_s11 = smov 56  }
0x1409   :  { %v2002_v7 = vpop.xlane.xlu0 %2001 }
0x140a   :  { %12255 = vrcp.f32 %v2002_v7 }
0x140d   :  { %v1999_v57 = vpop.xlane.xlu0 %1998 }
0x140e   :  { %12257 = vrcp.f32 %v1999_v57 }
0x1411   :  { %v1264_v19 = vpop.permute.xlu0 %1263 }
0x1412   :  { %v1285_v16 = vsel %vm465_vm2, %v12915_v48, %v1264_v19  ;;  %v1286_v48 = vsel %vm465_vm2, %v12913_v11, %v1266_v18 }
0x1413   :  { %v1287_v30 = vsel %vm551_vm4, %v1285_v16, %v1272_v20  ;;  %v1288_v40 = vsel %vm551_vm4, %v1286_v48, %v1274_v27 }
0x1414   :  { %v12256_v21 = vpop.eup %12255  ;;  %v1291_v31 = vsel %vm1289_vm5, %v1288_v40, %v1282_v15 }
0x1415   :  { %v1280_v25 = vpop.permute.xlu0 %1279  ;;  %v2006_v28 = vmul.f32 %v12256_v21, %v12252_v38  ;;  %v2304_v38 = vld [vmem:[%s14564_s14] sm:$0xff] }
0x1416   :  { %v1290_v37 = vsel %vm1289_vm5, %v1287_v30, %v1280_v25 }
0x1418   :  { %v12258_v23 = vpop.eup %12257 }
0x1419   :  { %v2005_v26 = vmul.f32 %v12258_v23, %v12254_v10  ;;  %v2097_v58 = vpop.permute.xlu0 %2096  ;;  %v11421_v10 = vpack.c.bf16 %v2305_v9, %v2304_v38 }
0x141a   :  { %v2118_v62 = vsel %vm465_vm2, %v13015_v36, %v2097_v58  ;;  %v2437_v58 = vld [vmem:[%s14567_s16 + $0x38] sm:$0xff] }
0x141b   :  { %10668 = vmatprep.mubr.msk.f32.mxu1 %vm551_vm4, %v2005_v26  ;;  %11422 = vmatprep.subr.bf16.mxu0 %v11421_v10 }
0x141c   :  { %10669 = vmatmul.mubr.msk.f32.vlgmr.msra.gmra.mrb[24].mxu1 %vm551_vm4, %v2006_v28  ;;  %11424 = vmatpush3.bf16.msra.mxu0 %v11421_v10 }
0x141d   :  { %11416 = vmatpush3.bf16.msra.mxu1 %v11413_v17  ;;  %10679 = vmatprep.mubr.msk.f32.mxu1 %vm206_vm1, %v1290_v37  ;;  %v2105_v61 = vpop.permute.xlu0 %2104 }
0x141e   :  { %11418 = vmatprep.subr.bf16.mxu1 %v11417_v29  ;;  %v2120_v0 = vsel %vm551_vm4, %v2118_v62, %v2105_v61  ;;  %11426 = vmatprep.subr.bf16.mxu0 %v11425_v13 }
0x1420   :  { %11428 = vmatpush3.bf16.msra.mxu0 %v11425_v13 }
0x1421   :  { %11420 = vmatpush3.bf16.msra.mxu1 %v11417_v29  ;;  %v13163_v29 = vld [vmem:[%s14565_s12] ss:$0 sm:$0xff] }
0x1424   :  { %10680 = vmatmul.mubr.msk.f32.vlgmr.msra.gmra.mrb[26].mxu1 %vm206_vm1, %v1291_v31 }
0x14ef   :  { %v10670_v42 = vpop.f32.mrb[24].mxu1 }
0x14f0   :  { %2114 = vrot.lane.b32.xlu1 %v10670_v42, %s14602_s30  ;;  %v2085_v43 = vpop.f32.mrb[25].mxu1  ;;  %v2430_v42 = vld [vmem:[%s14567_s16] sm:$0xff] }
0x14f1   :  { %2112 = vrot.lane.b32.xlu0 %v2085_v43, %s14602_s30  ;;  %v2431_v43 = vld [vmem:[%s14567_s16 + $0x8] sm:$0xff]  ;;  %s14660_s30 = smov 72  }
0x14f7   :  { %v10681_v35 = vpop.f32.mrb[26].mxu1 }
0x14f8   :  { %v2211_v44 = vpop.f32.mrb[27].mxu1  ;;  %v2217_v47 = vadd.f32 %v10681_v35, %v9771_v45  ;;  %v11429_v35 = vpack.c.bf16 %v2431_v43, %v2430_v42 }
0x14f9   :  { %v2212_v11 = vadd.f32 %v9771_v45, %v2211_v44  ;;  %v2432_v44 = vld [vmem:[%s14567_s16 + $0x10] sm:$0xff] }
0x14fa   :  { %v13118_v49 = vadd.f32 %v2217_v47, %v12797_v59  ;;  %v2119_v59 = vsel %vm465_vm2, %v13013_v34, %v2099_v53  ;;  %11430 = vmatprep.subr.bf16.mxu1 %v11429_v35  ;;  %v2434_v47 = vld [vmem:[%s14567_s16 + $0x20] sm:$0xff]  ;;  %v2436_v53 = vld [vmem:[%s14567_s16 + $0x30] sm:$0xff] }
0x14fb   :  { %v13115_v14 = vadd.f32 %v2212_v11, %v12785_v54  ;;  %v2121_v2 = vsel %vm551_vm4, %v2119_v59, %v2107_v60  ;;  %11432 = vmatpush3.bf16.msra.mxu1 %v11429_v35  ;;  %v11441_v60 = vpack.c.bf16 %v2437_v58, %v2436_v53 }
0x14fc   :  { %v2239_v52 = vsel %vm206_vm1, %v13118_v49, 0.0 }
0x14fd   :  { %v2236_v50 = vsel %vm206_vm1, %v13115_v14, 0.0 }
0x1510   :  { %2237 = vadd.xlane.f32.xlu0 %v2236_v50  ;;  %v2435_v50 = vld [vmem:[%s14567_s16 + $0x28] sm:$0xff] }
0x1514   :  { %2240 = vadd.xlane.f32.xlu1 %v2239_v52  ;;  %v11437_v52 = vpack.c.bf16 %v2435_v50, %v2434_v47 }
0x1562   :  { %v2115_v54 = vpop.permute.xlu1 %2114 }
0x1563   :  { %v2113_v1 = vpop.permute.xlu0 %2112  ;;  %v2123_v4 = vsel %vm1289_vm5, %v2121_v2, %v2115_v54 }
0x1564   :  { %v2122_v39 = vsel %vm1289_vm5, %v2120_v0, %v2113_v1 }
0x1565   :  { %10682 = vmatprep.mubr.msk.f32.mxu1 %vm206_vm1, %v2122_v39 }
0x1566   :  { %10683 = vmatmul.mubr.msk.f32.gmra.mrb[28].mxu1 %vm206_vm1, %v2123_v4 }
0x159d   :  { %v2238_v5 = vpop.xlane.xlu0 %2237 }
0x159e   :  { %v2248_v55 = vmul.f32 0.03125, %v2238_v5 }
0x15a0   :  { %v2252_v36 = vsub.f32 %v13115_v14, %v2248_v55  ;;  %v9778_v55 = vld [vmem:[%s14568_s15] ss:$0 sm:$0xff] }
0x15a1   :  { %v2241_v6 = vpop.xlane.xlu1 %2240 }
0x15a2   :  { %v2249_v51 = vmul.f32 0.03125, %v2241_v6  ;;  %v2256_v34 = vmul.f32 %v2252_v36, %v2252_v36 }
0x15a4   :  { %v2253_v33 = vsub.f32 %v13118_v49, %v2249_v51  ;;  %v2260_v8 = vsel %vm206_vm1, %v2256_v34, 0.0 }
0x15a5   :  { %2261 = vadd.xlane.f32.xlu0 %v2260_v8 }
0x15a6   :  { %v2257_v46 = vmul.f32 %v2253_v33, %v2253_v33 }
0x15a8   :  { %v2263_v32 = vsel %vm206_vm1, %v2257_v46, 0.0 }
0x15a9   :  { %2264 = vadd.xlane.f32.xlu0 %v2263_v32 }
0x1632   :  { %v2262_v17 = vpop.xlane.xlu0 %2261 }
0x1633   :  { %v2272_v7 = vmul.f32 0.03125, %v2262_v17 }
0x1635   :  { %v2276_v57 = vadd.f32 1e-05, %v2272_v7 }
0x1636   :  { %v2265_v18 = vpop.xlane.xlu0 %2264 }
0x1637   :  { %12259 = vrsqrt.f32 %v2276_v57  ;;  %v2273_v19 = vmul.f32 0.03125, %v2265_v18 }
0x1639   :  { %v2277_v20 = vadd.f32 1e-05, %v2273_v19  ;;  %v10684_v21 = vpop.f32.mrb[28].mxu1 }
0x163a   :  { %v2227_v22 = vadd.f32 %v10684_v21, %v9771_v45  ;;  %v2221_v41 = vpop.f32.mrb[29].mxu1 }
0x163b   :  { %12261 = vrsqrt.f32 %v2277_v20  ;;  %v2222_v23 = vadd.f32 %v9771_v45, %v2221_v41  ;;  %v2433_v45 = vld [vmem:[%s14567_s16 + $0x18] sm:$0xff] }
0x163c   :  { %v13151_v16 = vadd.f32 %v2227_v22, %v12849_v3  ;;  %v11433_v11 = vpack.c.bf16 %v2433_v45, %v2432_v44 }
0x163d   :  { %v13154_v25 = vadd.f32 %v2222_v23, %v12842_v63  ;;  %v13168_v63 = vld [vmem:[%s14566_s13] ss:$0 sm:$0xff] }
0x163e   :  { %v2245_v26 = vsel %vm206_vm1, %v13151_v16, 0.0  ;;  %11434 = vmatprep.subr.bf16.mxu1 %v11433_v11 }
0x163f   :  { %2246 = vadd.xlane.f32.xlu1 %v2245_v26  ;;  %v2242_v27 = vsel %vm206_vm1, %v13154_v25, 0.0  ;;  %11436 = vmatpush3.bf16.msra.mxu1 %v11433_v11 }
0x1640   :  { %2243 = vadd.xlane.f32.xlu0 %v2242_v27  ;;  %11438 = vmatprep.subr.bf16.mxu1 %v11437_v52 }
0x1641   :  { %v12260_v28 = vpop.eup %12259 }
0x1642   :  { %v2284_v30 = vmul.f32 %v12260_v28, %v2252_v36 }
0x1643   :  { %11440 = vmatpush3.bf16.msra.mxu1 %v11437_v52 }
0x1644   :  { %v2292_v3 = vmul.f32 %v13163_v29, %v2284_v30  ;;  %11442 = vmatprep.subr.bf16.mxu1 %v11441_v60 }
0x1645   :  { %v12262_v37 = vpop.eup %12261 }
0x1646   :  { %v2285_v15 = vmul.f32 %v12262_v37, %v2253_v33  ;;  %v2300_v48 = vadd.f32 %v13168_v63, %v2292_v3  ;;  %v13218_v37 = vld [vmem:[%s14569_s17] ss:$0 sm:$0xff] }
0x1647   :  { %11444 = vmatpush3.bf16.msra.mxu1 %v11441_v60 }
0x1648   :  { %10693 = vmatprep.mubr.msk.f32.mxu0 %vm206_vm1, %v2300_v48  ;;  %v2293_v40 = vmul.f32 %v13163_v29, %v2285_v15 }
0x164a   :  { %v2301_v31 = vadd.f32 %v13168_v63, %v2293_v40 }
0x164c   :  { %10694 = vmatmul.mubr.msk.f32.vlgmr.msra.gmra.mrb[14].mxu0 %vm206_vm1, %v2301_v31 }
0x16cc   :  { %v2247_v61 = vpop.xlane.xlu1 %2246 }
0x16cd   :  { %v2251_v62 = vmul.f32 0.03125, %v2247_v61  ;;  %v2244_v54 = vpop.xlane.xlu0 %2243 }
0x16ce   :  { %v2250_v59 = vmul.f32 0.03125, %v2244_v54 }
0x16cf   :  { %v2255_v0 = vsub.f32 %v13151_v16, %v2251_v62 }
0x16d0   :  { %v2254_v1 = vsub.f32 %v13154_v25, %v2250_v59 }
0x16d1   :  { %v2259_v2 = vmul.f32 %v2255_v0, %v2255_v0 }
0x16d2   :  { %v2258_v39 = vmul.f32 %v2254_v1, %v2254_v1 }
0x16d3   :  { %v2269_v4 = vsel %vm206_vm1, %v2259_v2, 0.0 }
0x16d4   :  { %2270 = vadd.xlane.f32.xlu1 %v2269_v4  ;;  %v2266_v5 = vsel %vm206_vm1, %v2258_v39, 0.0 }
0x16d5   :  { %2267 = vadd.xlane.f32.xlu0 %v2266_v5 }
0x171f   :  { %v10695_v36 = vpop.f32.mrb[14].mxu0 }
0x1720   :  { %v2397_v6 = vadd.f32 %v10695_v36, %v9778_v55  ;;  %v2391_v51 = vpop.f32.mrb[15].mxu0  ;;  %v9790_v36 = vld [vmem:[%s14648_s1 + $0x20] sm:$0xff] }
0x1721   :  { %v2392_v34 = vadd.f32 %v9778_v55, %v2391_v51 }
0x1722   :  { %v2415_v33 = vmul.f32 0.70710677, %v2397_v6  ;;  %v2411_v56 = vmul.f32 0.5, %v2397_v6  ;;  %v9791_v6 = vld [vmem:[%s14648_s1 + $0x28] sm:$0xff] }
0x1723   :  { %v2414_v8 = vmul.f32 0.70710677, %v2392_v34  ;;  %v2410_v9 = vmul.f32 0.5, %v2392_v34  ;;  %v11445_v51 = vpack.c.bf16 %v9791_v6, %v9790_v36  ;;  %v9792_v34 = vld [vmem:[%s14648_s1 + $0x30] sm:$0xff] }
0x1724   :  { %12263 = verf.f32 %v2415_v33  ;;  %v9793_v33 = vld [vmem:[%s14648_s1 + $0x38] sm:$0xff] }
0x1725   :  { %12265 = verf.f32 %v2414_v8  ;;  %11446 = vmatprep.subr.bf16.mxu0 %v11445_v51  ;;  %v11449_v8 = vpack.c.bf16 %v9793_v33, %v9792_v34 }
0x1726   :  { %11448 = vmatpush3.bf16.msra.mxu0 %v11445_v51 }
0x1727   :  { %11450 = vmatprep.subr.bf16.mxu0 %v11449_v8 }
0x172a   :  { %11452 = vmatpush3.bf16.msra.mxu0 %v11449_v8 }
0x172e   :  { %v12264_v46 = vpop.eup %12263 }
0x172f   :  { %v12266_v32 = vpop.eup %12265  ;;  %v2423_v38 = vadd.f32 1.0, %v12264_v46 }
0x1730   :  { %v2422_v10 = vadd.f32 1.0, %v12266_v32 }
0x1731   :  { %v2427_v13 = vmul.f32 %v2423_v38, %v2411_v56 }
0x1732   :  { %v2426_v12 = vmul.f32 %v2422_v10, %v2410_v9 }
0x1734   :  { %10715 = vmatprep.mubr.msk.f32.mxu1 %vm2438_vm6, %v2426_v12 }
0x1735   :  { %10716 = vmatmul.mubr.msk.f32.vlgmr.msra.gmra.mrb[30].mxu1 %vm2438_vm6, %v2427_v13 }
0x1761   :  { %v2271_v17 = vpop.xlane.xlu1 %2270 }
0x1762   :  { %v2275_v7 = vmul.f32 0.03125, %v2271_v17  ;;  %v2268_v57 = vpop.xlane.xlu0 %2267 }
0x1763   :  { %v2274_v18 = vmul.f32 0.03125, %v2268_v57 }
0x1764   :  { %v2279_v19 = vadd.f32 1e-05, %v2275_v7 }
0x1765   :  { %v2278_v20 = vadd.f32 1e-05, %v2274_v18 }
0x1766   :  { %12267 = vrsqrt.f32 %v2279_v19 }
0x1767   :  { %12269 = vrsqrt.f32 %v2278_v20 }
0x1770   :  { %v12268_v21 = vpop.eup %12267 }
0x1771   :  { %v12270_v22 = vpop.eup %12269  ;;  %v2287_v41 = vmul.f32 %v12268_v21, %v2255_v0 }
0x1772   :  { %v2286_v23 = vmul.f32 %v12270_v22, %v2254_v1 }
0x1773   :  { %v2295_v26 = vmul.f32 %v13163_v29, %v2287_v41 }
0x1774   :  { %v2294_v27 = vmul.f32 %v13163_v29, %v2286_v23  ;;  %v9789_v23 = vld [vmem:[%s14650_s6 + $0x1] ss:$0 sm:$0xff] }
0x1775   :  { %v2303_v30 = vadd.f32 %v13168_v63, %v2295_v26 }
0x1776   :  { %v2302_v28 = vadd.f32 %v13168_v63, %v2294_v27 }
0x1778   :  { %10696 = vmatprep.mubr.msk.f32.mxu0 %vm206_vm1, %v2302_v28 }
0x1779   :  { %10697 = vmatmul.mubr.msk.f32.gmra.mrb[16].mxu0 %vm206_vm1, %v2303_v30 }
0x1808   :  { %v10717_v3 = vpop.f32.mrb[30].mxu1 }
0x1809   :  { %v2537_v15 = vadd.f32 %v10717_v3, %v13118_v49  ;;  %v2517_v48 = vpop.f32.mrb[31].mxu1 }
0x180a   :  { %v2536_v40 = vadd.f32 %v2517_v48, %v13115_v14 }
0x180b   :  { %v13223_v29 = vadd.f32 %v13218_v37, %v2537_v15 }
0x180c   :  { %v13226_v63 = vadd.f32 %v13218_v37, %v2536_v40 }
0x180d   :  { %v2554_v31 = vsel %vm206_vm1, %v13223_v29, 0.0 }
0x180e   :  { %2555 = vadd.xlane.f32.xlu1 %v2554_v31  ;;  %v2551_v42 = vsel %vm206_vm1, %v13226_v63, 0.0 }
0x180f   :  { %2552 = vadd.xlane.f32.xlu0 %v2551_v42 }
0x184c   :  { %v10698_v43 = vpop.f32.mrb[16].mxu0 }
0x184d   :  { %v2407_v35 = vadd.f32 %v10698_v43, %v9778_v55  ;;  %v2401_v49 = vpop.f32.mrb[17].mxu0 }
0x184e   :  { %v2402_v44 = vadd.f32 %v9778_v55, %v2401_v49 }
0x184f   :  { %v2417_v45 = vmul.f32 0.70710677, %v2407_v35  ;;  %v2413_v58 = vmul.f32 0.5, %v2407_v35 }
0x1850   :  { %v2416_v14 = vmul.f32 0.70710677, %v2402_v44  ;;  %v2412_v52 = vmul.f32 0.5, %v2402_v44 }
0x1851   :  { %12271 = verf.f32 %v2417_v45 }
0x1852   :  { %12273 = verf.f32 %v2416_v14 }
0x185b   :  { %v12272_v11 = vpop.eup %12271 }
0x185c   :  { %v12274_v47 = vpop.eup %12273  ;;  %v2425_v50 = vadd.f32 1.0, %v12272_v11 }
0x185d   :  { %v2424_v53 = vadd.f32 1.0, %v12274_v47 }
0x185e   :  { %v2429_v61 = vmul.f32 %v2425_v50, %v2413_v58 }
0x185f   :  { %v2428_v60 = vmul.f32 %v2424_v53, %v2412_v52 }
0x1861   :  { %10718 = vmatprep.mubr.msk.f32.mxu1 %vm2438_vm6, %v2428_v60 }
0x1862   :  { %10719 = vmatmul.mubr.msk.f32.gmra.mrb[32].mxu1 %vm2438_vm6, %v2429_v61 }
0x189b   :  { %v2556_v62 = vpop.xlane.xlu1 %2555 }
0x189c   :  { %v2564_v54 = vmul.f32 0.03125, %v2556_v62  ;;  %v2553_v59 = vpop.xlane.xlu0 %2552 }
0x189d   :  { %v2563_v0 = vmul.f32 0.03125, %v2553_v59 }
0x189e   :  { %v2568_v1 = vsub.f32 %v13223_v29, %v2564_v54 }
0x189f   :  { %v2567_v2 = vsub.f32 %v13226_v63, %v2563_v0 }
0x18a0   :  { %v2572_v39 = vmul.f32 %v2568_v1, %v2568_v1 }
0x18a1   :  { %v2571_v4 = vmul.f32 %v2567_v2, %v2567_v2 }
0x18a2   :  { %v2578_v5 = vsel %vm206_vm1, %v2572_v39, 0.0 }
0x18a3   :  { %2579 = vadd.xlane.f32.xlu1 %v2578_v5  ;;  %v2575_v55 = vsel %vm206_vm1, %v2571_v4, 0.0 }
0x18a4   :  { %2576 = vadd.xlane.f32.xlu0 %v2575_v55 }
0x1930   :  { %v2580_v46 = vpop.xlane.xlu1 %2579 }
0x1931   :  { %v2588_v32 = vmul.f32 0.03125, %v2580_v46  ;;  %v2577_v38 = vpop.xlane.xlu0 %2576 }
0x1932   :  { %v2587_v9 = vmul.f32 0.03125, %v2577_v38 }
0x1933   :  { %v2592_v10 = vadd.f32 1e-05, %v2588_v32 }
0x1934   :  { %v2591_v56 = vadd.f32 1e-05, %v2587_v9 }
0x1935   :  { %12275 = vrsqrt.f32 %v2592_v10  ;;  %v10720_v12 = vpop.f32.mrb[32].mxu1 }
0x1936   :  { %12277 = vrsqrt.f32 %v2591_v56  ;;  %v2539_v13 = vadd.f32 %v10720_v12, %v13151_v16  ;;  %v2527_v17 = vpop.f32.mrb[33].mxu1  ;;  %v9788_v16 = vld [vmem:[%s14649_s5 + $0x1] ss:$0 sm:$0xff] }
0x1937   :  { %v2538_v7 = vadd.f32 %v2527_v17, %v13154_v25 }
0x1938   :  { %v13253_v57 = vadd.f32 %v13218_v37, %v2539_v13 }
0x1939   :  { %v13256_v18 = vadd.f32 %v13218_v37, %v2538_v7 }
0x193a   :  { %v2560_v19 = vsel %vm206_vm1, %v13253_v57, 0.0 }
0x193b   :  { %2561 = vadd.xlane.f32.xlu1 %v2560_v19  ;;  %v2557_v20 = vsel %vm206_vm1, %v13256_v18, 0.0 }
0x193c   :  { %2558 = vadd.xlane.f32.xlu0 %v2557_v20 }
0x193f   :  { %v12276_v21 = vpop.eup %12275 }
0x1940   :  { %v12278_v25 = vpop.eup %12277  ;;  %v2600_v22 = vmul.f32 %v12276_v21, %v2568_v1 }
0x1941   :  { %v2599_v41 = vmul.f32 %v12278_v25, %v2567_v2 }
0x1942   :  { %v2608_v26 = vmul.f32 %v9788_v16, %v2600_v22 }
0x1943   :  { %v2607_v27 = vmul.f32 %v9788_v16, %v2599_v41 }
0x1944   :  { %v2616_v30 = vadd.f32 %v9789_v23, %v2608_v26 }
0x1945   :  { %v2615_v28 = vadd.f32 %v9789_v23, %v2607_v27 }
0x1947   :  { %10729 = vmatprep.mubr.msk.f32.mxu0 %vm206_vm1, %v2615_v28 }
0x1948   :  { %10730 = vmatmul.mubr.msk.f32.vlgmr.msra.gmra.mrb[18].mxu0 %vm206_vm1, %v2616_v30 }
0x19c8   :  { %v2562_v3 = vpop.xlane.xlu1 %2561 }
0x19c9   :  { %v2566_v37 = vmul.f32 0.03125, %v2562_v3  ;;  %v2559_v15 = vpop.xlane.xlu0 %2558 }
0x19ca   :  { %v2565_v48 = vmul.f32 0.03125, %v2559_v15 }
0x19cb   :  { %v2570_v40 = vsub.f32 %v13253_v57, %v2566_v37 }
0x19cc   :  { %v2569_v31 = vsub.f32 %v13256_v18, %v2565_v48 }
0x19cd   :  { %v2574_v42 = vmul.f32 %v2570_v40, %v2570_v40 }
0x19ce   :  { %v2573_v43 = vmul.f32 %v2569_v31, %v2569_v31 }
0x19cf   :  { %v2584_v35 = vsel %vm206_vm1, %v2574_v42, 0.0 }
0x19d0   :  { %2585 = vadd.xlane.f32.xlu1 %v2584_v35  ;;  %v2581_v49 = vsel %vm206_vm1, %v2573_v43, 0.0 }
0x19d1   :  { %2582 = vadd.xlane.f32.xlu0 %v2581_v49 }
0x1a1b   :  { %v10731_v44 = vpop.f32.mrb[18].mxu0 }
0x1a1c   :  { %v2702_v45 = vpop.f32.mrb[19].mxu0  ;;  %v13282_v47 = vmul.f32 0.35355338, %v10731_v44 }
0x1a1d   :  { %v13274_v14 = vpack.i.bf16 %v10731_v44, %v2702_v45  ;;  %v13280_v11 = vmul.f32 0.35355338, %v2702_v45 }
0x1a1f   :  { %11945 = vrot.lane.b32.xlu1 %v13274_v14, %s14612_s29  ;;  %11940 = vrot.lane.b32.xlu0 %v13274_v14, %s14614_s7  ;;  %s14663_s29 = smov 40  }
0x1a23   :  { %2923 = vrot.lane.b32.xlu1 %v13280_v11, %s14655_s8  ;;  %2925 = vrot.lane.b32.xlu0 %v13282_v47, %s14655_s8 }
0x1a27   :  { %11950 = vrot.lane.b32.xlu1 %v13274_v14, %s14656_s0  ;;  %3125 = vrot.lane.b32.xlu0 %v13282_v47, %s14657_s27 }
0x1a2b   :  { %3123 = vrot.lane.b32.xlu1 %v13280_v11, %s14657_s27 }
0x1a5d   :  { %v2586_v50 = vpop.xlane.xlu1 %2585 }
0x1a5e   :  { %v2590_v52 = vmul.f32 0.03125, %v2586_v50  ;;  %v2583_v53 = vpop.xlane.xlu0 %2582 }
0x1a5f   :  { %v2589_v58 = vmul.f32 0.03125, %v2583_v53 }
0x1a60   :  { %v2594_v60 = vadd.f32 1e-05, %v2590_v52 }
0x1a61   :  { %v2593_v61 = vadd.f32 1e-05, %v2589_v58 }
0x1a62   :  { %12279 = vrsqrt.f32 %v2594_v60 }
0x1a63   :  { %12281 = vrsqrt.f32 %v2593_v61 }
0x1a6c   :  { %v12280_v62 = vpop.eup %12279 }
0x1a6d   :  { %v12282_v54 = vpop.eup %12281  ;;  %v2602_v59 = vmul.f32 %v12280_v62, %v2570_v40 }
0x1a6e   :  { %v2601_v0 = vmul.f32 %v12282_v54, %v2569_v31 }
0x1a6f   :  { %v2610_v1 = vmul.f32 %v9788_v16, %v2602_v59 }
0x1a70   :  { %v2609_v2 = vmul.f32 %v9788_v16, %v2601_v0 }
0x1a71   :  { %v2618_v4 = vadd.f32 %v9789_v23, %v2610_v1 }
0x1a72   :  { %v2617_v39 = vadd.f32 %v9789_v23, %v2609_v2 }
0x1a74   :  { %10732 = vmatprep.mubr.msk.f32.mxu0 %vm206_vm1, %v2617_v39 }
0x1a75   :  { %10733 = vmatmul.mubr.msk.f32.gmra.mrb[20].mxu0 %vm206_vm1, %v2618_v4 }
0x1a76   :  { %10739 = vmatprep.mubr.msk.f32.mxu0 %vm465_vm2, %v13280_v11 }
0x1a91   :  { %v11946_v5 = vpop.permute.xlu1 %11945  ;;  %v11941_v55 = vpop.permute.xlu0 %11940 }
0x1a92   :  { %v11948_v36 = vunpack.i.h.bf16 %v11946_v5  ;;  %v11947_v6 = vunpack.i.l.bf16 %v11946_v5  ;;  %v11943_v51 = vunpack.i.h.bf16 %v11941_v55  ;;  %v11942_v34 = vunpack.i.l.bf16 %v11941_v55 }
0x1a94   :  { %v11463_v33 = vpack.c.bf16 %v11948_v36, %v11947_v6  ;;  %v11453_v8 = vpack.c.bf16 %v11943_v51, %v11942_v34 }
0x1a95   :  { %v2924_v46 = vpop.permute.xlu1 %2923  ;;  %v2926_v12 = vpop.permute.xlu0 %2925 }
0x1a96   :  { %11455 = vmatprep.subr.msk.bf16.mxu0 %vm12873_vm3, %v11453_v8  ;;  %11465 = vmatprep.subr.msk.bf16.mxu1 %vm12873_vm3, %v11463_v33 }
0x1a97   :  { %10753 = vmatprep.mubr.msk.f32.mxu1 %vm465_vm2, %v2924_v46  ;;  %11458 = vmatpush3.bf16.xpose.msk.msra.mxu0 %vm12873_vm3, %v11453_v8 }
0x1a98   :  { %11468 = vmatpush3.bf16.xpose.msk.msra.mxu1 %vm12873_vm3, %v11463_v33 }
0x1a99   :  { %v11951_v32 = vpop.permute.xlu1 %11950  ;;  %v3126_v13 = vpop.permute.xlu0 %3125 }
0x1a9a   :  { %v11953_v38 = vunpack.i.h.bf16 %v11951_v32  ;;  %v11952_v9 = vunpack.i.l.bf16 %v11951_v32 }
0x1a9c   :  { %v11473_v10 = vpack.c.bf16 %v11953_v38, %v11952_v9 }
0x1a9d   :  { %v3124_v56 = vpop.permute.xlu1 %3123 }
0x1a9e   :  { %10740 = vmatmul.mubr.msk.f32.vlgmr.msra.gmra.mrb[22].mxu0 %vm465_vm2, %v13282_v47  ;;  %11475 = vmatprep.subr.msk.bf16.mxu1 %vm12873_vm3, %v11473_v10 }
0x1a9f   :  { %10754 = vmatmul.mubr.msk.f32.vlgmr.msra.gmra.mrb[34].mxu1 %vm465_vm2, %v2926_v12 }
0x1aa0   :  { %11478 = vmatpush3.bf16.xpose.msk.msra.mxu1 %vm12873_vm3, %v11473_v10  ;;  %10767 = vmatprep.mubr.msk.f32.mxu1 %vm465_vm2, %v3124_v56 }
0x1aa7   :  { %10768 = vmatmul.mubr.msk.f32.vlgmr.msra.gmra.mrb[36].mxu1 %vm465_vm2, %v3126_v13 }
0x1b48   :  { %v13316_v17 = vpop.f32.mrb[20].mxu0 }
0x1b49   :  { %v13318_v7 = vpop.f32.mrb[21].mxu0 }
0x1b4a   :  { %v13322_v19 = vpack.i.bf16 %v13316_v17, %v13318_v7 }
0x1b71   :  { %v10741_v20 = vpop.f32.mrb[22].mxu0 }
0x1b72   :  { %v10755_v21 = vpop.f32.mrb[34].mxu1  ;;  %v2805_v16 = vpop.f32.mrb[23].mxu0  ;;  %v2817_v25 = vsel %vm551_vm4, %v10741_v20, -inf }
0x1b73   :  { %v3005_v22 = vpop.f32.mrb[35].mxu1  ;;  %2818 = vmax.xlane.f32.xlu0 %v2817_v25  ;;  %v2814_v41 = vsel %vm551_vm4, %v2805_v16, -inf  ;;  %v3017_v27 = vsel %vm551_vm4, %v10755_v21, -inf }
0x1b74   :  { %2815 = vmax.xlane.f32.xlu1 %v2814_v41  ;;  %v3014_v23 = vsel %vm551_vm4, %v3005_v22, -inf }
0x1b77   :  { %3015 = vmax.xlane.f32.xlu0 %v3014_v23 }
0x1b7a   :  { %v10769_v26 = vpop.f32.mrb[36].mxu1 }
0x1b7b   :  { %v3205_v28 = vpop.f32.mrb[37].mxu1  ;;  %3018 = vmax.xlane.f32.xlu0 %v3017_v27  ;;  %v3217_v3 = vsel %vm551_vm4, %v10769_v26, -inf }
0x1b7c   :  { %v3214_v30 = vsel %vm551_vm4, %v3205_v28, -inf }
0x1b7d   :  { %3215 = vmax.xlane.f32.xlu1 %v3214_v30 }
0x1b7f   :  { %3218 = vmax.xlane.f32.xlu0 %v3217_v3 }
0x1b8e   :  { %11955 = vrot.lane.b32.xlu1 %v13274_v14, %s14658_s3 }
0x1c00   :  { %v2819_v37 = vpop.xlane.xlu0 %2818 }
0x1c01   :  { %v2821_v15 = vsub.f32 %v10741_v20, %v2819_v37  ;;  %v2816_v48 = vpop.xlane.xlu1 %2815 }
0x1c02   :  { %v2820_v40 = vsub.f32 %v2805_v16, %v2816_v48 }
0x1c03   :  { %v2824_v31 = vmul.f32 1.442695, %v2821_v15 }
0x1c04   :  { %v2822_v42 = vmul.f32 1.442695, %v2820_v40  ;;  %v3016_v43 = vpop.xlane.xlu0 %3015 }
0x1c05   :  { %12283 = vpow2.f32 %v2824_v31  ;;  %v3020_v35 = vsub.f32 %v3005_v22, %v3016_v43 }
0x1c06   :  { %12285 = vpow2.f32 %v2822_v42 }
0x1c07   :  { %v3022_v49 = vmul.f32 1.442695, %v3020_v35 }
0x1c08   :  { %v3019_v44 = vpop.xlane.xlu0 %3018 }
0x1c09   :  { %12287 = vpow2.f32 %v3022_v49  ;;  %v3021_v45 = vsub.f32 %v10755_v21, %v3019_v44 }
0x1c0a   :  { %v3216_v50 = vpop.xlane.xlu1 %3215 }
0x1c0b   :  { %v3024_v52 = vmul.f32 1.442695, %v3021_v45  ;;  %v3220_v34 = vsub.f32 %v3205_v28, %v3216_v50 }
0x1c0c   :  { %v3219_v53 = vpop.xlane.xlu0 %3218 }
0x1c0d   :  { %12289 = vpow2.f32 %v3024_v52  ;;  %v3221_v58 = vsub.f32 %v10769_v26, %v3219_v53  ;;  %v3222_v33 = vmul.f32 1.442695, %v3220_v34 }
0x1c0e   :  { %v11956_v60 = vpop.permute.xlu1 %11955 }
0x1c0f   :  { %v12284_v61 = vpop.eup %12283  ;;  %v3224_v62 = vmul.f32 1.442695, %v3221_v58  ;;  %v11958_v54 = vunpack.i.h.bf16 %v11956_v60  ;;  %v11957_v59 = vunpack.i.l.bf16 %v11956_v60 }
0x1c10   :  { %v12286_v0 = vpop.eup %12285  ;;  %v2829_v1 = vsel %vm551_vm4, %v12284_v61, 0.0 }
0x1c11   :  { %12291 = vpow2.f32 %v3224_v62  ;;  %2830 = vadd.xlane.f32.xlu0 %v2829_v1  ;;  %v2826_v2 = vsel %vm551_vm4, %v12286_v0, 0.0  ;;  %v11459_v39 = vpack.c.bf16 %v11958_v54, %v11957_v59 }
0x1c12   :  { %2827 = vadd.xlane.f32.xlu1 %v2826_v2  ;;  %12293 = vpow2.f32 %v3222_v33 }
0x1c13   :  { %v12288_v4 = vpop.eup %12287  ;;  %11460 = vmatprep.subr.bf16.mxu0 %v11459_v39 }
0x1c14   :  { %11462 = vmatpush3.bf16.msra.mxu0 %v11459_v39  ;;  %v3026_v5 = vsel %vm551_vm4, %v12288_v4, 0.0 }
0x1c16   :  { %3027 = vadd.xlane.f32.xlu1 %v3026_v5 }
0x1c17   :  { %v12290_v55 = vpop.eup %12289 }
0x1c18   :  { %v3029_v36 = vsel %vm551_vm4, %v12290_v55, 0.0 }
0x1c19   :  { %3030 = vadd.xlane.f32.xlu0 %v3029_v36 }
0x1c1b   :  { %v12292_v6 = vpop.eup %12291 }
0x1c1c   :  { %v3229_v51 = vsel %vm551_vm4, %v12292_v6, 0.0  ;;  %v12294_v8 = vpop.eup %12293 }
0x1c1d   :  { %3230 = vadd.xlane.f32.xlu0 %v3229_v51  ;;  %v3226_v46 = vsel %vm551_vm4, %v12294_v8, 0.0 }
0x1c27   :  { %11965 = vrot.lane.b32.xlu1 %v13274_v14, %s14659_s10 }
0x1c2b   :  { %11970 = vrot.lane.b32.xlu1 %v13274_v14, %s14660_s30 }
0x1c33   :  { %11960 = vrot.lane.b32.xlu0 %v13274_v14, %s14661_s11 }
0x1c37   :  { %3325 = vrot.lane.b32.xlu0 %v13282_v47, %s14662_s9 }
0x1c4f   :  { %3227 = vadd.xlane.f32.xlu1 %v3226_v46 }
0x1c60   :  { %3323 = vrot.lane.b32.xlu1 %v13280_v11, %s14662_s9 }
0x1c9e   :  { %v2831_v32 = vpop.xlane.xlu0 %2830 }
0x1c9f   :  { %12295 = vrcp.f32 %v2831_v32  ;;  %v2828_v38 = vpop.xlane.xlu1 %2827 }
0x1ca0   :  { %12297 = vrcp.f32 %v2828_v38 }
0x1ca3   :  { %v3028_v9 = vpop.xlane.xlu1 %3027 }
0x1ca4   :  { %12299 = vrcp.f32 %v3028_v9 }
0x1ca6   :  { %v3031_v10 = vpop.xlane.xlu0 %3030 }
0x1ca7   :  { %12301 = vrcp.f32 %v3031_v10  ;;  %v11966_v12 = vpop.permute.xlu1 %11965 }
0x1ca8   :  { %v11968_v25 = vunpack.i.h.bf16 %v11966_v12  ;;  %v11967_v11 = vunpack.i.l.bf16 %v11966_v12 }
0x1ca9   :  { %v12296_v56 = vpop.eup %12295 }
0x1caa   :  { %v12298_v47 = vpop.eup %12297  ;;  %v3231_v13 = vpop.xlane.xlu0 %3230  ;;  %v2835_v21 = vmul.f32 %v12296_v56, %v12284_v61  ;;  %v11479_v15 = vpack.c.bf16 %v11968_v25, %v11967_v11  ;;  %v13392_v25 = vmul.f32 0.35355338, %v13316_v17 }
0x1cab   :  { %v2834_v20 = vmul.f32 %v12298_v47, %v12286_v0  ;;  %v11971_v27 = vpop.permute.xlu1 %11970  ;;  %12303 = vrcp.f32 %v3231_v13 }
0x1cac   :  { %v11973_v3 = vunpack.i.h.bf16 %v11971_v27  ;;  %v11972_v37 = vunpack.i.l.bf16 %v11971_v27 }
0x1cad   :  { %10746 = vmatprep.mubr.msk.f32.mxu0 %vm551_vm4, %v2834_v20 }
0x1cae   :  { %v12300_v16 = vpop.eup %12299  ;;  %v11961_v22 = vpop.permute.xlu0 %11960  ;;  %10747 = vmatmul.mubr.msk.f32.vlgmr.msra.gmra.mrb[24].mxu0 %vm551_vm4, %v2835_v21  ;;  %v11483_v40 = vpack.c.bf16 %v11973_v3, %v11972_v37 }
0x1caf   :  { %v11963_v41 = vunpack.i.h.bf16 %v11961_v22  ;;  %v11962_v23 = vunpack.i.l.bf16 %v11961_v22  ;;  %v3034_v26 = vmul.f32 %v12300_v16, %v12288_v4  ;;  %v13384_v16 = vmul.f32 0.35355338, %v13318_v7 }
0x1cb1   :  { %10760 = vmatprep.mubr.msk.f32.mxu0 %vm551_vm4, %v3034_v26  ;;  %v11469_v28 = vpack.c.bf16 %v11963_v41, %v11962_v23  ;;  %v12302_v30 = vpop.eup %12301 }
0x1cb2   :  { %v3035_v48 = vmul.f32 %v12302_v30, %v12290_v55  ;;  %v3326_v45 = vpop.permute.xlu0 %3325 }
0x1cb3   :  { %11470 = vmatprep.subr.bf16.mxu0 %v11469_v28 }
0x1cb4   :  { %11472 = vmatpush3.bf16.msra.mxu0 %v11469_v28 }
0x1cb5   :  { %11480 = vmatprep.subr.bf16.mxu0 %v11479_v15  ;;  %v12304_v42 = vpop.eup %12303 }
0x1cb6   :  { %v3235_v49 = vmul.f32 %v12304_v42, %v12292_v6 }
0x1cb7   :  { %10761 = vmatmul.mubr.msk.f32.vlgmr.msra.gmra.mrb[26].mxu0 %vm551_vm4, %v3035_v48 }
0x1cb8   :  { %11482 = vmatpush3.bf16.msra.mxu0 %v11479_v15 }
0x1cb9   :  { %11485 = vmatprep.subr.msk.bf16.mxu0 %vm12873_vm3, %v11483_v40 }
0x1cdc   :  { %v3228_v31 = vpop.xlane.xlu1 %3227 }
0x1cdd   :  { %12305 = vrcp.f32 %v3228_v31 }
0x1ce0   :  { %v3324_v44 = vpop.permute.xlu1 %3323 }
0x1ce7   :  { %v12306_v43 = vpop.eup %12305 }
0x1ce8   :  { %v3234_v35 = vmul.f32 %v12306_v43, %v12294_v8 }
0x1cea   :  { %10774 = vmatprep.mubr.msk.f32.mxu0 %vm551_vm4, %v3234_v35 }
0x1ceb   :  { %10775 = vmatmul.mubr.msk.f32.vlgmr.msra.gmra.mrb[28].mxu0 %vm551_vm4, %v3235_v49 }
0x1cec   :  { %11488 = vmatpush3.bf16.xpose.msk.msra.mxu0 %vm12873_vm3, %v11483_v40  ;;  %10781 = vmatprep.mubr.msk.f32.mxu0 %vm465_vm2, %v3324_v44 }
0x1cf3   :  { %10782 = vmatmul.mubr.msk.f32.vlgmr.msra.gmra.mrb[30].mxu0 %vm465_vm2, %v3326_v45 }
0x1d81   :  { %v13360_v50 = vpop.f32.mrb[24].mxu0 }
0x1d82   :  { %v13362_v52 = vpop.f32.mrb[25].mxu0 }
0x1d8a   :  { %v13364_v53 = vpop.f32.mrb[26].mxu0 }
0x1d8b   :  { %v13366_v58 = vpop.f32.mrb[27].mxu0 }
0x1dbe   :  { %v13368_v60 = vpop.f32.mrb[28].mxu0 }
0x1dbf   :  { %v13370_v61 = vpop.f32.mrb[29].mxu0 }
0x1dc6   :  { %v10783_v62 = vpop.f32.mrb[30].mxu0 }
0x1dc7   :  { %v3405_v54 = vpop.f32.mrb[31].mxu0  ;;  %v3417_v59 = vsel %vm551_vm4, %v10783_v62, -inf }
0x1dc8   :  { %3418 = vmax.xlane.f32.xlu0 %v3417_v59  ;;  %v3414_v0 = vsel %vm551_vm4, %v3405_v54, -inf }
0x1dc9   :  { %3415 = vmax.xlane.f32.xlu1 %v3414_v0 }
0x1dda   :  { %11975 = vrot.lane.b32.xlu1 %v13274_v14, %s14663_s29 }
0x1e55   :  { %v3419_v1 = vpop.xlane.xlu0 %3418 }
0x1e56   :  { %v3421_v2 = vsub.f32 %v10783_v62, %v3419_v1  ;;  %v3416_v39 = vpop.xlane.xlu1 %3415 }
0x1e57   :  { %v3420_v4 = vsub.f32 %v3405_v54, %v3416_v39 }
0x1e58   :  { %v3424_v5 = vmul.f32 1.442695, %v3421_v2 }
0x1e59   :  { %v3422_v55 = vmul.f32 1.442695, %v3420_v4 }
0x1e5a   :  { %12307 = vpow2.f32 %v3424_v5  ;;  %v11976_v36 = vpop.permute.xlu1 %11975 }
0x1e5b   :  { %v11978_v6 = vunpack.i.h.bf16 %v11976_v36  ;;  %v11977_v51 = vunpack.i.l.bf16 %v11976_v36  ;;  %12309 = vpow2.f32 %v3422_v55 }
0x1e5d   :  { %v11489_v34 = vpack.c.bf16 %v11978_v6, %v11977_v51 }
0x1e5f   :  { %11490 = vmatprep.subr.bf16.mxu1 %v11489_v34 }
0x1e60   :  { %11492 = vmatpush3.bf16.msra.mxu1 %v11489_v34 }
0x1e64   :  { %v12308_v33 = vpop.eup %12307 }
0x1e65   :  { %v3429_v8 = vsel %vm551_vm4, %v12308_v33, 0.0  ;;  %v12310_v46 = vpop.eup %12309 }
0x1e66   :  { %3430 = vadd.xlane.f32.xlu0 %v3429_v8  ;;  %v3426_v14 = vsel %vm551_vm4, %v12310_v46, 0.0 }
0x1e6a   :  { %3427 = vadd.xlane.f32.xlu0 %v3426_v14 }
0x1e80   :  { %11980 = vrot.lane.b32.xlu0 %v13322_v19, %s14614_s7  ;;  %s14664_s7 = smov 88  }
0x1ef3   :  { %v3431_v32 = vpop.xlane.xlu0 %3430 }
0x1ef4   :  { %12311 = vrcp.f32 %v3431_v32 }
0x1ef7   :  { %v3428_v38 = vpop.xlane.xlu0 %3427 }
0x1ef8   :  { %12313 = vrcp.f32 %v3428_v38 }
0x1efb   :  { %v11981_v9 = vpop.permute.xlu0 %11980 }
0x1efc   :  { %v11983_v10 = vunpack.i.h.bf16 %v11981_v9  ;;  %v11982_v56 = vunpack.i.l.bf16 %v11981_v9 }
0x1efe   :  { %v11493_v47 = vpack.c.bf16 %v11983_v10, %v11982_v56  ;;  %v12312_v12 = vpop.eup %12311 }
0x1eff   :  { %v3435_v21 = vmul.f32 %v12312_v12, %v12308_v33 }
0x1f00   :  { %11495 = vmatprep.subr.msk.bf16.mxu1 %vm12873_vm3, %v11493_v47 }
0x1f02   :  { %v12314_v13 = vpop.eup %12313 }
0x1f03   :  { %v3434_v20 = vmul.f32 %v12314_v13, %v12310_v46 }
0x1f05   :  { %10788 = vmatprep.mubr.msk.f32.mxu1 %vm551_vm4, %v3434_v20 }
0x1f06   :  { %10789 = vmatmul.mubr.msk.f32.vlgmr.msra.gmra.mrb[38].mxu1 %vm551_vm4, %v3435_v21 }
0x1f07   :  { %11498 = vmatpush3.bf16.xpose.msk.msra.mxu1 %vm12873_vm3, %v11493_v47  ;;  %10795 = vmatprep.mubr.msk.f32.mxu1 %vm465_vm2, %v13384_v16 }
0x1f0e   :  { %10796 = vmatmul.mubr.msk.f32.vlgmr.msra.gmra.mrb[40].mxu1 %vm465_vm2, %v13392_v25 }
0x1fd9   :  { %v13396_v22 = vpop.f32.mrb[38].mxu1 }
0x1fda   :  { %v13398_v11 = vpop.f32.mrb[39].mxu1 }
0x1fe1   :  { %v10797_v7 = vpop.f32.mrb[40].mxu1 }
0x1fe2   :  { %v3637_v41 = vpop.f32.mrb[41].mxu1  ;;  %v3649_v23 = vsel %vm551_vm4, %v10797_v7, -inf }
0x1fe3   :  { %3650 = vmax.xlane.f32.xlu0 %v3649_v23  ;;  %v3646_v26 = vsel %vm551_vm4, %v3637_v41, -inf }
0x1fe4   :  { %3647 = vmax.xlane.f32.xlu1 %v3646_v26 }
0x1ff5   :  { %11985 = vrot.lane.b32.xlu1 %v13322_v19, %s14658_s3 }
0x1ff9   :  { %3755 = vrot.lane.b32.xlu1 %v13384_v16, %s14655_s8 }
0x2070   :  { %v3651_v17 = vpop.xlane.xlu0 %3650 }
0x2071   :  { %v3653_v27 = vsub.f32 %v10797_v7, %v3651_v17  ;;  %v3648_v28 = vpop.xlane.xlu1 %3647 }
0x2072   :  { %v3652_v30 = vsub.f32 %v3637_v41, %v3648_v28 }
0x2073   :  { %v3656_v3 = vmul.f32 1.442695, %v3653_v27 }
0x2074   :  { %v3654_v37 = vmul.f32 1.442695, %v3652_v30 }
0x2075   :  { %12315 = vpow2.f32 %v3656_v3  ;;  %v11986_v15 = vpop.permute.xlu1 %11985 }
0x2076   :  { %12317 = vpow2.f32 %v3654_v37  ;;  %v11988_v48 = vunpack.i.h.bf16 %v11986_v15  ;;  %v11987_v40 = vunpack.i.l.bf16 %v11986_v15 }
0x2078   :  { %v11499_v31 = vpack.c.bf16 %v11988_v48, %v11987_v40 }
0x2079   :  { %v3756_v44 = vpop.permute.xlu1 %3755 }
0x207a   :  { %11500 = vmatprep.subr.bf16.mxu0 %v11499_v31 }
0x207b   :  { %11502 = vmatpush3.bf16.msra.mxu0 %v11499_v31 }
0x207f   :  { %v12316_v42 = vpop.eup %12315 }
0x2080   :  { %v12318_v43 = vpop.eup %12317  ;;  %v3661_v35 = vsel %vm551_vm4, %v12316_v42, 0.0 }
0x2081   :  { %3662 = vadd.xlane.f32.xlu0 %v3661_v35  ;;  %v3658_v49 = vsel %vm551_vm4, %v12318_v43, 0.0 }
0x2082   :  { %3659 = vadd.xlane.f32.xlu1 %v3658_v49 }
0x2093   :  { %3757 = vrot.lane.b32.xlu1 %v13392_v25, %s14655_s8 }
0x2097   :  { %11990 = vrot.lane.b32.xlu0 %v13322_v19, %s14664_s7 }
0x210e   :  { %v3663_v45 = vpop.xlane.xlu0 %3662 }
0x210f   :  { %12319 = vrcp.f32 %v3663_v45  ;;  %v3660_v62 = vpop.xlane.xlu1 %3659 }
0x2110   :  { %12321 = vrcp.f32 %v3660_v62 }
0x2112   :  { %v11991_v54 = vpop.permute.xlu0 %11990 }
0x2113   :  { %v11993_v59 = vunpack.i.h.bf16 %v11991_v54  ;;  %v11992_v0 = vunpack.i.l.bf16 %v11991_v54  ;;  %v3758_v55 = vpop.permute.xlu1 %3757 }
0x2115   :  { %v11503_v1 = vpack.c.bf16 %v11993_v59, %v11992_v0 }
0x2117   :  { %11505 = vmatprep.subr.msk.bf16.mxu0 %vm12873_vm3, %v11503_v1 }
0x2119   :  { %v12320_v2 = vpop.eup %12319 }
0x211a   :  { %v12322_v39 = vpop.eup %12321  ;;  %v3667_v5 = vmul.f32 %v12320_v2, %v12316_v42 }
0x211b   :  { %v3666_v4 = vmul.f32 %v12322_v39, %v12318_v43 }
0x211d   :  { %10802 = vmatprep.mubr.msk.f32.mxu0 %vm551_vm4, %v3666_v4 }
0x211e   :  { %10803 = vmatmul.mubr.msk.f32.vlgmr.msra.gmra.mrb[32].mxu0 %vm551_vm4, %v3667_v5 }
0x211f   :  { %11508 = vmatpush3.bf16.xpose.msk.msra.mxu0 %vm12873_vm3, %v11503_v1  ;;  %10809 = vmatprep.mubr.msk.f32.mxu0 %vm465_vm2, %v3756_v44 }
0x2126   :  { %10810 = vmatmul.mubr.msk.f32.vlgmr.msra.gmra.mrb[34].mxu0 %vm465_vm2, %v3758_v55 }
0x21f1   :  { %v13420_v36 = vpop.f32.mrb[32].mxu0 }
0x21f2   :  { %v13422_v6 = vpop.f32.mrb[33].mxu0 }
0x21f9   :  { %v10811_v51 = vpop.f32.mrb[34].mxu0 }
0x21fa   :  { %v3837_v34 = vpop.f32.mrb[35].mxu0  ;;  %v3849_v33 = vsel %vm551_vm4, %v10811_v51, -inf }
0x21fb   :  { %3850 = vmax.xlane.f32.xlu0 %v3849_v33  ;;  %v3846_v8 = vsel %vm551_vm4, %v3837_v34, -inf }
0x21fc   :  { %3847 = vmax.xlane.f32.xlu1 %v3846_v8 }
0x220d   :  { %11995 = vrot.lane.b32.xlu1 %v13322_v19, %s14661_s11 }
0x2211   :  { %3955 = vrot.lane.b32.xlu1 %v13384_v16, %s14657_s27 }
0x2215   :  { %3957 = vrot.lane.b32.xlu1 %v13392_v25, %s14657_s27 }
0x2288   :  { %v3851_v46 = vpop.xlane.xlu0 %3850 }
0x2289   :  { %v3853_v14 = vsub.f32 %v10811_v51, %v3851_v46  ;;  %v3848_v32 = vpop.xlane.xlu1 %3847 }
0x228a   :  { %v3852_v38 = vsub.f32 %v3837_v34, %v3848_v32 }
0x228b   :  { %v3856_v9 = vmul.f32 1.442695, %v3853_v14 }
0x228c   :  { %v3854_v10 = vmul.f32 1.442695, %v3852_v38 }
0x228d   :  { %12323 = vpow2.f32 %v3856_v9  ;;  %v11996_v56 = vpop.permute.xlu1 %11995 }
0x228e   :  { %v11998_v47 = vunpack.i.h.bf16 %v11996_v56  ;;  %v11997_v12 = vunpack.i.l.bf16 %v11996_v56  ;;  %12325 = vpow2.f32 %v3854_v10 }
0x2290   :  { %v11509_v13 = vpack.c.bf16 %v11998_v47, %v11997_v12 }
0x2291   :  { %v3956_v40 = vpop.permute.xlu1 %3955 }
0x2292   :  { %11510 = vmatprep.subr.bf16.mxu1 %v11509_v13 }
0x2293   :  { %11512 = vmatpush3.bf16.msra.mxu1 %v11509_v13 }
0x2295   :  { %v3958_v31 = vpop.permute.xlu1 %3957 }
0x2297   :  { %v12324_v20 = vpop.eup %12323 }
0x2298   :  { %v3861_v21 = vsel %vm551_vm4, %v12324_v20, 0.0  ;;  %v12326_v7 = vpop.eup %12325 }
0x2299   :  { %3862 = vadd.xlane.f32.xlu0 %v3861_v21  ;;  %v3858_v41 = vsel %vm551_vm4, %v12326_v7, 0.0 }
0x229d   :  { %3859 = vadd.xlane.f32.xlu0 %v3858_v41 }
0x22b3   :  { %12000 = vrot.lane.b32.xlu0 %v13322_v19, %s14656_s0 }
0x2326   :  { %v3863_v23 = vpop.xlane.xlu0 %3862 }
0x2327   :  { %12327 = vrcp.f32 %v3863_v23 }
0x232a   :  { %v3860_v26 = vpop.xlane.xlu0 %3859 }
0x232b   :  { %12329 = vrcp.f32 %v3860_v26 }
0x232e   :  { %v12001_v17 = vpop.permute.xlu0 %12000 }
0x232f   :  { %v12003_v27 = vunpack.i.h.bf16 %v12001_v17  ;;  %v12002_v28 = vunpack.i.l.bf16 %v12001_v17 }
0x2331   :  { %v11513_v30 = vpack.c.bf16 %v12003_v27, %v12002_v28  ;;  %v12328_v3 = vpop.eup %12327 }
0x2332   :  { %v3867_v48 = vmul.f32 %v12328_v3, %v12324_v20 }
0x2333   :  { %11515 = vmatprep.subr.msk.bf16.mxu1 %vm12873_vm3, %v11513_v30 }
0x2335   :  { %v12330_v37 = vpop.eup %12329 }
0x2336   :  { %v3866_v15 = vmul.f32 %v12330_v37, %v12326_v7 }
0x2338   :  { %10816 = vmatprep.mubr.msk.f32.mxu1 %vm551_vm4, %v3866_v15 }
0x2339   :  { %10817 = vmatmul.mubr.msk.f32.vlgmr.msra.gmra.mrb[42].mxu1 %vm551_vm4, %v3867_v48 }
0x233a   :  { %11518 = vmatpush3.bf16.xpose.msk.msra.mxu1 %vm12873_vm3, %v11513_v30  ;;  %10823 = vmatprep.mubr.msk.f32.mxu1 %vm465_vm2, %v3956_v40 }
0x2341   :  { %10824 = vmatmul.mubr.msk.f32.vlgmr.msra.gmra.mrb[44].mxu1 %vm465_vm2, %v3958_v31  ;;  %v9846_v31 = vld [vmem:[%s14653_s28 + $0x20] sm:$0xff] }
0x240c   :  { %v13444_v42 = vpop.f32.mrb[42].mxu1 }
0x240d   :  { %v13446_v43 = vpop.f32.mrb[43].mxu1 }
0x2414   :  { %v10825_v35 = vpop.f32.mrb[44].mxu1 }
0x2415   :  { %v4037_v49 = vpop.f32.mrb[45].mxu1  ;;  %v4049_v44 = vsel %vm551_vm4, %v10825_v35, -inf }
0x2416   :  { %4050 = vmax.xlane.f32.xlu0 %v4049_v44  ;;  %v4046_v45 = vsel %vm551_vm4, %v4037_v49, -inf }
0x2417   :  { %4047 = vmax.xlane.f32.xlu1 %v4046_v45 }
0x2428   :  { %12005 = vrot.lane.b32.xlu1 %v13322_v19, %s14659_s10 }
0x242c   :  { %4155 = vrot.lane.b32.xlu1 %v13384_v16, %s14662_s9 }
0x2430   :  { %4157 = vrot.lane.b32.xlu1 %v13392_v25, %s14662_s9 }
0x24a3   :  { %v4051_v62 = vpop.xlane.xlu0 %4050 }
0x24a4   :  { %v4053_v54 = vsub.f32 %v10825_v35, %v4051_v62  ;;  %v4048_v59 = vpop.xlane.xlu1 %4047 }
0x24a5   :  { %v4052_v0 = vsub.f32 %v4037_v49, %v4048_v59  ;;  %v9848_v59 = vld [vmem:[%s14653_s28 + $0x30] sm:$0xff] }
0x24a6   :  { %v4056_v1 = vmul.f32 1.442695, %v4053_v54 }
0x24a7   :  { %v4054_v2 = vmul.f32 1.442695, %v4052_v0 }
0x24a8   :  { %12331 = vpow2.f32 %v4056_v1  ;;  %v12006_v39 = vpop.permute.xlu1 %12005 }
0x24a9   :  { %v12008_v4 = vunpack.i.h.bf16 %v12006_v39  ;;  %v12007_v5 = vunpack.i.l.bf16 %v12006_v39  ;;  %12333 = vpow2.f32 %v4054_v2 }
0x24ab   :  { %v11519_v55 = vpack.c.bf16 %v12008_v4, %v12007_v5 }
0x24ac   :  { %v4156_v12 = vpop.permute.xlu1 %4155 }
0x24ad   :  { %11520 = vmatprep.subr.bf16.mxu0 %v11519_v55 }
0x24ae   :  { %11522 = vmatpush3.bf16.msra.mxu0 %v11519_v55 }
0x24b0   :  { %v4158_v13 = vpop.permute.xlu1 %4157 }
0x24b2   :  { %v12332_v51 = vpop.eup %12331 }
0x24b3   :  { %v4061_v16 = vsel %vm551_vm4, %v12332_v51, 0.0  ;;  %v12334_v34 = vpop.eup %12333 }
0x24b4   :  { %4062 = vadd.xlane.f32.xlu0 %v4061_v16  ;;  %v4058_v25 = vsel %vm551_vm4, %v12334_v34, 0.0 }
0x24b8   :  { %4059 = vadd.xlane.f32.xlu0 %v4058_v25 }
0x24ce   :  { %12010 = vrot.lane.b32.xlu0 %v13322_v19, %s14660_s30 }
0x2541   :  { %v4063_v33 = vpop.xlane.xlu0 %4062 }
0x2542   :  { %12335 = vrcp.f32 %v4063_v33 }
0x2545   :  { %v4060_v8 = vpop.xlane.xlu0 %4059 }
0x2546   :  { %12337 = vrcp.f32 %v4060_v8 }
0x2549   :  { %v12011_v46 = vpop.permute.xlu0 %12010 }
0x254a   :  { %v12013_v14 = vunpack.i.h.bf16 %v12011_v46  ;;  %v12012_v32 = vunpack.i.l.bf16 %v12011_v46 }
0x254c   :  { %v11523_v38 = vpack.c.bf16 %v12013_v14, %v12012_v32  ;;  %v12336_v9 = vpop.eup %12335  ;;  %v9850_v32 = vld [vmem:[%s14654_s4 + $0x1] ss:$0 sm:$0xff]  ;;  %s14670_s4 = sld [smem:[#allocation12_spill]] }
0x254d   :  { %v4067_v47 = vmul.f32 %v12336_v9, %v12332_v51 }
0x254e   :  { %11525 = vmatprep.subr.msk.bf16.mxu0 %vm12873_vm3, %v11523_v38 }
0x2550   :  { %v12338_v10 = vpop.eup %12337 }
0x2551   :  { %v4066_v56 = vmul.f32 %v12338_v10, %v12334_v34 }
0x2553   :  { %10830 = vmatprep.mubr.msk.f32.mxu0 %vm551_vm4, %v4066_v56 }
0x2554   :  { %10831 = vmatmul.mubr.msk.f32.vlgmr.msra.gmra.mrb[36].mxu0 %vm551_vm4, %v4067_v47 }
0x2555   :  { %11528 = vmatpush3.bf16.xpose.msk.msra.mxu0 %vm12873_vm3, %v11523_v38  ;;  %10837 = vmatprep.mubr.msk.f32.mxu0 %vm465_vm2, %v4156_v12 }
0x255c   :  { %10838 = vmatmul.mubr.msk.f32.vlgmr.msra.gmra.mrb[38].mxu0 %vm465_vm2, %v4158_v13 }
0x2627   :  { %v10832_v20 = vpop.f32.mrb[36].mxu0 }
0x2628   :  { %v4146_v21 = vpop.f32.mrb[37].mxu0 }
0x262f   :  { %v10839_v7 = vpop.f32.mrb[38].mxu0 }
0x2630   :  { %v4237_v41 = vpop.f32.mrb[39].mxu0  ;;  %v4249_v23 = vsel %vm551_vm4, %v10839_v7, -inf }
0x2631   :  { %4250 = vmax.xlane.f32.xlu0 %v4249_v23  ;;  %v4246_v26 = vsel %vm551_vm4, %v4237_v41, -inf }
0x2632   :  { %4247 = vmax.xlane.f32.xlu1 %v4246_v26 }
0x2643   :  { %12015 = vrot.lane.b32.xlu1 %v13322_v19, %s14663_s29 }
0x2647   :  { %3527 = vrot.lane.b32.xlu1 %v13364_v53, %s14665_s26 }
0x264b   :  { %3533 = vrot.lane.b32.xlu1 %v13370_v61, %s14666_s25 }
0x264f   :  { %3535 = vrot.lane.b32.xlu1 %v13368_v60, %s14666_s25 }
0x2653   :  { %3543 = vrot.lane.b32.xlu1 %v13396_v22, %s14667_s24 }
0x2657   :  { %4359 = vrot.lane.b32.xlu1 %v13444_v42, %s14665_s26  ;;  %v9847_v42 = vld [vmem:[%s14653_s28 + $0x28] sm:$0xff] }
0x2658   :  { %v11533_v35 = vpack.c.bf16 %v9847_v42, %v9846_v31  ;;  %v9860_v31 = vld [vmem:[%s14564_s14 + $0x38] sm:$0xff] }
0x265b   :  { %4367 = vrot.lane.b32.xlu1 %v10832_v20, %s14666_s25 }
0x26be   :  { %v4251_v17 = vpop.xlane.xlu0 %4250 }
0x26bf   :  { %v4253_v27 = vsub.f32 %v10839_v7, %v4251_v17  ;;  %v4248_v19 = vpop.xlane.xlu1 %4247 }
0x26c0   :  { %v4252_v28 = vsub.f32 %v4237_v41, %v4248_v19 }
0x26c1   :  { %v4256_v30 = vmul.f32 1.442695, %v4253_v27 }
0x26c2   :  { %v4254_v53 = vmul.f32 1.442695, %v4252_v28 }
0x26c3   :  { %12339 = vpow2.f32 %v4256_v30  ;;  %v12016_v3 = vpop.permute.xlu1 %12015 }
0x26c4   :  { %v12018_v61 = vunpack.i.h.bf16 %v12016_v3  ;;  %v12017_v37 = vunpack.i.l.bf16 %v12016_v3  ;;  %12341 = vpow2.f32 %v4254_v53 }
0x26c6   :  { %v11529_v60 = vpack.c.bf16 %v12018_v61, %v12017_v37 }
0x26c7   :  { %v3528_v44 = vpop.permute.xlu1 %3527 }
0x26c8   :  { %11530 = vmatprep.subr.bf16.mxu1 %v11529_v60 }
0x26c9   :  { %11532 = vmatpush3.bf16.msra.mxu1 %v11529_v60 }
0x26ca   :  { %11534 = vmatprep.subr.bf16.mxu1 %v11533_v35 }
0x26cb   :  { %v3534_v62 = vpop.permute.xlu1 %3533 }
0x26cd   :  { %v12340_v22 = vpop.eup %12339 }
0x26ce   :  { %v4261_v15 = vsel %vm551_vm4, %v12340_v22, 0.0  ;;  %v12342_v48 = vpop.eup %12341 }
0x26cf   :  { %4262 = vadd.xlane.f32.xlu0 %v4261_v15  ;;  %v4258_v40 = vsel %vm551_vm4, %v12342_v48, 0.0  ;;  %v3536_v39 = vpop.permute.xlu1 %3535  ;;  %v9858_v15 = vld [vmem:[%s14564_s14 + $0x28] sm:$0xff] }
0x26d3   :  { %4259 = vadd.xlane.f32.xlu0 %v4258_v40  ;;  %v3544_v16 = vpop.permute.xlu1 %3543  ;;  %v9859_v40 = vld [vmem:[%s14564_s14 + $0x30] sm:$0xff] }
0x26d4   :  { %v11545_v42 = vpack.c.bf16 %v9860_v31, %v9859_v40 }
0x26d7   :  { %v4360_v12 = vpop.permute.xlu1 %4359 }
0x26db   :  { %v4368_v20 = vpop.permute.xlu1 %4367 }
0x26e9   :  { %3525 = vrot.lane.b32.xlu0 %v13366_v58, %s14665_s26 }
0x26ed   :  { %3541 = vrot.lane.b32.xlu0 %v13398_v11, %s14667_s24  ;;  %v9849_v11 = vld [vmem:[%s14653_s28 + $0x38] sm:$0xff] }
0x26ee   :  { %v11537_v5 = vpack.c.bf16 %v9849_v11, %v9848_v59 }
0x26f1   :  { %4357 = vrot.lane.b32.xlu0 %v13446_v43, %s14665_s26 }
0x26f5   :  { %4365 = vrot.lane.b32.xlu0 %v4146_v21, %s14666_s25 }
0x275c   :  { %v4263_v49 = vpop.xlane.xlu0 %4262 }
0x275d   :  { %12343 = vrcp.f32 %v4263_v49 }
0x2760   :  { %v4260_v58 = vpop.xlane.xlu0 %4259 }
0x2761   :  { %12345 = vrcp.f32 %v4260_v58 }
0x2764   :  { %v3526_v45 = vpop.permute.xlu0 %3525 }
0x2765   :  { %v3547_v43 = vsel %vm465_vm2, %v13362_v52, %v3526_v45  ;;  %v3548_v52 = vsel %vm465_vm2, %v13360_v50, %v3528_v44 }
0x2766   :  { %v3549_v55 = vsel %vm551_vm4, %v3547_v43, %v3534_v62  ;;  %v3550_v34 = vsel %vm551_vm4, %v3548_v52, %v3536_v39 }
0x2767   :  { %v12344_v54 = vpop.eup %12343  ;;  %v3552_v25 = vsel %vm1289_vm5, %v3550_v34, %v3544_v16 }
0x2768   :  { %v3542_v1 = vpop.permute.xlu0 %3541  ;;  %v4267_v4 = vmul.f32 %v12344_v54, %v12340_v22  ;;  %v9857_v22 = vld [vmem:[%s14564_s14 + $0x20] sm:$0xff] }
0x2769   :  { %v3551_v51 = vsel %vm1289_vm5, %v3549_v55, %v3542_v1 }
0x276b   :  { %v12346_v0 = vpop.eup %12345 }
0x276c   :  { %v4266_v2 = vmul.f32 %v12346_v0, %v12342_v48  ;;  %v4358_v13 = vpop.permute.xlu0 %4357  ;;  %v11541_v48 = vpack.c.bf16 %v9858_v15, %v9857_v22 }
0x276d   :  { %v4379_v7 = vsel %vm465_vm2, %v13422_v6, %v4358_v13  ;;  %v9873_v13 = vld [vmem:[%s14567_s16 + $0x78] sm:$0xff] }
0x276e   :  { %10844 = vmatprep.mubr.msk.f32.mxu1 %vm551_vm4, %v4266_v2  ;;  %11542 = vmatprep.subr.bf16.mxu0 %v11541_v48 }
0x276f   :  { %10845 = vmatmul.mubr.msk.f32.vlgmr.msra.gmra.mrb[46].mxu1 %vm551_vm4, %v4267_v4  ;;  %11544 = vmatpush3.bf16.msra.mxu0 %v11541_v48 }
0x2770   :  { %11536 = vmatpush3.bf16.msra.mxu1 %v11533_v35  ;;  %10855 = vmatprep.mubr.msk.f32.mxu1 %vm206_vm1, %v3551_v51  ;;  %v4366_v21 = vpop.permute.xlu0 %4365 }
0x2771   :  { %11538 = vmatprep.subr.bf16.mxu1 %v11537_v5  ;;  %v4381_v41 = vsel %vm551_vm4, %v4379_v7, %v4366_v21  ;;  %11546 = vmatprep.subr.bf16.mxu0 %v11545_v42 }
0x2773   :  { %11548 = vmatpush3.bf16.msra.mxu0 %v11545_v42 }
0x2774   :  { %11540 = vmatpush3.bf16.msra.mxu1 %v11537_v5  ;;  %v13570_v5 = vld [vmem:[%s14565_s12 + $0x1] ss:$0 sm:$0xff] }
0x2777   :  { %10856 = vmatmul.mubr.msk.f32.vlgmr.msra.gmra.mrb[48].mxu1 %vm206_vm1, %v3552_v25 }
0x2842   :  { %v10846_v33 = vpop.f32.mrb[46].mxu1 }
0x2843   :  { %4375 = vrot.lane.b32.xlu1 %v10846_v33, %s14667_s24  ;;  %v4346_v8 = vpop.f32.mrb[47].mxu1  ;;  %v9866_v33 = vld [vmem:[%s14567_s16 + $0x40] sm:$0xff] }
0x2844   :  { %4373 = vrot.lane.b32.xlu0 %v4346_v8, %s14667_s24  ;;  %v9867_v8 = vld [vmem:[%s14567_s16 + $0x48] sm:$0xff] }
0x284a   :  { %v10857_v46 = vpop.f32.mrb[48].mxu1 }
0x284b   :  { %v4473_v14 = vpop.f32.mrb[49].mxu1  ;;  %v4479_v38 = vadd.f32 %v10857_v46, %v9850_v32  ;;  %v11549_v46 = vpack.c.bf16 %v9867_v8, %v9866_v33 }
0x284c   :  { %v4474_v50 = vadd.f32 %v9850_v32, %v4473_v14  ;;  %v9868_v14 = vld [vmem:[%s14567_s16 + $0x50] sm:$0xff] }
0x284d   :  { %v13525_v10 = vadd.f32 %v4479_v38, %v13223_v29  ;;  %v4380_v29 = vsel %vm465_vm2, %v13420_v36, %v4360_v12  ;;  %11550 = vmatprep.subr.bf16.mxu1 %v11549_v46  ;;  %v9870_v38 = vld [vmem:[%s14567_s16 + $0x60] sm:$0xff]  ;;  %v9872_v12 = vld [vmem:[%s14567_s16 + $0x70] sm:$0xff] }
0x284e   :  { %v13522_v9 = vadd.f32 %v4474_v50, %v13226_v63  ;;  %v4382_v26 = vsel %vm551_vm4, %v4380_v29, %v4368_v20  ;;  %11552 = vmatpush3.bf16.msra.mxu1 %v11549_v46  ;;  %v11561_v20 = vpack.c.bf16 %v9873_v13, %v9872_v12 }
0x284f   :  { %v4501_v47 = vsel %vm206_vm1, %v13525_v10, 0.0 }
0x2850   :  { %v4498_v56 = vsel %vm206_vm1, %v13522_v9, 0.0 }
0x2863   :  { %4499 = vadd.xlane.f32.xlu0 %v4498_v56  ;;  %v9871_v56 = vld [vmem:[%s14567_s16 + $0x68] sm:$0xff] }
0x2867   :  { %4502 = vadd.xlane.f32.xlu1 %v4501_v47  ;;  %v11557_v47 = vpack.c.bf16 %v9871_v56, %v9870_v38 }
0x28b5   :  { %v4376_v63 = vpop.permute.xlu1 %4375 }
0x28b6   :  { %v4374_v23 = vpop.permute.xlu0 %4373  ;;  %v4384_v27 = vsel %vm1289_vm5, %v4382_v26, %v4376_v63 }
0x28b7   :  { %v4383_v17 = vsel %vm1289_vm5, %v4381_v41, %v4374_v23 }
0x28b8   :  { %10858 = vmatprep.mubr.msk.f32.mxu1 %vm206_vm1, %v4383_v17 }
0x28b9   :  { %10859 = vmatmul.mubr.msk.f32.gmra.mrb[50].mxu1 %vm206_vm1, %v4384_v27 }
0x28f0   :  { %v4500_v19 = vpop.xlane.xlu0 %4499 }
0x28f1   :  { %v4510_v28 = vmul.f32 0.03125, %v4500_v19 }
0x28f3   :  { %v4514_v6 = vsub.f32 %v13522_v9, %v4510_v28  ;;  %v9861_v28 = vld [vmem:[%s14568_s15 + $0x1] ss:$0 sm:$0xff] }
0x28f4   :  { %v4503_v30 = vpop.xlane.xlu1 %4502 }
0x28f5   :  { %v4511_v53 = vmul.f32 0.03125, %v4503_v30  ;;  %v4518_v36 = vmul.f32 %v4514_v6, %v4514_v6 }
0x28f7   :  { %v4515_v3 = vsub.f32 %v13525_v10, %v4511_v53  ;;  %v4522_v61 = vsel %vm206_vm1, %v4518_v36, 0.0 }
0x28f8   :  { %4523 = vadd.xlane.f32.xlu0 %v4522_v61 }
0x28f9   :  { %v4519_v37 = vmul.f32 %v4515_v3, %v4515_v3 }
0x28fb   :  { %v4525_v60 = vsel %vm206_vm1, %v4519_v37, 0.0 }
0x28fc   :  { %4526 = vadd.xlane.f32.xlu0 %v4525_v60 }
0x2985   :  { %v4524_v35 = vpop.xlane.xlu0 %4523 }
0x2986   :  { %v4534_v49 = vmul.f32 0.03125, %v4524_v35 }
0x2988   :  { %v4538_v58 = vadd.f32 1e-05, %v4534_v49 }
0x2989   :  { %v4527_v44 = vpop.xlane.xlu0 %4526 }
0x298a   :  { %12347 = vrsqrt.f32 %v4538_v58  ;;  %v4535_v45 = vmul.f32 0.03125, %v4527_v44 }
0x298c   :  { %v4539_v62 = vadd.f32 1e-05, %v4535_v45  ;;  %v10860_v54 = vpop.f32.mrb[50].mxu1 }
0x298d   :  { %v4489_v59 = vadd.f32 %v10860_v54, %v9850_v32  ;;  %v4483_v11 = vpop.f32.mrb[51].mxu1 }
0x298e   :  { %12349 = vrsqrt.f32 %v4539_v62  ;;  %v4484_v0 = vadd.f32 %v9850_v32, %v4483_v11  ;;  %v9869_v32 = vld [vmem:[%s14567_s16 + $0x58] sm:$0xff] }
0x298f   :  { %v13558_v43 = vadd.f32 %v4489_v59, %v13253_v57  ;;  %v13575_v57 = vld [vmem:[%s14566_s13 + $0x1] ss:$0 sm:$0xff]  ;;  %v11553_v50 = vpack.c.bf16 %v9869_v32, %v9868_v14 }
0x2990   :  { %v13561_v1 = vadd.f32 %v4484_v0, %v13256_v18 }
0x2991   :  { %v4507_v2 = vsel %vm206_vm1, %v13558_v43, 0.0  ;;  %11554 = vmatprep.subr.bf16.mxu1 %v11553_v50 }
0x2992   :  { %4508 = vadd.xlane.f32.xlu1 %v4507_v2  ;;  %v4504_v39 = vsel %vm206_vm1, %v13561_v1, 0.0  ;;  %11556 = vmatpush3.bf16.msra.mxu1 %v11553_v50 }
0x2993   :  { %4505 = vadd.xlane.f32.xlu0 %v4504_v39  ;;  %11558 = vmatprep.subr.bf16.mxu1 %v11557_v47 }
0x2994   :  { %v12348_v4 = vpop.eup %12347 }
0x2995   :  { %v4546_v55 = vmul.f32 %v12348_v4, %v4514_v6 }
0x2996   :  { %11560 = vmatpush3.bf16.msra.mxu1 %v11557_v47 }
0x2997   :  { %v4554_v18 = vmul.f32 %v13570_v5, %v4546_v55  ;;  %11562 = vmatprep.subr.bf16.mxu1 %v11561_v20 }
0x2998   :  { %v12350_v51 = vpop.eup %12349 }
0x2999   :  { %v4547_v16 = vmul.f32 %v12350_v51, %v4515_v3  ;;  %v4562_v52 = vadd.f32 %v13575_v57, %v4554_v18  ;;  %v13625_v51 = vld [vmem:[%s14569_s17 + $0x1] ss:$0 sm:$0xff] }
0x299a   :  { %11564 = vmatpush3.bf16.msra.mxu1 %v11561_v20 }
0x299b   :  { %10869 = vmatprep.mubr.msk.f32.mxu0 %vm206_vm1, %v4562_v52  ;;  %v4555_v34 = vmul.f32 %v13570_v5, %v4547_v16 }
0x299d   :  { %v4563_v25 = vadd.f32 %v13575_v57, %v4555_v34 }
0x299f   :  { %10870 = vmatmul.mubr.msk.f32.vlgmr.msra.gmra.mrb[40].mxu0 %vm206_vm1, %v4563_v25  ;;  %v13638_v25 = vld [vmem:[%s14570_s2] sm:$0xff] }
0x2a1f   :  { %v4509_v21 = vpop.xlane.xlu1 %4508 }
0x2a20   :  { %v4513_v7 = vmul.f32 0.03125, %v4509_v21  ;;  %v4506_v63 = vpop.xlane.xlu0 %4505 }
0x2a21   :  { %v4512_v29 = vmul.f32 0.03125, %v4506_v63 }
0x2a22   :  { %v4517_v41 = vsub.f32 %v13558_v43, %v4513_v7 }
0x2a23   :  { %v4516_v23 = vsub.f32 %v13561_v1, %v4512_v29 }
0x2a24   :  { %v4521_v26 = vmul.f32 %v4517_v41, %v4517_v41 }
0x2a25   :  { %v4520_v17 = vmul.f32 %v4516_v23, %v4516_v23 }
0x2a26   :  { %v4531_v27 = vsel %vm206_vm1, %v4521_v26, 0.0 }
0x2a27   :  { %4532 = vadd.xlane.f32.xlu1 %v4531_v27  ;;  %v4528_v19 = vsel %vm206_vm1, %v4520_v17, 0.0 }
0x2a28   :  { %4529 = vadd.xlane.f32.xlu0 %v4528_v19 }
0x2a72   :  { %v10871_v6 = vpop.f32.mrb[40].mxu0 }
0x2a73   :  { %v4660_v30 = vadd.f32 %v10871_v6, %v9861_v28  ;;  %v4654_v53 = vpop.f32.mrb[41].mxu0 }
0x2a74   :  { %v4655_v36 = vadd.f32 %v9861_v28, %v4654_v53 }
0x2a75   :  { %v4678_v3 = vmul.f32 0.70710677, %v4660_v30  ;;  %v4674_v40 = vmul.f32 0.5, %v4660_v30 }
0x2a76   :  { %v4677_v61 = vmul.f32 0.70710677, %v4655_v36  ;;  %v4673_v15 = vmul.f32 0.5, %v4655_v36 }
0x2a77   :  { %12351 = verf.f32 %v4678_v3  ;;  %v9881_v3 = vld [vmem:[%s14648_s1 + $0x40] sm:$0xff] }
0x2a78   :  { %12353 = verf.f32 %v4677_v61  ;;  %v9882_v61 = vld [vmem:[%s14648_s1 + $0x48] sm:$0xff] }
0x2a81   :  { %v12352_v37 = vpop.eup %12351 }
0x2a82   :  { %v12354_v60 = vpop.eup %12353  ;;  %v4686_v22 = vadd.f32 1.0, %v12352_v37  ;;  %v11565_v37 = vpack.c.bf16 %v9882_v61, %v9881_v3 }
0x2a83   :  { %v4685_v48 = vadd.f32 1.0, %v12354_v60  ;;  %v9883_v60 = vld [vmem:[%s14648_s1 + $0x50] sm:$0xff] }
0x2a84   :  { %v4690_v42 = vmul.f32 %v4686_v22, %v4674_v40  ;;  %v9884_v22 = vld [vmem:[%s14648_s1 + $0x58] sm:$0xff]  ;;  %11566 = vmatprep.subr.bf16.mxu0 %v11565_v37 }
0x2a85   :  { %v4689_v31 = vmul.f32 %v4685_v48, %v4673_v15  ;;  %v11569_v15 = vpack.c.bf16 %v9884_v22, %v9883_v60  ;;  %11568 = vmatpush3.bf16.msra.mxu0 %v11565_v37 }
0x2a87   :  { %10891 = vmatprep.mubr.msk.f32.mxu1 %vm2438_vm6, %v4689_v31  ;;  %11570 = vmatprep.subr.bf16.mxu0 %v11569_v15 }
0x2a88   :  { %10892 = vmatmul.mubr.msk.f32.vlgmr.msra.gmra.mrb[52].mxu1 %vm2438_vm6, %v4690_v42 }
0x2a89   :  { %11572 = vmatpush3.bf16.msra.mxu0 %v11569_v15 }
0x2ab4   :  { %v4533_v35 = vpop.xlane.xlu1 %4532 }
0x2ab5   :  { %v4537_v49 = vmul.f32 0.03125, %v4533_v35  ;;  %v4530_v58 = vpop.xlane.xlu0 %4529 }
0x2ab6   :  { %v4536_v44 = vmul.f32 0.03125, %v4530_v58 }
0x2ab7   :  { %v4541_v45 = vadd.f32 1e-05, %v4537_v49 }
0x2ab8   :  { %v4540_v62 = vadd.f32 1e-05, %v4536_v44 }
0x2ab9   :  { %12355 = vrsqrt.f32 %v4541_v45 }
0x2aba   :  { %12357 = vrsqrt.f32 %v4540_v62 }
0x2ac3   :  { %v12356_v54 = vpop.eup %12355 }
0x2ac4   :  { %v12358_v59 = vpop.eup %12357  ;;  %v4549_v11 = vmul.f32 %v12356_v54, %v4517_v41 }
0x2ac5   :  { %v4548_v0 = vmul.f32 %v12358_v59, %v4516_v23 }
0x2ac6   :  { %v4557_v2 = vmul.f32 %v13570_v5, %v4549_v11 }
0x2ac7   :  { %v4556_v39 = vmul.f32 %v13570_v5, %v4548_v0  ;;  %v13631_v5 = vld [vmem:[%s14570_s2 + $0x8] sm:$0xff] }
0x2ac8   :  { %v4565_v55 = vadd.f32 %v13575_v57, %v4557_v2 }
0x2ac9   :  { %v4564_v4 = vadd.f32 %v13575_v57, %v4556_v39  ;;  %v9879_v39 = vld [vmem:[%s14649_s5 + $0x2] ss:$0 sm:$0xff] }
0x2acb   :  { %10872 = vmatprep.mubr.msk.f32.mxu0 %vm206_vm1, %v4564_v4 }
0x2acc   :  { %10873 = vmatmul.mubr.msk.f32.gmra.mrb[42].mxu0 %vm206_vm1, %v4565_v55 }
0x2b5b   :  { %v10893_v18 = vpop.f32.mrb[52].mxu1 }
0x2b5c   :  { %v4800_v16 = vadd.f32 %v10893_v18, %v13525_v10  ;;  %v4780_v52 = vpop.f32.mrb[53].mxu1 }
0x2b5d   :  { %v4799_v57 = vadd.f32 %v4780_v52, %v13522_v9 }
0x2b5e   :  { %v4809_v34 = vadd.f32 %v13625_v51, %v4800_v16 }
0x2b5f   :  { %v4808_v33 = vadd.f32 %v13625_v51, %v4799_v57 }
0x2b60   :  { %v13642_v8 = vadd.f32 %v13631_v5, %v4809_v34 }
0x2b61   :  { %v13645_v10 = vadd.f32 %v13638_v25, %v4808_v33 }
0x2b62   :  { %v4823_v46 = vsel %vm206_vm1, %v13642_v8, 0.0 }
0x2b63   :  { %4824 = vadd.xlane.f32.xlu1 %v4823_v46  ;;  %v4820_v9 = vsel %vm206_vm1, %v13645_v10, 0.0 }
0x2b64   :  { %4821 = vadd.xlane.f32.xlu0 %v4820_v9 }
0x2b9f   :  { %v10874_v14 = vpop.f32.mrb[42].mxu0 }
0x2ba0   :  { %v4670_v32 = vadd.f32 %v10874_v14, %v9861_v28  ;;  %v4664_v50 = vpop.f32.mrb[43].mxu0 }
0x2ba1   :  { %v4665_v38 = vadd.f32 %v9861_v28, %v4664_v50 }
0x2ba2   :  { %v4680_v56 = vmul.f32 0.70710677, %v4670_v32  ;;  %v4676_v63 = vmul.f32 0.5, %v4670_v32 }
0x2ba3   :  { %v4679_v47 = vmul.f32 0.70710677, %v4665_v38  ;;  %v4675_v21 = vmul.f32 0.5, %v4665_v38 }
0x2ba4   :  { %12359 = verf.f32 %v4680_v56 }
0x2ba5   :  { %12361 = verf.f32 %v4679_v47 }
0x2bae   :  { %v12360_v12 = vpop.eup %12359 }
0x2baf   :  { %v12362_v13 = vpop.eup %12361  ;;  %v4688_v20 = vadd.f32 1.0, %v12360_v12 }
0x2bb0   :  { %v4687_v7 = vadd.f32 1.0, %v12362_v13 }
0x2bb1   :  { %v4692_v41 = vmul.f32 %v4688_v20, %v4676_v63 }
0x2bb2   :  { %v4691_v29 = vmul.f32 %v4687_v7, %v4675_v21 }
0x2bb4   :  { %10894 = vmatprep.mubr.msk.f32.mxu1 %vm2438_vm6, %v4691_v29 }
0x2bb5   :  { %10895 = vmatmul.mubr.msk.f32.gmra.mrb[54].mxu1 %vm2438_vm6, %v4692_v41 }
0x2bf0   :  { %v4825_v23 = vpop.xlane.xlu1 %4824 }
0x2bf1   :  { %v4833_v26 = vmul.f32 0.03125, %v4825_v23  ;;  %v4822_v17 = vpop.xlane.xlu0 %4821 }
0x2bf2   :  { %v4832_v27 = vmul.f32 0.03125, %v4822_v17 }
0x2bf3   :  { %v4837_v19 = vsub.f32 %v13642_v8, %v4833_v26 }
0x2bf4   :  { %v4836_v28 = vsub.f32 %v13645_v10, %v4832_v27 }
0x2bf5   :  { %v4841_v6 = vmul.f32 %v4837_v19, %v4837_v19 }
0x2bf6   :  { %v4840_v30 = vmul.f32 %v4836_v28, %v4836_v28 }
0x2bf7   :  { %v4847_v53 = vsel %vm206_vm1, %v4841_v6, 0.0 }
0x2bf8   :  { %4848 = vadd.xlane.f32.xlu1 %v4847_v53  ;;  %v4844_v36 = vsel %vm206_vm1, %v4840_v30, 0.0 }
0x2bf9   :  { %4845 = vadd.xlane.f32.xlu0 %v4844_v36 }
0x2c85   :  { %v4849_v48 = vpop.xlane.xlu1 %4848 }
0x2c86   :  { %v4857_v40 = vmul.f32 0.03125, %v4849_v48  ;;  %v4846_v31 = vpop.xlane.xlu0 %4845 }
0x2c87   :  { %v4856_v42 = vmul.f32 0.03125, %v4846_v31 }
0x2c88   :  { %v4861_v35 = vadd.f32 1e-05, %v4857_v40  ;;  %v10896_v49 = vpop.f32.mrb[54].mxu1 }
0x2c89   :  { %v4860_v58 = vadd.f32 1e-05, %v4856_v42  ;;  %v4802_v44 = vadd.f32 %v10896_v49, %v13558_v43  ;;  %v4790_v45 = vpop.f32.mrb[55].mxu1 }
0x2c8a   :  { %12363 = vrsqrt.f32 %v4861_v35  ;;  %v4801_v62 = vadd.f32 %v4790_v45, %v13561_v1 }
0x2c8b   :  { %12365 = vrsqrt.f32 %v4860_v58  ;;  %v4811_v54 = vadd.f32 %v13625_v51, %v4802_v44 }
0x2c8c   :  { %v4810_v59 = vadd.f32 %v13625_v51, %v4801_v62  ;;  %v9880_v51 = vld [vmem:[%s14650_s6 + $0x2] ss:$0 sm:$0xff] }
0x2c8d   :  { %v13674_v11 = vadd.f32 %v13631_v5, %v4811_v54 }
0x2c8e   :  { %v13677_v0 = vadd.f32 %v13638_v25, %v4810_v59 }
0x2c8f   :  { %v4829_v2 = vsel %vm206_vm1, %v13674_v11, 0.0 }
0x2c90   :  { %4830 = vadd.xlane.f32.xlu1 %v4829_v2  ;;  %v4826_v43 = vsel %vm206_vm1, %v13677_v0, 0.0 }
0x2c91   :  { %4827 = vadd.xlane.f32.xlu0 %v4826_v43 }
0x2c94   :  { %v12364_v1 = vpop.eup %12363 }
0x2c95   :  { %v12366_v4 = vpop.eup %12365  ;;  %v4869_v55 = vmul.f32 %v12364_v1, %v4837_v19 }
0x2c96   :  { %v4868_v18 = vmul.f32 %v12366_v4, %v4836_v28 }
0x2c97   :  { %v4877_v16 = vmul.f32 %v9879_v39, %v4869_v55 }
0x2c98   :  { %v4876_v52 = vmul.f32 %v9879_v39, %v4868_v18 }
0x2c99   :  { %v4885_v57 = vadd.f32 %v9880_v51, %v4877_v16 }
0x2c9a   :  { %v4884_v5 = vadd.f32 %v9880_v51, %v4876_v52 }
0x2c9c   :  { %10905 = vmatprep.mubr.msk.f32.mxu0 %vm206_vm1, %v4884_v5 }
0x2c9d   :  { %10906 = vmatmul.mubr.msk.f32.vlgmr.msra.gmra.mrb[44].mxu0 %vm206_vm1, %v4885_v57 }
0x2d1d   :  { %v4831_v34 = vpop.xlane.xlu1 %4830 }
0x2d1e   :  { %v4835_v25 = vmul.f32 0.03125, %v4831_v34  ;;  %v4828_v33 = vpop.xlane.xlu0 %4827 }
0x2d1f   :  { %v4834_v46 = vmul.f32 0.03125, %v4828_v33 }
0x2d20   :  { %v4839_v9 = vsub.f32 %v13674_v11, %v4835_v25 }
0x2d21   :  { %v4838_v14 = vsub.f32 %v13677_v0, %v4834_v46 }
0x2d22   :  { %v4843_v32 = vmul.f32 %v4839_v9, %v4839_v9 }
0x2d23   :  { %v4842_v50 = vmul.f32 %v4838_v14, %v4838_v14 }
0x2d24   :  { %v4853_v38 = vsel %vm206_vm1, %v4843_v32, 0.0 }
0x2d25   :  { %4854 = vadd.xlane.f32.xlu1 %v4853_v38  ;;  %v4850_v56 = vsel %vm206_vm1, %v4842_v50, 0.0 }
0x2d26   :  { %4851 = vadd.xlane.f32.xlu0 %v4850_v56 }
0x2d70   :  { %v10907_v47 = vpop.f32.mrb[44].mxu0 }
0x2d71   :  { %v4971_v12 = vpop.f32.mrb[45].mxu0  ;;  %v13703_v21 = vmul.f32 0.35355338, %v10907_v47 }
0x2d72   :  { %v13695_v13 = vpack.i.bf16 %v10907_v47, %v4971_v12  ;;  %v13701_v20 = vmul.f32 0.35355338, %v4971_v12 }
0x2d74   :  { %12025 = vrot.lane.b32.xlu1 %v13695_v13, %s14664_s7  ;;  %12020 = vrot.lane.b32.xlu0 %v13695_v13, %s14668_s20 }
0x2d78   :  { %5192 = vrot.lane.b32.xlu1 %v13701_v20, %s14655_s8  ;;  %5194 = vrot.lane.b32.xlu0 %v13703_v21, %s14655_s8 }
0x2d7c   :  { %12030 = vrot.lane.b32.xlu1 %v13695_v13, %s14656_s0  ;;  %5394 = vrot.lane.b32.xlu0 %v13703_v21, %s14657_s27 }
0x2d80   :  { %5392 = vrot.lane.b32.xlu1 %v13701_v20, %s14657_s27 }
0x2db2   :  { %v4855_v7 = vpop.xlane.xlu1 %4854 }
0x2db3   :  { %v4859_v63 = vmul.f32 0.03125, %v4855_v7  ;;  %v4852_v29 = vpop.xlane.xlu0 %4851 }
0x2db4   :  { %v4858_v41 = vmul.f32 0.03125, %v4852_v29 }
0x2db5   :  { %v4863_v23 = vadd.f32 1e-05, %v4859_v63 }
0x2db6   :  { %v4862_v26 = vadd.f32 1e-05, %v4858_v41 }
0x2db7   :  { %12367 = vrsqrt.f32 %v4863_v23 }
0x2db8   :  { %12369 = vrsqrt.f32 %v4862_v26 }
0x2dc1   :  { %v12368_v17 = vpop.eup %12367 }
0x2dc2   :  { %v12370_v27 = vpop.eup %12369  ;;  %v4871_v19 = vmul.f32 %v12368_v17, %v4839_v9 }
0x2dc3   :  { %v4870_v28 = vmul.f32 %v12370_v27, %v4838_v14 }
0x2dc4   :  { %v4879_v6 = vmul.f32 %v9879_v39, %v4871_v19 }
0x2dc5   :  { %v4878_v30 = vmul.f32 %v9879_v39, %v4870_v28 }
0x2dc6   :  { %v4887_v36 = vadd.f32 %v9880_v51, %v4879_v6 }
0x2dc7   :  { %v4886_v53 = vadd.f32 %v9880_v51, %v4878_v30 }
0x2dc9   :  { %10908 = vmatprep.mubr.msk.f32.mxu0 %vm206_vm1, %v4886_v53 }
0x2dca   :  { %10909 = vmatmul.mubr.msk.f32.gmra.mrb[46].mxu0 %vm206_vm1, %v4887_v36 }
0x2dcb   :  { %10915 = vmatprep.mubr.msk.f32.mxu0 %vm465_vm2, %v13701_v20 }
0x2de6   :  { %v12026_v3 = vpop.permute.xlu1 %12025  ;;  %v12021_v61 = vpop.permute.xlu0 %12020 }
0x2de7   :  { %v12028_v37 = vunpack.i.h.bf16 %v12026_v3  ;;  %v12027_v60 = vunpack.i.l.bf16 %v12026_v3  ;;  %v12023_v22 = vunpack.i.h.bf16 %v12021_v61  ;;  %v12022_v15 = vunpack.i.l.bf16 %v12021_v61 }
0x2de9   :  { %v11583_v48 = vpack.c.bf16 %v12028_v37, %v12027_v60  ;;  %v11573_v40 = vpack.c.bf16 %v12023_v22, %v12022_v15 }
0x2dea   :  { %v5193_v31 = vpop.permute.xlu1 %5192  ;;  %v5195_v45 = vpop.permute.xlu0 %5194 }
0x2deb   :  { %11575 = vmatprep.subr.msk.bf16.mxu0 %vm12873_vm3, %v11573_v40  ;;  %11585 = vmatprep.subr.msk.bf16.mxu1 %vm12873_vm3, %v11583_v48 }
0x2dec   :  { %10929 = vmatprep.mubr.msk.f32.mxu1 %vm465_vm2, %v5193_v31  ;;  %11578 = vmatpush3.bf16.xpose.msk.msra.mxu0 %vm12873_vm3, %v11573_v40 }
0x2ded   :  { %11588 = vmatpush3.bf16.xpose.msk.msra.mxu1 %vm12873_vm3, %v11583_v48 }
0x2dee   :  { %v12031_v42 = vpop.permute.xlu1 %12030  ;;  %v5395_v62 = vpop.permute.xlu0 %5394 }
0x2def   :  { %v12033_v35 = vunpack.i.h.bf16 %v12031_v42  ;;  %v12032_v49 = vunpack.i.l.bf16 %v12031_v42 }
0x2df1   :  { %v11593_v58 = vpack.c.bf16 %v12033_v35, %v12032_v49 }
0x2df2   :  { %v5393_v44 = vpop.permute.xlu1 %5392 }
0x2df3   :  { %10916 = vmatmul.mubr.msk.f32.vlgmr.msra.gmra.mrb[48].mxu0 %vm465_vm2, %v13703_v21  ;;  %11595 = vmatprep.subr.msk.bf16.mxu1 %vm12873_vm3, %v11593_v58 }
0x2df4   :  { %10930 = vmatmul.mubr.msk.f32.vlgmr.msra.gmra.mrb[56].mxu1 %vm465_vm2, %v5195_v45 }
0x2df5   :  { %11598 = vmatpush3.bf16.xpose.msk.msra.mxu1 %vm12873_vm3, %v11593_v58  ;;  %10943 = vmatprep.mubr.msk.f32.mxu1 %vm465_vm2, %v5393_v44 }
0x2dfc   :  { %10944 = vmatmul.mubr.msk.f32.vlgmr.msra.gmra.mrb[58].mxu1 %vm465_vm2, %v5395_v62 }
0x2e9d   :  { %v13737_v54 = vpop.f32.mrb[46].mxu0 }
0x2e9e   :  { %v13739_v59 = vpop.f32.mrb[47].mxu0 }
0x2e9f   :  { %v13743_v2 = vpack.i.bf16 %v13737_v54, %v13739_v59 }
0x2ec6   :  { %v10917_v43 = vpop.f32.mrb[48].mxu0 }
0x2ec7   :  { %v10931_v1 = vpop.f32.mrb[56].mxu1  ;;  %v5074_v39 = vpop.f32.mrb[49].mxu0  ;;  %v5086_v4 = vsel %vm551_vm4, %v10917_v43, -inf }
0x2ec8   :  { %v5274_v55 = vpop.f32.mrb[57].mxu1  ;;  %5087 = vmax.xlane.f32.xlu0 %v5086_v4  ;;  %v5083_v18 = vsel %vm551_vm4, %v5074_v39, -inf  ;;  %v5286_v52 = vsel %vm551_vm4, %v10931_v1, -inf }
0x2ec9   :  { %5084 = vmax.xlane.f32.xlu1 %v5083_v18  ;;  %v5283_v51 = vsel %vm551_vm4, %v5274_v55, -inf }
0x2ecc   :  { %5284 = vmax.xlane.f32.xlu0 %v5283_v51 }
0x2ecf   :  { %v10945_v16 = vpop.f32.mrb[58].mxu1 }
0x2ed0   :  { %v5474_v5 = vpop.f32.mrb[59].mxu1  ;;  %5287 = vmax.xlane.f32.xlu0 %v5286_v52  ;;  %v5486_v34 = vsel %vm551_vm4, %v10945_v16, -inf }
0x2ed1   :  { %v5483_v57 = vsel %vm551_vm4, %v5474_v5, -inf }
0x2ed2   :  { %5484 = vmax.xlane.f32.xlu1 %v5483_v57 }
0x2ed4   :  { %5487 = vmax.xlane.f32.xlu0 %v5486_v34 }
0x2ee3   :  { %12035 = vrot.lane.b32.xlu1 %v13695_v13, %s14658_s3 }
0x2f55   :  { %v5088_v25 = vpop.xlane.xlu0 %5087 }
0x2f56   :  { %v5090_v33 = vsub.f32 %v10917_v43, %v5088_v25  ;;  %v5085_v46 = vpop.xlane.xlu1 %5084 }
0x2f57   :  { %v5089_v9 = vsub.f32 %v5074_v39, %v5085_v46 }
0x2f58   :  { %v5093_v14 = vmul.f32 1.442695, %v5090_v33 }
0x2f59   :  { %v5091_v32 = vmul.f32 1.442695, %v5089_v9  ;;  %v5285_v50 = vpop.xlane.xlu0 %5284 }
0x2f5a   :  { %12371 = vpow2.f32 %v5093_v14  ;;  %v5289_v38 = vsub.f32 %v5274_v55, %v5285_v50 }
0x2f5b   :  { %12373 = vpow2.f32 %v5091_v32 }
0x2f5c   :  { %v5291_v56 = vmul.f32 1.442695, %v5289_v38 }
0x2f5d   :  { %v5288_v47 = vpop.xlane.xlu0 %5287 }
0x2f5e   :  { %12375 = vpow2.f32 %v5291_v56  ;;  %v5290_v12 = vsub.f32 %v10931_v1, %v5288_v47 }
0x2f5f   :  { %v5485_v7 = vpop.xlane.xlu1 %5484 }
0x2f60   :  { %v5293_v63 = vmul.f32 1.442695, %v5290_v12  ;;  %v5489_v15 = vsub.f32 %v5474_v5, %v5485_v7 }
0x2f61   :  { %v5488_v29 = vpop.xlane.xlu0 %5487 }
0x2f62   :  { %12377 = vpow2.f32 %v5293_v63  ;;  %v5490_v41 = vsub.f32 %v10945_v16, %v5488_v29  ;;  %v5491_v48 = vmul.f32 1.442695, %v5489_v15 }
0x2f63   :  { %v12036_v23 = vpop.permute.xlu1 %12035 }
0x2f64   :  { %v12372_v26 = vpop.eup %12371  ;;  %v5493_v17 = vmul.f32 1.442695, %v5490_v41  ;;  %v12038_v27 = vunpack.i.h.bf16 %v12036_v23  ;;  %v12037_v19 = vunpack.i.l.bf16 %v12036_v23 }
0x2f65   :  { %v12374_v28 = vpop.eup %12373  ;;  %v5098_v6 = vsel %vm551_vm4, %v12372_v26, 0.0 }
0x2f66   :  { %12379 = vpow2.f32 %v5493_v17  ;;  %5099 = vadd.xlane.f32.xlu0 %v5098_v6  ;;  %v5095_v30 = vsel %vm551_vm4, %v12374_v28, 0.0  ;;  %v11579_v53 = vpack.c.bf16 %v12038_v27, %v12037_v19 }
0x2f67   :  { %5096 = vadd.xlane.f32.xlu1 %v5095_v30  ;;  %12381 = vpow2.f32 %v5491_v48 }
0x2f68   :  { %v12376_v36 = vpop.eup %12375  ;;  %11580 = vmatprep.subr.bf16.mxu0 %v11579_v53 }
0x2f69   :  { %11582 = vmatpush3.bf16.msra.mxu0 %v11579_v53  ;;  %v5295_v3 = vsel %vm551_vm4, %v12376_v36, 0.0 }
0x2f6b   :  { %5296 = vadd.xlane.f32.xlu1 %v5295_v3 }
0x2f6c   :  { %v12378_v61 = vpop.eup %12377 }
0x2f6d   :  { %v5298_v37 = vsel %vm551_vm4, %v12378_v61, 0.0 }
0x2f6e   :  { %5299 = vadd.xlane.f32.xlu0 %v5298_v37 }
0x2f70   :  { %v12380_v60 = vpop.eup %12379 }
0x2f71   :  { %v5498_v22 = vsel %vm551_vm4, %v12380_v60, 0.0  ;;  %v12382_v40 = vpop.eup %12381 }
0x2f72   :  { %5499 = vadd.xlane.f32.xlu0 %v5498_v22  ;;  %v5495_v31 = vsel %vm551_vm4, %v12382_v40, 0.0 }
0x2f7c   :  { %12045 = vrot.lane.b32.xlu1 %v13695_v13, %s14659_s10 }
0x2f80   :  { %12050 = vrot.lane.b32.xlu1 %v13695_v13, %s14660_s30 }
0x2f88   :  { %12040 = vrot.lane.b32.xlu0 %v13695_v13, %s14661_s11 }
0x2f8c   :  { %5594 = vrot.lane.b32.xlu0 %v13703_v21, %s14662_s9 }
0x2fa4   :  { %5496 = vadd.xlane.f32.xlu1 %v5495_v31 }
0x2fb5   :  { %5592 = vrot.lane.b32.xlu1 %v13701_v20, %s14662_s9 }
0x2ff3   :  { %v5100_v42 = vpop.xlane.xlu0 %5099 }
0x2ff4   :  { %12383 = vrcp.f32 %v5100_v42  ;;  %v5097_v35 = vpop.xlane.xlu1 %5096 }
0x2ff5   :  { %12385 = vrcp.f32 %v5097_v35 }
0x2ff8   :  { %v5297_v49 = vpop.xlane.xlu1 %5296 }
0x2ff9   :  { %12387 = vrcp.f32 %v5297_v49 }
0x2ffb   :  { %v5300_v58 = vpop.xlane.xlu0 %5299 }
0x2ffc   :  { %12389 = vrcp.f32 %v5300_v58  ;;  %v12046_v45 = vpop.permute.xlu1 %12045 }
0x2ffd   :  { %v12048_v4 = vunpack.i.h.bf16 %v12046_v45  ;;  %v12047_v20 = vunpack.i.l.bf16 %v12046_v45 }
0x2ffe   :  { %v12384_v44 = vpop.eup %12383 }
0x2fff   :  { %v12386_v21 = vpop.eup %12385  ;;  %v5500_v62 = vpop.xlane.xlu0 %5499  ;;  %v5104_v1 = vmul.f32 %v12384_v44, %v12372_v26  ;;  %v11599_v33 = vpack.c.bf16 %v12048_v4, %v12047_v20  ;;  %v13813_v4 = vmul.f32 0.35355338, %v13737_v54 }
0x3000   :  { %v5103_v43 = vmul.f32 %v12386_v21, %v12374_v28  ;;  %v12051_v52 = vpop.permute.xlu1 %12050  ;;  %12391 = vrcp.f32 %v5500_v62 }
0x3001   :  { %v12053_v34 = vunpack.i.h.bf16 %v12051_v52  ;;  %v12052_v25 = vunpack.i.l.bf16 %v12051_v52 }
0x3002   :  { %10922 = vmatprep.mubr.msk.f32.mxu0 %vm551_vm4, %v5103_v43 }
0x3003   :  { %v12388_v39 = vpop.eup %12387  ;;  %v12041_v55 = vpop.permute.xlu0 %12040  ;;  %10923 = vmatmul.mubr.msk.f32.vlgmr.msra.gmra.mrb[50].mxu0 %vm551_vm4, %v5104_v1  ;;  %v11603_v9 = vpack.c.bf16 %v12053_v34, %v12052_v25 }
0x3004   :  { %v12043_v18 = vunpack.i.h.bf16 %v12041_v55  ;;  %v12042_v51 = vunpack.i.l.bf16 %v12041_v55  ;;  %v5303_v16 = vmul.f32 %v12388_v39, %v12376_v36  ;;  %v13805_v39 = vmul.f32 0.35355338, %v13739_v59 }
0x3006   :  { %10936 = vmatprep.mubr.msk.f32.mxu0 %vm551_vm4, %v5303_v16  ;;  %v11589_v5 = vpack.c.bf16 %v12043_v18, %v12042_v51  ;;  %v12390_v57 = vpop.eup %12389 }
0x3007   :  { %v5304_v46 = vmul.f32 %v12390_v57, %v12378_v61  ;;  %v5595_v12 = vpop.permute.xlu0 %5594 }
0x3008   :  { %11590 = vmatprep.subr.bf16.mxu0 %v11589_v5 }
0x3009   :  { %11592 = vmatpush3.bf16.msra.mxu0 %v11589_v5 }
0x300a   :  { %11600 = vmatprep.subr.bf16.mxu0 %v11599_v33  ;;  %v12392_v32 = vpop.eup %12391 }
0x300b   :  { %v5504_v56 = vmul.f32 %v12392_v32, %v12380_v60 }
0x300c   :  { %10937 = vmatmul.mubr.msk.f32.vlgmr.msra.gmra.mrb[52].mxu0 %vm551_vm4, %v5304_v46 }
0x300d   :  { %11602 = vmatpush3.bf16.msra.mxu0 %v11599_v33 }
0x300e   :  { %11605 = vmatprep.subr.msk.bf16.mxu0 %vm12873_vm3, %v11603_v9 }
0x3031   :  { %v5497_v14 = vpop.xlane.xlu1 %5496 }
0x3032   :  { %12393 = vrcp.f32 %v5497_v14 }
0x3035   :  { %v5593_v47 = vpop.permute.xlu1 %5592 }
0x303c   :  { %v12394_v50 = vpop.eup %12393 }
0x303d   :  { %v5503_v38 = vmul.f32 %v12394_v50, %v12382_v40 }
0x303f   :  { %10950 = vmatprep.mubr.msk.f32.mxu0 %vm551_vm4, %v5503_v38 }
0x3040   :  { %10951 = vmatmul.mubr.msk.f32.vlgmr.msra.gmra.mrb[54].mxu0 %vm551_vm4, %v5504_v56 }
0x3041   :  { %11608 = vmatpush3.bf16.xpose.msk.msra.mxu0 %vm12873_vm3, %v11603_v9  ;;  %10957 = vmatprep.mubr.msk.f32.mxu0 %vm465_vm2, %v5593_v47 }
0x3048   :  { %10958 = vmatmul.mubr.msk.f32.vlgmr.msra.gmra.mrb[56].mxu0 %vm465_vm2, %v5595_v12 }
0x30d6   :  { %v13781_v7 = vpop.f32.mrb[50].mxu0 }
0x30d7   :  { %v13783_v63 = vpop.f32.mrb[51].mxu0 }
0x30df   :  { %v13785_v29 = vpop.f32.mrb[52].mxu0 }
0x30e0   :  { %v13787_v41 = vpop.f32.mrb[53].mxu0 }
0x3113   :  { %v13789_v23 = vpop.f32.mrb[54].mxu0 }
0x3114   :  { %v13791_v26 = vpop.f32.mrb[55].mxu0 }
0x311b   :  { %v10959_v17 = vpop.f32.mrb[56].mxu0 }
0x311c   :  { %v5674_v27 = vpop.f32.mrb[57].mxu0  ;;  %v5686_v19 = vsel %vm551_vm4, %v10959_v17, -inf }
0x311d   :  { %5687 = vmax.xlane.f32.xlu0 %v5686_v19  ;;  %v5683_v28 = vsel %vm551_vm4, %v5674_v27, -inf }
0x311e   :  { %5684 = vmax.xlane.f32.xlu1 %v5683_v28 }
0x312f   :  { %12055 = vrot.lane.b32.xlu1 %v13695_v13, %s14663_s29 }
0x31aa   :  { %v5688_v6 = vpop.xlane.xlu0 %5687 }
0x31ab   :  { %v5690_v30 = vsub.f32 %v10959_v17, %v5688_v6  ;;  %v5685_v53 = vpop.xlane.xlu1 %5684 }
0x31ac   :  { %v5689_v36 = vsub.f32 %v5674_v27, %v5685_v53 }
0x31ad   :  { %v5693_v3 = vmul.f32 1.442695, %v5690_v30 }
0x31ae   :  { %v5691_v61 = vmul.f32 1.442695, %v5689_v36 }
0x31af   :  { %12395 = vpow2.f32 %v5693_v3  ;;  %v12056_v37 = vpop.permute.xlu1 %12055 }
0x31b0   :  { %v12058_v60 = vunpack.i.h.bf16 %v12056_v37  ;;  %v12057_v22 = vunpack.i.l.bf16 %v12056_v37  ;;  %12397 = vpow2.f32 %v5691_v61 }
0x31b2   :  { %v11609_v15 = vpack.c.bf16 %v12058_v60, %v12057_v22 }
0x31b4   :  { %11610 = vmatprep.subr.bf16.mxu1 %v11609_v15 }
0x31b5   :  { %11612 = vmatpush3.bf16.msra.mxu1 %v11609_v15 }
0x31b9   :  { %v12396_v48 = vpop.eup %12395 }
0x31ba   :  { %v5698_v40 = vsel %vm551_vm4, %v12396_v48, 0.0  ;;  %v12398_v31 = vpop.eup %12397 }
0x31bb   :  { %5699 = vadd.xlane.f32.xlu0 %v5698_v40  ;;  %v5695_v13 = vsel %vm551_vm4, %v12398_v31, 0.0 }
0x31bf   :  { %5696 = vadd.xlane.f32.xlu0 %v5695_v13 }
0x31d5   :  { %12060 = vrot.lane.b32.xlu0 %v13743_v2, %s14668_s20 }
0x3248   :  { %v5700_v42 = vpop.xlane.xlu0 %5699 }
0x3249   :  { %12399 = vrcp.f32 %v5700_v42 }
0x324c   :  { %v5697_v35 = vpop.xlane.xlu0 %5696 }
0x324d   :  { %12401 = vrcp.f32 %v5697_v35 }
0x3250   :  { %v12061_v49 = vpop.permute.xlu0 %12060 }
0x3251   :  { %v12063_v58 = vunpack.i.h.bf16 %v12061_v49  ;;  %v12062_v44 = vunpack.i.l.bf16 %v12061_v49 }
0x3253   :  { %v11613_v21 = vpack.c.bf16 %v12063_v58, %v12062_v44  ;;  %v12400_v45 = vpop.eup %12399 }
0x3254   :  { %v5704_v1 = vmul.f32 %v12400_v45, %v12396_v48 }
0x3255   :  { %11615 = vmatprep.subr.msk.bf16.mxu1 %vm12873_vm3, %v11613_v21 }
0x3257   :  { %v12402_v62 = vpop.eup %12401 }
0x3258   :  { %v5703_v43 = vmul.f32 %v12402_v62, %v12398_v31 }
0x325a   :  { %10964 = vmatprep.mubr.msk.f32.mxu1 %vm551_vm4, %v5703_v43 }
0x325b   :  { %10965 = vmatmul.mubr.msk.f32.vlgmr.msra.gmra.mrb[60].mxu1 %vm551_vm4, %v5704_v1 }
0x325c   :  { %11618 = vmatpush3.bf16.xpose.msk.msra.mxu1 %vm12873_vm3, %v11613_v21  ;;  %10971 = vmatprep.mubr.msk.f32.mxu1 %vm465_vm2, %v13805_v39 }
0x3263   :  { %10972 = vmatmul.mubr.msk.f32.vlgmr.msra.gmra.mrb[62].mxu1 %vm465_vm2, %v13813_v4 }
0x332e   :  { %v13817_v55 = vpop.f32.mrb[60].mxu1 }
0x332f   :  { %v13819_v20 = vpop.f32.mrb[61].mxu1 }
0x3336   :  { %v10973_v59 = vpop.f32.mrb[62].mxu1 }
0x3337   :  { %v5906_v18 = vpop.f32.mrb[63].mxu1  ;;  %v5918_v51 = vsel %vm551_vm4, %v10973_v59, -inf }
0x3338   :  { %5919 = vmax.xlane.f32.xlu0 %v5918_v51  ;;  %v5915_v16 = vsel %vm551_vm4, %v5906_v18, -inf }
0x3339   :  { %5916 = vmax.xlane.f32.xlu1 %v5915_v16 }
0x334a   :  { %12065 = vrot.lane.b32.xlu1 %v13743_v2, %s14658_s3 }
0x334e   :  { %6024 = vrot.lane.b32.xlu1 %v13805_v39, %s14655_s8 }
0x33c5   :  { %v5920_v54 = vpop.xlane.xlu0 %5919 }
0x33c6   :  { %v5922_v52 = vsub.f32 %v10973_v59, %v5920_v54  ;;  %v5917_v5 = vpop.xlane.xlu1 %5916 }
0x33c7   :  { %v5921_v57 = vsub.f32 %v5906_v18, %v5917_v5 }
0x33c8   :  { %v5925_v34 = vmul.f32 1.442695, %v5922_v52 }
0x33c9   :  { %v5923_v25 = vmul.f32 1.442695, %v5921_v57 }
0x33ca   :  { %12403 = vpow2.f32 %v5925_v34  ;;  %v12066_v33 = vpop.permute.xlu1 %12065 }
0x33cb   :  { %12405 = vpow2.f32 %v5923_v25  ;;  %v12068_v46 = vunpack.i.h.bf16 %v12066_v33  ;;  %v12067_v9 = vunpack.i.l.bf16 %v12066_v33 }
0x33cd   :  { %v11619_v14 = vpack.c.bf16 %v12068_v46, %v12067_v9 }
0x33ce   :  { %v6025_v47 = vpop.permute.xlu1 %6024 }
0x33cf   :  { %11620 = vmatprep.subr.bf16.mxu0 %v11619_v14 }
0x33d0   :  { %11622 = vmatpush3.bf16.msra.mxu0 %v11619_v14 }
0x33d4   :  { %v12404_v32 = vpop.eup %12403 }
0x33d5   :  { %v12406_v50 = vpop.eup %12405  ;;  %v5930_v38 = vsel %vm551_vm4, %v12404_v32, 0.0 }
0x33d6   :  { %5931 = vadd.xlane.f32.xlu0 %v5930_v38  ;;  %v5927_v56 = vsel %vm551_vm4, %v12406_v50, 0.0 }
0x33d7   :  { %5928 = vadd.xlane.f32.xlu1 %v5927_v56 }
0x33e8   :  { %6026 = vrot.lane.b32.xlu1 %v13813_v4, %s14655_s8 }
0x33ec   :  { %12070 = vrot.lane.b32.xlu0 %v13743_v2, %s14664_s7 }
0x3463   :  { %v5932_v12 = vpop.xlane.xlu0 %5931 }
0x3464   :  { %12407 = vrcp.f32 %v5932_v12  ;;  %v5929_v17 = vpop.xlane.xlu1 %5928 }
0x3465   :  { %12409 = vrcp.f32 %v5929_v17 }
0x3467   :  { %v12071_v27 = vpop.permute.xlu0 %12070 }
0x3468   :  { %v12073_v19 = vunpack.i.h.bf16 %v12071_v27  ;;  %v12072_v28 = vunpack.i.l.bf16 %v12071_v27  ;;  %v6027_v61 = vpop.permute.xlu1 %6026 }
0x346a   :  { %v11623_v6 = vpack.c.bf16 %v12073_v19, %v12072_v28 }
0x346c   :  { %11625 = vmatprep.subr.msk.bf16.mxu0 %vm12873_vm3, %v11623_v6 }
0x346e   :  { %v12408_v30 = vpop.eup %12407 }
0x346f   :  { %v12410_v53 = vpop.eup %12409  ;;  %v5936_v3 = vmul.f32 %v12408_v30, %v12404_v32 }
0x3470   :  { %v5935_v36 = vmul.f32 %v12410_v53, %v12406_v50 }
0x3472   :  { %10978 = vmatprep.mubr.msk.f32.mxu0 %vm551_vm4, %v5935_v36 }
0x3473   :  { %10979 = vmatmul.mubr.msk.f32.vlgmr.msra.gmra.mrb[58].mxu0 %vm551_vm4, %v5936_v3 }
0x3474   :  { %11628 = vmatpush3.bf16.xpose.msk.msra.mxu0 %vm12873_vm3, %v11623_v6  ;;  %10985 = vmatprep.mubr.msk.f32.mxu0 %vm465_vm2, %v6025_v47 }
0x347b   :  { %10986 = vmatmul.mubr.msk.f32.vlgmr.msra.gmra.mrb[60].mxu0 %vm465_vm2, %v6027_v61 }
0x3546   :  { %v13841_v37 = vpop.f32.mrb[58].mxu0 }
0x3547   :  { %v13843_v60 = vpop.f32.mrb[59].mxu0 }
0x354e   :  { %v10987_v22 = vpop.f32.mrb[60].mxu0 }
0x354f   :  { %v6106_v15 = vpop.f32.mrb[61].mxu0  ;;  %v6118_v48 = vsel %vm551_vm4, %v10987_v22, -inf }
0x3550   :  { %6119 = vmax.xlane.f32.xlu0 %v6118_v48  ;;  %v6115_v40 = vsel %vm551_vm4, %v6106_v15, -inf }
0x3551   :  { %6116 = vmax.xlane.f32.xlu1 %v6115_v40 }
0x3562   :  { %12075 = vrot.lane.b32.xlu1 %v13743_v2, %s14661_s11 }
0x3566   :  { %6224 = vrot.lane.b32.xlu1 %v13805_v39, %s14657_s27 }
0x356a   :  { %6226 = vrot.lane.b32.xlu1 %v13813_v4, %s14657_s27 }
0x35dd   :  { %v6120_v31 = vpop.xlane.xlu0 %6119 }
0x35de   :  { %v6122_v13 = vsub.f32 %v10987_v22, %v6120_v31  ;;  %v6117_v42 = vpop.xlane.xlu1 %6116 }
0x35df   :  { %v6121_v35 = vsub.f32 %v6106_v15, %v6117_v42 }
0x35e0   :  { %v6125_v49 = vmul.f32 1.442695, %v6122_v13 }
0x35e1   :  { %v6123_v58 = vmul.f32 1.442695, %v6121_v35 }
0x35e2   :  { %12411 = vpow2.f32 %v6125_v49  ;;  %v12076_v44 = vpop.permute.xlu1 %12075 }
0x35e3   :  { %v12078_v21 = vunpack.i.h.bf16 %v12076_v44  ;;  %v12077_v45 = vunpack.i.l.bf16 %v12076_v44  ;;  %12413 = vpow2.f32 %v6123_v58 }
0x35e5   :  { %v11629_v62 = vpack.c.bf16 %v12078_v21, %v12077_v45 }
0x35e6   :  { %v6225_v9 = vpop.permute.xlu1 %6224 }
0x35e7   :  { %11630 = vmatprep.subr.bf16.mxu1 %v11629_v62 }
0x35e8   :  { %11632 = vmatpush3.bf16.msra.mxu1 %v11629_v62 }
0x35ea   :  { %v6227_v14 = vpop.permute.xlu1 %6226 }
0x35ec   :  { %v12412_v43 = vpop.eup %12411 }
0x35ed   :  { %v6130_v1 = vsel %vm551_vm4, %v12412_v43, 0.0  ;;  %v12414_v59 = vpop.eup %12413 }
0x35ee   :  { %6131 = vadd.xlane.f32.xlu0 %v6130_v1  ;;  %v6127_v18 = vsel %vm551_vm4, %v12414_v59, 0.0 }
0x35f2   :  { %6128 = vadd.xlane.f32.xlu0 %v6127_v18 }
0x3608   :  { %12080 = vrot.lane.b32.xlu0 %v13743_v2, %s14656_s0 }
0x367b   :  { %v6132_v51 = vpop.xlane.xlu0 %6131 }
0x367c   :  { %12415 = vrcp.f32 %v6132_v51 }
0x367f   :  { %v6129_v16 = vpop.xlane.xlu0 %6128 }
0x3680   :  { %12417 = vrcp.f32 %v6129_v16 }
0x3683   :  { %v12081_v54 = vpop.permute.xlu0 %12080 }
0x3684   :  { %v12083_v52 = vunpack.i.h.bf16 %v12081_v54  ;;  %v12082_v5 = vunpack.i.l.bf16 %v12081_v54 }
0x3686   :  { %v11633_v57 = vpack.c.bf16 %v12083_v52, %v12082_v5  ;;  %v12416_v34 = vpop.eup %12415 }
0x3687   :  { %v6136_v46 = vmul.f32 %v12416_v34, %v12412_v43 }
0x3688   :  { %11635 = vmatprep.subr.msk.bf16.mxu1 %vm12873_vm3, %v11633_v57 }
0x368a   :  { %v12418_v25 = vpop.eup %12417 }
0x368b   :  { %v6135_v33 = vmul.f32 %v12418_v25, %v12414_v59 }
0x368d   :  { %10992 = vmatprep.mubr.msk.f32.mxu1 %vm551_vm4, %v6135_v33 }
0x368e   :  { %10993 = vmatmul.mubr.msk.f32.vlgmr.msra.gmra.mrb[64].mxu1 %vm551_vm4, %v6136_v46 }
0x368f   :  { %11638 = vmatpush3.bf16.xpose.msk.msra.mxu1 %vm12873_vm3, %v11633_v57  ;;  %10999 = vmatprep.mubr.msk.f32.mxu1 %vm465_vm2, %v6225_v9 }
0x3696   :  { %11000 = vmatmul.mubr.msk.f32.vlgmr.msra.gmra.mrb[66].mxu1 %vm465_vm2, %v6227_v14  ;;  %v9937_v14 = vld [vmem:[%s14669_s19 + $0x40] sm:$0xff] }
0x3761   :  { %v13865_v32 = vpop.f32.mrb[64].mxu1 }
0x3762   :  { %v13867_v50 = vpop.f32.mrb[65].mxu1 }
0x3769   :  { %v11001_v38 = vpop.f32.mrb[66].mxu1 }
0x376a   :  { %v6306_v56 = vpop.f32.mrb[67].mxu1  ;;  %v6318_v47 = vsel %vm551_vm4, %v11001_v38, -inf }
0x376b   :  { %6319 = vmax.xlane.f32.xlu0 %v6318_v47  ;;  %v6315_v12 = vsel %vm551_vm4, %v6306_v56, -inf }
0x376c   :  { %6316 = vmax.xlane.f32.xlu1 %v6315_v12 }
0x377d   :  { %12085 = vrot.lane.b32.xlu1 %v13743_v2, %s14659_s10 }
0x3781   :  { %6424 = vrot.lane.b32.xlu1 %v13805_v39, %s14662_s9 }
0x3785   :  { %6426 = vrot.lane.b32.xlu1 %v13813_v4, %s14662_s9 }
0x37f8   :  { %v6320_v17 = vpop.xlane.xlu0 %6319 }
0x37f9   :  { %v6322_v27 = vsub.f32 %v11001_v38, %v6320_v17  ;;  %v6317_v19 = vpop.xlane.xlu1 %6316 }
0x37fa   :  { %v6321_v28 = vsub.f32 %v6306_v56, %v6317_v19  ;;  %v9939_v19 = vld [vmem:[%s14669_s19 + $0x50] sm:$0xff] }
0x37fb   :  { %v6325_v6 = vmul.f32 1.442695, %v6322_v27 }
0x37fc   :  { %v6323_v30 = vmul.f32 1.442695, %v6321_v28 }
0x37fd   :  { %12419 = vpow2.f32 %v6325_v6  ;;  %v12086_v53 = vpop.permute.xlu1 %12085 }
0x37fe   :  { %v12088_v36 = vunpack.i.h.bf16 %v12086_v53  ;;  %v12087_v3 = vunpack.i.l.bf16 %v12086_v53  ;;  %12421 = vpow2.f32 %v6323_v30 }
0x3800   :  { %v11639_v61 = vpack.c.bf16 %v12088_v36, %v12087_v3 }
0x3801   :  { %v6425_v45 = vpop.permute.xlu1 %6424 }
0x3802   :  { %11640 = vmatprep.subr.bf16.mxu0 %v11639_v61 }
0x3803   :  { %11642 = vmatpush3.bf16.msra.mxu0 %v11639_v61 }
0x3805   :  { %v6427_v62 = vpop.permute.xlu1 %6426 }
0x3807   :  { %v12420_v22 = vpop.eup %12419 }
0x3808   :  { %v6330_v39 = vsel %vm551_vm4, %v12420_v22, 0.0  ;;  %v12422_v15 = vpop.eup %12421 }
0x3809   :  { %6331 = vadd.xlane.f32.xlu0 %v6330_v39  ;;  %v6327_v4 = vsel %vm551_vm4, %v12422_v15, 0.0 }
0x380d   :  { %6328 = vadd.xlane.f32.xlu0 %v6327_v4 }
0x3823   :  { %12090 = vrot.lane.b32.xlu0 %v13743_v2, %s14660_s30 }
0x3896   :  { %v6332_v48 = vpop.xlane.xlu0 %6331 }
0x3897   :  { %12423 = vrcp.f32 %v6332_v48 }
0x389a   :  { %v6329_v40 = vpop.xlane.xlu0 %6328 }
0x389b   :  { %12425 = vrcp.f32 %v6329_v40 }
0x389e   :  { %v12091_v31 = vpop.permute.xlu0 %12090 }
0x389f   :  { %v12093_v13 = vunpack.i.h.bf16 %v12091_v31  ;;  %v12092_v42 = vunpack.i.l.bf16 %v12091_v31 }
0x38a1   :  { %v11643_v35 = vpack.c.bf16 %v12093_v13, %v12092_v42  ;;  %v12424_v49 = vpop.eup %12423  ;;  %v9941_v42 = vld [vmem:[%s14670_s4 + $0x2] ss:$0 sm:$0xff]  ;;  %s14674_s4 = sld [smem:[#allocation14_spill]] }
0x38a2   :  { %v6336_v21 = vmul.f32 %v12424_v49, %v12420_v22 }
0x38a3   :  { %11645 = vmatprep.subr.msk.bf16.mxu0 %vm12873_vm3, %v11643_v35 }
0x38a5   :  { %v12426_v58 = vpop.eup %12425 }
0x38a6   :  { %v6335_v44 = vmul.f32 %v12426_v58, %v12422_v15 }
0x38a8   :  { %11006 = vmatprep.mubr.msk.f32.mxu0 %vm551_vm4, %v6335_v44 }
0x38a9   :  { %11007 = vmatmul.mubr.msk.f32.vlgmr.msra.gmra.mrb[62].mxu0 %vm551_vm4, %v6336_v21 }
0x38aa   :  { %11648 = vmatpush3.bf16.xpose.msk.msra.mxu0 %vm12873_vm3, %v11643_v35  ;;  %11013 = vmatprep.mubr.msk.f32.mxu0 %vm465_vm2, %v6425_v45 }
0x38b1   :  { %11014 = vmatmul.mubr.msk.f32.vlgmr.msra.gmra.mrb[64].mxu0 %vm465_vm2, %v6427_v62 }
0x397c   :  { %v11008_v43 = vpop.f32.mrb[62].mxu0 }
0x397d   :  { %v6415_v1 = vpop.f32.mrb[63].mxu0 }
0x3984   :  { %v11015_v59 = vpop.f32.mrb[64].mxu0 }
0x3985   :  { %v6506_v18 = vpop.f32.mrb[65].mxu0  ;;  %v6518_v51 = vsel %vm551_vm4, %v11015_v59, -inf }
0x3986   :  { %6519 = vmax.xlane.f32.xlu0 %v6518_v51  ;;  %v6515_v16 = vsel %vm551_vm4, %v6506_v18, -inf }
0x3987   :  { %6516 = vmax.xlane.f32.xlu1 %v6515_v16 }
0x3998   :  { %12095 = vrot.lane.b32.xlu1 %v13743_v2, %s14663_s29 }
0x399c   :  { %5796 = vrot.lane.b32.xlu1 %v13785_v29, %s14665_s26 }
0x39a0   :  { %5802 = vrot.lane.b32.xlu1 %v13791_v26, %s14666_s25 }
0x39a4   :  { %5804 = vrot.lane.b32.xlu1 %v13789_v23, %s14666_s25 }
0x39a8   :  { %5812 = vrot.lane.b32.xlu1 %v13817_v55, %s14667_s24 }
0x39ac   :  { %6628 = vrot.lane.b32.xlu1 %v13865_v32, %s14665_s26  ;;  %v9938_v32 = vld [vmem:[%s14669_s19 + $0x48] sm:$0xff] }
0x39ad   :  { %v11653_v38 = vpack.c.bf16 %v9938_v32, %v9937_v14  ;;  %v9951_v14 = vld [vmem:[%s14564_s14 + $0x58] sm:$0xff] }
0x39b0   :  { %6636 = vrot.lane.b32.xlu1 %v11008_v43, %s14666_s25 }
0x3a13   :  { %v6520_v54 = vpop.xlane.xlu0 %6519 }
0x3a14   :  { %v6522_v52 = vsub.f32 %v11015_v59, %v6520_v54  ;;  %v6517_v2 = vpop.xlane.xlu1 %6516 }
0x3a15   :  { %v6521_v5 = vsub.f32 %v6506_v18, %v6517_v2 }
0x3a16   :  { %v6525_v57 = vmul.f32 1.442695, %v6522_v52 }
0x3a17   :  { %v6523_v29 = vmul.f32 1.442695, %v6521_v5 }
0x3a18   :  { %12427 = vpow2.f32 %v6525_v57  ;;  %v12096_v34 = vpop.permute.xlu1 %12095 }
0x3a19   :  { %v12098_v26 = vunpack.i.h.bf16 %v12096_v34  ;;  %v12097_v25 = vunpack.i.l.bf16 %v12096_v34  ;;  %12429 = vpow2.f32 %v6523_v29 }
0x3a1b   :  { %v11649_v23 = vpack.c.bf16 %v12098_v26, %v12097_v25 }
0x3a1c   :  { %v5797_v47 = vpop.permute.xlu1 %5796 }
0x3a1d   :  { %11650 = vmatprep.subr.bf16.mxu1 %v11649_v23 }
0x3a1e   :  { %11652 = vmatpush3.bf16.msra.mxu1 %v11649_v23 }
0x3a1f   :  { %11654 = vmatprep.subr.bf16.mxu1 %v11653_v38 }
0x3a20   :  { %v5803_v17 = vpop.permute.xlu1 %5802 }
0x3a22   :  { %v12428_v55 = vpop.eup %12427 }
0x3a23   :  { %v6530_v33 = vsel %vm551_vm4, %v12428_v55, 0.0  ;;  %v12430_v46 = vpop.eup %12429 }
0x3a24   :  { %6531 = vadd.xlane.f32.xlu0 %v6530_v33  ;;  %v6527_v9 = vsel %vm551_vm4, %v12430_v46, 0.0  ;;  %v5805_v53 = vpop.permute.xlu1 %5804  ;;  %v9949_v33 = vld [vmem:[%s14564_s14 + $0x48] sm:$0xff] }
0x3a28   :  { %6528 = vadd.xlane.f32.xlu0 %v6527_v9  ;;  %v5813_v39 = vpop.permute.xlu1 %5812  ;;  %v9950_v9 = vld [vmem:[%s14564_s14 + $0x50] sm:$0xff] }
0x3a29   :  { %v11665_v32 = vpack.c.bf16 %v9951_v14, %v9950_v9 }
0x3a2c   :  { %v6629_v45 = vpop.permute.xlu1 %6628 }
0x3a30   :  { %v6637_v43 = vpop.permute.xlu1 %6636 }
0x3a3e   :  { %5794 = vrot.lane.b32.xlu0 %v13787_v41, %s14665_s26 }
0x3a42   :  { %5810 = vrot.lane.b32.xlu0 %v13819_v20, %s14667_s24  ;;  %v9940_v20 = vld [vmem:[%s14669_s19 + $0x58] sm:$0xff] }
0x3a43   :  { %v11657_v3 = vpack.c.bf16 %v9940_v20, %v9939_v19 }
0x3a46   :  { %6626 = vrot.lane.b32.xlu0 %v13867_v50, %s14665_s26 }
0x3a4a   :  { %6634 = vrot.lane.b32.xlu0 %v6415_v1, %s14666_s25 }
0x3ab1   :  { %v6532_v56 = vpop.xlane.xlu0 %6531 }
0x3ab2   :  { %12431 = vrcp.f32 %v6532_v56 }
0x3ab5   :  { %v6529_v41 = vpop.xlane.xlu0 %6528 }
0x3ab6   :  { %12433 = vrcp.f32 %v6529_v41 }
0x3ab9   :  { %v5795_v12 = vpop.permute.xlu0 %5794 }
0x3aba   :  { %v5816_v50 = vsel %vm465_vm2, %v13783_v63, %v5795_v12  ;;  %v5817_v63 = vsel %vm465_vm2, %v13781_v7, %v5797_v47 }
0x3abb   :  { %v5818_v61 = vsel %vm551_vm4, %v5816_v50, %v5803_v17  ;;  %v5819_v15 = vsel %vm551_vm4, %v5817_v63, %v5805_v53 }
0x3abc   :  { %v12432_v27 = vpop.eup %12431  ;;  %v5821_v4 = vsel %vm1289_vm5, %v5819_v15, %v5813_v39 }
0x3abd   :  { %v5811_v6 = vpop.permute.xlu0 %5810  ;;  %v6536_v36 = vmul.f32 %v12432_v27, %v12428_v55  ;;  %v9948_v55 = vld [vmem:[%s14564_s14 + $0x40] sm:$0xff] }
0x3abe   :  { %v5820_v22 = vsel %vm1289_vm5, %v5818_v61, %v5811_v6 }
0x3ac0   :  { %v12434_v28 = vpop.eup %12433 }
0x3ac1   :  { %v6535_v30 = vmul.f32 %v12434_v28, %v12430_v46  ;;  %v6627_v62 = vpop.permute.xlu0 %6626  ;;  %v11661_v46 = vpack.c.bf16 %v9949_v33, %v9948_v55 }
0x3ac2   :  { %v6648_v59 = vsel %vm465_vm2, %v13843_v60, %v6627_v62  ;;  %v9964_v62 = vld [vmem:[%s14567_s16 + $0xb8] sm:$0xff] }
0x3ac3   :  { %11020 = vmatprep.mubr.msk.f32.mxu1 %vm551_vm4, %v6535_v30  ;;  %11662 = vmatprep.subr.bf16.mxu0 %v11661_v46 }
0x3ac4   :  { %11021 = vmatmul.mubr.msk.f32.vlgmr.msra.gmra.mrb[68].mxu1 %vm551_vm4, %v6536_v36  ;;  %11664 = vmatpush3.bf16.msra.mxu0 %v11661_v46 }
0x3ac5   :  { %11656 = vmatpush3.bf16.msra.mxu1 %v11653_v38  ;;  %11031 = vmatprep.mubr.msk.f32.mxu1 %vm206_vm1, %v5820_v22  ;;  %v6635_v1 = vpop.permute.xlu0 %6634 }
0x3ac6   :  { %11658 = vmatprep.subr.bf16.mxu1 %v11657_v3  ;;  %v6650_v18 = vsel %vm551_vm4, %v6648_v59, %v6635_v1  ;;  %11666 = vmatprep.subr.bf16.mxu0 %v11665_v32 }
0x3ac8   :  { %11668 = vmatpush3.bf16.msra.mxu0 %v11665_v32 }
0x3ac9   :  { %11660 = vmatpush3.bf16.msra.mxu1 %v11657_v3  ;;  %v13991_v3 = vld [vmem:[%s14565_s12 + $0x2] ss:$0 sm:$0xff] }
0x3acc   :  { %11032 = vmatmul.mubr.msk.f32.vlgmr.msra.gmra.mrb[70].mxu1 %vm206_vm1, %v5821_v4 }
0x3b97   :  { %v11022_v48 = vpop.f32.mrb[68].mxu1 }
0x3b98   :  { %6644 = vrot.lane.b32.xlu1 %v11022_v48, %s14667_s24  ;;  %v6615_v40 = vpop.f32.mrb[69].mxu1  ;;  %v9957_v48 = vld [vmem:[%s14567_s16 + $0x80] sm:$0xff] }
0x3b99   :  { %6642 = vrot.lane.b32.xlu0 %v6615_v40, %s14667_s24  ;;  %v9958_v40 = vld [vmem:[%s14567_s16 + $0x88] sm:$0xff] }
0x3b9f   :  { %v11033_v31 = vpop.f32.mrb[70].mxu1 }
0x3ba0   :  { %v6742_v13 = vpop.f32.mrb[71].mxu1  ;;  %v6748_v35 = vadd.f32 %v11033_v31, %v9941_v42  ;;  %v11669_v31 = vpack.c.bf16 %v9958_v40, %v9957_v48 }
0x3ba1   :  { %v6743_v7 = vadd.f32 %v9941_v42, %v6742_v13  ;;  %v9959_v13 = vld [vmem:[%s14567_s16 + $0x90] sm:$0xff] }
0x3ba2   :  { %v13946_v58 = vadd.f32 %v6748_v35, %v13642_v8  ;;  %v6649_v8 = vsel %vm465_vm2, %v13841_v37, %v6629_v45  ;;  %11670 = vmatprep.subr.bf16.mxu1 %v11669_v31  ;;  %v9961_v35 = vld [vmem:[%s14567_s16 + $0xa0] sm:$0xff]  ;;  %v9963_v45 = vld [vmem:[%s14567_s16 + $0xb0] sm:$0xff] }
0x3ba3   :  { %v13943_v49 = vadd.f32 %v6743_v7, %v13645_v10  ;;  %v6651_v16 = vsel %vm551_vm4, %v6649_v8, %v6637_v43  ;;  %11672 = vmatpush3.bf16.msra.mxu1 %v11669_v31  ;;  %v11681_v43 = vpack.c.bf16 %v9964_v62, %v9963_v45 }
0x3ba4   :  { %v6770_v21 = vsel %vm206_vm1, %v13946_v58, 0.0 }
0x3ba5   :  { %v6767_v44 = vsel %vm206_vm1, %v13943_v49, 0.0 }
0x3bb8   :  { %6768 = vadd.xlane.f32.xlu0 %v6767_v44  ;;  %v9962_v44 = vld [vmem:[%s14567_s16 + $0xa8] sm:$0xff] }
0x3bbc   :  { %6771 = vadd.xlane.f32.xlu1 %v6770_v21  ;;  %v11677_v21 = vpack.c.bf16 %v9962_v44, %v9961_v35 }
0x3c0a   :  { %v6645_v10 = vpop.permute.xlu1 %6644 }
0x3c0b   :  { %v6643_v51 = vpop.permute.xlu0 %6642  ;;  %v6653_v52 = vsel %vm1289_vm5, %v6651_v16, %v6645_v10 }
0x3c0c   :  { %v6652_v54 = vsel %vm1289_vm5, %v6650_v18, %v6643_v51 }
0x3c0d   :  { %11034 = vmatprep.mubr.msk.f32.mxu1 %vm206_vm1, %v6652_v54 }
0x3c0e   :  { %11035 = vmatmul.mubr.msk.f32.gmra.mrb[72].mxu1 %vm206_vm1, %v6653_v52 }
0x3c45   :  { %v6769_v2 = vpop.xlane.xlu0 %6768 }
0x3c46   :  { %v6779_v5 = vmul.f32 0.03125, %v6769_v2 }
0x3c48   :  { %v6783_v60 = vsub.f32 %v13943_v49, %v6779_v5  ;;  %v9952_v5 = vld [vmem:[%s14568_s15 + $0x2] ss:$0 sm:$0xff] }
0x3c49   :  { %v6772_v57 = vpop.xlane.xlu1 %6771 }
0x3c4a   :  { %v6780_v29 = vmul.f32 0.03125, %v6772_v57  ;;  %v6787_v37 = vmul.f32 %v6783_v60, %v6783_v60 }
0x3c4c   :  { %v6784_v34 = vsub.f32 %v13946_v58, %v6780_v29  ;;  %v6791_v26 = vsel %vm206_vm1, %v6787_v37, 0.0 }
0x3c4d   :  { %6792 = vadd.xlane.f32.xlu0 %v6791_v26 }
0x3c4e   :  { %v6788_v25 = vmul.f32 %v6784_v34, %v6784_v34 }
0x3c50   :  { %v6794_v23 = vsel %vm206_vm1, %v6788_v25, 0.0 }
0x3c51   :  { %6795 = vadd.xlane.f32.xlu0 %v6794_v23 }
0x3cda   :  { %v6793_v38 = vpop.xlane.xlu0 %6792 }
0x3cdb   :  { %v6803_v56 = vmul.f32 0.03125, %v6793_v38 }
0x3cdd   :  { %v6807_v41 = vadd.f32 1e-05, %v6803_v56 }
0x3cde   :  { %v6796_v47 = vpop.xlane.xlu0 %6795 }
0x3cdf   :  { %12435 = vrsqrt.f32 %v6807_v41  ;;  %v6804_v12 = vmul.f32 0.03125, %v6796_v47 }
0x3ce1   :  { %v6808_v17 = vadd.f32 1e-05, %v6804_v12  ;;  %v11036_v27 = vpop.f32.mrb[72].mxu1 }
0x3ce2   :  { %v6758_v19 = vadd.f32 %v11036_v27, %v9941_v42  ;;  %v6752_v20 = vpop.f32.mrb[73].mxu1 }
0x3ce3   :  { %12437 = vrsqrt.f32 %v6808_v17  ;;  %v6753_v28 = vadd.f32 %v9941_v42, %v6752_v20  ;;  %v9960_v42 = vld [vmem:[%s14567_s16 + $0x98] sm:$0xff] }
0x3ce4   :  { %v13979_v50 = vadd.f32 %v6758_v19, %v13674_v11  ;;  %v13996_v11 = vld [vmem:[%s14566_s13 + $0x2] ss:$0 sm:$0xff]  ;;  %v11673_v7 = vpack.c.bf16 %v9960_v42, %v9959_v13 }
0x3ce5   :  { %v13982_v6 = vadd.f32 %v6753_v28, %v13677_v0 }
0x3ce6   :  { %v6776_v30 = vsel %vm206_vm1, %v13979_v50, 0.0  ;;  %11674 = vmatprep.subr.bf16.mxu1 %v11673_v7 }
0x3ce7   :  { %6777 = vadd.xlane.f32.xlu1 %v6776_v30  ;;  %v6773_v53 = vsel %vm206_vm1, %v13982_v6, 0.0  ;;  %11676 = vmatpush3.bf16.msra.mxu1 %v11673_v7 }
0x3ce8   :  { %6774 = vadd.xlane.f32.xlu0 %v6773_v53  ;;  %11678 = vmatprep.subr.bf16.mxu1 %v11677_v21 }
0x3ce9   :  { %v12436_v36 = vpop.eup %12435 }
0x3cea   :  { %v6815_v61 = vmul.f32 %v12436_v36, %v6783_v60 }
0x3ceb   :  { %11680 = vmatpush3.bf16.msra.mxu1 %v11677_v21 }
0x3cec   :  { %v6823_v0 = vmul.f32 %v13991_v3, %v6815_v61  ;;  %11682 = vmatprep.subr.bf16.mxu1 %v11681_v43 }
0x3ced   :  { %v12438_v22 = vpop.eup %12437 }
0x3cee   :  { %v6816_v39 = vmul.f32 %v12438_v22, %v6784_v34  ;;  %v6831_v63 = vadd.f32 %v13996_v11, %v6823_v0  ;;  %v14046_v22 = vld [vmem:[%s14569_s17 + $0x2] ss:$0 sm:$0xff] }
0x3cef   :  { %11684 = vmatpush3.bf16.msra.mxu1 %v11681_v43 }
0x3cf0   :  { %11045 = vmatprep.mubr.msk.f32.mxu0 %vm206_vm1, %v6831_v63  ;;  %v6824_v15 = vmul.f32 %v13991_v3, %v6816_v39 }
0x3cf2   :  { %v6832_v4 = vadd.f32 %v13996_v11, %v6824_v15 }
0x3cf4   :  { %11046 = vmatmul.mubr.msk.f32.vlgmr.msra.gmra.mrb[66].mxu0 %vm206_vm1, %v6832_v4 }
0x3d74   :  { %v6778_v1 = vpop.xlane.xlu1 %6777 }
0x3d75   :  { %v6782_v59 = vmul.f32 0.03125, %v6778_v1  ;;  %v6775_v10 = vpop.xlane.xlu0 %6774 }
0x3d76   :  { %v6781_v8 = vmul.f32 0.03125, %v6775_v10 }
0x3d77   :  { %v6786_v18 = vsub.f32 %v13979_v50, %v6782_v59 }
0x3d78   :  { %v6785_v51 = vsub.f32 %v13982_v6, %v6781_v8 }
0x3d79   :  { %v6790_v16 = vmul.f32 %v6786_v18, %v6786_v18 }
0x3d7a   :  { %v6789_v54 = vmul.f32 %v6785_v51, %v6785_v51 }
0x3d7b   :  { %v6800_v52 = vsel %vm206_vm1, %v6790_v16, 0.0 }
0x3d7c   :  { %6801 = vadd.xlane.f32.xlu1 %v6800_v52  ;;  %v6797_v2 = vsel %vm206_vm1, %v6789_v54, 0.0 }
0x3d7d   :  { %6798 = vadd.xlane.f32.xlu0 %v6797_v2 }
0x3dc7   :  { %v11047_v60 = vpop.f32.mrb[66].mxu0 }
0x3dc8   :  { %v6929_v57 = vadd.f32 %v11047_v60, %v9952_v5  ;;  %v6923_v29 = vpop.f32.mrb[67].mxu0  ;;  %v9972_v60 = vld [vmem:[%s14648_s1 + $0x60] sm:$0xff] }
0x3dc9   :  { %v6924_v37 = vadd.f32 %v9952_v5, %v6923_v29 }
0x3dca   :  { %v6947_v34 = vmul.f32 0.70710677, %v6929_v57  ;;  %v6943_v9 = vmul.f32 0.5, %v6929_v57  ;;  %v9973_v57 = vld [vmem:[%s14648_s1 + $0x68] sm:$0xff] }
0x3dcb   :  { %v6946_v26 = vmul.f32 0.70710677, %v6924_v37  ;;  %v6942_v33 = vmul.f32 0.5, %v6924_v37  ;;  %v11685_v29 = vpack.c.bf16 %v9973_v57, %v9972_v60  ;;  %v9974_v37 = vld [vmem:[%s14648_s1 + $0x70] sm:$0xff] }
0x3dcc   :  { %12439 = verf.f32 %v6947_v34  ;;  %v9975_v34 = vld [vmem:[%s14648_s1 + $0x78] sm:$0xff] }
0x3dcd   :  { %12441 = verf.f32 %v6946_v26  ;;  %11686 = vmatprep.subr.bf16.mxu0 %v11685_v29  ;;  %v11689_v26 = vpack.c.bf16 %v9975_v34, %v9974_v37 }
0x3dce   :  { %11688 = vmatpush3.bf16.msra.mxu0 %v11685_v29 }
0x3dcf   :  { %11690 = vmatprep.subr.bf16.mxu0 %v11689_v26 }
0x3dd2   :  { %11692 = vmatpush3.bf16.msra.mxu0 %v11689_v26 }
0x3dd6   :  { %v12440_v25 = vpop.eup %12439 }
0x3dd7   :  { %v12442_v23 = vpop.eup %12441  ;;  %v6955_v55 = vadd.f32 1.0, %v12440_v25 }
0x3dd8   :  { %v6954_v46 = vadd.f32 1.0, %v12442_v23 }
0x3dd9   :  { %v6959_v32 = vmul.f32 %v6955_v55, %v6943_v9 }
0x3dda   :  { %v6958_v14 = vmul.f32 %v6954_v46, %v6942_v33 }
0x3ddc   :  { %11067 = vmatprep.mubr.msk.f32.mxu1 %vm2438_vm6, %v6958_v14 }
0x3ddd   :  { %11068 = vmatmul.mubr.msk.f32.vlgmr.msra.gmra.mrb[74].mxu1 %vm2438_vm6, %v6959_v32 }
0x3e09   :  { %v6802_v38 = vpop.xlane.xlu1 %6801 }
0x3e0a   :  { %v6806_v56 = vmul.f32 0.03125, %v6802_v38  ;;  %v6799_v41 = vpop.xlane.xlu0 %6798 }
0x3e0b   :  { %v6805_v47 = vmul.f32 0.03125, %v6799_v41 }
0x3e0c   :  { %v6810_v12 = vadd.f32 1e-05, %v6806_v56 }
0x3e0d   :  { %v6809_v17 = vadd.f32 1e-05, %v6805_v47 }
0x3e0e   :  { %12443 = vrsqrt.f32 %v6810_v12 }
0x3e0f   :  { %12445 = vrsqrt.f32 %v6809_v17 }
0x3e18   :  { %v12444_v27 = vpop.eup %12443 }
0x3e19   :  { %v12446_v19 = vpop.eup %12445  ;;  %v6818_v20 = vmul.f32 %v12444_v27, %v6786_v18 }
0x3e1a   :  { %v6817_v28 = vmul.f32 %v12446_v19, %v6785_v51 }
0x3e1b   :  { %v6826_v30 = vmul.f32 %v13991_v3, %v6818_v20 }
0x3e1c   :  { %v6825_v53 = vmul.f32 %v13991_v3, %v6817_v28  ;;  %v9971_v28 = vld [vmem:[%s14650_s6 + $0x3] ss:$0 sm:$0xff] }
0x3e1d   :  { %v6834_v61 = vadd.f32 %v13996_v11, %v6826_v30 }
0x3e1e   :  { %v6833_v36 = vadd.f32 %v13996_v11, %v6825_v53 }
0x3e20   :  { %11048 = vmatprep.mubr.msk.f32.mxu0 %vm206_vm1, %v6833_v36 }
0x3e21   :  { %11049 = vmatmul.mubr.msk.f32.gmra.mrb[68].mxu0 %vm206_vm1, %v6834_v61 }
0x3eb0   :  { %v11069_v0 = vpop.f32.mrb[74].mxu1 }
0x3eb1   :  { %v7069_v39 = vadd.f32 %v11069_v0, %v13946_v58  ;;  %v7049_v63 = vpop.f32.mrb[75].mxu1 }
0x3eb2   :  { %v7068_v15 = vadd.f32 %v7049_v63, %v13943_v49 }
0x3eb3   :  { %v14051_v3 = vadd.f32 %v14046_v22, %v7069_v39 }
0x3eb4   :  { %v14054_v11 = vadd.f32 %v14046_v22, %v7068_v15 }
0x3eb5   :  { %v7086_v4 = vsel %vm206_vm1, %v14051_v3, 0.0 }
0x3eb6   :  { %7087 = vadd.xlane.f32.xlu1 %v7086_v4  ;;  %v7083_v48 = vsel %vm206_vm1, %v14054_v11, 0.0 }
0x3eb7   :  { %7084 = vadd.xlane.f32.xlu0 %v7083_v48 }
0x3ef4   :  { %v11050_v40 = vpop.f32.mrb[68].mxu0 }
0x3ef5   :  { %v6939_v31 = vadd.f32 %v11050_v40, %v9952_v5  ;;  %v6933_v58 = vpop.f32.mrb[69].mxu0 }
0x3ef6   :  { %v6934_v13 = vadd.f32 %v9952_v5, %v6933_v58 }
0x3ef7   :  { %v6949_v42 = vmul.f32 0.70710677, %v6939_v31  ;;  %v6945_v62 = vmul.f32 0.5, %v6939_v31 }
0x3ef8   :  { %v6948_v49 = vmul.f32 0.70710677, %v6934_v13  ;;  %v6944_v21 = vmul.f32 0.5, %v6934_v13 }
0x3ef9   :  { %12447 = verf.f32 %v6949_v42 }
0x3efa   :  { %12449 = verf.f32 %v6948_v49 }
0x3f03   :  { %v12448_v7 = vpop.eup %12447 }
0x3f04   :  { %v12450_v35 = vpop.eup %12449  ;;  %v6957_v44 = vadd.f32 1.0, %v12448_v7 }
0x3f05   :  { %v6956_v45 = vadd.f32 1.0, %v12450_v35 }
0x3f06   :  { %v6961_v1 = vmul.f32 %v6957_v44, %v6945_v62 }
0x3f07   :  { %v6960_v43 = vmul.f32 %v6956_v45, %v6944_v21 }
0x3f09   :  { %11070 = vmatprep.mubr.msk.f32.mxu1 %vm2438_vm6, %v6960_v43 }
0x3f0a   :  { %11071 = vmatmul.mubr.msk.f32.gmra.mrb[76].mxu1 %vm2438_vm6, %v6961_v1 }
0x3f43   :  { %v7088_v59 = vpop.xlane.xlu1 %7087 }
0x3f44   :  { %v7096_v10 = vmul.f32 0.03125, %v7088_v59  ;;  %v7085_v8 = vpop.xlane.xlu0 %7084 }
0x3f45   :  { %v7095_v18 = vmul.f32 0.03125, %v7085_v8 }
0x3f46   :  { %v7100_v51 = vsub.f32 %v14051_v3, %v7096_v10 }
0x3f47   :  { %v7099_v16 = vsub.f32 %v14054_v11, %v7095_v18 }
0x3f48   :  { %v7104_v54 = vmul.f32 %v7100_v51, %v7100_v51 }
0x3f49   :  { %v7103_v52 = vmul.f32 %v7099_v16, %v7099_v16 }
0x3f4a   :  { %v7110_v2 = vsel %vm206_vm1, %v7104_v54, 0.0 }
0x3f4b   :  { %7111 = vadd.xlane.f32.xlu1 %v7110_v2  ;;  %v7107_v5 = vsel %vm206_vm1, %v7103_v52, 0.0 }
0x3f4c   :  { %7108 = vadd.xlane.f32.xlu0 %v7107_v5 }
0x3fd8   :  { %v7112_v25 = vpop.xlane.xlu1 %7111 }
0x3fd9   :  { %v7120_v23 = vmul.f32 0.03125, %v7112_v25  ;;  %v7109_v55 = vpop.xlane.xlu0 %7108 }
0x3fda   :  { %v7119_v33 = vmul.f32 0.03125, %v7109_v55 }
0x3fdb   :  { %v7124_v46 = vadd.f32 1e-05, %v7120_v23 }
0x3fdc   :  { %v7123_v9 = vadd.f32 1e-05, %v7119_v33 }
0x3fdd   :  { %12451 = vrsqrt.f32 %v7124_v46  ;;  %v11072_v14 = vpop.f32.mrb[76].mxu1 }
0x3fde   :  { %12453 = vrsqrt.f32 %v7123_v9  ;;  %v7071_v32 = vadd.f32 %v11072_v14, %v13979_v50  ;;  %v7059_v38 = vpop.f32.mrb[77].mxu1  ;;  %v9970_v50 = vld [vmem:[%s14649_s5 + $0x3] ss:$0 sm:$0xff] }
0x3fdf   :  { %v7070_v56 = vadd.f32 %v7059_v38, %v13982_v6 }
0x3fe0   :  { %v14081_v41 = vadd.f32 %v14046_v22, %v7071_v32 }
0x3fe1   :  { %v14084_v47 = vadd.f32 %v14046_v22, %v7070_v56 }
0x3fe2   :  { %v7092_v12 = vsel %vm206_vm1, %v14081_v41, 0.0 }
0x3fe3   :  { %7093 = vadd.xlane.f32.xlu1 %v7092_v12  ;;  %v7089_v17 = vsel %vm206_vm1, %v14084_v47, 0.0 }
0x3fe4   :  { %7090 = vadd.xlane.f32.xlu0 %v7089_v17 }
0x3fe7   :  { %v12452_v27 = vpop.eup %12451 }
0x3fe8   :  { %v12454_v6 = vpop.eup %12453  ;;  %v7132_v19 = vmul.f32 %v12452_v27, %v7100_v51 }
0x3fe9   :  { %v7131_v20 = vmul.f32 %v12454_v6, %v7099_v16 }
0x3fea   :  { %v7140_v30 = vmul.f32 %v9970_v50, %v7132_v19 }
0x3feb   :  { %v7139_v53 = vmul.f32 %v9970_v50, %v7131_v20 }
0x3fec   :  { %v7148_v61 = vadd.f32 %v9971_v28, %v7140_v30 }
0x3fed   :  { %v7147_v36 = vadd.f32 %v9971_v28, %v7139_v53 }
0x3fef   :  { %11081 = vmatprep.mubr.msk.f32.mxu0 %vm206_vm1, %v7147_v36 }
0x3ff0   :  { %11082 = vmatmul.mubr.msk.f32.vlgmr.msra.gmra.mrb[70].mxu0 %vm206_vm1, %v7148_v61 }
0x4070   :  { %v7094_v0 = vpop.xlane.xlu1 %7093 }
0x4071   :  { %v7098_v22 = vmul.f32 0.03125, %v7094_v0  ;;  %v7091_v39 = vpop.xlane.xlu0 %7090 }
0x4072   :  { %v7097_v63 = vmul.f32 0.03125, %v7091_v39 }
0x4073   :  { %v7102_v15 = vsub.f32 %v14081_v41, %v7098_v22 }
0x4074   :  { %v7101_v4 = vsub.f32 %v14084_v47, %v7097_v63 }
0x4075   :  { %v7106_v48 = vmul.f32 %v7102_v15, %v7102_v15 }
0x4076   :  { %v7105_v40 = vmul.f32 %v7101_v4, %v7101_v4 }
0x4077   :  { %v7116_v31 = vsel %vm206_vm1, %v7106_v48, 0.0 }
0x4078   :  { %7117 = vadd.xlane.f32.xlu1 %v7116_v31  ;;  %v7113_v58 = vsel %vm206_vm1, %v7105_v40, 0.0 }
0x4079   :  { %7114 = vadd.xlane.f32.xlu0 %v7113_v58 }
0x40c3   :  { %v11083_v13 = vpop.f32.mrb[70].mxu0 }
0x40c4   :  { %v7234_v42 = vpop.f32.mrb[71].mxu0  ;;  %v14110_v35 = vmul.f32 0.35355338, %v11083_v13 }
0x40c5   :  { %v14102_v49 = vpack.i.bf16 %v11083_v13, %v7234_v42  ;;  %v14108_v7 = vmul.f32 0.35355338, %v7234_v42 }
0x40c7   :  { %12105 = vrot.lane.b32.xlu1 %v14102_v49, %s14664_s7  ;;  %12100 = vrot.lane.b32.xlu0 %v14102_v49, %s14668_s20 }
0x40cb   :  { %7455 = vrot.lane.b32.xlu1 %v14108_v7, %s14655_s8  ;;  %7457 = vrot.lane.b32.xlu0 %v14110_v35, %s14655_s8 }
0x40cf   :  { %12110 = vrot.lane.b32.xlu1 %v14102_v49, %s14656_s0  ;;  %7657 = vrot.lane.b32.xlu0 %v14110_v35, %s14657_s27 }
0x40d3   :  { %7655 = vrot.lane.b32.xlu1 %v14108_v7, %s14657_s27 }
0x4105   :  { %v7118_v44 = vpop.xlane.xlu1 %7117 }
0x4106   :  { %v7122_v21 = vmul.f32 0.03125, %v7118_v44  ;;  %v7115_v45 = vpop.xlane.xlu0 %7114 }
0x4107   :  { %v7121_v62 = vmul.f32 0.03125, %v7115_v45 }
0x4108   :  { %v7126_v43 = vadd.f32 1e-05, %v7122_v21 }
0x4109   :  { %v7125_v1 = vadd.f32 1e-05, %v7121_v62 }
0x410a   :  { %12455 = vrsqrt.f32 %v7126_v43 }
0x410b   :  { %12457 = vrsqrt.f32 %v7125_v1 }
0x4114   :  { %v12456_v59 = vpop.eup %12455 }
0x4115   :  { %v12458_v10 = vpop.eup %12457  ;;  %v7134_v8 = vmul.f32 %v12456_v59, %v7102_v15 }
0x4116   :  { %v7133_v18 = vmul.f32 %v12458_v10, %v7101_v4 }
0x4117   :  { %v7142_v51 = vmul.f32 %v9970_v50, %v7134_v8 }
0x4118   :  { %v7141_v16 = vmul.f32 %v9970_v50, %v7133_v18 }
0x4119   :  { %v7150_v52 = vadd.f32 %v9971_v28, %v7142_v51 }
0x411a   :  { %v7149_v54 = vadd.f32 %v9971_v28, %v7141_v16 }
0x411c   :  { %11084 = vmatprep.mubr.msk.f32.mxu0 %vm206_vm1, %v7149_v54 }
0x411d   :  { %11085 = vmatmul.mubr.msk.f32.gmra.mrb[72].mxu0 %vm206_vm1, %v7150_v52 }
0x411e   :  { %11091 = vmatprep.mubr.msk.f32.mxu0 %vm465_vm2, %v14108_v7 }
0x4139   :  { %v12106_v2 = vpop.permute.xlu1 %12105  ;;  %v12101_v5 = vpop.permute.xlu0 %12100 }
0x413a   :  { %v12108_v60 = vunpack.i.h.bf16 %v12106_v2  ;;  %v12107_v57 = vunpack.i.l.bf16 %v12106_v2  ;;  %v12103_v29 = vunpack.i.h.bf16 %v12101_v5  ;;  %v12102_v37 = vunpack.i.l.bf16 %v12101_v5 }
0x413c   :  { %v11703_v34 = vpack.c.bf16 %v12108_v60, %v12107_v57  ;;  %v11693_v26 = vpack.c.bf16 %v12103_v29, %v12102_v37 }
0x413d   :  { %v7456_v25 = vpop.permute.xlu1 %7455  ;;  %v7458_v14 = vpop.permute.xlu0 %7457 }
0x413e   :  { %11695 = vmatprep.subr.msk.bf16.mxu0 %vm12873_vm3, %v11693_v26  ;;  %11705 = vmatprep.subr.msk.bf16.mxu1 %vm12873_vm3, %v11703_v34 }
0x413f   :  { %11105 = vmatprep.mubr.msk.f32.mxu1 %vm465_vm2, %v7456_v25  ;;  %11698 = vmatpush3.bf16.xpose.msk.msra.mxu0 %vm12873_vm3, %v11693_v26 }
0x4140   :  { %11708 = vmatpush3.bf16.xpose.msk.msra.mxu1 %vm12873_vm3, %v11703_v34 }
0x4141   :  { %v12111_v23 = vpop.permute.xlu1 %12110  ;;  %v7658_v32 = vpop.permute.xlu0 %7657 }
0x4142   :  { %v12113_v55 = vunpack.i.h.bf16 %v12111_v23  ;;  %v12112_v33 = vunpack.i.l.bf16 %v12111_v23 }
0x4144   :  { %v11713_v46 = vpack.c.bf16 %v12113_v55, %v12112_v33 }
0x4145   :  { %v7656_v9 = vpop.permute.xlu1 %7655 }
0x4146   :  { %11092 = vmatmul.mubr.msk.f32.vlgmr.msra.gmra.mrb[74].mxu0 %vm465_vm2, %v14110_v35  ;;  %11715 = vmatprep.subr.msk.bf16.mxu1 %vm12873_vm3, %v11713_v46 }
0x4147   :  { %11106 = vmatmul.mubr.msk.f32.vlgmr.msra.gmra.mrb[78].mxu1 %vm465_vm2, %v7458_v14 }
0x4148   :  { %11718 = vmatpush3.bf16.xpose.msk.msra.mxu1 %vm12873_vm3, %v11713_v46  ;;  %11119 = vmatprep.mubr.msk.f32.mxu1 %vm465_vm2, %v7656_v9 }
0x414f   :  { %11120 = vmatmul.mubr.msk.f32.vlgmr.msra.gmra.mrb[80].mxu1 %vm465_vm2, %v7658_v32 }
0x41f0   :  { %v14144_v38 = vpop.f32.mrb[72].mxu0 }
0x41f1   :  { %v14146_v56 = vpop.f32.mrb[73].mxu0 }
0x41f2   :  { %v14150_v12 = vpack.i.bf16 %v14144_v38, %v14146_v56 }
0x4219   :  { %v11093_v17 = vpop.f32.mrb[74].mxu0 }
0x421a   :  { %v11107_v27 = vpop.f32.mrb[78].mxu1  ;;  %v7337_v50 = vpop.f32.mrb[75].mxu0  ;;  %v7349_v6 = vsel %vm551_vm4, %v11093_v17, -inf }
0x421b   :  { %v7537_v19 = vpop.f32.mrb[79].mxu1  ;;  %7350 = vmax.xlane.f32.xlu0 %v7349_v6  ;;  %v7346_v20 = vsel %vm551_vm4, %v7337_v50, -inf  ;;  %v7549_v53 = vsel %vm551_vm4, %v11107_v27, -inf }
0x421c   :  { %7347 = vmax.xlane.f32.xlu1 %v7346_v20  ;;  %v7546_v28 = vsel %vm551_vm4, %v7537_v19, -inf }
0x421f   :  { %7547 = vmax.xlane.f32.xlu0 %v7546_v28 }
0x4222   :  { %v11121_v30 = vpop.f32.mrb[80].mxu1 }
0x4223   :  { %v7737_v36 = vpop.f32.mrb[81].mxu1  ;;  %7550 = vmax.xlane.f32.xlu0 %v7549_v53  ;;  %v7749_v0 = vsel %vm551_vm4, %v11121_v30, -inf }
0x4224   :  { %v7746_v61 = vsel %vm551_vm4, %v7737_v36, -inf }
0x4225   :  { %7747 = vmax.xlane.f32.xlu1 %v7746_v61 }
0x4227   :  { %7750 = vmax.xlane.f32.xlu0 %v7749_v0 }
0x4236   :  { %12115 = vrot.lane.b32.xlu1 %v14102_v49, %s14658_s3 }
0x42a8   :  { %v7351_v22 = vpop.xlane.xlu0 %7350 }
0x42a9   :  { %v7353_v39 = vsub.f32 %v11093_v17, %v7351_v22  ;;  %v7348_v63 = vpop.xlane.xlu1 %7347 }
0x42aa   :  { %v7352_v15 = vsub.f32 %v7337_v50, %v7348_v63 }
0x42ab   :  { %v7356_v4 = vmul.f32 1.442695, %v7353_v39 }
0x42ac   :  { %v7354_v48 = vmul.f32 1.442695, %v7352_v15  ;;  %v7548_v40 = vpop.xlane.xlu0 %7547 }
0x42ad   :  { %12459 = vpow2.f32 %v7356_v4  ;;  %v7552_v31 = vsub.f32 %v7537_v19, %v7548_v40 }
0x42ae   :  { %12461 = vpow2.f32 %v7354_v48 }
0x42af   :  { %v7554_v58 = vmul.f32 1.442695, %v7552_v31 }
0x42b0   :  { %v7551_v13 = vpop.xlane.xlu0 %7550 }
0x42b1   :  { %12463 = vpow2.f32 %v7554_v58  ;;  %v7553_v42 = vsub.f32 %v11107_v27, %v7551_v13 }
0x42b2   :  { %v7748_v44 = vpop.xlane.xlu1 %7747 }
0x42b3   :  { %v7556_v21 = vmul.f32 1.442695, %v7553_v42  ;;  %v7752_v37 = vsub.f32 %v7737_v36, %v7748_v44 }
0x42b4   :  { %v7751_v45 = vpop.xlane.xlu0 %7750 }
0x42b5   :  { %12465 = vpow2.f32 %v7556_v21  ;;  %v7753_v62 = vsub.f32 %v11121_v30, %v7751_v45  ;;  %v7754_v34 = vmul.f32 1.442695, %v7752_v37 }
0x42b6   :  { %v12116_v43 = vpop.permute.xlu1 %12115 }
0x42b7   :  { %v12460_v1 = vpop.eup %12459  ;;  %v7756_v59 = vmul.f32 1.442695, %v7753_v62  ;;  %v12118_v10 = vunpack.i.h.bf16 %v12116_v43  ;;  %v12117_v8 = vunpack.i.l.bf16 %v12116_v43 }
0x42b8   :  { %v12462_v18 = vpop.eup %12461  ;;  %v7361_v51 = vsel %vm551_vm4, %v12460_v1, 0.0 }
0x42b9   :  { %12467 = vpow2.f32 %v7756_v59  ;;  %v11699_v16 = vpack.c.bf16 %v12118_v10, %v12117_v8  ;;  %7362 = vadd.xlane.f32.xlu0 %v7361_v51  ;;  %v7358_v54 = vsel %vm551_vm4, %v12462_v18, 0.0 }
0x42ba   :  { %7359 = vadd.xlane.f32.xlu1 %v7358_v54  ;;  %12469 = vpow2.f32 %v7754_v34 }
0x42bb   :  { %v12464_v52 = vpop.eup %12463  ;;  %11700 = vmatprep.subr.bf16.mxu0 %v11699_v16 }
0x42bc   :  { %11702 = vmatpush3.bf16.msra.mxu0 %v11699_v16  ;;  %v7558_v2 = vsel %vm551_vm4, %v12464_v52, 0.0 }
0x42be   :  { %7559 = vadd.xlane.f32.xlu1 %v7558_v2 }
0x42bf   :  { %v12466_v5 = vpop.eup %12465 }
0x42c0   :  { %v7561_v60 = vsel %vm551_vm4, %v12466_v5, 0.0 }
0x42c1   :  { %7562 = vadd.xlane.f32.xlu0 %v7561_v60 }
0x42c3   :  { %v12468_v57 = vpop.eup %12467 }
0x42c4   :  { %v7761_v29 = vsel %vm551_vm4, %v12468_v57, 0.0  ;;  %v12470_v26 = vpop.eup %12469 }
0x42c5   :  { %7762 = vadd.xlane.f32.xlu0 %v7761_v29  ;;  %v7758_v25 = vsel %vm551_vm4, %v12470_v26, 0.0 }
0x42cf   :  { %12125 = vrot.lane.b32.xlu1 %v14102_v49, %s14659_s10 }
0x42d3   :  { %12130 = vrot.lane.b32.xlu1 %v14102_v49, %s14660_s30 }
0x42db   :  { %12120 = vrot.lane.b32.xlu0 %v14102_v49, %s14661_s11 }
0x42df   :  { %7857 = vrot.lane.b32.xlu0 %v14110_v35, %s14662_s9 }
0x42f7   :  { %7759 = vadd.xlane.f32.xlu1 %v7758_v25 }
0x4308   :  { %7855 = vrot.lane.b32.xlu1 %v14108_v7, %s14662_s9 }
0x4346   :  { %v7363_v23 = vpop.xlane.xlu0 %7362 }
0x4347   :  { %12471 = vrcp.f32 %v7363_v23  ;;  %v7360_v55 = vpop.xlane.xlu1 %7359 }
0x4348   :  { %12473 = vrcp.f32 %v7360_v55 }
0x434b   :  { %v7560_v33 = vpop.xlane.xlu1 %7559 }
0x434c   :  { %12475 = vrcp.f32 %v7560_v33 }
0x434e   :  { %v7563_v46 = vpop.xlane.xlu0 %7562 }
0x434f   :  { %12477 = vrcp.f32 %v7563_v46  ;;  %v12126_v14 = vpop.permute.xlu1 %12125 }
0x4350   :  { %v12128_v6 = vunpack.i.h.bf16 %v12126_v14  ;;  %v12127_v7 = vunpack.i.l.bf16 %v12126_v14 }
0x4351   :  { %v12472_v9 = vpop.eup %12471 }
0x4352   :  { %v12474_v35 = vpop.eup %12473  ;;  %v7763_v32 = vpop.xlane.xlu0 %7762  ;;  %v7367_v27 = vmul.f32 %v12472_v9, %v12460_v1  ;;  %v11719_v0 = vpack.c.bf16 %v12128_v6, %v12127_v7  ;;  %v14220_v6 = vmul.f32 0.35355338, %v14144_v38 }
0x4353   :  { %v7366_v17 = vmul.f32 %v12474_v35, %v12462_v18  ;;  %v12131_v53 = vpop.permute.xlu1 %12130  ;;  %12479 = vrcp.f32 %v7763_v32 }
0x4354   :  { %v12133_v22 = vunpack.i.h.bf16 %v12131_v53  ;;  %v12132_v39 = vunpack.i.l.bf16 %v12131_v53 }
0x4355   :  { %11098 = vmatprep.mubr.msk.f32.mxu0 %vm551_vm4, %v7366_v17 }
0x4356   :  { %v12476_v50 = vpop.eup %12475  ;;  %v12121_v19 = vpop.permute.xlu0 %12120  ;;  %11099 = vmatmul.mubr.msk.f32.vlgmr.msra.gmra.mrb[76].mxu0 %vm551_vm4, %v7367_v27  ;;  %v11723_v15 = vpack.c.bf16 %v12133_v22, %v12132_v39 }
0x4357   :  { %v12123_v20 = vunpack.i.h.bf16 %v12121_v19  ;;  %v12122_v28 = vunpack.i.l.bf16 %v12121_v19  ;;  %v7566_v30 = vmul.f32 %v12476_v50, %v12464_v52  ;;  %v14212_v50 = vmul.f32 0.35355338, %v14146_v56 }
0x4359   :  { %v11709_v36 = vpack.c.bf16 %v12123_v20, %v12122_v28  ;;  %11112 = vmatprep.mubr.msk.f32.mxu0 %vm551_vm4, %v7566_v30  ;;  %v12478_v61 = vpop.eup %12477 }
0x435a   :  { %v7567_v63 = vmul.f32 %v12478_v61, %v12466_v5  ;;  %v7858_v42 = vpop.permute.xlu0 %7857 }
0x435b   :  { %11710 = vmatprep.subr.bf16.mxu0 %v11709_v36 }
0x435c   :  { %11712 = vmatpush3.bf16.msra.mxu0 %v11709_v36 }
0x435d   :  { %11720 = vmatprep.subr.bf16.mxu0 %v11719_v0  ;;  %v12480_v48 = vpop.eup %12479 }
0x435e   :  { %v7767_v58 = vmul.f32 %v12480_v48, %v12468_v57 }
0x435f   :  { %11113 = vmatmul.mubr.msk.f32.vlgmr.msra.gmra.mrb[78].mxu0 %vm551_vm4, %v7567_v63 }
0x4360   :  { %11722 = vmatpush3.bf16.msra.mxu0 %v11719_v0 }
0x4361   :  { %11725 = vmatprep.subr.msk.bf16.mxu0 %vm12873_vm3, %v11723_v15 }
0x4384   :  { %v7760_v4 = vpop.xlane.xlu1 %7759 }
0x4385   :  { %12481 = vrcp.f32 %v7760_v4 }
0x4388   :  { %v7856_v13 = vpop.permute.xlu1 %7855 }
0x438f   :  { %v12482_v40 = vpop.eup %12481 }
0x4390   :  { %v7766_v31 = vmul.f32 %v12482_v40, %v12470_v26 }
0x4392   :  { %11126 = vmatprep.mubr.msk.f32.mxu0 %vm551_vm4, %v7766_v31 }
0x4393   :  { %11127 = vmatmul.mubr.msk.f32.vlgmr.msra.gmra.mrb[80].mxu0 %vm551_vm4, %v7767_v58 }
0x4394   :  { %11728 = vmatpush3.bf16.xpose.msk.msra.mxu0 %vm12873_vm3, %v11723_v15  ;;  %11133 = vmatprep.mubr.msk.f32.mxu0 %vm465_vm2, %v7856_v13 }
0x439b   :  { %11134 = vmatmul.mubr.msk.f32.vlgmr.msra.gmra.mrb[82].mxu0 %vm465_vm2, %v7858_v42 }
0x4429   :  { %v14188_v44 = vpop.f32.mrb[76].mxu0 }
0x442a   :  { %v14190_v21 = vpop.f32.mrb[77].mxu0 }
0x4432   :  { %v14192_v45 = vpop.f32.mrb[78].mxu0 }
0x4433   :  { %v14194_v62 = vpop.f32.mrb[79].mxu0 }
0x4466   :  { %v14196_v43 = vpop.f32.mrb[80].mxu0 }
0x4467   :  { %v14198_v1 = vpop.f32.mrb[81].mxu0 }
0x446e   :  { %v11135_v59 = vpop.f32.mrb[82].mxu0 }
0x446f   :  { %v7937_v10 = vpop.f32.mrb[83].mxu0  ;;  %v7949_v8 = vsel %vm551_vm4, %v11135_v59, -inf }
0x4470   :  { %7950 = vmax.xlane.f32.xlu0 %v7949_v8  ;;  %v7946_v18 = vsel %vm551_vm4, %v7937_v10, -inf }
0x4471   :  { %7947 = vmax.xlane.f32.xlu1 %v7946_v18 }
0x4482   :  { %12135 = vrot.lane.b32.xlu1 %v14102_v49, %s14663_s29 }
0x44fd   :  { %v7951_v51 = vpop.xlane.xlu0 %7950 }
0x44fe   :  { %v7953_v16 = vsub.f32 %v11135_v59, %v7951_v51  ;;  %v7948_v54 = vpop.xlane.xlu1 %7947 }
0x44ff   :  { %v7952_v52 = vsub.f32 %v7937_v10, %v7948_v54 }
0x4500   :  { %v7956_v2 = vmul.f32 1.442695, %v7953_v16 }
0x4501   :  { %v7954_v5 = vmul.f32 1.442695, %v7952_v52 }
0x4502   :  { %12483 = vpow2.f32 %v7956_v2  ;;  %v12136_v60 = vpop.permute.xlu1 %12135 }
0x4503   :  { %v12138_v57 = vunpack.i.h.bf16 %v12136_v60  ;;  %v12137_v29 = vunpack.i.l.bf16 %v12136_v60  ;;  %12485 = vpow2.f32 %v7954_v5 }
0x4505   :  { %v11729_v37 = vpack.c.bf16 %v12138_v57, %v12137_v29 }
0x4507   :  { %11730 = vmatprep.subr.bf16.mxu1 %v11729_v37 }
0x4508   :  { %11732 = vmatpush3.bf16.msra.mxu1 %v11729_v37 }
0x450c   :  { %v12484_v34 = vpop.eup %12483 }
0x450d   :  { %v7961_v26 = vsel %vm551_vm4, %v12484_v34, 0.0  ;;  %v12486_v25 = vpop.eup %12485 }
0x450e   :  { %7962 = vadd.xlane.f32.xlu0 %v7961_v26  ;;  %v7958_v49 = vsel %vm551_vm4, %v12486_v25, 0.0 }
0x4512   :  { %7959 = vadd.xlane.f32.xlu0 %v7958_v49 }
0x4528   :  { %12140 = vrot.lane.b32.xlu0 %v14150_v12, %s14668_s20 }
0x459b   :  { %v7963_v23 = vpop.xlane.xlu0 %7962 }
0x459c   :  { %12487 = vrcp.f32 %v7963_v23 }
0x459f   :  { %v7960_v55 = vpop.xlane.xlu0 %7959 }
0x45a0   :  { %12489 = vrcp.f32 %v7960_v55 }
0x45a3   :  { %v12141_v33 = vpop.permute.xlu0 %12140 }
0x45a4   :  { %v12143_v46 = vunpack.i.h.bf16 %v12141_v33  ;;  %v12142_v9 = vunpack.i.l.bf16 %v12141_v33 }
0x45a6   :  { %v11733_v35 = vpack.c.bf16 %v12143_v46, %v12142_v9  ;;  %v12488_v14 = vpop.eup %12487 }
0x45a7   :  { %v7967_v27 = vmul.f32 %v12488_v14, %v12484_v34 }
0x45a8   :  { %11735 = vmatprep.subr.msk.bf16.mxu1 %vm12873_vm3, %v11733_v35 }
0x45aa   :  { %v12490_v32 = vpop.eup %12489 }
0x45ab   :  { %v7966_v17 = vmul.f32 %v12490_v32, %v12486_v25 }
0x45ad   :  { %11140 = vmatprep.mubr.msk.f32.mxu1 %vm551_vm4, %v7966_v17 }
0x45ae   :  { %11141 = vmatmul.mubr.msk.f32.vlgmr.msra.gmra.mrb[82].mxu1 %vm551_vm4, %v7967_v27 }
0x45af   :  { %11738 = vmatpush3.bf16.xpose.msk.msra.mxu1 %vm12873_vm3, %v11733_v35  ;;  %11147 = vmatprep.mubr.msk.f32.mxu1 %vm465_vm2, %v14212_v50 }
0x45b6   :  { %11148 = vmatmul.mubr.msk.f32.vlgmr.msra.gmra.mrb[84].mxu1 %vm465_vm2, %v14220_v6 }
0x4681   :  { %v14224_v19 = vpop.f32.mrb[82].mxu1 }
0x4682   :  { %v14226_v7 = vpop.f32.mrb[83].mxu1 }
0x4689   :  { %v11149_v56 = vpop.f32.mrb[84].mxu1 }
0x468a   :  { %v8169_v20 = vpop.f32.mrb[85].mxu1  ;;  %v8181_v28 = vsel %vm551_vm4, %v11149_v56, -inf }
0x468b   :  { %8182 = vmax.xlane.f32.xlu0 %v8181_v28  ;;  %v8178_v30 = vsel %vm551_vm4, %v8169_v20, -inf }
0x468c   :  { %8179 = vmax.xlane.f32.xlu1 %v8178_v30 }
0x469d   :  { %12145 = vrot.lane.b32.xlu1 %v14150_v12, %s14658_s3  ;;  %s14678_s3 = sld [smem:[#allocation18_spill]] }
0x46a1   :  { %8287 = vrot.lane.b32.xlu1 %v14212_v50, %s14655_s8 }
0x4718   :  { %v8183_v38 = vpop.xlane.xlu0 %8182 }
0x4719   :  { %v8185_v53 = vsub.f32 %v11149_v56, %v8183_v38  ;;  %v8180_v36 = vpop.xlane.xlu1 %8179 }
0x471a   :  { %v8184_v61 = vsub.f32 %v8169_v20, %v8180_v36 }
0x471b   :  { %v8188_v0 = vmul.f32 1.442695, %v8185_v53 }
0x471c   :  { %v8186_v22 = vmul.f32 1.442695, %v8184_v61 }
0x471d   :  { %12491 = vpow2.f32 %v8188_v0  ;;  %v12146_v39 = vpop.permute.xlu1 %12145 }
0x471e   :  { %12493 = vpow2.f32 %v8186_v22  ;;  %v12148_v63 = vunpack.i.h.bf16 %v12146_v39  ;;  %v12147_v15 = vunpack.i.l.bf16 %v12146_v39 }
0x4720   :  { %v11739_v4 = vpack.c.bf16 %v12148_v63, %v12147_v15 }
0x4721   :  { %v8288_v13 = vpop.permute.xlu1 %8287 }
0x4722   :  { %11740 = vmatprep.subr.bf16.mxu0 %v11739_v4 }
0x4723   :  { %11742 = vmatpush3.bf16.msra.mxu0 %v11739_v4 }
0x4727   :  { %v12492_v48 = vpop.eup %12491 }
0x4728   :  { %v12494_v40 = vpop.eup %12493  ;;  %v8193_v31 = vsel %vm551_vm4, %v12492_v48, 0.0 }
0x4729   :  { %8194 = vadd.xlane.f32.xlu0 %v8193_v31  ;;  %v8190_v58 = vsel %vm551_vm4, %v12494_v40, 0.0 }
0x472a   :  { %8191 = vadd.xlane.f32.xlu1 %v8190_v58 }
0x473b   :  { %8289 = vrot.lane.b32.xlu1 %v14220_v6, %s14655_s8  ;;  %s14677_s8 = sld [smem:[#allocation17_spill]] }
0x473f   :  { %12150 = vrot.lane.b32.xlu0 %v14150_v12, %s14664_s7  ;;  %s14671_s7 = sld [smem:[#allocation11_spill]] }
0x47b6   :  { %v8195_v42 = vpop.xlane.xlu0 %8194 }
0x47b7   :  { %12495 = vrcp.f32 %v8195_v42  ;;  %v8192_v59 = vpop.xlane.xlu1 %8191 }
0x47b8   :  { %12497 = vrcp.f32 %v8192_v59 }
0x47ba   :  { %v12151_v10 = vpop.permute.xlu0 %12150 }
0x47bb   :  { %v12153_v8 = vunpack.i.h.bf16 %v12151_v10  ;;  %v12152_v18 = vunpack.i.l.bf16 %v12151_v10  ;;  %v8290_v5 = vpop.permute.xlu1 %8289 }
0x47bd   :  { %v11743_v51 = vpack.c.bf16 %v12153_v8, %v12152_v18 }
0x47bf   :  { %11745 = vmatprep.subr.msk.bf16.mxu0 %vm12873_vm3, %v11743_v51 }
0x47c1   :  { %v12496_v16 = vpop.eup %12495 }
0x47c2   :  { %v12498_v54 = vpop.eup %12497  ;;  %v8199_v2 = vmul.f32 %v12496_v16, %v12492_v48 }
0x47c3   :  { %v8198_v52 = vmul.f32 %v12498_v54, %v12494_v40 }
0x47c5   :  { %11154 = vmatprep.mubr.msk.f32.mxu0 %vm551_vm4, %v8198_v52 }
0x47c6   :  { %11155 = vmatmul.mubr.msk.f32.vlgmr.msra.gmra.mrb[84].mxu0 %vm551_vm4, %v8199_v2 }
0x47c7   :  { %11748 = vmatpush3.bf16.xpose.msk.msra.mxu0 %vm12873_vm3, %v11743_v51  ;;  %11161 = vmatprep.mubr.msk.f32.mxu0 %vm465_vm2, %v8288_v13 }
0x47ce   :  { %11162 = vmatmul.mubr.msk.f32.vlgmr.msra.gmra.mrb[86].mxu0 %vm465_vm2, %v8290_v5 }
0x4899   :  { %v14248_v60 = vpop.f32.mrb[84].mxu0 }
0x489a   :  { %v14250_v57 = vpop.f32.mrb[85].mxu0 }
0x48a1   :  { %v11163_v29 = vpop.f32.mrb[86].mxu0 }
0x48a2   :  { %v8369_v37 = vpop.f32.mrb[87].mxu0  ;;  %v8381_v34 = vsel %vm551_vm4, %v11163_v29, -inf }
0x48a3   :  { %8382 = vmax.xlane.f32.xlu0 %v8381_v34  ;;  %v8378_v26 = vsel %vm551_vm4, %v8369_v37, -inf }
0x48a4   :  { %8379 = vmax.xlane.f32.xlu1 %v8378_v26 }
0x48b5   :  { %12155 = vrot.lane.b32.xlu1 %v14150_v12, %s14661_s11 }
0x48b9   :  { %8487 = vrot.lane.b32.xlu1 %v14212_v50, %s14657_s27 }
0x48bd   :  { %8489 = vrot.lane.b32.xlu1 %v14220_v6, %s14657_s27 }
0x4930   :  { %v8383_v25 = vpop.xlane.xlu0 %8382 }
0x4931   :  { %v8385_v49 = vsub.f32 %v11163_v29, %v8383_v25  ;;  %v8380_v23 = vpop.xlane.xlu1 %8379 }
0x4932   :  { %v8384_v55 = vsub.f32 %v8369_v37, %v8380_v23 }
0x4933   :  { %v8388_v33 = vmul.f32 1.442695, %v8385_v49 }
0x4934   :  { %v8386_v46 = vmul.f32 1.442695, %v8384_v55 }
0x4935   :  { %12499 = vpow2.f32 %v8388_v33  ;;  %v12156_v9 = vpop.permute.xlu1 %12155 }
0x4936   :  { %v12158_v35 = vunpack.i.h.bf16 %v12156_v9  ;;  %v12157_v14 = vunpack.i.l.bf16 %v12156_v9  ;;  %12501 = vpow2.f32 %v8386_v46 }
0x4938   :  { %v11749_v32 = vpack.c.bf16 %v12158_v35, %v12157_v14 }
0x4939   :  { %v8488_v15 = vpop.permute.xlu1 %8487 }
0x493a   :  { %11750 = vmatprep.subr.bf16.mxu1 %v11749_v32 }
0x493b   :  { %11752 = vmatpush3.bf16.msra.mxu1 %v11749_v32 }
0x493d   :  { %v8490_v4 = vpop.permute.xlu1 %8489 }
0x493f   :  { %v12500_v17 = vpop.eup %12499 }
0x4940   :  { %v8393_v27 = vsel %vm551_vm4, %v12500_v17, 0.0  ;;  %v12502_v56 = vpop.eup %12501 }
0x4941   :  { %8394 = vadd.xlane.f32.xlu0 %v8393_v27  ;;  %v8390_v20 = vsel %vm551_vm4, %v12502_v56, 0.0 }
0x4945   :  { %8391 = vadd.xlane.f32.xlu0 %v8390_v20 }
0x495b   :  { %12160 = vrot.lane.b32.xlu0 %v14150_v12, %s14656_s0 }
0x49ce   :  { %v8395_v28 = vpop.xlane.xlu0 %8394 }
0x49cf   :  { %12503 = vrcp.f32 %v8395_v28 }
0x49d2   :  { %v8392_v30 = vpop.xlane.xlu0 %8391 }
0x49d3   :  { %12505 = vrcp.f32 %v8392_v30 }
0x49d6   :  { %v12161_v38 = vpop.permute.xlu0 %12160 }
0x49d7   :  { %v12163_v53 = vunpack.i.h.bf16 %v12161_v38  ;;  %v12162_v36 = vunpack.i.l.bf16 %v12161_v38 }
0x49d9   :  { %v11753_v61 = vpack.c.bf16 %v12163_v53, %v12162_v36  ;;  %v12504_v0 = vpop.eup %12503 }
0x49da   :  { %v8399_v63 = vmul.f32 %v12504_v0, %v12500_v17 }
0x49db   :  { %11755 = vmatprep.subr.msk.bf16.mxu1 %vm12873_vm3, %v11753_v61 }
0x49dd   :  { %v12506_v22 = vpop.eup %12505 }
0x49de   :  { %v8398_v39 = vmul.f32 %v12506_v22, %v12502_v56 }
0x49e0   :  { %11168 = vmatprep.mubr.msk.f32.mxu1 %vm551_vm4, %v8398_v39 }
0x49e1   :  { %11169 = vmatmul.mubr.msk.f32.vlgmr.msra.gmra.mrb[86].mxu1 %vm551_vm4, %v8399_v63 }
0x49e2   :  { %11758 = vmatpush3.bf16.xpose.msk.msra.mxu1 %vm12873_vm3, %v11753_v61  ;;  %11175 = vmatprep.mubr.msk.f32.mxu1 %vm465_vm2, %v8488_v15  ;;  %v10028_v15 = vld [vmem:[%s14671_s7 + $0x60] sm:$0xff] }
0x49e9   :  { %11176 = vmatmul.mubr.msk.f32.vlgmr.msra.gmra.mrb[88].mxu1 %vm465_vm2, %v8490_v4  ;;  %v10029_v4 = vld [vmem:[%s14671_s7 + $0x68] sm:$0xff] }
0x4ab4   :  { %v14272_v48 = vpop.f32.mrb[86].mxu1 }
0x4ab5   :  { %v14274_v40 = vpop.f32.mrb[87].mxu1 }
0x4abc   :  { %v11177_v31 = vpop.f32.mrb[88].mxu1 }
0x4abd   :  { %v8569_v58 = vpop.f32.mrb[89].mxu1  ;;  %v8581_v13 = vsel %vm551_vm4, %v11177_v31, -inf }
0x4abe   :  { %8582 = vmax.xlane.f32.xlu0 %v8581_v13  ;;  %v8578_v42 = vsel %vm551_vm4, %v8569_v58, -inf }
0x4abf   :  { %8579 = vmax.xlane.f32.xlu1 %v8578_v42 }
0x4ad0   :  { %12165 = vrot.lane.b32.xlu1 %v14150_v12, %s14659_s10 }
0x4ad4   :  { %8687 = vrot.lane.b32.xlu1 %v14212_v50, %s14662_s9 }
0x4ad8   :  { %8689 = vrot.lane.b32.xlu1 %v14220_v6, %s14662_s9  ;;  %s14673_s9 = sld [smem:[#allocation13_spill]] }
0x4b4b   :  { %v8583_v59 = vpop.xlane.xlu0 %8582 }
0x4b4c   :  { %v8585_v10 = vsub.f32 %v11177_v31, %v8583_v59  ;;  %v8580_v8 = vpop.xlane.xlu1 %8579 }
0x4b4d   :  { %v8584_v18 = vsub.f32 %v8569_v58, %v8580_v8  ;;  %v10030_v8 = vld [vmem:[%s14671_s7 + $0x70] sm:$0xff] }
0x4b4e   :  { %v8588_v51 = vmul.f32 1.442695, %v8585_v10 }
0x4b4f   :  { %v8586_v16 = vmul.f32 1.442695, %v8584_v18 }
0x4b50   :  { %12507 = vpow2.f32 %v8588_v51  ;;  %v12166_v54 = vpop.permute.xlu1 %12165 }
0x4b51   :  { %v12168_v52 = vunpack.i.h.bf16 %v12166_v54  ;;  %v12167_v2 = vunpack.i.l.bf16 %v12166_v54  ;;  %12509 = vpow2.f32 %v8586_v16 }
0x4b53   :  { %v11759_v5 = vpack.c.bf16 %v12168_v52, %v12167_v2 }
0x4b54   :  { %v8688_v14 = vpop.permute.xlu1 %8687 }
0x4b55   :  { %11760 = vmatprep.subr.bf16.mxu0 %v11759_v5 }
0x4b56   :  { %11762 = vmatpush3.bf16.msra.mxu0 %v11759_v5 }
0x4b58   :  { %v8690_v32 = vpop.permute.xlu1 %8689 }
0x4b5a   :  { %v12508_v29 = vpop.eup %12507 }
0x4b5b   :  { %v8593_v50 = vsel %vm551_vm4, %v12508_v29, 0.0  ;;  %v12510_v37 = vpop.eup %12509 }
0x4b5c   :  { %8594 = vadd.xlane.f32.xlu0 %v8593_v50  ;;  %v8590_v6 = vsel %vm551_vm4, %v12510_v37, 0.0 }
0x4b60   :  { %8591 = vadd.xlane.f32.xlu0 %v8590_v6 }
0x4b76   :  { %12170 = vrot.lane.b32.xlu0 %v14150_v12, %s14660_s30  ;;  %s14672_s30 = sld [smem:[#allocation12_spill]] }
0x4be9   :  { %v8595_v34 = vpop.xlane.xlu0 %8594 }
0x4bea   :  { %12511 = vrcp.f32 %v8595_v34 }
0x4bed   :  { %v8592_v26 = vpop.xlane.xlu0 %8591 }
0x4bee   :  { %12513 = vrcp.f32 %v8592_v26 }
0x4bf1   :  { %v12171_v25 = vpop.permute.xlu0 %12170 }
0x4bf2   :  { %v12173_v49 = vunpack.i.h.bf16 %v12171_v25  ;;  %v12172_v23 = vunpack.i.l.bf16 %v12171_v25 }
0x4bf4   :  { %v11763_v55 = vpack.c.bf16 %v12173_v49, %v12172_v23  ;;  %v12512_v33 = vpop.eup %12511  ;;  %v10032_v49 = vld [vmem:[%s14672_s30 + $0x3] ss:$0 sm:$0xff] }
0x4bf5   :  { %v8599_v35 = vmul.f32 %v12512_v33, %v12508_v29 }
0x4bf6   :  { %11765 = vmatprep.subr.msk.bf16.mxu0 %vm12873_vm3, %v11763_v55 }
0x4bf8   :  { %v12514_v46 = vpop.eup %12513 }
0x4bf9   :  { %v8598_v9 = vmul.f32 %v12514_v46, %v12510_v37 }
0x4bfb   :  { %11182 = vmatprep.mubr.msk.f32.mxu0 %vm551_vm4, %v8598_v9 }
0x4bfc   :  { %11183 = vmatmul.mubr.msk.f32.vlgmr.msra.gmra.mrb[88].mxu0 %vm551_vm4, %v8599_v35 }
0x4bfd   :  { %11768 = vmatpush3.bf16.xpose.msk.msra.mxu0 %vm12873_vm3, %v11763_v55  ;;  %11189 = vmatprep.mubr.msk.f32.mxu0 %vm465_vm2, %v8688_v14 }
0x4c04   :  { %11190 = vmatmul.mubr.msk.f32.vlgmr.msra.gmra.mrb[90].mxu0 %vm465_vm2, %v8690_v32 }
0x4ccf   :  { %v11184_v17 = vpop.f32.mrb[88].mxu0 }
0x4cd0   :  { %v8678_v27 = vpop.f32.mrb[89].mxu0 }
0x4cd7   :  { %v11191_v56 = vpop.f32.mrb[90].mxu0 }
0x4cd8   :  { %v8769_v20 = vpop.f32.mrb[91].mxu0  ;;  %v8781_v28 = vsel %vm551_vm4, %v11191_v56, -inf }
0x4cd9   :  { %8782 = vmax.xlane.f32.xlu0 %v8781_v28  ;;  %v8778_v30 = vsel %vm551_vm4, %v8769_v20, -inf }
0x4cda   :  { %8779 = vmax.xlane.f32.xlu1 %v8778_v30 }
0x4ceb   :  { %12175 = vrot.lane.b32.xlu1 %v14150_v12, %s14663_s29 }
0x4cef   :  { %8059 = vrot.lane.b32.xlu1 %v14192_v45, %s14665_s26 }
0x4cf3   :  { %8065 = vrot.lane.b32.xlu1 %v14198_v1, %s14666_s25 }
0x4cf7   :  { %8067 = vrot.lane.b32.xlu1 %v14196_v43, %s14666_s25 }
0x4cfb   :  { %8075 = vrot.lane.b32.xlu1 %v14224_v19, %s14667_s24 }
0x4cff   :  { %8891 = vrot.lane.b32.xlu1 %v14272_v48, %s14665_s26  ;;  %v11773_v48 = vpack.c.bf16 %v10029_v4, %v10028_v15 }
0x4d03   :  { %8899 = vrot.lane.b32.xlu1 %v11184_v17, %s14666_s25 }
0x4d66   :  { %v8783_v24 = vpop.xlane.xlu0 %8782 }
0x4d67   :  { %v8785_v38 = vsub.f32 %v11191_v56, %v8783_v24  ;;  %v8780_v12 = vpop.xlane.xlu1 %8779 }
0x4d68   :  { %v8784_v53 = vsub.f32 %v8769_v20, %v8780_v12 }
0x4d69   :  { %v8788_v36 = vmul.f32 1.442695, %v8785_v38 }
0x4d6a   :  { %v8786_v45 = vmul.f32 1.442695, %v8784_v53 }
0x4d6b   :  { %v12176_v61 = vpop.permute.xlu1 %12175 }
0x4d6c   :  { %12515 = vpow2.f32 %v8786_v45  ;;  %v12178_v1 = vunpack.i.h.bf16 %v12176_v61  ;;  %v12177_v0 = vunpack.i.l.bf16 %v12176_v61 }
0x4d6d   :  { %12517 = vpow2.f32 %v8788_v36 }
0x4d6e   :  { %v11769_v43 = vpack.c.bf16 %v12178_v1, %v12177_v0 }
0x4d70   :  { %11770 = vmatprep.subr.bf16.mxu1 %v11769_v43 }
0x4d71   :  { %11772 = vmatpush3.bf16.msra.mxu1 %v11769_v43 }
0x4d72   :  { %11774 = vmatprep.subr.bf16.mxu1 %v11773_v48 }
0x4d76   :  { %v12516_v19 = vpop.eup %12515 }
0x4d77   :  { %v8790_v22 = vsel %vm551_vm4, %v12516_v19, 0.0  ;;  %v12518_v39 = vpop.eup %12517 }
0x4d78   :  { %8791 = vadd.xlane.f32.xlu0 %v8790_v22  ;;  %v8793_v63 = vsel %vm551_vm4, %v12518_v39, 0.0 }
0x4d7c   :  { %8794 = vadd.xlane.f32.xlu0 %v8793_v63 }
0x4d92   :  { %8057 = vrot.lane.b32.xlu0 %v14194_v62, %s14665_s26  ;;  %v8060_v62 = vpop.permute.xlu1 %8059 }
0x4d96   :  { %8073 = vrot.lane.b32.xlu0 %v14226_v7, %s14667_s24  ;;  %v8066_v42 = vpop.permute.xlu1 %8065  ;;  %v10031_v7 = vld [vmem:[%s14671_s7 + $0x78] sm:$0xff] }
0x4d97   :  { %v11777_v52 = vpack.c.bf16 %v10031_v7, %v10030_v8 }
0x4d9a   :  { %8889 = vrot.lane.b32.xlu0 %v14274_v40, %s14665_s26  ;;  %v8068_v16 = vpop.permute.xlu1 %8067  ;;  %s14679_s26 = sld [smem:[#allocation19_spill]] }
0x4d9e   :  { %8897 = vrot.lane.b32.xlu0 %v8678_v27, %s14666_s25  ;;  %v8076_v29 = vpop.permute.xlu1 %8075 }
0x4da2   :  { %v8892_v35 = vpop.permute.xlu1 %8891 }
0x4da6   :  { %v8900_v32 = vpop.permute.xlu1 %8899 }
0x4e05   :  { %v8792_v31 = vpop.xlane.xlu0 %8791 }
0x4e06   :  { %12519 = vrcp.f32 %v8792_v31  ;;  %v10041_v31 = vld [vmem:[%s14564_s14 + $0x70] sm:$0xff] }
0x4e09   :  { %v8795_v58 = vpop.xlane.xlu0 %8794 }
0x4e0a   :  { %12521 = vrcp.f32 %v8795_v58  ;;  %v10042_v58 = vld [vmem:[%s14564_s14 + $0x78] sm:$0xff] }
0x4e0d   :  { %v8058_v13 = vpop.permute.xlu0 %8057 }
0x4e0e   :  { %v8079_v40 = vsel %vm465_vm2, %v14190_v21, %v8058_v13  ;;  %v8080_v21 = vsel %vm465_vm2, %v14188_v44, %v8060_v62  ;;  %v11785_v13 = vpack.c.bf16 %v10042_v58, %v10041_v31 }
0x4e0f   :  { %v8081_v2 = vsel %vm551_vm4, %v8079_v40, %v8066_v42  ;;  %v8082_v50 = vsel %vm551_vm4, %v8080_v21, %v8068_v16 }
0x4e10   :  { %v12520_v59 = vpop.eup %12519  ;;  %v8084_v37 = vsel %vm1289_vm5, %v8082_v50, %v8076_v29 }
0x4e11   :  { %v8798_v10 = vmul.f32 %v12520_v59, %v12516_v19  ;;  %v8074_v51 = vpop.permute.xlu0 %8073 }
0x4e12   :  { %v8083_v5 = vsel %vm1289_vm5, %v8081_v2, %v8074_v51 }
0x4e13   :  { %11196 = vmatprep.mubr.msk.f32.mxu1 %vm551_vm4, %v8798_v10 }
0x4e14   :  { %v12522_v18 = vpop.eup %12521 }
0x4e15   :  { %v8799_v54 = vmul.f32 %v12522_v18, %v12518_v39  ;;  %v8890_v14 = vpop.permute.xlu0 %8889 }
0x4e16   :  { %v8911_v27 = vsel %vm465_vm2, %v14250_v57, %v8890_v14  ;;  %v10049_v14 = vld [vmem:[%s14567_s16 + $0xc8] sm:$0xff] }
0x4e17   :  { %11197 = vmatmul.mubr.msk.f32.vlgmr.msra.gmra.mrb[90].mxu1 %vm551_vm4, %v8799_v54 }
0x4e18   :  { %11776 = vmatpush3.bf16.msra.mxu1 %v11773_v48  ;;  %11207 = vmatprep.mubr.msk.f32.mxu1 %vm206_vm1, %v8083_v5 }
0x4e19   :  { %11778 = vmatprep.subr.bf16.mxu1 %v11777_v52  ;;  %v8898_v17 = vpop.permute.xlu0 %8897 }
0x4e1a   :  { %v8913_v56 = vsel %vm551_vm4, %v8911_v27, %v8898_v17  ;;  %v10050_v17 = vld [vmem:[%s14567_s16 + $0xd0] sm:$0xff]  ;;  %v10051_v27 = vld [vmem:[%s14567_s16 + $0xd8] sm:$0xff] }
0x4e1c   :  { %11780 = vmatpush3.bf16.msra.mxu1 %v11777_v52 }
0x4e1f   :  { %11208 = vmatmul.mubr.msk.f32.vlgmr.msra.gmra.mrb[92].mxu1 %vm206_vm1, %v8084_v37 }
0x4eea   :  { %v11198_v6 = vpop.f32.mrb[90].mxu1 }
0x4eeb   :  { %8907 = vrot.lane.b32.xlu1 %v11198_v6, %s14667_s24  ;;  %v8878_v34 = vpop.f32.mrb[91].mxu1 }
0x4eec   :  { %8905 = vrot.lane.b32.xlu0 %v8878_v34, %s14667_s24  ;;  %v10037_v34 = vld [vmem:[%s14565_s12 + $0x3] ss:$0 sm:$0xff]  ;;  %s14675_s12 = sld [smem:[#allocation15_spill]]  ;;  %s14680_s24 = sld [smem:[#allocation20_spill]] }
0x4ef2   :  { %v11209_v26 = vpop.f32.mrb[92].mxu1 }
0x4ef3   :  { %v9005_v25 = vpop.f32.mrb[93].mxu1  ;;  %v9011_v23 = vadd.f32 %v11209_v26, %v10032_v49 }
0x4ef4   :  { %v9006_v44 = vadd.f32 %v10032_v49, %v9005_v25 }
0x4ef5   :  { %v14353_v33 = vadd.f32 %v9011_v23, %v14051_v3  ;;  %v8912_v3 = vsel %vm465_vm2, %v14248_v60, %v8892_v35  ;;  %v10048_v35 = vld [vmem:[%s14567_s16 + $0xc0] sm:$0xff] }
0x4ef6   :  { %v14350_v55 = vadd.f32 %v9006_v44, %v14054_v11  ;;  %v8914_v28 = vsel %vm551_vm4, %v8912_v3, %v8900_v32  ;;  %v10038_v44 = vld [vmem:[%s14566_s13 + $0x3] ss:$0 sm:$0xff]  ;;  %v11789_v32 = vpack.c.bf16 %v10049_v14, %v10048_v35  ;;  %s14676_s13 = sld [smem:[#allocation16_spill]] }
0x4ef7   :  { %v9033_v9 = vsel %vm206_vm1, %v14353_v33, 0.0  ;;  %v10052_v3 = vld [vmem:[%s14567_s16 + $0xe0] sm:$0xff] }
0x4ef8   :  { %v9030_v46 = vsel %vm206_vm1, %v14350_v55, 0.0  ;;  %11790 = vmatprep.subr.bf16.mxu1 %v11789_v32 }
0x4ef9   :  { %11792 = vmatpush3.bf16.msra.mxu1 %v11789_v32 }
0x4f0b   :  { %9031 = vadd.xlane.f32.xlu0 %v9030_v46 }
0x4f0f   :  { %9034 = vadd.xlane.f32.xlu1 %v9033_v9 }
0x4f5d   :  { %v8908_v11 = vpop.permute.xlu1 %8907 }
0x4f5e   :  { %v8906_v20 = vpop.permute.xlu0 %8905  ;;  %v8916_v24 = vsel %vm1289_vm5, %v8914_v28, %v8908_v11  ;;  %v11793_v11 = vpack.c.bf16 %v10051_v27, %v10050_v17  ;;  %v10054_v28 = vld [vmem:[%s14567_s16 + $0xf0] sm:$0xff]  ;;  %v10060_v17 = vld [vmem:[%s14569_s17 + $0x3] ss:$0 sm:$0xff] }
0x4f5f   :  { %v8915_v30 = vsel %vm1289_vm5, %v8913_v56, %v8906_v20  ;;  %v10053_v56 = vld [vmem:[%s14567_s16 + $0xe8] sm:$0xff] }
0x4f60   :  { %11210 = vmatprep.mubr.msk.f32.mxu1 %vm206_vm1, %v8915_v30  ;;  %11794 = vmatprep.subr.bf16.mxu1 %v11793_v11  ;;  %v11797_v20 = vpack.c.bf16 %v10053_v56, %v10052_v3  ;;  %v10055_v30 = vld [vmem:[%s14567_s16 + $0xf8] sm:$0xff] }
0x4f61   :  { %11211 = vmatmul.mubr.msk.f32.gmra.mrb[94].mxu1 %vm206_vm1, %v8916_v24  ;;  %v11801_v24 = vpack.c.bf16 %v10055_v30, %v10054_v28 }
0x4f62   :  { %11796 = vmatpush3.bf16.msra.mxu1 %v11793_v11 }
0x4f63   :  { %11798 = vmatprep.subr.bf16.mxu1 %v11797_v20 }
0x4f66   :  { %11800 = vmatpush3.bf16.msra.mxu1 %v11797_v20 }
0x4f67   :  { %11802 = vmatprep.subr.bf16.mxu1 %v11801_v24 }
0x4f6a   :  { %11804 = vmatpush3.bf16.msra.mxu1 %v11801_v24 }
0x4f98   :  { %v9032_v36 = vpop.xlane.xlu0 %9031 }
0x4f99   :  { %v9042_v1 = vmul.f32 0.03125, %v9032_v36 }
0x4f9b   :  { %v9046_v22 = vsub.f32 %v14350_v55, %v9042_v1 }
0x4f9c   :  { %v9035_v38 = vpop.xlane.xlu1 %9034 }
0x4f9d   :  { %v9043_v12 = vmul.f32 0.03125, %v9035_v38  ;;  %v9050_v4 = vmul.f32 %v9046_v22, %v9046_v22 }
0x4f9f   :  { %v9047_v57 = vsub.f32 %v14353_v33, %v9043_v12  ;;  %v9054_v48 = vsel %vm206_vm1, %v9050_v4, 0.0  ;;  %v10043_v4 = vld [vmem:[%s14568_s15 + $0x3] ss:$0 sm:$0xff] }
0x4fa1   :  { %v9051_v53 = vmul.f32 %v9047_v57, %v9047_v57 }
0x4fa3   :  { %v9057_v60 = vsel %vm206_vm1, %v9051_v53, 0.0 }
0x4fa4   :  { %9058 = vadd.xlane.f32.xlu1 %v9057_v60 }
0x5031   :  { %v9059_v42 = vpop.xlane.xlu1 %9058 }
0x5032   :  { %v9067_v59 = vmul.f32 0.03125, %v9059_v42 }
0x5034   :  { %v11212_v45 = vpop.f32.mrb[94].mxu1  ;;  %v9071_v40 = vadd.f32 1e-05, %v9067_v59 }
0x5035   :  { %v9015_v61 = vpop.f32.mrb[95].mxu1  ;;  %v9021_v0 = vadd.f32 %v11212_v45, %v10032_v49 }
0x5036   :  { %v9016_v43 = vadd.f32 %v10032_v49, %v9015_v61  ;;  %12523 = vrsqrt.f32 %v9071_v40 }
0x5037   :  { %v14376_v39 = vadd.f32 %v9021_v0, %v14081_v41  ;;  %v10040_v41 = vld [vmem:[%s14564_s14 + $0x68] sm:$0xff] }
0x5038   :  { %v14372_v19 = vadd.f32 %v9016_v43, %v14084_v47  ;;  %v10039_v47 = vld [vmem:[%s14564_s14 + $0x60] sm:$0xff] }
0x5039   :  { %v9039_v15 = vsel %vm206_vm1, %v14376_v39, 0.0  ;;  %v11781_v62 = vpack.c.bf16 %v10040_v41, %v10039_v47 }
0x503a   :  { %v9036_v63 = vsel %vm206_vm1, %v14372_v19, 0.0 }
0x503b   :  { %9037 = vadd.xlane.f32.xlu0 %v9036_v63  ;;  %11782 = vmatprep.subr.bf16.mxu0 %v11781_v62 }
0x503c   :  { %11784 = vmatpush3.bf16.msra.mxu0 %v11781_v62 }
0x503d   :  { %11786 = vmatprep.subr.bf16.mxu0 %v11785_v13 }
0x503f   :  { %9040 = vadd.xlane.f32.xlu0 %v9039_v15 }
0x5040   :  { %11788 = vmatpush3.bf16.msra.mxu0 %v11785_v13  ;;  %v12524_v37 = vpop.eup %12523 }
0x5041   :  { %v9079_v6 = vmul.f32 %v12524_v37, %v9047_v57 }
0x5043   :  { %9055 = vadd.xlane.f32.xlu0 %v9054_v48  ;;  %v9087_v49 = vmul.f32 %v10037_v34, %v9079_v6 }
0x5045   :  { %v9095_v9 = vadd.f32 %v10038_v44, %v9087_v49 }
0x50c8   :  { %v9038_v10 = vpop.xlane.xlu0 %9037 }
0x50c9   :  { %v9044_v8 = vmul.f32 0.03125, %v9038_v10 }
0x50cb   :  { %v9048_v7 = vsub.f32 %v14372_v19, %v9044_v8 }
0x50cc   :  { %v9041_v18 = vpop.xlane.xlu0 %9040 }
0x50cd   :  { %v9045_v51 = vmul.f32 0.03125, %v9041_v18  ;;  %v9052_v16 = vmul.f32 %v9048_v7, %v9048_v7 }
0x50cf   :  { %v9049_v54 = vsub.f32 %v14376_v39, %v9045_v51  ;;  %v9060_v52 = vsel %vm206_vm1, %v9052_v16, 0.0  ;;  %v9344_v51 = vld [vmem:[%s14673_s9] sm:$0xff]  ;;  %v9345_v16 = vld [vmem:[%s14673_s9 + $0x8] sm:$0xff] }
0x50d0   :  { %9061 = vadd.xlane.f32.xlu0 %v9060_v52  ;;  %v9056_v2 = vpop.xlane.xlu0 %9055  ;;  %v9346_v52 = vld [vmem:[%s14673_s9 + $0x10] sm:$0xff] }
0x50d1   :  { %v9066_v5 = vmul.f32 0.03125, %v9056_v2  ;;  %v9053_v29 = vmul.f32 %v9049_v54, %v9049_v54  ;;  %v9347_v2 = vld [vmem:[%s14673_s9 + $0x18] sm:$0xff]  ;;  %s14681_s9 = sld [smem:[#allocation21_spill]] }
0x50d3   :  { %v9070_v21 = vadd.f32 1e-05, %v9066_v5  ;;  %v9063_v50 = vsel %vm206_vm1, %v9053_v29, 0.0  ;;  %v11809_v5 = vpack.c.bf16 %v9347_v2, %v9346_v52  ;;  %v9531_v2 = vld [vmem:[%s14675_s12 + $0x60] sm:$0xff] }
0x50d4   :  { %9064 = vadd.xlane.f32.xlu1 %v9063_v50 }
0x50d5   :  { %12525 = vrsqrt.f32 %v9070_v21 }
0x50df   :  { %v12526_v26 = vpop.eup %12525 }
0x50e0   :  { %v9078_v25 = vmul.f32 %v12526_v26, %v9046_v22 }
0x50e2   :  { %v9086_v23 = vmul.f32 %v10037_v34, %v9078_v25 }
0x50e4   :  { %v9094_v46 = vadd.f32 %v10038_v44, %v9086_v23 }
0x50e6   :  { %11221 = vmatprep.mubr.msk.f32.mxu0 %vm206_vm1, %v9094_v46 }
0x50e7   :  { %11222 = vmatmul.mubr.msk.f32.vlgmr.msra.gmra.mrb[92].mxu0 %vm206_vm1, %v9095_v9 }
0x515d   :  { %v9062_v38 = vpop.xlane.xlu0 %9061 }
0x515e   :  { %v9068_v12 = vmul.f32 0.03125, %v9062_v38 }
0x5160   :  { %v9072_v57 = vadd.f32 1e-05, %v9068_v12 }
0x5161   :  { %v9065_v53 = vpop.xlane.xlu1 %9064 }
0x5162   :  { %12527 = vrsqrt.f32 %v9072_v57  ;;  %v9069_v60 = vmul.f32 0.03125, %v9065_v53 }
0x5164   :  { %v9073_v36 = vadd.f32 1e-05, %v9069_v60 }
0x5166   :  { %12529 = vrsqrt.f32 %v9073_v36  ;;  %v9521_v36 = vld [vmem:[%s14675_s12 + $0x10] sm:$0xff] }
0x516c   :  { %v12528_v45 = vpop.eup %12527 }
0x516d   :  { %v9080_v61 = vmul.f32 %v12528_v45, %v9048_v7 }
0x516f   :  { %v9088_v1 = vmul.f32 %v10037_v34, %v9080_v61  ;;  %v9522_v61 = vld [vmem:[%s14675_s12 + $0x18] sm:$0xff] }
0x5170   :  { %v12530_v0 = vpop.eup %12529 }
0x5171   :  { %v9096_v43 = vadd.f32 %v10038_v44, %v9088_v1  ;;  %v9081_v22 = vmul.f32 %v12530_v0, %v9049_v54  ;;  %v11805_v54 = vpack.c.bf16 %v9345_v16, %v9344_v51  ;;  %v11817_v1 = vpack.c.bf16 %v9522_v61, %v9521_v36  ;;  %v9529_v16 = vld [vmem:[%s14675_s12 + $0x50] sm:$0xff] }
0x5173   :  { %11224 = vmatprep.mubr.msk.f32.mxu0 %vm206_vm1, %v9096_v43  ;;  %v9089_v63 = vmul.f32 %v10037_v34, %v9081_v22  ;;  %11806 = vmatprep.subr.bf16.mxu0 %v11805_v54 }
0x5174   :  { %11808 = vmatpush3.bf16.msra.mxu0 %v11805_v54  ;;  %v9530_v54 = vld [vmem:[%s14675_s12 + $0x58] sm:$0xff] }
0x5175   :  { %v9097_v15 = vadd.f32 %v10038_v44, %v9089_v63  ;;  %11810 = vmatprep.subr.bf16.mxu0 %v11809_v5  ;;  %v11833_v52 = vpack.c.bf16 %v9530_v54, %v9529_v16 }
0x5177   :  { %11225 = vmatmul.mubr.msk.f32.gmra.mrb[94].mxu0 %vm206_vm1, %v9097_v15 }
0x5178   :  { %11812 = vmatpush3.bf16.msra.mxu0 %v11809_v5  ;;  %v9532_v5 = vld [vmem:[%s14675_s12 + $0x68] sm:$0xff] }
0x51ba   :  { %v11223_v48 = vpop.f32.mrb[92].mxu0 }
0x51bb   :  { %v9192_v47 = vadd.f32 %v11223_v48, %v10043_v4  ;;  %v9186_v41 = vpop.f32.mrb[93].mxu0 }
0x51bc   :  { %v9187_v31 = vadd.f32 %v10043_v4, %v9186_v41 }
0x51bd   :  { %v9210_v62 = vmul.f32 0.70710677, %v9192_v47  ;;  %v9206_v7 = vmul.f32 0.5, %v9192_v47 }
0x51be   :  { %v9209_v58 = vmul.f32 0.70710677, %v9187_v31  ;;  %v9205_v10 = vmul.f32 0.5, %v9187_v31 }
0x51bf   :  { %12531 = verf.f32 %v9210_v62 }
0x51c0   :  { %12533 = verf.f32 %v9209_v58 }
0x51c9   :  { %v12532_v13 = vpop.eup %12531 }
0x51ca   :  { %v12534_v42 = vpop.eup %12533  ;;  %v9218_v59 = vadd.f32 1.0, %v12532_v13  ;;  %v9523_v13 = vld [vmem:[%s14675_s12 + $0x20] sm:$0xff] }
0x51cb   :  { %v9217_v8 = vadd.f32 1.0, %v12534_v42  ;;  %v9524_v42 = vld [vmem:[%s14675_s12 + $0x28] sm:$0xff] }
0x51cc   :  { %v9222_v18 = vmul.f32 %v9218_v59, %v9206_v7  ;;  %v11821_v59 = vpack.c.bf16 %v9524_v42, %v9523_v13 }
0x51cd   :  { %v9221_v40 = vmul.f32 %v9217_v8, %v9205_v10  ;;  %v9525_v10 = vld [vmem:[%s14675_s12 + $0x30] sm:$0xff]  ;;  %v9526_v8 = vld [vmem:[%s14675_s12 + $0x38] sm:$0xff] }
0x51ce   :  { %v11825_v7 = vpack.c.bf16 %v9526_v8, %v9525_v10 }
0x51cf   :  { %11243 = vmatprep.mubr.msk.f32.mxu1 %vm2438_vm6, %v9221_v40  ;;  %v9527_v40 = vld [vmem:[%s14675_s12 + $0x40] sm:$0xff] }
0x51d0   :  { %11244 = vmatmul.mubr.msk.f32.vlgmr.msra.gmra.mrb[96].mxu1 %vm2438_vm6, %v9222_v18  ;;  %v9528_v18 = vld [vmem:[%s14675_s12 + $0x48] sm:$0xff] }
0x51d1   :  { %v11829_v51 = vpack.c.bf16 %v9528_v18, %v9527_v40 }
0x524a   :  { %v11226_v29 = vpop.f32.mrb[94].mxu0 }
0x524b   :  { %v9202_v21 = vadd.f32 %v11226_v29, %v10043_v4  ;;  %v9196_v50 = vpop.f32.mrb[95].mxu0  ;;  %v11837_v29 = vpack.c.bf16 %v9532_v5, %v9531_v2 }
0x524c   :  { %v9197_v37 = vadd.f32 %v10043_v4, %v9196_v50  ;;  %v9534_v50 = vld [vmem:[%s14675_s12 + $0x78] sm:$0xff] }
0x524d   :  { %v9212_v6 = vmul.f32 0.70710677, %v9202_v21  ;;  %v9208_v46 = vmul.f32 0.5, %v9202_v21  ;;  %v9533_v21 = vld [vmem:[%s14675_s12 + $0x70] sm:$0xff] }
0x524e   :  { %v9211_v34 = vmul.f32 0.70710677, %v9197_v37  ;;  %v9207_v44 = vmul.f32 0.5, %v9197_v37  ;;  %v11841_v37 = vpack.c.bf16 %v9534_v50, %v9533_v21 }
0x524f   :  { %12535 = verf.f32 %v9212_v6 }
0x5250   :  { %12537 = verf.f32 %v9211_v34 }
0x5259   :  { %v12536_v26 = vpop.eup %12535 }
0x525a   :  { %v12538_v25 = vpop.eup %12537  ;;  %v9220_v49 = vadd.f32 1.0, %v12536_v26 }
0x525b   :  { %v9219_v23 = vadd.f32 1.0, %v12538_v25 }
0x525c   :  { %v9224_v35 = vmul.f32 %v9220_v49, %v9208_v46 }
0x525d   :  { %v9223_v9 = vmul.f32 %v9219_v23, %v9207_v44 }
0x525f   :  { %11246 = vmatprep.mubr.msk.f32.mxu1 %vm2438_vm6, %v9223_v9 }
0x5260   :  { %11247 = vmatmul.mubr.msk.f32.gmra.mrb[98].mxu1 %vm2438_vm6, %v9224_v35 }
0x52a3   :  { %v11245_v14 = vpop.f32.mrb[96].mxu1 }
0x52a4   :  { %v9332_v32 = vadd.f32 %v11245_v14, %v14353_v33  ;;  %v9312_v27 = vpop.f32.mrb[97].mxu1 }
0x52a5   :  { %v9331_v11 = vadd.f32 %v9312_v27, %v14350_v55  ;;  %v10061_v55 = vld [vmem:[%s14674_s4] ss:$0 sm:$0xff] }
0x52a6   :  { %v9341_v56 = vadd.f32 %v10060_v17, %v9332_v32 }
0x52a7   :  { %v9340_v3 = vadd.f32 %v10060_v17, %v9331_v11 }
0x52a9   :  { %11257 = vmatprep.mubr.msk.f32.mxu0 %vm206_vm1, %v9340_v3  ;;  %v10066_v3 = vld [vmem:[%s14676_s13] ss:$0 sm:$0xff] }
0x52aa   :  { %11258 = vmatmul.mubr.msk.f32.vlgmr.msra.gmra.mrb[96].mxu0 %vm206_vm1, %v9341_v56 }
0x5333   :  { %v11248_v20 = vpop.f32.mrb[98].mxu1 }
0x5334   :  { %v9334_v28 = vadd.f32 %v11248_v20, %v14376_v39  ;;  %v9322_v30 = vpop.f32.mrb[99].mxu1  ;;  %v9520_v39 = vld [vmem:[%s14675_s12 + $0x8] sm:$0xff] }
0x5335   :  { %v9333_v24 = vadd.f32 %v9322_v30, %v14372_v19  ;;  %v9519_v19 = vld [vmem:[%s14675_s12] sm:$0xff] }
0x5336   :  { %v9343_v38 = vadd.f32 %v10060_v17, %v9334_v28  ;;  %v11813_v45 = vpack.c.bf16 %v9520_v39, %v9519_v19  ;;  %v10067_v30 = vld [vmem:[%s14677_s8] ss:$0 sm:$0xff] }
0x5337   :  { %v9342_v33 = vadd.f32 %v10060_v17, %v9333_v24 }
0x5338   :  { %11814 = vmatprep.subr.bf16.mxu0 %v11813_v45 }
0x5339   :  { %11260 = vmatprep.mubr.msk.f32.mxu0 %vm206_vm1, %v9342_v33  ;;  %11816 = vmatpush3.bf16.msra.mxu0 %v11813_v45 }
0x533a   :  { %11261 = vmatmul.mubr.msk.f32.gmra.mrb[98].mxu0 %vm206_vm1, %v9343_v38  ;;  %11818 = vmatprep.subr.bf16.mxu0 %v11817_v1 }
0x533d   :  { %11820 = vmatpush3.bf16.msra.mxu0 %v11817_v1 }
0x533e   :  { %11822 = vmatprep.subr.bf16.mxu0 %v11821_v59 }
0x5341   :  { %11824 = vmatpush3.bf16.msra.mxu0 %v11821_v59 }
0x5342   :  { %11826 = vmatprep.subr.bf16.mxu0 %v11825_v7 }
0x5345   :  { %11828 = vmatpush3.bf16.msra.mxu0 %v11825_v7 }
0x5346   :  { %11830 = vmatprep.subr.bf16.mxu0 %v11829_v51 }
0x5349   :  { %11832 = vmatpush3.bf16.msra.mxu0 %v11829_v51 }
0x534a   :  { %11834 = vmatprep.subr.bf16.mxu0 %v11833_v52 }
0x534d   :  { %11836 = vmatpush3.bf16.msra.mxu0 %v11833_v52 }
0x534e   :  { %11838 = vmatprep.subr.bf16.mxu0 %v11837_v29 }
0x5351   :  { %11840 = vmatpush3.bf16.msra.mxu0 %v11837_v29 }
0x5352   :  { %11842 = vmatprep.subr.bf16.mxu0 %v11841_v37 }
0x5355   :  { %11844 = vmatpush3.bf16.msra.mxu0 %v11841_v37 }
0x537d   :  { %v11259_v12 = vpop.f32.mrb[96].mxu0 }
0x537e   :  { %v9439_v57 = vadd.f32 %v11259_v12, %v10061_v55  ;;  %v9433_v53 = vpop.f32.mrb[97].mxu0 }
0x537f   :  { %v9434_v60 = vadd.f32 %v10061_v55, %v9433_v53 }
0x5380   :  { %9456 = vadd.xlane.f32.xlu1 %v9439_v57 }
0x5381   :  { %9454 = vadd.xlane.f32.xlu0 %v9434_v60 }
0x540d   :  { %v9457_v0 = vpop.xlane.xlu1 %9456  ;;  %v11262_v43 = vpop.f32.mrb[98].mxu0 }
0x540e   :  { %v9464_v22 = vmul.f32 0.0078125, %v9457_v0  ;;  %v9449_v63 = vadd.f32 %v11262_v43, %v10061_v55  ;;  %v9455_v15 = vpop.xlane.xlu0 %9454  ;;  %v9443_v4 = vpop.f32.mrb[99].mxu0 }
0x540f   :  { %v9463_v48 = vmul.f32 0.0078125, %v9455_v15  ;;  %v9444_v47 = vadd.f32 %v10061_v55, %v9443_v4  ;;  %v10068_v15 = vld [vmem:[%s14678_s3] ss:$0 sm:$0xff] }
0x5410   :  { %v9468_v41 = vsub.f32 %v9439_v57, %v9464_v22  ;;  %9460 = vadd.xlane.f32.xlu1 %v9449_v63 }
0x5411   :  { %v9467_v31 = vsub.f32 %v9434_v60, %v9463_v48  ;;  %9458 = vadd.xlane.f32.xlu0 %v9444_v47 }
0x5412   :  { %v9472_v62 = vmul.f32 %v9468_v41, %v9468_v41 }
0x5413   :  { %v9471_v58 = vmul.f32 %v9467_v31, %v9467_v31 }
0x5414   :  { %9477 = vadd.xlane.f32.xlu1 %v9472_v62 }
0x5415   :  { %9475 = vadd.xlane.f32.xlu0 %v9471_v58 }
0x549d   :  { %v9461_v6 = vpop.xlane.xlu1 %9460 }
0x549e   :  { %v9466_v34 = vmul.f32 0.0078125, %v9461_v6  ;;  %v9459_v26 = vpop.xlane.xlu0 %9458 }
0x549f   :  { %v9465_v25 = vmul.f32 0.0078125, %v9459_v26 }
0x54a0   :  { %v9470_v49 = vsub.f32 %v9449_v63, %v9466_v34 }
0x54a1   :  { %v9469_v44 = vsub.f32 %v9444_v47, %v9465_v25  ;;  %v9478_v23 = vpop.xlane.xlu1 %9477 }
0x54a2   :  { %v9484_v46 = vmul.f32 0.0078125, %v9478_v23  ;;  %v9476_v9 = vpop.xlane.xlu0 %9475  ;;  %v9474_v35 = vmul.f32 %v9470_v49, %v9470_v49 }
0x54a3   :  { %v9483_v14 = vmul.f32 0.0078125, %v9476_v9  ;;  %v9473_v32 = vmul.f32 %v9469_v44, %v9469_v44 }
0x54a4   :  { %v9488_v17 = vadd.f32 1e-05, %v9484_v46  ;;  %9481 = vadd.xlane.f32.xlu1 %v9474_v35 }
0x54a5   :  { %v9487_v27 = vadd.f32 1e-05, %v9483_v14  ;;  %9479 = vadd.xlane.f32.xlu0 %v9473_v32 }
0x54a6   :  { %12539 = vrsqrt.f32 %v9488_v17 }
0x54a7   :  { %12541 = vrsqrt.f32 %v9487_v27 }
0x54b0   :  { %v12540_v11 = vpop.eup %12539 }
0x54b1   :  { %v12542_v56 = vpop.eup %12541  ;;  %v9496_v20 = vmul.f32 %v12540_v11, %v9468_v41  ;;  %v10069_v11 = vld [vmem:[%s14679_s26] ss:$0 sm:$0xff] }
0x54b2   :  { %v9495_v28 = vmul.f32 %v12542_v56, %v9467_v31 }
0x54b3   :  { %v9506_v24 = vmul.f32 %v10066_v3, %v9496_v20  ;;  %v10070_v20 = vld [vmem:[%s14680_s24] ss:$0 sm:$0xff] }
0x54b4   :  { %v9505_v33 = vmul.f32 %v10066_v3, %v9495_v28 }
0x54b5   :  { %v9516_v55 = vadd.f32 %v10067_v30, %v9506_v24 }
0x54b6   :  { %v9515_v38 = vadd.f32 %v10067_v30, %v9505_v33 }
0x54b8   :  { %11295 = vmatprep.mubr.f32.mxu0 %v9515_v38 }
0x54b9   :  { %11296 = vmatmul.mubr.f32.vlgmr.msra.gmra.mrb[100].mxu0 %v9516_v55 }
0x5531   :  { %v9482_v12 = vpop.xlane.xlu1 %9481 }
0x5532   :  { %v9486_v57 = vmul.f32 0.0078125, %v9482_v12  ;;  %v9480_v53 = vpop.xlane.xlu0 %9479 }
0x5533   :  { %v9485_v60 = vmul.f32 0.0078125, %v9480_v53 }
0x5534   :  { %v9490_v19 = vadd.f32 1e-05, %v9486_v57 }
0x5535   :  { %v9489_v39 = vadd.f32 1e-05, %v9485_v60 }
0x5536   :  { %12543 = vrsqrt.f32 %v9490_v19 }
0x5537   :  { %12545 = vrsqrt.f32 %v9489_v39 }
0x5540   :  { %v12544_v36 = vpop.eup %12543 }
0x5541   :  { %v12546_v45 = vpop.eup %12545  ;;  %v9498_v61 = vmul.f32 %v12544_v36, %v9470_v49 }
0x5542   :  { %v9497_v1 = vmul.f32 %v12546_v45, %v9469_v44 }
0x5543   :  { %v9508_v0 = vmul.f32 %v10066_v3, %v9498_v61 }
0x5544   :  { %v9507_v43 = vmul.f32 %v10066_v3, %v9497_v1 }
0x5545   :  { %v9518_v63 = vadd.f32 %v10067_v30, %v9508_v0 }
0x5546   :  { %v9517_v22 = vadd.f32 %v10067_v30, %v9507_v43 }
0x5548   :  { %11298 = vmatprep.mubr.f32.mxu0 %v9517_v22 }
0x5549   :  { %11299 = vmatmul.mubr.f32.gmra.mrb[102].mxu0 %v9518_v63 }
0x558c   :  { %v11297_v4 = vpop.f32.mrb[100].mxu0 }
0x558d   :  { %v9614_v48 = vadd.f32 %v11297_v4, %v10068_v15  ;;  %v9608_v47 = vpop.f32.mrb[101].mxu0 }
0x558e   :  { %v9609_v41 = vadd.f32 %v10068_v15, %v9608_v47 }
0x558f   :  { %v9632_v31 = vsel %vm106_vm0, %v9614_v48, 0.0 }
0x5590   :  { %9633 = vadd.xlane.f32.xlu1 %v9632_v31  ;;  %v9629_v62 = vsel %vm106_vm0, %v9609_v41, 0.0 }
0x5591   :  { %9630 = vadd.xlane.f32.xlu0 %v9629_v62 }
0x561c   :  { %v11300_v58 = vpop.f32.mrb[102].mxu0 }
0x561d   :  { %v9624_v13 = vadd.f32 %v11300_v58, %v10068_v15  ;;  %v9634_v42 = vpop.xlane.xlu1 %9633  ;;  %v9618_v59 = vpop.f32.mrb[103].mxu0 }
0x561e   :  { %v9643_v10 = vmul.f32 0.010416667, %v9634_v42  ;;  %v9619_v8 = vadd.f32 %v10068_v15, %v9618_v59  ;;  %v9631_v7 = vpop.xlane.xlu0 %9630 }
0x561f   :  { %v9642_v40 = vmul.f32 0.010416667, %v9631_v7  ;;  %v9638_v18 = vsel %vm106_vm0, %v9624_v13, 0.0 }
0x5620   :  { %v9647_v51 = vsub.f32 %v9614_v48, %v9643_v10  ;;  %9639 = vadd.xlane.f32.xlu1 %v9638_v18  ;;  %v9635_v16 = vsel %vm106_vm0, %v9619_v8, 0.0 }
0x5621   :  { %v9646_v54 = vsub.f32 %v9609_v41, %v9642_v40  ;;  %9636 = vadd.xlane.f32.xlu0 %v9635_v16 }
0x5622   :  { %v9651_v52 = vmul.f32 %v9647_v51, %v9647_v51 }
0x5623   :  { %v9650_v2 = vmul.f32 %v9646_v54, %v9646_v54 }
0x5624   :  { %v9657_v5 = vsel %vm106_vm0, %v9651_v52, 0.0 }
0x5625   :  { %9658 = vadd.xlane.f32.xlu1 %v9657_v5  ;;  %v9654_v29 = vsel %vm106_vm0, %v9650_v2, 0.0 }
0x5626   :  { %9655 = vadd.xlane.f32.xlu0 %v9654_v29 }
0x56ad   :  { %v9640_v21 = vpop.xlane.xlu1 %9639 }
0x56ae   :  { %v9645_v50 = vmul.f32 0.010416667, %v9640_v21  ;;  %v9637_v37 = vpop.xlane.xlu0 %9636 }
0x56af   :  { %v9644_v6 = vmul.f32 0.010416667, %v9637_v37 }
0x56b0   :  { %v9649_v34 = vsub.f32 %v9624_v13, %v9645_v50 }
0x56b1   :  { %v9648_v26 = vsub.f32 %v9619_v8, %v9644_v6 }
0x56b2   :  { %v9659_v25 = vpop.xlane.xlu1 %9658  ;;  %v9653_v49 = vmul.f32 %v9649_v34, %v9649_v34 }
0x56b3   :  { %v9667_v44 = vmul.f32 0.010416667, %v9659_v25  ;;  %v9656_v23 = vpop.xlane.xlu0 %9655  ;;  %v9652_v46 = vmul.f32 %v9648_v26, %v9648_v26 }
0x56b4   :  { %v9666_v9 = vmul.f32 0.010416667, %v9656_v23  ;;  %v9663_v35 = vsel %vm106_vm0, %v9653_v49, 0.0 }
0x56b5   :  { %v9671_v14 = vadd.f32 1e-05, %v9667_v44  ;;  %9664 = vadd.xlane.f32.xlu1 %v9663_v35  ;;  %v9660_v32 = vsel %vm106_vm0, %v9652_v46, 0.0 }
0x56b6   :  { %v9670_v17 = vadd.f32 1e-05, %v9666_v9  ;;  %9661 = vadd.xlane.f32.xlu0 %v9660_v32 }
0x56b7   :  { %12547 = vrsqrt.f32 %v9671_v14 }
0x56b8   :  { %12549 = vrsqrt.f32 %v9670_v17 }
0x56c1   :  { %v12548_v27 = vpop.eup %12547 }
0x56c2   :  { %v12550_v3 = vpop.eup %12549  ;;  %v9679_v56 = vmul.f32 %v12548_v27, %v9647_v51 }
0x56c3   :  { %v9678_v28 = vmul.f32 %v12550_v3, %v9646_v54 }
0x56c4   :  { %v9689_v30 = vmul.f32 %v10069_v11, %v9679_v56 }
0x56c5   :  { %v9688_v24 = vmul.f32 %v10069_v11, %v9678_v28 }
0x56c6   :  { %v9699_v33 = vadd.f32 %v10070_v20, %v9689_v30 }
0x56c7   :  { %v9698_v38 = vadd.f32 %v10070_v20, %v9688_v24 }
0x56c8   :  { %9703 = vst.msk [vmem:[%s14681_s9 + $0x8] sm:$0xff] %vm106_vm0, %v9699_v33 }
0x56c9   :  { %9702 = vst.msk [vmem:[%s14681_s9] sm:$0xff] %vm106_vm0, %v9698_v38 }
0x5742   :  { %v9665_v55 = vpop.xlane.xlu1 %9664 }
0x5743   :  { %v9669_v12 = vmul.f32 0.010416667, %v9665_v55  ;;  %v9662_v57 = vpop.xlane.xlu0 %9661 }
0x5744   :  { %v9668_v53 = vmul.f32 0.010416667, %v9662_v57 }
0x5745   :  { %v9673_v60 = vadd.f32 1e-05, %v9669_v12 }
0x5746   :  { %v9672_v19 = vadd.f32 1e-05, %v9668_v53 }
0x5747   :  { %12551 = vrsqrt.f32 %v9673_v60 }
0x5748   :  { %12553 = vrsqrt.f32 %v9672_v19 }
0x5751   :  { %v12552_v39 = vpop.eup %12551 }
0x5752   :  { %v12554_v36 = vpop.eup %12553  ;;  %v9681_v45 = vmul.f32 %v12552_v39, %v9649_v34 }
0x5753   :  { %v9680_v61 = vmul.f32 %v12554_v36, %v9648_v26 }
0x5754   :  { %v9691_v1 = vmul.f32 %v10069_v11, %v9681_v45 }
0x5755   :  { %v9690_v0 = vmul.f32 %v10069_v11, %v9680_v61 }
0x5756   :  { %v9701_v43 = vadd.f32 %v10070_v20, %v9691_v1 }
0x5757   :  { %v9700_v22 = vadd.f32 %v10070_v20, %v9690_v0 }
0x5758   :  { %9705 = vst.msk [vmem:[%s14681_s9 + $0x18] sm:$0xff] %vm106_vm0, %v9701_v43 }
0x5759   :  { %9704 = vst.msk [vmem:[%s14681_s9 + $0x10] sm:$0xff] %vm106_vm0, %v9700_v22 }

</bundles_post_ra>
